<compile_context>
chip_gen: v5e
topology: v5e:2x2
jax: 0.10.0
libtpu: 0.0.40
codegen_flags: <defaults>
</compile_context>

<pallas_src>
import functools
import math

import numpy as np
import jax
import jax.numpy as jnp
from jax.experimental import pallas as pl
from jax.experimental.pallas import tpu as pltpu

# ----------------------------- config ---------------------------------------
C_CONDS = (8, 8, 8)            # positional-encoding channels per level (div by 4)
PARALLEL_BLOCKS = (2, 2, 2)    # coupling blocks per parallel flow
CLAMP_ALPHA = 1.9
HIDDEN = 16                    # subnet hidden channels
EXTRACTOR_CHANS = [3, 8, 8, 16, 32]   # stem + 3 levels -> out_channels [8,16,32]
IMG_SIZE = 64


# ----------------------------- Pallas kernels -------------------------------
def _extractor_kernel(*refs, n_convs):
    """Fused frozen extractor: n_convs stride-2 3x3 conv + ReLU layers, one sample.

    refs = [x_rlf] + [T_k, S_k, b_k] * n_convs + [h_out_1 .. h_out_{n_convs-1}]
    Each conv:  out = relu( sum_dy S_dy @ (X @ T_dy) + bias_row ).
    """
    x = refs[0][0]                                          # (H, W*Cin) RLF
    feats = []
    for k in range(n_convs):
        t_ref = refs[1 + 3 * k]
        s_ref = refs[2 + 3 * k]
        b_ref = refs[3 + 3 * k]
        acc = None
        for dy in range(3):
            p = jnp.dot(x, t_ref[dy], preferred_element_type=jnp.float32)
            q = jnp.dot(s_ref[dy], p, preferred_element_type=jnp.float32)
            acc = q if acc is None else acc + q
        x = jnp.maximum(acc + b_ref[...], 0.0)
        feats.append(x)
    out_refs = refs[1 + 3 * n_convs:]
    for h_ref, f in zip(out_refs, feats[1:]):               # levels = conv outs 1..n-1
        h_ref[0] = f


def _level_flow_kernel(h_ref, tp_ref, sp_ref, s1_ref, t1_ref, cb1_ref, t2_ref, b2_ref,
                       sely2_ref, m1_ref, m2_ref, mf_ref, z_ref, jac_ref,
                       *, n_blocks, clamp, wpc2):
    """One feature level, fully fused per sample:
       AvgPool2d(3,2,1) -> n_blocks conditional affine-coupling blocks -> fusion 1x1
       channel mixing, plus per-sample log-det accumulation.  All VMEM-resident."""
    h = h_ref[0]                                            # (Hl, Wl*C)

    # AvgPool2d(3, 2, 1), count_include_pad=True
    hp = jnp.dot(h, tp_ref[...], preferred_element_type=jnp.float32)
    x = None
    for dy in range(3):
        q = jnp.dot(sp_ref[dy], hp, preferred_element_type=jnp.float32)
        x = q if x is None else x + q                       # state (Hp, Wp*C)

    jac = jnp.zeros((1, 1), jnp.float32)
    for blk in range(n_blocks):
        # subnet conv1: reads the y1 half of the state (channel selection folded into T1);
        # positional-encoding condition and bias are folded into the constant cb1.
        acc = None
        for dy in range(3):
            p = jnp.dot(x, t1_ref[blk, dy], preferred_element_type=jnp.float32)
            q = jnp.dot(s1_ref[dy], p, preferred_element_type=jnp.float32)
            acc = q if acc is None else acc + q
        hid = jnp.maximum(acc + cb1_ref[blk], 0.0)          # (Hp, Wp*HIDDEN)

        # subnet conv2 -> (s | t), columns already regrouped so s is the first wpc2 lanes
        acc = None
        for dy in range(3):
            p = jnp.dot(hid, t2_ref[blk, dy], preferred_element_type=jnp.float32)
            q = jnp.dot(s1_ref[dy], p, preferred_element_type=jnp.float32)
            acc = q if acc is None else acc + q
        st = acc + b2_ref[blk]                              # (Hp, 2*Wp*C2)

        # TODO(synk): FrEIA AllInOneBlock uses an ATAN soft clamp; tanh is used here.
        s = clamp * jnp.tanh(st[:, :wpc2])
        t = st[:, wpc2:]
        y2 = jnp.dot(x, sely2_ref[...], preferred_element_type=jnp.float32)
        z2 = y2 * jnp.exp(s) + t
        jac = jac + jnp.sum(jnp.sum(s, axis=1, keepdims=True), axis=0, keepdims=True)

        # new state = [y1, z2]; the fixed channel roll/placement is a constant 0/1 matmul.
        # TODO(synk): FrEIA uses a fixed random permutation + global affine terms; a fixed
        #             channel roll with no extra Jacobian terms is used here (as before).
        x = (jnp.dot(x, m1_ref[...], preferred_element_type=jnp.float32)
             + jnp.dot(z2, m2_ref[...], preferred_element_type=jnp.float32))

    # TODO(synk): real MSFlow fusion flow is a cross-scale FrEIA graph; simplified to a
    #             per-scale invertible 1x1 channel mixing (block-diagonal constant matrix).
    zf = jnp.dot(x, mf_ref[...], preferred_element_type=jnp.float32)
    z_ref[0] = zf
    jac_ref[0] = jnp.broadcast_to(jac, (1, 128))            # lane-dense jac store


# ----------------------------- pallas_call wrappers --------------------------
def _const_spec(arr):
    n = arr.ndim
    return pl.BlockSpec(arr.shape, lambda b, _n=n: (0,) * _n)


def run_extractor(x_rlf, ext):
    """x_rlf: (B, H, W*3) RLF image -> 3 feature levels, RLF, lane width 128 each."""
    B, H, WC = x_rlf.shape
    n_convs = len(ext)
    in_specs = [pl.BlockSpec((1, H, WC), lambda b: (b, 0, 0))]
    args = [x_rlf]
    for conv in ext:
        for key in ("T", "S", "b"):
            a = conv[key]
            in_specs.append(_const_spec(a))
            args.append(a)
    out_shapes, out_specs = [], []
    for conv in ext[1:]:
        Ho, No = conv["Hout"], conv["Wout"] * conv["Cout"]
        out_shapes.append(jax.ShapeDtypeStruct((B, Ho, No), jnp.float32))
        out_specs.append(pl.BlockSpec((1, Ho, No), lambda b: (b, 0, 0)))
    return pl.pallas_call(
        functools.partial(_extractor_kernel, n_convs=n_convs),
        out_shape=tuple(out_shapes),
        grid=(B,),
        in_specs=in_specs,
        out_specs=tuple(out_specs),
        compiler_params=pltpu.CompilerParams(dimension_semantics=("parallel",)),
    )(*args)


def run_level(h_rlf, lp):
    """h_rlf: (B, Hl, Wl*C) RLF feature level -> (z RLF (B,Hp,Wp*C), jac (B,1,128))."""
    B, Hl, WlC = h_rlf.shape
    Hp, Wp, C, C2 = lp["Hp"], lp["Wp"], lp["C"], lp["C2"]
    WpC = Wp * C
    const_keys = ("Tp", "Sp", "S1", "T1", "CB1", "T2", "B2", "SELY2", "M1", "M2", "MF")
    consts = [lp[k] for k in const_keys]
    in_specs = [pl.BlockSpec((1, Hl, WlC), lambda b: (b, 0, 0))]
    in_specs += [_const_spec(a) for a in consts]
    kernel = functools.partial(_level_flow_kernel,
                               n_blocks=int(lp["T1"].shape[0]),
                               clamp=CLAMP_ALPHA,
                               wpc2=Wp * C2)
    z, jac = pl.pallas_call(
        kernel,
        out_shape=(jax.ShapeDtypeStruct((B, Hp, WpC), jnp.float32),
                   jax.ShapeDtypeStruct((B, 1, 128), jnp.float32)),
        grid=(B,),
        in_specs=in_specs,
        out_specs=(pl.BlockSpec((1, Hp, WpC), lambda b: (b, 0, 0)),
                   pl.BlockSpec((1, 1, 128), lambda b: (b, 0, 0))),
        compiler_params=pltpu.CompilerParams(dimension_semantics=("parallel",)),
    )(h_rlf, *consts)
    return z, jac


# ----------------------------- full forward ----------------------------------
def msflow_forward(params, image):
    """image: NCHW (B,3,H,W) -> {'z_list': [NCHW z per level], 'jac': (B,)}"""
    B, Cin, H, W = image.shape
    x = jnp.transpose(image, (0, 2, 3, 1)).astype(jnp.float32)   # NHWC
    x_rlf = x.reshape(B, H, W * Cin)                             # RLF (free reshape)

    h_list = run_extractor(x_rlf, params["extractor"])           # 3 levels, RLF

    z_list, jacs = [], []
    for h, lp in zip(h_list, params["levels"]):
        z_rlf, jac_pad = run_level(h, lp)
        Hp, Wp, C = lp["Hp"], lp["Wp"], lp["C"]
        z = jnp.transpose(z_rlf.reshape(B, Hp, Wp, C), (0, 3, 1, 2))   # back to NCHW
        z_list.append(z)
        jacs.append(jac_pad[:, 0, 0])

    # fusion log-det is a host-side constant (precomputed slogdet at init)
    jac = sum(jacs) + jnp.float32(params["fusion_logdet"])
    return {"z_list": z_list, "jac": jac}


# ----------------------------- constant-matrix builders (numpy, init-time) ---
def build_stride2_conv_mats(w, b, Hin, Win):
    """3x3 stride-2 pad-1 conv as  sum_dy S_dy @ (X @ T_dy) + bias_row  on RLF maps."""
    Cin, Cout = w.shape[2], w.shape[3]
    Hout, Wout = Hin // 2, Win // 2
    T = np.zeros((3, Win * Cin, Wout * Cout), np.float32)
    S = np.zeros((3, Hout, Hin), np.float32)
    for dy in range(3):
        for i in range(Hout):
            r = 2 * i + dy - 1
            if 0 <= r < Hin:
                S[dy, i, r] = 1.0
        for dx in range(3):
            for jo in range(Wout):
                cc = 2 * jo + dx - 1
                if 0 <= cc < Win:
                    T[dy, cc * Cin:(cc + 1) * Cin, jo * Cout:(jo + 1) * Cout] += w[dy, dx]
    brow = np.tile(b, Wout)[None, :].astype(np.float32)
    return T, S, brow


def build_pool_mats(Hl, Wl, C):
    """AvgPool2d(3,2,1), count_include_pad=True:  pooled = sum_dy S_dy @ (X @ T)."""
    Hp, Wp = Hl // 2, Wl // 2
    T = np.zeros((Wl * C, Wp * C), np.float32)
    S = np.zeros((3, Hp, Hl), np.float32)
    for dx in range(3):
        for j in range(Wp):
            cj = 2 * j + dx - 1
            if 0 <= cj < Wl:
                for c in range(C):
                    T[cj * C + c, j * C + c] += 1.0 / 9.0
    for dy in range(3):
        for i in range(Hp):
            r = 2 * i + dy - 1
            if 0 <= r < Hl:
                S[dy, i, r] = 1.0
    return T, S


def build_s1_rowsel(Hp):
    """Stride-1 pad-1 row-selection matrices (zero rows where the tap hits the pad)."""
    S = np.zeros((3, Hp, Hp), np.float32)
    for dy in range(3):
        for i in range(Hp):
            r = i + dy - 1
            if 0 <= r < Hp:
                S[dy, i, r] = 1.0
    return S


def build_flow_conv1_T(w1, Wp, C, C1, C2):
    """Subnet conv1 Toeplitz; reads the y1 channels ([C2:C] of the state) only."""
    HID = w1.shape[3]
    T = np.zeros((3, Wp * C, Wp * HID), np.float32)
    for dy in range(3):
        for dx in range(3):
            for j in range(Wp):
                cj = j + dx - 1
                if 0 <= cj < Wp:
                    T[dy, cj * C + C2: cj * C + C, j * HID:(j + 1) * HID] += w1[dy, dx, :C1, :]
    return T


def build_flow_conv1_condbias(w1, b1, cond, Hp, Wp, C1):
    """Constant (Hp, Wp*HID) term: conv of the positional-encoding condition + bias."""
    HID = w1.shape[3]
    cc = cond.shape[2]
    cond_pad = np.zeros((Hp + 2, Wp + 2, cc), np.float32)
    cond_pad[1:Hp + 1, 1:Wp + 1] = cond
    CB = np.zeros((Hp, Wp, HID), np.float32)
    for dy in range(3):
        for dx in range(3):
            CB += np.einsum('ijk,ko->ijo',
                            cond_pad[dy:dy + Hp, dx:dx + Wp, :],
                            w1[dy, dx, C1:, :]).astype(np.float32)
    CB += b1[None, None, :]
    return CB.reshape(Hp, Wp * HID).astype(np.float32)


def build_flow_conv2_T(w2, b2, Wp, C2):
    """Subnet conv2 Toeplitz; output columns regrouped as [all s | all t]."""
    HID = w2.shape[2]
    T = np.zeros((3, Wp * HID, 2 * Wp * C2), np.float32)
    for dy in range(3):
        for dx in range(3):
            for j in range(Wp):
                cj = j + dx - 1
                if 0 <= cj < Wp:
                    T[dy, cj * HID:(cj + 1) * HID, j * C2:(j + 1) * C2] += w2[dy, dx, :, :C2]
                    T[dy, cj * HID:(cj + 1) * HID,
                      Wp * C2 + j * C2: Wp * C2 + (j + 1) * C2] += w2[dy, dx, :, C2:]
    B2 = np.zeros((1, 2 * Wp * C2), np.float32)
    for j in range(Wp):
        B2[0, j * C2:(j + 1) * C2] = b2[:C2]
        B2[0, Wp * C2 + j * C2: Wp * C2 + (j + 1) * C2] = b2[C2:]
    return T, B2


def build_flow_select_mats(Wp, C, C1, C2):
    """Constant 0/1 matrices for the fixed channel roll / split / recombination."""
    SELY2 = np.zeros((Wp * C, Wp * C2), np.float32)
    M1 = np.zeros((Wp * C, Wp * C), np.float32)
    M2 = np.zeros((Wp * C2, Wp * C), np.float32)
    for j in range(Wp):
        for c2 in range(C2):
            SELY2[j * C + c2, j * C2 + c2] = 1.0
            M2[j * C2 + c2, j * C + C1 + c2] = 1.0
        for c1 in range(C1):
            M1[j * C + C2 + c1, j * C + c1] = 1.0
    return SELY2, M1, M2


def build_fusion_mat(Wfuse, Wp):
    C = Wfuse.shape[0]
    MF = np.zeros((Wp * C, Wp * C), np.float32)
    for j in range(Wp):
        MF[j * C:(j + 1) * C, j * C:(j + 1) * C] = Wfuse
    return MF


def positionalencoding2d(D, H, W):
    """Exact port of MSFlow.positionalencoding2d; returns (H, W, D)."""
    assert D % 4 == 0
    P = np.zeros((D, H, W), np.float32)
    Dh = D // 2
    div_term = np.exp(np.arange(0.0, Dh, 2) * -(math.log(10000.0) / Dh))
    pos_w = np.arange(0.0, W)[:, None]
    pos_h = np.arange(0.0, H)[:, None]
    P[0:Dh:2] = np.repeat(np.sin(pos_w * div_term).T[:, None, :], H, axis=1)
    P[1:Dh:2] = np.repeat(np.cos(pos_w * div_term).T[:, None, :], H, axis=1)
    P[Dh::2] = np.repeat(np.sin(pos_h * div_term).T[:, :, None], W, axis=2)
    P[Dh + 1::2] = np.repeat(np.cos(pos_h * div_term).T[:, :, None], W, axis=2)
    return np.transpose(P, (1, 2, 0)).astype(np.float32)


# ----------------------------- deterministic params --------------------------
def init_params(seed=42, img_size=IMG_SIZE):
    rng = np.random.default_rng(seed)
    params = {"extractor": [], "levels": []}

    Hin = Win = img_size
    for i in range(len(EXTRACTOR_CHANS) - 1):
        cin, cout = EXTRACTOR_CHANS[i], EXTRACTOR_CHANS[i + 1]
        w = (0.1 * rng.standard_normal((3, 3, cin, cout))).astype(np.float32)
        b = np.zeros((cout,), np.float32)
        T, S, brow = build_stride2_conv_mats(w, b, Hin, Win)
        Hout, Wout = Hin // 2, Win // 2
        params["extractor"].append({
            "T": jnp.asarray(T), "S": jnp.asarray(S), "b": jnp.asarray(brow),
            "Hout": Hout, "Wout": Wout, "Cout": cout,
        })
        Hin, Win = Hout, Wout

    out_channels = EXTRACTOR_CHANS[2:]                            # [8, 16, 32]
    feat_sizes = [e["Hout"] for e in params["extractor"][1:]]     # [16, 8, 4]
    fusion_logdet = 0.0
    for C, cc, nb, Hl in zip(out_channels, C_CONDS, PARALLEL_BLOCKS, feat_sizes):
        Wl = Hl
        Hp, Wp = Hl // 2, Wl // 2
        C1 = C // 2
        C2 = C - C1
        Tp, Sp = build_pool_mats(Hl, Wl, C)
        S1 = build_s1_rowsel(Hp)
        cond = positionalencoding2d(cc, Hp, Wp)                   # (Hp, Wp, cc)
        T1s, CB1s, T2s, B2s = [], [], [], []
        for _ in range(nb):
            w1 = (0.1 * rng.standard_normal((3, 3, C1 + cc, HIDDEN))).astype(np.float32)
            b1 = np.zeros((HIDDEN,), np.float32)
            w2 = (0.01 * rng.standard_normal((3, 3, HIDDEN, 2 * C2))).astype(np.float32)
            b2 = np.zeros((2 * C2,), np.float32)
            T1s.append(build_flow_conv1_T(w1, Wp, C, C1, C2))
            CB1s.append(build_flow_conv1_condbias(w1, b1, cond, Hp, Wp, C1))
            T2, B2 = build_flow_conv2_T(w2, b2, Wp, C2)
            T2s.append(T2)
            B2s.append(B2)
        SELY2, M1, M2 = build_flow_select_mats(Wp, C, C1, C2)
        Wfuse = (np.eye(C) + 0.05 * rng.standard_normal((C, C))).astype(np.float32)
        MF = build_fusion_mat(Wfuse, Wp)
        _, logabs = np.linalg.slogdet(Wfuse.astype(np.float64))   # precomputed (perf fix)
        fusion_logdet += Hp * Wp * float(logabs)
        params["levels"].append({
            "C": C, "C2": C2, "Hp": Hp, "Wp": Wp,
            "Tp": jnp.asarray(Tp), "Sp": jnp.asarray(Sp), "S1": jnp.asarray(S1),
            "T1": jnp.asarray(np.stack(T1s)), "CB1": jnp.asarray(np.stack(CB1s)),
            "T2": jnp.asarray(np.stack(T2s)), "B2": jnp.asarray(np.stack(B2s)),
            "SELY2": jnp.asarray(SELY2), "M1": jnp.asarray(M1), "M2": jnp.asarray(M2),
            "MF": jnp.asarray(MF),
        })
    params["fusion_logdet"] = fusion_logdet
    return params


# ----------------------------- main -------------------------------------------
if __name__ == "__main__":
    image = jax.random.normal(jax.random.PRNGKey(0), (2, 3, IMG_SIZE, IMG_SIZE), jnp.float32)
    params = init_params(seed=42)

    fwd = jax.jit(functools.partial(msflow_forward, params))
    outputs = jax.block_until_ready(fwd(image))

    # sanity checks on shapes / dtypes / finiteness
    assert outputs["jac"].shape == (2,)
    expected = [(2, 8, 8, 8), (2, 16, 4, 4), (2, 32, 2, 2)]      # NCHW per level
    for z, s in zip(outputs["z_list"], expected):
        assert z.shape == s and z.dtype == jnp.float32
        assert bool(jnp.all(jnp.isfinite(z)))
    assert bool(jnp.all(jnp.isfinite(outputs["jac"])))

    print("KERNEL_OK")
</pallas_src>

<mosaic_0001>
module attributes {stable_mosaic.version = 11 : i64} {
  func.func @_extractor_kernel(%arg0: i32, %arg1: memref<1x64x192xf32, #tpu.memory_space<vmem>>, %arg2: memref<3x192x256xf32, #tpu.memory_space<vmem>>, %arg3: memref<3x32x64xf32, #tpu.memory_space<vmem>>, %arg4: memref<1x256xf32, #tpu.memory_space<vmem>>, %arg5: memref<3x256x128xf32, #tpu.memory_space<vmem>>, %arg6: memref<3x16x32xf32, #tpu.memory_space<vmem>>, %arg7: memref<1x128xf32, #tpu.memory_space<vmem>>, %arg8: memref<3x128x128xf32, #tpu.memory_space<vmem>>, %arg9: memref<3x8x16xf32, #tpu.memory_space<vmem>>, %arg10: memref<1x128xf32, #tpu.memory_space<vmem>>, %arg11: memref<3x128x128xf32, #tpu.memory_space<vmem>>, %arg12: memref<3x4x8xf32, #tpu.memory_space<vmem>>, %arg13: memref<1x128xf32, #tpu.memory_space<vmem>>, %arg14: memref<1x16x128xf32, #tpu.memory_space<vmem>>, %arg15: memref<1x8x128xf32, #tpu.memory_space<vmem>>, %arg16: memref<1x4x128xf32, #tpu.memory_space<vmem>>) attributes {dimension_semantics = [#tpu.dimension_semantics<parallel>], iteration_bounds = array<i64: 2>, scalar_prefetch = 0 : i64, scratch_operands = 0 : i64, tpu.core_type = #tpu.core_type<tc>, window_params = [{transform_indices = @transform_0, window_bounds = array<i64: 1, 64, 192>}, {pipeline_mode = #tpu.pipeline_mode<synchronous>, transform_indices = @transform_1, window_bounds = array<i64: 3, 192, 256>}, {pipeline_mode = #tpu.pipeline_mode<synchronous>, transform_indices = @transform_2, window_bounds = array<i64: 3, 32, 64>}, {pipeline_mode = #tpu.pipeline_mode<synchronous>, transform_indices = @transform_3, window_bounds = array<i64: 1, 256>}, {pipeline_mode = #tpu.pipeline_mode<synchronous>, transform_indices = @transform_4, window_bounds = array<i64: 3, 256, 128>}, {pipeline_mode = #tpu.pipeline_mode<synchronous>, transform_indices = @transform_5, window_bounds = array<i64: 3, 16, 32>}, {pipeline_mode = #tpu.pipeline_mode<synchronous>, transform_indices = @transform_6, window_bounds = array<i64: 1, 128>}, {pipeline_mode = #tpu.pipeline_mode<synchronous>, transform_indices = @transform_7, window_bounds = array<i64: 3, 128, 128>}, {pipeline_mode = #tpu.pipeline_mode<synchronous>, transform_indices = @transform_8, window_bounds = array<i64: 3, 8, 16>}, {pipeline_mode = #tpu.pipeline_mode<synchronous>, transform_indices = @transform_9, window_bounds = array<i64: 1, 128>}, {pipeline_mode = #tpu.pipeline_mode<synchronous>, transform_indices = @transform_10, window_bounds = array<i64: 3, 128, 128>}, {pipeline_mode = #tpu.pipeline_mode<synchronous>, transform_indices = @transform_11, window_bounds = array<i64: 3, 4, 8>}, {pipeline_mode = #tpu.pipeline_mode<synchronous>, transform_indices = @transform_12, window_bounds = array<i64: 1, 128>}, {transform_indices = @transform_13, window_bounds = array<i64: 1, 16, 128>}, {transform_indices = @transform_14, window_bounds = array<i64: 1, 8, 128>}, {transform_indices = @transform_15, window_bounds = array<i64: 1, 4, 128>}]} {
    %c0 = arith.constant 0 : index
    %c0_0 = arith.constant 0 : index
    %c0_1 = arith.constant 0 : index
    %0 = vector.load %arg1[%c0, %c0_0, %c0_1] : memref<1x64x192xf32, #tpu.memory_space<vmem>>, vector<1x64x192xf32>
    %1 = vector.shape_cast %0 : vector<1x64x192xf32> to vector<64x192xf32>
    %c0_2 = arith.constant 0 : index
    %c0_3 = arith.constant 0 : index
    %c0_4 = arith.constant 0 : index
    %2 = vector.load %arg2[%c0_2, %c0_3, %c0_4] : memref<3x192x256xf32, #tpu.memory_space<vmem>>, vector<1x192x256xf32>
    %3 = vector.shape_cast %2 : vector<1x192x256xf32> to vector<192x256xf32>
    %cst = arith.constant dense<0.000000e+00> : vector<64x256xf32>
    %4 = tpu.matmul %1, %3, %cst {dimension_numbers = #tpu.dot_dimension_numbers<[1], [0], [0], [1], [0, 0, 1, 1], [], []>} : vector<64x192xf32>, vector<192x256xf32>, vector<64x256xf32> -> vector<64x256xf32>
    %c0_5 = arith.constant 0 : index
    %c0_6 = arith.constant 0 : index
    %c0_7 = arith.constant 0 : index
    %5 = vector.load %arg3[%c0_5, %c0_6, %c0_7] : memref<3x32x64xf32, #tpu.memory_space<vmem>>, vector<1x32x64xf32>
    %6 = vector.shape_cast %5 : vector<1x32x64xf32> to vector<32x64xf32>
    %cst_8 = arith.constant dense<0.000000e+00> : vector<32x256xf32>
    %7 = tpu.matmul %6, %4, %cst_8 {dimension_numbers = #tpu.dot_dimension_numbers<[1], [0], [0], [1], [0, 0, 1, 1], [], []>} : vector<32x64xf32>, vector<64x256xf32>, vector<32x256xf32> -> vector<32x256xf32>
    %c1 = arith.constant 1 : index
    %c0_9 = arith.constant 0 : index
    %c0_10 = arith.constant 0 : index
    %8 = vector.load %arg2[%c1, %c0_9, %c0_10] : memref<3x192x256xf32, #tpu.memory_space<vmem>>, vector<1x192x256xf32>
    %9 = vector.shape_cast %8 : vector<1x192x256xf32> to vector<192x256xf32>
    %cst_11 = arith.constant dense<0.000000e+00> : vector<64x256xf32>
    %10 = tpu.matmul %1, %9, %cst_11 {dimension_numbers = #tpu.dot_dimension_numbers<[1], [0], [0], [1], [0, 0, 1, 1], [], []>} : vector<64x192xf32>, vector<192x256xf32>, vector<64x256xf32> -> vector<64x256xf32>
    %c1_12 = arith.constant 1 : index
    %c0_13 = arith.constant 0 : index
    %c0_14 = arith.constant 0 : index
    %11 = vector.load %arg3[%c1_12, %c0_13, %c0_14] : memref<3x32x64xf32, #tpu.memory_space<vmem>>, vector<1x32x64xf32>
    %12 = vector.shape_cast %11 : vector<1x32x64xf32> to vector<32x64xf32>
    %cst_15 = arith.constant dense<0.000000e+00> : vector<32x256xf32>
    %13 = tpu.matmul %12, %10, %cst_15 {dimension_numbers = #tpu.dot_dimension_numbers<[1], [0], [0], [1], [0, 0, 1, 1], [], []>} : vector<32x64xf32>, vector<64x256xf32>, vector<32x256xf32> -> vector<32x256xf32>
    %14 = arith.addf %7, %13 : vector<32x256xf32>
    %c2 = arith.constant 2 : index
    %c0_16 = arith.constant 0 : index
    %c0_17 = arith.constant 0 : index
    %15 = vector.load %arg2[%c2, %c0_16, %c0_17] : memref<3x192x256xf32, #tpu.memory_space<vmem>>, vector<1x192x256xf32>
    %16 = vector.shape_cast %15 : vector<1x192x256xf32> to vector<192x256xf32>
    %cst_18 = arith.constant dense<0.000000e+00> : vector<64x256xf32>
    %17 = tpu.matmul %1, %16, %cst_18 {dimension_numbers = #tpu.dot_dimension_numbers<[1], [0], [0], [1], [0, 0, 1, 1], [], []>} : vector<64x192xf32>, vector<192x256xf32>, vector<64x256xf32> -> vector<64x256xf32>
    %c2_19 = arith.constant 2 : index
    %c0_20 = arith.constant 0 : index
    %c0_21 = arith.constant 0 : index
    %18 = vector.load %arg3[%c2_19, %c0_20, %c0_21] : memref<3x32x64xf32, #tpu.memory_space<vmem>>, vector<1x32x64xf32>
    %19 = vector.shape_cast %18 : vector<1x32x64xf32> to vector<32x64xf32>
    %cst_22 = arith.constant dense<0.000000e+00> : vector<32x256xf32>
    %20 = tpu.matmul %19, %17, %cst_22 {dimension_numbers = #tpu.dot_dimension_numbers<[1], [0], [0], [1], [0, 0, 1, 1], [], []>} : vector<32x64xf32>, vector<64x256xf32>, vector<32x256xf32> -> vector<32x256xf32>
    %21 = arith.addf %14, %20 : vector<32x256xf32>
    %c0_23 = arith.constant 0 : index
    %c0_24 = arith.constant 0 : index
    %22 = vector.load %arg4[%c0_23, %c0_24] : memref<1x256xf32, #tpu.memory_space<vmem>>, vector<1x256xf32>
    %23 = vector.broadcast %22 : vector<1x256xf32> to vector<32x256xf32>
    %24 = arith.addf %21, %23 : vector<32x256xf32>
    %cst_25 = arith.constant 0.000000e+00 : f32
    %25 = vector.broadcast %cst_25 : f32 to vector<32x256xf32>
    %26 = arith.maximumf %24, %25 : vector<32x256xf32>
    %c0_26 = arith.constant 0 : index
    %c0_27 = arith.constant 0 : index
    %c0_28 = arith.constant 0 : index
    %27 = vector.load %arg5[%c0_26, %c0_27, %c0_28] : memref<3x256x128xf32, #tpu.memory_space<vmem>>, vector<1x256x128xf32>
    %28 = vector.shape_cast %27 : vector<1x256x128xf32> to vector<256x128xf32>
    %cst_29 = arith.constant dense<0.000000e+00> : vector<32x128xf32>
    %29 = tpu.matmul %26, %28, %cst_29 {dimension_numbers = #tpu.dot_dimension_numbers<[1], [0], [0], [1], [0, 0, 1, 1], [], []>} : vector<32x256xf32>, vector<256x128xf32>, vector<32x128xf32> -> vector<32x128xf32>
    %c0_30 = arith.constant 0 : index
    %c0_31 = arith.constant 0 : index
    %c0_32 = arith.constant 0 : index
    %30 = vector.load %arg6[%c0_30, %c0_31, %c0_32] : memref<3x16x32xf32, #tpu.memory_space<vmem>>, vector<1x16x32xf32>
    %31 = vector.shape_cast %30 : vector<1x16x32xf32> to vector<16x32xf32>
    %cst_33 = arith.constant dense<0.000000e+00> : vector<16x128xf32>
    %32 = tpu.matmul %31, %29, %cst_33 {dimension_numbers = #tpu.dot_dimension_numbers<[1], [0], [0], [1], [0, 0, 1, 1], [], []>} : vector<16x32xf32>, vector<32x128xf32>, vector<16x128xf32> -> vector<16x128xf32>
    %c1_34 = arith.constant 1 : index
    %c0_35 = arith.constant 0 : index
    %c0_36 = arith.constant 0 : index
    %33 = vector.load %arg5[%c1_34, %c0_35, %c0_36] : memref<3x256x128xf32, #tpu.memory_space<vmem>>, vector<1x256x128xf32>
    %34 = vector.shape_cast %33 : vector<1x256x128xf32> to vector<256x128xf32>
    %cst_37 = arith.constant dense<0.000000e+00> : vector<32x128xf32>
    %35 = tpu.matmul %26, %34, %cst_37 {dimension_numbers = #tpu.dot_dimension_numbers<[1], [0], [0], [1], [0, 0, 1, 1], [], []>} : vector<32x256xf32>, vector<256x128xf32>, vector<32x128xf32> -> vector<32x128xf32>
    %c1_38 = arith.constant 1 : index
    %c0_39 = arith.constant 0 : index
    %c0_40 = arith.constant 0 : index
    %36 = vector.load %arg6[%c1_38, %c0_39, %c0_40] : memref<3x16x32xf32, #tpu.memory_space<vmem>>, vector<1x16x32xf32>
    %37 = vector.shape_cast %36 : vector<1x16x32xf32> to vector<16x32xf32>
    %cst_41 = arith.constant dense<0.000000e+00> : vector<16x128xf32>
    %38 = tpu.matmul %37, %35, %cst_41 {dimension_numbers = #tpu.dot_dimension_numbers<[1], [0], [0], [1], [0, 0, 1, 1], [], []>} : vector<16x32xf32>, vector<32x128xf32>, vector<16x128xf32> -> vector<16x128xf32>
    %39 = arith.addf %32, %38 : vector<16x128xf32>
    %c2_42 = arith.constant 2 : index
    %c0_43 = arith.constant 0 : index
    %c0_44 = arith.constant 0 : index
    %40 = vector.load %arg5[%c2_42, %c0_43, %c0_44] : memref<3x256x128xf32, #tpu.memory_space<vmem>>, vector<1x256x128xf32>
    %41 = vector.shape_cast %40 : vector<1x256x128xf32> to vector<256x128xf32>
    %cst_45 = arith.constant dense<0.000000e+00> : vector<32x128xf32>
    %42 = tpu.matmul %26, %41, %cst_45 {dimension_numbers = #tpu.dot_dimension_numbers<[1], [0], [0], [1], [0, 0, 1, 1], [], []>} : vector<32x256xf32>, vector<256x128xf32>, vector<32x128xf32> -> vector<32x128xf32>
    %c2_46 = arith.constant 2 : index
    %c0_47 = arith.constant 0 : index
    %c0_48 = arith.constant 0 : index
    %43 = vector.load %arg6[%c2_46, %c0_47, %c0_48] : memref<3x16x32xf32, #tpu.memory_space<vmem>>, vector<1x16x32xf32>
    %44 = vector.shape_cast %43 : vector<1x16x32xf32> to vector<16x32xf32>
    %cst_49 = arith.constant dense<0.000000e+00> : vector<16x128xf32>
    %45 = tpu.matmul %44, %42, %cst_49 {dimension_numbers = #tpu.dot_dimension_numbers<[1], [0], [0], [1], [0, 0, 1, 1], [], []>} : vector<16x32xf32>, vector<32x128xf32>, vector<16x128xf32> -> vector<16x128xf32>
    %46 = arith.addf %39, %45 : vector<16x128xf32>
    %c0_50 = arith.constant 0 : index
    %c0_51 = arith.constant 0 : index
    %47 = vector.load %arg7[%c0_50, %c0_51] : memref<1x128xf32, #tpu.memory_space<vmem>>, vector<1x128xf32>
    %48 = vector.broadcast %47 : vector<1x128xf32> to vector<16x128xf32>
    %49 = arith.addf %46, %48 : vector<16x128xf32>
    %cst_52 = arith.constant 0.000000e+00 : f32
    %50 = vector.broadcast %cst_52 : f32 to vector<16x128xf32>
    %51 = arith.maximumf %49, %50 : vector<16x128xf32>
    %c0_53 = arith.constant 0 : index
    %c0_54 = arith.constant 0 : index
    %c0_55 = arith.constant 0 : index
    %52 = vector.load %arg8[%c0_53, %c0_54, %c0_55] : memref<3x128x128xf32, #tpu.memory_space<vmem>>, vector<1x128x128xf32>
    %53 = vector.shape_cast %52 : vector<1x128x128xf32> to vector<128x128xf32>
    %cst_56 = arith.constant dense<0.000000e+00> : vector<16x128xf32>
    %54 = tpu.matmul %51, %53, %cst_56 {dimension_numbers = #tpu.dot_dimension_numbers<[1], [0], [0], [1], [0, 0, 1, 1], [], []>} : vector<16x128xf32>, vector<128x128xf32>, vector<16x128xf32> -> vector<16x128xf32>
    %c0_57 = arith.constant 0 : index
    %c0_58 = arith.constant 0 : index
    %c0_59 = arith.constant 0 : index
    %55 = vector.load %arg9[%c0_57, %c0_58, %c0_59] : memref<3x8x16xf32, #tpu.memory_space<vmem>>, vector<1x8x16xf32>
    %56 = vector.shape_cast %55 : vector<1x8x16xf32> to vector<8x16xf32>
    %cst_60 = arith.constant dense<0.000000e+00> : vector<8x128xf32>
    %57 = tpu.matmul %56, %54, %cst_60 {dimension_numbers = #tpu.dot_dimension_numbers<[1], [0], [0], [1], [0, 0, 1, 1], [], []>} : vector<8x16xf32>, vector<16x128xf32>, vector<8x128xf32> -> vector<8x128xf32>
    %c1_61 = arith.constant 1 : index
    %c0_62 = arith.constant 0 : index
    %c0_63 = arith.constant 0 : index
    %58 = vector.load %arg8[%c1_61, %c0_62, %c0_63] : memref<3x128x128xf32, #tpu.memory_space<vmem>>, vector<1x128x128xf32>
    %59 = vector.shape_cast %58 : vector<1x128x128xf32> to vector<128x128xf32>
    %cst_64 = arith.constant dense<0.000000e+00> : vector<16x128xf32>
    %60 = tpu.matmul %51, %59, %cst_64 {dimension_numbers = #tpu.dot_dimension_numbers<[1], [0], [0], [1], [0, 0, 1, 1], [], []>} : vector<16x128xf32>, vector<128x128xf32>, vector<16x128xf32> -> vector<16x128xf32>
    %c1_65 = arith.constant 1 : index
    %c0_66 = arith.constant 0 : index
    %c0_67 = arith.constant 0 : index
    %61 = vector.load %arg9[%c1_65, %c0_66, %c0_67] : memref<3x8x16xf32, #tpu.memory_space<vmem>>, vector<1x8x16xf32>
    %62 = vector.shape_cast %61 : vector<1x8x16xf32> to vector<8x16xf32>
    %cst_68 = arith.constant dense<0.000000e+00> : vector<8x128xf32>
    %63 = tpu.matmul %62, %60, %cst_68 {dimension_numbers = #tpu.dot_dimension_numbers<[1], [0], [0], [1], [0, 0, 1, 1], [], []>} : vector<8x16xf32>, vector<16x128xf32>, vector<8x128xf32> -> vector<8x128xf32>
    %64 = arith.addf %57, %63 : vector<8x128xf32>
    %c2_69 = arith.constant 2 : index
    %c0_70 = arith.constant 0 : index
    %c0_71 = arith.constant 0 : index
    %65 = vector.load %arg8[%c2_69, %c0_70, %c0_71] : memref<3x128x128xf32, #tpu.memory_space<vmem>>, vector<1x128x128xf32>
    %66 = vector.shape_cast %65 : vector<1x128x128xf32> to vector<128x128xf32>
    %cst_72 = arith.constant dense<0.000000e+00> : vector<16x128xf32>
    %67 = tpu.matmul %51, %66, %cst_72 {dimension_numbers = #tpu.dot_dimension_numbers<[1], [0], [0], [1], [0, 0, 1, 1], [], []>} : vector<16x128xf32>, vector<128x128xf32>, vector<16x128xf32> -> vector<16x128xf32>
    %c2_73 = arith.constant 2 : index
    %c0_74 = arith.constant 0 : index
    %c0_75 = arith.constant 0 : index
    %68 = vector.load %arg9[%c2_73, %c0_74, %c0_75] : memref<3x8x16xf32, #tpu.memory_space<vmem>>, vector<1x8x16xf32>
    %69 = vector.shape_cast %68 : vector<1x8x16xf32> to vector<8x16xf32>
    %cst_76 = arith.constant dense<0.000000e+00> : vector<8x128xf32>
    %70 = tpu.matmul %69, %67, %cst_76 {dimension_numbers = #tpu.dot_dimension_numbers<[1], [0], [0], [1], [0, 0, 1, 1], [], []>} : vector<8x16xf32>, vector<16x128xf32>, vector<8x128xf32> -> vector<8x128xf32>
    %71 = arith.addf %64, %70 : vector<8x128xf32>
    %c0_77 = arith.constant 0 : index
    %c0_78 = arith.constant 0 : index
    %72 = vector.load %arg10[%c0_77, %c0_78] : memref<1x128xf32, #tpu.memory_space<vmem>>, vector<1x128xf32>
    %73 = vector.broadcast %72 : vector<1x128xf32> to vector<8x128xf32>
    %74 = arith.addf %71, %73 : vector<8x128xf32>
    %cst_79 = arith.constant 0.000000e+00 : f32
    %75 = vector.broadcast %cst_79 : f32 to vector<8x128xf32>
    %76 = arith.maximumf %74, %75 : vector<8x128xf32>
    %c0_80 = arith.constant 0 : index
    %c0_81 = arith.constant 0 : index
    %c0_82 = arith.constant 0 : index
    %77 = vector.load %arg11[%c0_80, %c0_81, %c0_82] : memref<3x128x128xf32, #tpu.memory_space<vmem>>, vector<1x128x128xf32>
    %78 = vector.shape_cast %77 : vector<1x128x128xf32> to vector<128x128xf32>
    %cst_83 = arith.constant dense<0.000000e+00> : vector<8x128xf32>
    %79 = tpu.matmul %76, %78, %cst_83 {dimension_numbers = #tpu.dot_dimension_numbers<[1], [0], [0], [1], [0, 0, 1, 1], [], []>} : vector<8x128xf32>, vector<128x128xf32>, vector<8x128xf32> -> vector<8x128xf32>
    %c0_84 = arith.constant 0 : index
    %c0_85 = arith.constant 0 : index
    %c0_86 = arith.constant 0 : index
    %80 = vector.load %arg12[%c0_84, %c0_85, %c0_86] : memref<3x4x8xf32, #tpu.memory_space<vmem>>, vector<1x4x8xf32>
    %81 = vector.shape_cast %80 : vector<1x4x8xf32> to vector<4x8xf32>
    %cst_87 = arith.constant dense<0.000000e+00> : vector<4x128xf32>
    %82 = tpu.matmul %81, %79, %cst_87 {dimension_numbers = #tpu.dot_dimension_numbers<[1], [0], [0], [1], [0, 0, 1, 1], [], []>} : vector<4x8xf32>, vector<8x128xf32>, vector<4x128xf32> -> vector<4x128xf32>
    %c1_88 = arith.constant 1 : index
    %c0_89 = arith.constant 0 : index
    %c0_90 = arith.constant 0 : index
    %83 = vector.load %arg11[%c1_88, %c0_89, %c0_90] : memref<3x128x128xf32, #tpu.memory_space<vmem>>, vector<1x128x128xf32>
    %84 = vector.shape_cast %83 : vector<1x128x128xf32> to vector<128x128xf32>
    %cst_91 = arith.constant dense<0.000000e+00> : vector<8x128xf32>
    %85 = tpu.matmul %76, %84, %cst_91 {dimension_numbers = #tpu.dot_dimension_numbers<[1], [0], [0], [1], [0, 0, 1, 1], [], []>} : vector<8x128xf32>, vector<128x128xf32>, vector<8x128xf32> -> vector<8x128xf32>
    %c1_92 = arith.constant 1 : index
    %c0_93 = arith.constant 0 : index
    %c0_94 = arith.constant 0 : index
    %86 = vector.load %arg12[%c1_92, %c0_93, %c0_94] : memref<3x4x8xf32, #tpu.memory_space<vmem>>, vector<1x4x8xf32>
    %87 = vector.shape_cast %86 : vector<1x4x8xf32> to vector<4x8xf32>
    %cst_95 = arith.constant dense<0.000000e+00> : vector<4x128xf32>
    %88 = tpu.matmul %87, %85, %cst_95 {dimension_numbers = #tpu.dot_dimension_numbers<[1], [0], [0], [1], [0, 0, 1, 1], [], []>} : vector<4x8xf32>, vector<8x128xf32>, vector<4x128xf32> -> vector<4x128xf32>
    %89 = arith.addf %82, %88 : vector<4x128xf32>
    %c2_96 = arith.constant 2 : index
    %c0_97 = arith.constant 0 : index
    %c0_98 = arith.constant 0 : index
    %90 = vector.load %arg11[%c2_96, %c0_97, %c0_98] : memref<3x128x128xf32, #tpu.memory_space<vmem>>, vector<1x128x128xf32>
    %91 = vector.shape_cast %90 : vector<1x128x128xf32> to vector<128x128xf32>
    %cst_99 = arith.constant dense<0.000000e+00> : vector<8x128xf32>
    %92 = tpu.matmul %76, %91, %cst_99 {dimension_numbers = #tpu.dot_dimension_numbers<[1], [0], [0], [1], [0, 0, 1, 1], [], []>} : vector<8x128xf32>, vector<128x128xf32>, vector<8x128xf32> -> vector<8x128xf32>
    %c2_100 = arith.constant 2 : index
    %c0_101 = arith.constant 0 : index
    %c0_102 = arith.constant 0 : index
    %93 = vector.load %arg12[%c2_100, %c0_101, %c0_102] : memref<3x4x8xf32, #tpu.memory_space<vmem>>, vector<1x4x8xf32>
    %94 = vector.shape_cast %93 : vector<1x4x8xf32> to vector<4x8xf32>
    %cst_103 = arith.constant dense<0.000000e+00> : vector<4x128xf32>
    %95 = tpu.matmul %94, %92, %cst_103 {dimension_numbers = #tpu.dot_dimension_numbers<[1], [0], [0], [1], [0, 0, 1, 1], [], []>} : vector<4x8xf32>, vector<8x128xf32>, vector<4x128xf32> -> vector<4x128xf32>
    %96 = arith.addf %89, %95 : vector<4x128xf32>
    %c0_104 = arith.constant 0 : index
    %c0_105 = arith.constant 0 : index
    %97 = vector.load %arg13[%c0_104, %c0_105] : memref<1x128xf32, #tpu.memory_space<vmem>>, vector<1x128xf32>
    %98 = vector.broadcast %97 : vector<1x128xf32> to vector<4x128xf32>
    %99 = arith.addf %96, %98 : vector<4x128xf32>
    %cst_106 = arith.constant 0.000000e+00 : f32
    %100 = vector.broadcast %cst_106 : f32 to vector<4x128xf32>
    %101 = arith.maximumf %99, %100 : vector<4x128xf32>
    %c0_107 = arith.constant 0 : index
    %c0_108 = arith.constant 0 : index
    %c0_109 = arith.constant 0 : index
    %102 = vector.load %arg14[%c0_107, %c0_108, %c0_109] : memref<1x16x128xf32, #tpu.memory_space<vmem>>, vector<1x16x128xf32>
    %103 = vector.shape_cast %102 : vector<1x16x128xf32> to vector<16x128xf32>
    %104 = vector.shape_cast %51 : vector<16x128xf32> to vector<1x16x128xf32>
    tpu.vector_store %arg14[%c0_107, %c0_108, %c0_109], %104 {strides = array<i32>} : memref<1x16x128xf32, #tpu.memory_space<vmem>>, vector<1x16x128xf32>,
    %c0_110 = arith.constant 0 : index
    %c0_111 = arith.constant 0 : index
    %c0_112 = arith.constant 0 : index
    %105 = vector.load %arg15[%c0_110, %c0_111, %c0_112] : memref<1x8x128xf32, #tpu.memory_space<vmem>>, vector<1x8x128xf32>
    %106 = vector.shape_cast %105 : vector<1x8x128xf32> to vector<8x128xf32>
    %107 = vector.shape_cast %76 : vector<8x128xf32> to vector<1x8x128xf32>
    tpu.vector_store %arg15[%c0_110, %c0_111, %c0_112], %107 {strides = array<i32>} : memref<1x8x128xf32, #tpu.memory_space<vmem>>, vector<1x8x128xf32>,
    %c0_113 = arith.constant 0 : index
    %c0_114 = arith.constant 0 : index
    %c0_115 = arith.constant 0 : index
    %108 = vector.load %arg16[%c0_113, %c0_114, %c0_115] : memref<1x4x128xf32, #tpu.memory_space<vmem>>, vector<1x4x128xf32>
    %109 = vector.shape_cast %108 : vector<1x4x128xf32> to vector<4x128xf32>
    %110 = vector.shape_cast %101 : vector<4x128xf32> to vector<1x4x128xf32>
    tpu.vector_store %arg16[%c0_113, %c0_114, %c0_115], %110 {strides = array<i32>} : memref<1x4x128xf32, #tpu.memory_space<vmem>>, vector<1x4x128xf32>,
    return
  }
  func.func @transform_0(%arg0: i32) -> (i32, i32, i32) {
    %c0_i32 = arith.constant 0 : i32
    %c0_i32_0 = arith.constant 0 : i32
    %c0_i32_1 = arith.constant 0 : i32
    return %arg0, %c0_i32, %c0_i32_0 : i32, i32, i32
  }
  func.func @transform_1(%arg0: i32) -> (i32, i32, i32) {
    %c0_i32 = arith.constant 0 : i32
    %c0_i32_0 = arith.constant 0 : i32
    %c0_i32_1 = arith.constant 0 : i32
    %c0_i32_2 = arith.constant 0 : i32
    return %c0_i32, %c0_i32_0, %c0_i32_1 : i32, i32, i32
  }
  func.func @transform_2(%arg0: i32) -> (i32, i32, i32) {
    %c0_i32 = arith.constant 0 : i32
    %c0_i32_0 = arith.constant 0 : i32
    %c0_i32_1 = arith.constant 0 : i32
    %c0_i32_2 = arith.constant 0 : i32
    return %c0_i32, %c0_i32_0, %c0_i32_1 : i32, i32, i32
  }
  func.func @transform_3(%arg0: i32) -> (i32, i32) {
    %c0_i32 = arith.constant 0 : i32
    %c0_i32_0 = arith.constant 0 : i32
    %c0_i32_1 = arith.constant 0 : i32
    return %c0_i32, %c0_i32_0 : i32, i32
  }
  func.func @transform_4(%arg0: i32) -> (i32, i32, i32) {
    %c0_i32 = arith.constant 0 : i32
    %c0_i32_0 = arith.constant 0 : i32
    %c0_i32_1 = arith.constant 0 : i32
    %c0_i32_2 = arith.constant 0 : i32
    return %c0_i32, %c0_i32_0, %c0_i32_1 : i32, i32, i32
  }
  func.func @transform_5(%arg0: i32) -> (i32, i32, i32) {
    %c0_i32 = arith.constant 0 : i32
    %c0_i32_0 = arith.constant 0 : i32
    %c0_i32_1 = arith.constant 0 : i32
    %c0_i32_2 = arith.constant 0 : i32
    return %c0_i32, %c0_i32_0, %c0_i32_1 : i32, i32, i32
  }
  func.func @transform_6(%arg0: i32) -> (i32, i32) {
    %c0_i32 = arith.constant 0 : i32
    %c0_i32_0 = arith.constant 0 : i32
    %c0_i32_1 = arith.constant 0 : i32
    return %c0_i32, %c0_i32_0 : i32, i32
  }
  func.func @transform_7(%arg0: i32) -> (i32, i32, i32) {
    %c0_i32 = arith.constant 0 : i32
    %c0_i32_0 = arith.constant 0 : i32
    %c0_i32_1 = arith.constant 0 : i32
    %c0_i32_2 = arith.constant 0 : i32
    return %c0_i32, %c0_i32_0, %c0_i32_1 : i32, i32, i32
  }
  func.func @transform_8(%arg0: i32) -> (i32, i32, i32) {
    %c0_i32 = arith.constant 0 : i32
    %c0_i32_0 = arith.constant 0 : i32
    %c0_i32_1 = arith.constant 0 : i32
    %c0_i32_2 = arith.constant 0 : i32
    return %c0_i32, %c0_i32_0, %c0_i32_1 : i32, i32, i32
  }
  func.func @transform_9(%arg0: i32) -> (i32, i32) {
    %c0_i32 = arith.constant 0 : i32
    %c0_i32_0 = arith.constant 0 : i32
    %c0_i32_1 = arith.constant 0 : i32
    return %c0_i32, %c0_i32_0 : i32, i32
  }
  func.func @transform_10(%arg0: i32) -> (i32, i32, i32) {
    %c0_i32 = arith.constant 0 : i32
    %c0_i32_0 = arith.constant 0 : i32
    %c0_i32_1 = arith.constant 0 : i32
    %c0_i32_2 = arith.constant 0 : i32
    return %c0_i32, %c0_i32_0, %c0_i32_1 : i32, i32, i32
  }
  func.func @transform_11(%arg0: i32) -> (i32, i32, i32) {
    %c0_i32 = arith.constant 0 : i32
    %c0_i32_0 = arith.constant 0 : i32
    %c0_i32_1 = arith.constant 0 : i32
    %c0_i32_2 = arith.constant 0 : i32
    return %c0_i32, %c0_i32_0, %c0_i32_1 : i32, i32, i32
  }
  func.func @transform_12(%arg0: i32) -> (i32, i32) {
    %c0_i32 = arith.constant 0 : i32
    %c0_i32_0 = arith.constant 0 : i32
    %c0_i32_1 = arith.constant 0 : i32
    return %c0_i32, %c0_i32_0 : i32, i32
  }
  func.func @transform_13(%arg0: i32) -> (i32, i32, i32) {
    %c0_i32 = arith.constant 0 : i32
    %c0_i32_0 = arith.constant 0 : i32
    %c0_i32_1 = arith.constant 0 : i32
    return %arg0, %c0_i32, %c0_i32_0 : i32, i32, i32
  }
  func.func @transform_14(%arg0: i32) -> (i32, i32, i32) {
    %c0_i32 = arith.constant 0 : i32
    %c0_i32_0 = arith.constant 0 : i32
    %c0_i32_1 = arith.constant 0 : i32
    return %arg0, %c0_i32, %c0_i32_0 : i32, i32, i32
  }
  func.func @transform_15(%arg0: i32) -> (i32, i32, i32) {
    %c0_i32 = arith.constant 0 : i32
    %c0_i32_0 = arith.constant 0 : i32
    %c0_i32_1 = arith.constant 0 : i32
    return %arg0, %c0_i32, %c0_i32_0 : i32, i32, i32
  }
}

module attributes {stable_mosaic.version = 11 : i64} {
  func.func @_level_flow_kernel(%arg0: i32, %arg1: memref<1x4x128xf32, #tpu.memory_space<vmem>>, %arg2: memref<128x64xf32, #tpu.memory_space<vmem>>, %arg3: memref<3x2x4xf32, #tpu.memory_space<vmem>>, %arg4: memref<3x2x2xf32, #tpu.memory_space<vmem>>, %arg5: memref<2x3x64x32xf32, #tpu.memory_space<vmem>>, %arg6: memref<2x2x32xf32, #tpu.memory_space<vmem>>, %arg7: memref<2x3x32x64xf32, #tpu.memory_space<vmem>>, %arg8: memref<2x1x64xf32, #tpu.memory_space<vmem>>, %arg9: memref<64x32xf32, #tpu.memory_space<vmem>>, %arg10: memref<64x64xf32, #tpu.memory_space<vmem>>, %arg11: memref<32x64xf32, #tpu.memory_space<vmem>>, %arg12: memref<64x64xf32, #tpu.memory_space<vmem>>, %arg13: memref<1x2x64xf32, #tpu.memory_space<vmem>>, %arg14: memref<1x1x128xf32, #tpu.memory_space<vmem>>) attributes {dimension_semantics = [#tpu.dimension_semantics<parallel>], iteration_bounds = array<i64: 2>, scalar_prefetch = 0 : i64, scratch_operands = 0 : i64, tpu.core_type = #tpu.core_type<tc>, window_params = [{transform_indices = @transform_0, window_bounds = array<i64: 1, 4, 128>}, {pipeline_mode = #tpu.pipeline_mode<synchronous>, transform_indices = @transform_1, window_bounds = array<i64: 128, 64>}, {pipeline_mode = #tpu.pipeline_mode<synchronous>, transform_indices = @transform_2, window_bounds = array<i64: 3, 2, 4>}, {pipeline_mode = #tpu.pipeline_mode<synchronous>, transform_indices = @transform_3, window_bounds = array<i64: 3, 2, 2>}, {pipeline_mode = #tpu.pipeline_mode<synchronous>, transform_indices = @transform_4, window_bounds = array<i64: 2, 3, 64, 32>}, {pipeline_mode = #tpu.pipeline_mode<synchronous>, transform_indices = @transform_5, window_bounds = array<i64: 2, 2, 32>}, {pipeline_mode = #tpu.pipeline_mode<synchronous>, transform_indices = @transform_6, window_bounds = array<i64: 2, 3, 32, 64>}, {pipeline_mode = #tpu.pipeline_mode<synchronous>, transform_indices = @transform_7, window_bounds = array<i64: 2, 1, 64>}, {pipeline_mode = #tpu.pipeline_mode<synchronous>, transform_indices = @transform_8, window_bounds = array<i64: 64, 32>}, {pipeline_mode = #tpu.pipeline_mode<synchronous>, transform_indices = @transform_9, window_bounds = array<i64: 64, 64>}, {pipeline_mode = #tpu.pipeline_mode<synchronous>, transform_indices = @transform_10, window_bounds = array<i64: 32, 64>}, {pipeline_mode = #tpu.pipeline_mode<synchronous>, transform_indices = @transform_11, window_bounds = array<i64: 64, 64>}, {transform_indices = @transform_12, window_bounds = array<i64: 1, 2, 64>}, {transform_indices = @transform_13, window_bounds = array<i64: 1, 1, 128>}]} {
    %c0 = arith.constant 0 : index
    %c0_0 = arith.constant 0 : index
    %c0_1 = arith.constant 0 : index
    %0 = vector.load %arg1[%c0, %c0_0, %c0_1] : memref<1x4x128xf32, #tpu.memory_space<vmem>>, vector<1x4x128xf32>
    %1 = vector.shape_cast %0 : vector<1x4x128xf32> to vector<4x128xf32>
    %c0_2 = arith.constant 0 : index
    %c0_3 = arith.constant 0 : index
    %2 = vector.load %arg2[%c0_2, %c0_3] : memref<128x64xf32, #tpu.memory_space<vmem>>, vector<128x64xf32>
    %cst = arith.constant dense<0.000000e+00> : vector<4x64xf32>
    %3 = tpu.matmul %1, %2, %cst {dimension_numbers = #tpu.dot_dimension_numbers<[1], [0], [0], [1], [0, 0, 1, 1], [], []>} : vector<4x128xf32>, vector<128x64xf32>, vector<4x64xf32> -> vector<4x64xf32>
    %c0_4 = arith.constant 0 : index
    %c0_5 = arith.constant 0 : index
    %c0_6 = arith.constant 0 : index
    %4 = vector.load %arg3[%c0_4, %c0_5, %c0_6] : memref<3x2x4xf32, #tpu.memory_space<vmem>>, vector<1x2x4xf32>
    %5 = vector.shape_cast %4 : vector<1x2x4xf32> to vector<2x4xf32>
    %cst_7 = arith.constant dense<0.000000e+00> : vector<2x64xf32>
    %6 = tpu.matmul %5, %3, %cst_7 {dimension_numbers = #tpu.dot_dimension_numbers<[1], [0], [0], [1], [0, 0, 1, 1], [], []>} : vector<2x4xf32>, vector<4x64xf32>, vector<2x64xf32> -> vector<2x64xf32>
    %c1 = arith.constant 1 : index
    %c0_8 = arith.constant 0 : index
    %c0_9 = arith.constant 0 : index
    %7 = vector.load %arg3[%c1, %c0_8, %c0_9] : memref<3x2x4xf32, #tpu.memory_space<vmem>>, vector<1x2x4xf32>
    %8 = vector.shape_cast %7 : vector<1x2x4xf32> to vector<2x4xf32>
    %cst_10 = arith.constant dense<0.000000e+00> : vector<2x64xf32>
    %9 = tpu.matmul %8, %3, %cst_10 {dimension_numbers = #tpu.dot_dimension_numbers<[1], [0], [0], [1], [0, 0, 1, 1], [], []>} : vector<2x4xf32>, vector<4x64xf32>, vector<2x64xf32> -> vector<2x64xf32>
    %10 = arith.addf %6, %9 : vector<2x64xf32>
    %c2 = arith.constant 2 : index
    %c0_11 = arith.constant 0 : index
    %c0_12 = arith.constant 0 : index
    %11 = vector.load %arg3[%c2, %c0_11, %c0_12] : memref<3x2x4xf32, #tpu.memory_space<vmem>>, vector<1x2x4xf32>
    %12 = vector.shape_cast %11 : vector<1x2x4xf32> to vector<2x4xf32>
    %cst_13 = arith.constant dense<0.000000e+00> : vector<2x64xf32>
    %13 = tpu.matmul %12, %3, %cst_13 {dimension_numbers = #tpu.dot_dimension_numbers<[1], [0], [0], [1], [0, 0, 1, 1], [], []>} : vector<2x4xf32>, vector<4x64xf32>, vector<2x64xf32> -> vector<2x64xf32>
    %14 = arith.addf %10, %13 : vector<2x64xf32>
    %cst_14 = arith.constant 0.000000e+00 : f32
    %15 = vector.broadcast %cst_14 : f32 to vector<1x1xf32>
    %c0_15 = arith.constant 0 : index
    %c0_16 = arith.constant 0 : index
    %c0_17 = arith.constant 0 : index
    %c0_18 = arith.constant 0 : index
    %16 = vector.load %arg5[%c0_15, %c0_16, %c0_17, %c0_18] : memref<2x3x64x32xf32, #tpu.memory_space<vmem>>, vector<1x1x64x32xf32>
    %17 = vector.shape_cast %16 : vector<1x1x64x32xf32> to vector<64x32xf32>
    %cst_19 = arith.constant dense<0.000000e+00> : vector<2x32xf32>
    %18 = tpu.matmul %14, %17, %cst_19 {dimension_numbers = #tpu.dot_dimension_numbers<[1], [0], [0], [1], [0, 0, 1, 1], [], []>} : vector<2x64xf32>, vector<64x32xf32>, vector<2x32xf32> -> vector<2x32xf32>
    %c0_20 = arith.constant 0 : index
    %c0_21 = arith.constant 0 : index
    %c0_22 = arith.constant 0 : index
    %19 = vector.load %arg4[%c0_20, %c0_21, %c0_22] : memref<3x2x2xf32, #tpu.memory_space<vmem>>, vector<1x2x2xf32>
    %20 = vector.shape_cast %19 : vector<1x2x2xf32> to vector<2x2xf32>
    %cst_23 = arith.constant dense<0.000000e+00> : vector<2x32xf32>
    %21 = tpu.matmul %20, %18, %cst_23 {dimension_numbers = #tpu.dot_dimension_numbers<[1], [0], [0], [1], [0, 0, 1, 1], [], []>} : vector<2x2xf32>, vector<2x32xf32>, vector<2x32xf32> -> vector<2x32xf32>
    %c0_24 = arith.constant 0 : index
    %c1_25 = arith.constant 1 : index
    %c0_26 = arith.constant 0 : index
    %c0_27 = arith.constant 0 : index
    %22 = vector.load %arg5[%c0_24, %c1_25, %c0_26, %c0_27] : memref<2x3x64x32xf32, #tpu.memory_space<vmem>>, vector<1x1x64x32xf32>
    %23 = vector.shape_cast %22 : vector<1x1x64x32xf32> to vector<64x32xf32>
    %cst_28 = arith.constant dense<0.000000e+00> : vector<2x32xf32>
    %24 = tpu.matmul %14, %23, %cst_28 {dimension_numbers = #tpu.dot_dimension_numbers<[1], [0], [0], [1], [0, 0, 1, 1], [], []>} : vector<2x64xf32>, vector<64x32xf32>, vector<2x32xf32> -> vector<2x32xf32>
    %c1_29 = arith.constant 1 : index
    %c0_30 = arith.constant 0 : index
    %c0_31 = arith.constant 0 : index
    %25 = vector.load %arg4[%c1_29, %c0_30, %c0_31] : memref<3x2x2xf32, #tpu.memory_space<vmem>>, vector<1x2x2xf32>
    %26 = vector.shape_cast %25 : vector<1x2x2xf32> to vector<2x2xf32>
    %cst_32 = arith.constant dense<0.000000e+00> : vector<2x32xf32>
    %27 = tpu.matmul %26, %24, %cst_32 {dimension_numbers = #tpu.dot_dimension_numbers<[1], [0], [0], [1], [0, 0, 1, 1], [], []>} : vector<2x2xf32>, vector<2x32xf32>, vector<2x32xf32> -> vector<2x32xf32>
    %28 = arith.addf %21, %27 : vector<2x32xf32>
    %c0_33 = arith.constant 0 : index
    %c2_34 = arith.constant 2 : index
    %c0_35 = arith.constant 0 : index
    %c0_36 = arith.constant 0 : index
    %29 = vector.load %arg5[%c0_33, %c2_34, %c0_35, %c0_36] : memref<2x3x64x32xf32, #tpu.memory_space<vmem>>, vector<1x1x64x32xf32>
    %30 = vector.shape_cast %29 : vector<1x1x64x32xf32> to vector<64x32xf32>
    %cst_37 = arith.constant dense<0.000000e+00> : vector<2x32xf32>
    %31 = tpu.matmul %14, %30, %cst_37 {dimension_numbers = #tpu.dot_dimension_numbers<[1], [0], [0], [1], [0, 0, 1, 1], [], []>} : vector<2x64xf32>, vector<64x32xf32>, vector<2x32xf32> -> vector<2x32xf32>
    %c2_38 = arith.constant 2 : index
    %c0_39 = arith.constant 0 : index
    %c0_40 = arith.constant 0 : index
    %32 = vector.load %arg4[%c2_38, %c0_39, %c0_40] : memref<3x2x2xf32, #tpu.memory_space<vmem>>, vector<1x2x2xf32>
    %33 = vector.shape_cast %32 : vector<1x2x2xf32> to vector<2x2xf32>
    %cst_41 = arith.constant dense<0.000000e+00> : vector<2x32xf32>
    %34 = tpu.matmul %33, %31, %cst_41 {dimension_numbers = #tpu.dot_dimension_numbers<[1], [0], [0], [1], [0, 0, 1, 1], [], []>} : vector<2x2xf32>, vector<2x32xf32>, vector<2x32xf32> -> vector<2x32xf32>
    %35 = arith.addf %28, %34 : vector<2x32xf32>
    %c0_42 = arith.constant 0 : index
    %c0_43 = arith.constant 0 : index
    %c0_44 = arith.constant 0 : index
    %36 = vector.load %arg6[%c0_42, %c0_43, %c0_44] : memref<2x2x32xf32, #tpu.memory_space<vmem>>, vector<1x2x32xf32>
    %37 = vector.shape_cast %36 : vector<1x2x32xf32> to vector<2x32xf32>
    %38 = arith.addf %35, %37 : vector<2x32xf32>
    %cst_45 = arith.constant 0.000000e+00 : f32
    %39 = vector.broadcast %cst_45 : f32 to vector<2x32xf32>
    %40 = arith.maximumf %38, %39 : vector<2x32xf32>
    %c0_46 = arith.constant 0 : index
    %c0_47 = arith.constant 0 : index
    %c0_48 = arith.constant 0 : index
    %c0_49 = arith.constant 0 : index
    %41 = vector.load %arg7[%c0_46, %c0_47, %c0_48, %c0_49] : memref<2x3x32x64xf32, #tpu.memory_space<vmem>>, vector<1x1x32x64xf32>
    %42 = vector.shape_cast %41 : vector<1x1x32x64xf32> to vector<32x64xf32>
    %cst_50 = arith.constant dense<0.000000e+00> : vector<2x64xf32>
    %43 = tpu.matmul %40, %42, %cst_50 {dimension_numbers = #tpu.dot_dimension_numbers<[1], [0], [0], [1], [0, 0, 1, 1], [], []>} : vector<2x32xf32>, vector<32x64xf32>, vector<2x64xf32> -> vector<2x64xf32>
    %c0_51 = arith.constant 0 : index
    %c0_52 = arith.constant 0 : index
    %c0_53 = arith.constant 0 : index
    %44 = vector.load %arg4[%c0_51, %c0_52, %c0_53] : memref<3x2x2xf32, #tpu.memory_space<vmem>>, vector<1x2x2xf32>
    %45 = vector.shape_cast %44 : vector<1x2x2xf32> to vector<2x2xf32>
    %cst_54 = arith.constant dense<0.000000e+00> : vector<2x64xf32>
    %46 = tpu.matmul %45, %43, %cst_54 {dimension_numbers = #tpu.dot_dimension_numbers<[1], [0], [0], [1], [0, 0, 1, 1], [], []>} : vector<2x2xf32>, vector<2x64xf32>, vector<2x64xf32> -> vector<2x64xf32>
    %c0_55 = arith.constant 0 : index
    %c1_56 = arith.constant 1 : index
    %c0_57 = arith.constant 0 : index
    %c0_58 = arith.constant 0 : index
    %47 = vector.load %arg7[%c0_55, %c1_56, %c0_57, %c0_58] : memref<2x3x32x64xf32, #tpu.memory_space<vmem>>, vector<1x1x32x64xf32>
    %48 = vector.shape_cast %47 : vector<1x1x32x64xf32> to vector<32x64xf32>
    %cst_59 = arith.constant dense<0.000000e+00> : vector<2x64xf32>
    %49 = tpu.matmul %40, %48, %cst_59 {dimension_numbers = #tpu.dot_dimension_numbers<[1], [0], [0], [1], [0, 0, 1, 1], [], []>} : vector<2x32xf32>, vector<32x64xf32>, vector<2x64xf32> -> vector<2x64xf32>
    %c1_60 = arith.constant 1 : index
    %c0_61 = arith.constant 0 : index
    %c0_62 = arith.constant 0 : index
    %50 = vector.load %arg4[%c1_60, %c0_61, %c0_62] : memref<3x2x2xf32, #tpu.memory_space<vmem>>, vector<1x2x2xf32>
    %51 = vector.shape_cast %50 : vector<1x2x2xf32> to vector<2x2xf32>
    %cst_63 = arith.constant dense<0.000000e+00> : vector<2x64xf32>
    %52 = tpu.matmul %51, %49, %cst_63 {dimension_numbers = #tpu.dot_dimension_numbers<[1], [0], [0], [1], [0, 0, 1, 1], [], []>} : vector<2x2xf32>, vector<2x64xf32>, vector<2x64xf32> -> vector<2x64xf32>
    %53 = arith.addf %46, %52 : vector<2x64xf32>
    %c0_64 = arith.constant 0 : index
    %c2_65 = arith.constant 2 : index
    %c0_66 = arith.constant 0 : index
    %c0_67 = arith.constant 0 : index
    %54 = vector.load %arg7[%c0_64, %c2_65, %c0_66, %c0_67] : memref<2x3x32x64xf32, #tpu.memory_space<vmem>>, vector<1x1x32x64xf32>
    %55 = vector.shape_cast %54 : vector<1x1x32x64xf32> to vector<32x64xf32>
    %cst_68 = arith.constant dense<0.000000e+00> : vector<2x64xf32>
    %56 = tpu.matmul %40, %55, %cst_68 {dimension_numbers = #tpu.dot_dimension_numbers<[1], [0], [0], [1], [0, 0, 1, 1], [], []>} : vector<2x32xf32>, vector<32x64xf32>, vector<2x64xf32> -> vector<2x64xf32>
    %c2_69 = arith.constant 2 : index
    %c0_70 = arith.constant 0 : index
    %c0_71 = arith.constant 0 : index
    %57 = vector.load %arg4[%c2_69, %c0_70, %c0_71] : memref<3x2x2xf32, #tpu.memory_space<vmem>>, vector<1x2x2xf32>
    %58 = vector.shape_cast %57 : vector<1x2x2xf32> to vector<2x2xf32>
    %cst_72 = arith.constant dense<0.000000e+00> : vector<2x64xf32>
    %59 = tpu.matmul %58, %56, %cst_72 {dimension_numbers = #tpu.dot_dimension_numbers<[1], [0], [0], [1], [0, 0, 1, 1], [], []>} : vector<2x2xf32>, vector<2x64xf32>, vector<2x64xf32> -> vector<2x64xf32>
    %60 = arith.addf %53, %59 : vector<2x64xf32>
    %c0_73 = arith.constant 0 : index
    %c0_74 = arith.constant 0 : index
    %c0_75 = arith.constant 0 : index
    %61 = vector.load %arg8[%c0_73, %c0_74, %c0_75] : memref<2x1x64xf32, #tpu.memory_space<vmem>>, vector<1x1x64xf32>
    %62 = vector.shape_cast %61 : vector<1x1x64xf32> to vector<1x64xf32>
    %63 = vector.broadcast %62 : vector<1x64xf32> to vector<2x64xf32>
    %64 = arith.addf %60, %63 : vector<2x64xf32>
    %65 = vector.extract_strided_slice %64 {offsets = [0, 0], sizes = [2, 32], strides = [1, 1]} : vector<2x64xf32> to vector<2x32xf32>
    %66 = math.tanh %65 : vector<2x32xf32>
    %cst_76 = arith.constant 1.900000e+00 : f32
    %67 = vector.broadcast %cst_76 : f32 to vector<2x32xf32>
    %68 = arith.mulf %67, %66 : vector<2x32xf32>
    %69 = vector.extract_strided_slice %64 {offsets = [0, 32], sizes = [2, 32], strides = [1, 1]} : vector<2x64xf32> to vector<2x32xf32>
    %c0_77 = arith.constant 0 : index
    %c0_78 = arith.constant 0 : index
    %70 = vector.load %arg9[%c0_77, %c0_78] : memref<64x32xf32, #tpu.memory_space<vmem>>, vector<64x32xf32>
    %cst_79 = arith.constant dense<0.000000e+00> : vector<2x32xf32>
    %71 = tpu.matmul %14, %70, %cst_79 {dimension_numbers = #tpu.dot_dimension_numbers<[1], [0], [0], [1], [0, 0, 1, 1], [], []>} : vector<2x64xf32>, vector<64x32xf32>, vector<2x32xf32> -> vector<2x32xf32>
    %72 = math.exp %68 : vector<2x32xf32>
    %73 = arith.mulf %71, %72 : vector<2x32xf32>
    %74 = arith.addf %73, %69 : vector<2x32xf32>
    %cst_80 = arith.constant dense<0.000000e+00> : vector<2xf32>
    %75 = vector.multi_reduction <add>, %68, %cst_80 [1] : vector<2x32xf32> to vector<2xf32>
    %76 = vector.shape_cast %75 : vector<2xf32> to vector<2x1xf32>
    %cst_81 = arith.constant dense<0.000000e+00> : vector<1xf32>
    %77 = vector.multi_reduction <add>, %76, %cst_81 [0] : vector<2x1xf32> to vector<1xf32>
    %78 = vector.shape_cast %77 : vector<1xf32> to vector<1x1xf32>
    %79 = arith.addf %15, %78 : vector<1x1xf32>
    %c0_82 = arith.constant 0 : index
    %c0_83 = arith.constant 0 : index
    %80 = vector.load %arg10[%c0_82, %c0_83] : memref<64x64xf32, #tpu.memory_space<vmem>>, vector<64x64xf32>
    %cst_84 = arith.constant dense<0.000000e+00> : vector<2x64xf32>
    %81 = tpu.matmul %14, %80, %cst_84 {dimension_numbers = #tpu.dot_dimension_numbers<[1], [0], [0], [1], [0, 0, 1, 1], [], []>} : vector<2x64xf32>, vector<64x64xf32>, vector<2x64xf32> -> vector<2x64xf32>
    %c0_85 = arith.constant 0 : index
    %c0_86 = arith.constant 0 : index
    %82 = vector.load %arg11[%c0_85, %c0_86] : memref<32x64xf32, #tpu.memory_space<vmem>>, vector<32x64xf32>
    %cst_87 = arith.constant dense<0.000000e+00> : vector<2x64xf32>
    %83 = tpu.matmul %74, %82, %cst_87 {dimension_numbers = #tpu.dot_dimension_numbers<[1], [0], [0], [1], [0, 0, 1, 1], [], []>} : vector<2x32xf32>, vector<32x64xf32>, vector<2x64xf32> -> vector<2x64xf32>
    %84 = arith.addf %81, %83 : vector<2x64xf32>
    %c1_88 = arith.constant 1 : index
    %c0_89 = arith.constant 0 : index
    %c0_90 = arith.constant 0 : index
    %c0_91 = arith.constant 0 : index
    %85 = vector.load %arg5[%c1_88, %c0_89, %c0_90, %c0_91] : memref<2x3x64x32xf32, #tpu.memory_space<vmem>>, vector<1x1x64x32xf32>
    %86 = vector.shape_cast %85 : vector<1x1x64x32xf32> to vector<64x32xf32>
    %cst_92 = arith.constant dense<0.000000e+00> : vector<2x32xf32>
    %87 = tpu.matmul %84, %86, %cst_92 {dimension_numbers = #tpu.dot_dimension_numbers<[1], [0], [0], [1], [0, 0, 1, 1], [], []>} : vector<2x64xf32>, vector<64x32xf32>, vector<2x32xf32> -> vector<2x32xf32>
    %c0_93 = arith.constant 0 : index
    %c0_94 = arith.constant 0 : index
    %c0_95 = arith.constant 0 : index
    %88 = vector.load %arg4[%c0_93, %c0_94, %c0_95] : memref<3x2x2xf32, #tpu.memory_space<vmem>>, vector<1x2x2xf32>
    %89 = vector.shape_cast %88 : vector<1x2x2xf32> to vector<2x2xf32>
    %cst_96 = arith.constant dense<0.000000e+00> : vector<2x32xf32>
    %90 = tpu.matmul %89, %87, %cst_96 {dimension_numbers = #tpu.dot_dimension_numbers<[1], [0], [0], [1], [0, 0, 1, 1], [], []>} : vector<2x2xf32>, vector<2x32xf32>, vector<2x32xf32> -> vector<2x32xf32>
    %c1_97 = arith.constant 1 : index
    %c1_98 = arith.constant 1 : index
    %c0_99 = arith.constant 0 : index
    %c0_100 = arith.constant 0 : index
    %91 = vector.load %arg5[%c1_97, %c1_98, %c0_99, %c0_100] : memref<2x3x64x32xf32, #tpu.memory_space<vmem>>, vector<1x1x64x32xf32>
    %92 = vector.shape_cast %91 : vector<1x1x64x32xf32> to vector<64x32xf32>
    %cst_101 = arith.constant dense<0.000000e+00> : vector<2x32xf32>
    %93 = tpu.matmul %84, %92, %cst_101 {dimension_numbers = #tpu.dot_dimension_numbers<[1], [0], [0], [1], [0, 0, 1, 1], [], []>} : vector<2x64xf32>, vector<64x32xf32>, vector<2x32xf32> -> vector<2x32xf32>
    %c1_102 = arith.constant 1 : index
    %c0_103 = arith.constant 0 : index
    %c0_104 = arith.constant 0 : index
    %94 = vector.load %arg4[%c1_102, %c0_103, %c0_104] : memref<3x2x2xf32, #tpu.memory_space<vmem>>, vector<1x2x2xf32>
    %95 = vector.shape_cast %94 : vector<1x2x2xf32> to vector<2x2xf32>
    %cst_105 = arith.constant dense<0.000000e+00> : vector<2x32xf32>
    %96 = tpu.matmul %95, %93, %cst_105 {dimension_numbers = #tpu.dot_dimension_numbers<[1], [0], [0], [1], [0, 0, 1, 1], [], []>} : vector<2x2xf32>, vector<2x32xf32>, vector<2x32xf32> -> vector<2x32xf32>
    %97 = arith.addf %90, %96 : vector<2x32xf32>
    %c1_106 = arith.constant 1 : index
    %c2_107 = arith.constant 2 : index
    %c0_108 = arith.constant 0 : index
    %c0_109 = arith.constant 0 : index
    %98 = vector.load %arg5[%c1_106, %c2_107, %c0_108, %c0_109] : memref<2x3x64x32xf32, #tpu.memory_space<vmem>>, vector<1x1x64x32xf32>
    %99 = vector.shape_cast %98 : vector<1x1x64x32xf32> to vector<64x32xf32>
    %cst_110 = arith.constant dense<0.000000e+00> : vector<2x32xf32>
    %100 = tpu.matmul %84, %99, %cst_110 {dimension_numbers = #tpu.dot_dimension_numbers<[1], [0], [0], [1], [0, 0, 1, 1], [], []>} : vector<2x64xf32>, vector<64x32xf32>, vector<2x32xf32> -> vector<2x32xf32>
    %c2_111 = arith.constant 2 : index
    %c0_112 = arith.constant 0 : index
    %c0_113 = arith.constant 0 : index
    %101 = vector.load %arg4[%c2_111, %c0_112, %c0_113] : memref<3x2x2xf32, #tpu.memory_space<vmem>>, vector<1x2x2xf32>
    %102 = vector.shape_cast %101 : vector<1x2x2xf32> to vector<2x2xf32>
    %cst_114 = arith.constant dense<0.000000e+00> : vector<2x32xf32>
    %103 = tpu.matmul %102, %100, %cst_114 {dimension_numbers = #tpu.dot_dimension_numbers<[1], [0], [0], [1], [0, 0, 1, 1], [], []>} : vector<2x2xf32>, vector<2x32xf32>, vector<2x32xf32> -> vector<2x32xf32>
    %104 = arith.addf %97, %103 : vector<2x32xf32>
    %c1_115 = arith.constant 1 : index
    %c0_116 = arith.constant 0 : index
    %c0_117 = arith.constant 0 : index
    %105 = vector.load %arg6[%c1_115, %c0_116, %c0_117] : memref<2x2x32xf32, #tpu.memory_space<vmem>>, vector<1x2x32xf32>
    %106 = vector.shape_cast %105 : vector<1x2x32xf32> to vector<2x32xf32>
    %107 = arith.addf %104, %106 : vector<2x32xf32>
    %cst_118 = arith.constant 0.000000e+00 : f32
    %108 = vector.broadcast %cst_118 : f32 to vector<2x32xf32>
    %109 = arith.maximumf %107, %108 : vector<2x32xf32>
    %c1_119 = arith.constant 1 : index
    %c0_120 = arith.constant 0 : index
    %c0_121 = arith.constant 0 : index
    %c0_122 = arith.constant 0 : index
    %110 = vector.load %arg7[%c1_119, %c0_120, %c0_121, %c0_122] : memref<2x3x32x64xf32, #tpu.memory_space<vmem>>, vector<1x1x32x64xf32>
    %111 = vector.shape_cast %110 : vector<1x1x32x64xf32> to vector<32x64xf32>
    %cst_123 = arith.constant dense<0.000000e+00> : vector<2x64xf32>
    %112 = tpu.matmul %109, %111, %cst_123 {dimension_numbers = #tpu.dot_dimension_numbers<[1], [0], [0], [1], [0, 0, 1, 1], [], []>} : vector<2x32xf32>, vector<32x64xf32>, vector<2x64xf32> -> vector<2x64xf32>
    %c0_124 = arith.constant 0 : index
    %c0_125 = arith.constant 0 : index
    %c0_126 = arith.constant 0 : index
    %113 = vector.load %arg4[%c0_124, %c0_125, %c0_126] : memref<3x2x2xf32, #tpu.memory_space<vmem>>, vector<1x2x2xf32>
    %114 = vector.shape_cast %113 : vector<1x2x2xf32> to vector<2x2xf32>
    %cst_127 = arith.constant dense<0.000000e+00> : vector<2x64xf32>
    %115 = tpu.matmul %114, %112, %cst_127 {dimension_numbers = #tpu.dot_dimension_numbers<[1], [0], [0], [1], [0, 0, 1, 1], [], []>} : vector<2x2xf32>, vector<2x64xf32>, vector<2x64xf32> -> vector<2x64xf32>
    %c1_128 = arith.constant 1 : index
    %c1_129 = arith.constant 1 : index
    %c0_130 = arith.constant 0 : index
    %c0_131 = arith.constant 0 : index
    %116 = vector.load %arg7[%c1_128, %c1_129, %c0_130, %c0_131] : memref<2x3x32x64xf32, #tpu.memory_space<vmem>>, vector<1x1x32x64xf32>
    %117 = vector.shape_cast %116 : vector<1x1x32x64xf32> to vector<32x64xf32>
    %cst_132 = arith.constant dense<0.000000e+00> : vector<2x64xf32>
    %118 = tpu.matmul %109, %117, %cst_132 {dimension_numbers = #tpu.dot_dimension_numbers<[1], [0], [0], [1], [0, 0, 1, 1], [], []>} : vector<2x32xf32>, vector<32x64xf32>, vector<2x64xf32> -> vector<2x64xf32>
    %c1_133 = arith.constant 1 : index
    %c0_134 = arith.constant 0 : index
    %c0_135 = arith.constant 0 : index
    %119 = vector.load %arg4[%c1_133, %c0_134, %c0_135] : memref<3x2x2xf32, #tpu.memory_space<vmem>>, vector<1x2x2xf32>
    %120 = vector.shape_cast %119 : vector<1x2x2xf32> to vector<2x2xf32>
    %cst_136 = arith.constant dense<0.000000e+00> : vector<2x64xf32>
    %121 = tpu.matmul %120, %118, %cst_136 {dimension_numbers = #tpu.dot_dimension_numbers<[1], [0], [0], [1], [0, 0, 1, 1], [], []>} : vector<2x2xf32>, vector<2x64xf32>, vector<2x64xf32> -> vector<2x64xf32>
    %122 = arith.addf %115, %121 : vector<2x64xf32>
    %c1_137 = arith.constant 1 : index
    %c2_138 = arith.constant 2 : index
    %c0_139 = arith.constant 0 : index
    %c0_140 = arith.constant 0 : index
    %123 = vector.load %arg7[%c1_137, %c2_138, %c0_139, %c0_140] : memref<2x3x32x64xf32, #tpu.memory_space<vmem>>, vector<1x1x32x64xf32>
    %124 = vector.shape_cast %123 : vector<1x1x32x64xf32> to vector<32x64xf32>
    %cst_141 = arith.constant dense<0.000000e+00> : vector<2x64xf32>
    %125 = tpu.matmul %109, %124, %cst_141 {dimension_numbers = #tpu.dot_dimension_numbers<[1], [0], [0], [1], [0, 0, 1, 1], [], []>} : vector<2x32xf32>, vector<32x64xf32>, vector<2x64xf32> -> vector<2x64xf32>
    %c2_142 = arith.constant 2 : index
    %c0_143 = arith.constant 0 : index
    %c0_144 = arith.constant 0 : index
    %126 = vector.load %arg4[%c2_142, %c0_143, %c0_144] : memref<3x2x2xf32, #tpu.memory_space<vmem>>, vector<1x2x2xf32>
    %127 = vector.shape_cast %126 : vector<1x2x2xf32> to vector<2x2xf32>
    %cst_145 = arith.constant dense<0.000000e+00> : vector<2x64xf32>
    %128 = tpu.matmul %127, %125, %cst_145 {dimension_numbers = #tpu.dot_dimension_numbers<[1], [0], [0], [1], [0, 0, 1, 1], [], []>} : vector<2x2xf32>, vector<2x64xf32>, vector<2x64xf32> -> vector<2x64xf32>
    %129 = arith.addf %122, %128 : vector<2x64xf32>
    %c1_146 = arith.constant 1 : index
    %c0_147 = arith.constant 0 : index
    %c0_148 = arith.constant 0 : index
    %130 = vector.load %arg8[%c1_146, %c0_147, %c0_148] : memref<2x1x64xf32, #tpu.memory_space<vmem>>, vector<1x1x64xf32>
    %131 = vector.shape_cast %130 : vector<1x1x64xf32> to vector<1x64xf32>
    %132 = vector.broadcast %131 : vector<1x64xf32> to vector<2x64xf32>
    %133 = arith.addf %129, %132 : vector<2x64xf32>
    %134 = vector.extract_strided_slice %133 {offsets = [0, 0], sizes = [2, 32], strides = [1, 1]} : vector<2x64xf32> to vector<2x32xf32>
    %135 = math.tanh %134 : vector<2x32xf32>
    %cst_149 = arith.constant 1.900000e+00 : f32
    %136 = vector.broadcast %cst_149 : f32 to vector<2x32xf32>
    %137 = arith.mulf %136, %135 : vector<2x32xf32>
    %138 = vector.extract_strided_slice %133 {offsets = [0, 32], sizes = [2, 32], strides = [1, 1]} : vector<2x64xf32> to vector<2x32xf32>
    %c0_150 = arith.constant 0 : index
    %c0_151 = arith.constant 0 : index
    %139 = vector.load %arg9[%c0_150, %c0_151] : memref<64x32xf32, #tpu.memory_space<vmem>>, vector<64x32xf32>
    %cst_152 = arith.constant dense<0.000000e+00> : vector<2x32xf32>
    %140 = tpu.matmul %84, %139, %cst_152 {dimension_numbers = #tpu.dot_dimension_numbers<[1], [0], [0], [1], [0, 0, 1, 1], [], []>} : vector<2x64xf32>, vector<64x32xf32>, vector<2x32xf32> -> vector<2x32xf32>
    %141 = math.exp %137 : vector<2x32xf32>
    %142 = arith.mulf %140, %141 : vector<2x32xf32>
    %143 = arith.addf %142, %138 : vector<2x32xf32>
    %cst_153 = arith.constant dense<0.000000e+00> : vector<2xf32>
    %144 = vector.multi_reduction <add>, %137, %cst_153 [1] : vector<2x32xf32> to vector<2xf32>
    %145 = vector.shape_cast %144 : vector<2xf32> to vector<2x1xf32>
    %cst_154 = arith.constant dense<0.000000e+00> : vector<1xf32>
    %146 = vector.multi_reduction <add>, %145, %cst_154 [0] : vector<2x1xf32> to vector<1xf32>
    %147 = vector.shape_cast %146 : vector<1xf32> to vector<1x1xf32>
    %148 = arith.addf %79, %147 : vector<1x1xf32>
    %c0_155 = arith.constant 0 : index
    %c0_156 = arith.constant 0 : index
    %149 = vector.load %arg10[%c0_155, %c0_156] : memref<64x64xf32, #tpu.memory_space<vmem>>, vector<64x64xf32>
    %cst_157 = arith.constant dense<0.000000e+00> : vector<2x64xf32>
    %150 = tpu.matmul %84, %149, %cst_157 {dimension_numbers = #tpu.dot_dimension_numbers<[1], [0], [0], [1], [0, 0, 1, 1], [], []>} : vector<2x64xf32>, vector<64x64xf32>, vector<2x64xf32> -> vector<2x64xf32>
    %c0_158 = arith.constant 0 : index
    %c0_159 = arith.constant 0 : index
    %151 = vector.load %arg11[%c0_158, %c0_159] : memref<32x64xf32, #tpu.memory_space<vmem>>, vector<32x64xf32>
    %cst_160 = arith.constant dense<0.000000e+00> : vector<2x64xf32>
    %152 = tpu.matmul %143, %151, %cst_160 {dimension_numbers = #tpu.dot_dimension_numbers<[1], [0], [0], [1], [0, 0, 1, 1], [], []>} : vector<2x32xf32>, vector<32x64xf32>, vector<2x64xf32> -> vector<2x64xf32>
    %153 = arith.addf %150, %152 : vector<2x64xf32>
    %c0_161 = arith.constant 0 : index
    %c0_162 = arith.constant 0 : index
    %154 = vector.load %arg12[%c0_161, %c0_162] : memref<64x64xf32, #tpu.memory_space<vmem>>, vector<64x64xf32>
    %cst_163 = arith.constant dense<0.000000e+00> : vector<2x64xf32>
    %155 = tpu.matmul %153, %154, %cst_163 {dimension_numbers = #tpu.dot_dimension_numbers<[1], [0], [0], [1], [0, 0, 1, 1], [], []>} : vector<2x64xf32>, vector<64x64xf32>, vector<2x64xf32> -> vector<2x64xf32>
    %c0_164 = arith.constant 0 : index
    %c0_165 = arith.constant 0 : index
    %c0_166 = arith.constant 0 : index
    %156 = vector.load %arg13[%c0_164, %c0_165, %c0_166] : memref<1x2x64xf32, #tpu.memory_space<vmem>>, vector<1x2x64xf32>
    %157 = vector.shape_cast %156 : vector<1x2x64xf32> to vector<2x64xf32>
    %158 = vector.shape_cast %155 : vector<2x64xf32> to vector<1x2x64xf32>
    tpu.vector_store %arg13[%c0_164, %c0_165, %c0_166], %158 {strides = array<i32>} : memref<1x2x64xf32, #tpu.memory_space<vmem>>, vector<1x2x64xf32>,
    %159 = vector.shape_cast %148 : vector<1x1xf32> to vector<1x1xf32>
    %160 = vector.broadcast %159 : vector<1x1xf32> to vector<1x128xf32>
    %c0_167 = arith.constant 0 : index
    %c0_168 = arith.constant 0 : index
    %c0_169 = arith.constant 0 : index
    %161 = vector.load %arg14[%c0_167, %c0_168, %c0_169] : memref<1x1x128xf32, #tpu.memory_space<vmem>>, vector<1x1x128xf32>
    %162 = vector.shape_cast %161 : vector<1x1x128xf32> to vector<1x128xf32>
    %163 = vector.shape_cast %160 : vector<1x128xf32> to vector<1x1x128xf32>
    tpu.vector_store %arg14[%c0_167, %c0_168, %c0_169], %163 {strides = array<i32>} : memref<1x1x128xf32, #tpu.memory_space<vmem>>, vector<1x1x128xf32>,
    return
  }
  func.func @transform_0(%arg0: i32) -> (i32, i32, i32) {
    %c0_i32 = arith.constant 0 : i32
    %c0_i32_0 = arith.constant 0 : i32
    %c0_i32_1 = arith.constant 0 : i32
    return %arg0, %c0_i32, %c0_i32_0 : i32, i32, i32
  }
  func.func @transform_1(%arg0: i32) -> (i32, i32) {
    %c0_i32 = arith.constant 0 : i32
    %c0_i32_0 = arith.constant 0 : i32
    %c0_i32_1 = arith.constant 0 : i32
    return %c0_i32, %c0_i32_0 : i32, i32
  }
  func.func @transform_2(%arg0: i32) -> (i32, i32, i32) {
    %c0_i32 = arith.constant 0 : i32
    %c0_i32_0 = arith.constant 0 : i32
    %c0_i32_1 = arith.constant 0 : i32
    %c0_i32_2 = arith.constant 0 : i32
    return %c0_i32, %c0_i32_0, %c0_i32_1 : i32, i32, i32
  }
  func.func @transform_3(%arg0: i32) -> (i32, i32, i32) {
    %c0_i32 = arith.constant 0 : i32
    %c0_i32_0 = arith.constant 0 : i32
    %c0_i32_1 = arith.constant 0 : i32
    %c0_i32_2 = arith.constant 0 : i32
    return %c0_i32, %c0_i32_0, %c0_i32_1 : i32, i32, i32
  }
  func.func @transform_4(%arg0: i32) -> (i32, i32, i32, i32) {
    %c0_i32 = arith.constant 0 : i32
    %c0_i32_0 = arith.constant 0 : i32
    %c0_i32_1 = arith.constant 0 : i32
    %c0_i32_2 = arith.constant 0 : i32
    %c0_i32_3 = arith.constant 0 : i32
    return %c0_i32, %c0_i32_0, %c0_i32_1, %c0_i32_2 : i32, i32, i32, i32
  }
  func.func @transform_5(%arg0: i32) -> (i32, i32, i32) {
    %c0_i32 = arith.constant 0 : i32
    %c0_i32_0 = arith.constant 0 : i32
    %c0_i32_1 = arith.constant 0 : i32
    %c0_i32_2 = arith.constant 0 : i32
    return %c0_i32, %c0_i32_0, %c0_i32_1 : i32, i32, i32
  }
  func.func @transform_6(%arg0: i32) -> (i32, i32, i32, i32) {
    %c0_i32 = arith.constant 0 : i32
    %c0_i32_0 = arith.constant 0 : i32
    %c0_i32_1 = arith.constant 0 : i32
    %c0_i32_2 = arith.constant 0 : i32
    %c0_i32_3 = arith.constant 0 : i32
    return %c0_i32, %c0_i32_0, %c0_i32_1, %c0_i32_2 : i32, i32, i32, i32
  }
  func.func @transform_7(%arg0: i32) -> (i32, i32, i32) {
    %c0_i32 = arith.constant 0 : i32
    %c0_i32_0 = arith.constant 0 : i32
    %c0_i32_1 = arith.constant 0 : i32
    %c0_i32_2 = arith.constant 0 : i32
    return %c0_i32, %c0_i32_0, %c0_i32_1 : i32, i32, i32
  }
  func.func @transform_8(%arg0: i32) -> (i32, i32) {
    %c0_i32 = arith.constant 0 : i32
    %c0_i32_0 = arith.constant 0 : i32
    %c0_i32_1 = arith.constant 0 : i32
    return %c0_i32, %c0_i32_0 : i32, i32
  }
  func.func @transform_9(%arg0: i32) -> (i32, i32) {
    %c0_i32 = arith.constant 0 : i32
    %c0_i32_0 = arith.constant 0 : i32
    %c0_i32_1 = arith.constant 0 : i32
    return %c0_i32, %c0_i32_0 : i32, i32
  }
  func.func @transform_10(%arg0: i32) -> (i32, i32) {
    %c0_i32 = arith.constant 0 : i32
    %c0_i32_0 = arith.constant 0 : i32
    %c0_i32_1 = arith.constant 0 : i32
    return %c0_i32, %c0_i32_0 : i32, i32
  }
  func.func @transform_11(%arg0: i32) -> (i32, i32) {
    %c0_i32 = arith.constant 0 : i32
    %c0_i32_0 = arith.constant 0 : i32
    %c0_i32_1 = arith.constant 0 : i32
    return %c0_i32, %c0_i32_0 : i32, i32
  }
  func.func @transform_12(%arg0: i32) -> (i32, i32, i32) {
    %c0_i32 = arith.constant 0 : i32
    %c0_i32_0 = arith.constant 0 : i32
    %c0_i32_1 = arith.constant 0 : i32
    return %arg0, %c0_i32, %c0_i32_0 : i32, i32, i32
  }
  func.func @transform_13(%arg0: i32) -> (i32, i32, i32) {
    %c0_i32 = arith.constant 0 : i32
    %c0_i32_0 = arith.constant 0 : i32
    %c0_i32_1 = arith.constant 0 : i32
    return %arg0, %c0_i32, %c0_i32_0 : i32, i32, i32
  }
}

module attributes {stable_mosaic.version = 11 : i64} {
  func.func @_level_flow_kernel(%arg0: i32, %arg1: memref<1x16x128xf32, #tpu.memory_space<vmem>>, %arg2: memref<128x64xf32, #tpu.memory_space<vmem>>, %arg3: memref<3x8x16xf32, #tpu.memory_space<vmem>>, %arg4: memref<3x8x8xf32, #tpu.memory_space<vmem>>, %arg5: memref<2x3x64x128xf32, #tpu.memory_space<vmem>>, %arg6: memref<2x8x128xf32, #tpu.memory_space<vmem>>, %arg7: memref<2x3x128x64xf32, #tpu.memory_space<vmem>>, %arg8: memref<2x1x64xf32, #tpu.memory_space<vmem>>, %arg9: memref<64x32xf32, #tpu.memory_space<vmem>>, %arg10: memref<64x64xf32, #tpu.memory_space<vmem>>, %arg11: memref<32x64xf32, #tpu.memory_space<vmem>>, %arg12: memref<64x64xf32, #tpu.memory_space<vmem>>, %arg13: memref<1x8x64xf32, #tpu.memory_space<vmem>>, %arg14: memref<1x1x128xf32, #tpu.memory_space<vmem>>) attributes {dimension_semantics = [#tpu.dimension_semantics<parallel>], iteration_bounds = array<i64: 2>, scalar_prefetch = 0 : i64, scratch_operands = 0 : i64, tpu.core_type = #tpu.core_type<tc>, window_params = [{transform_indices = @transform_0, window_bounds = array<i64: 1, 16, 128>}, {pipeline_mode = #tpu.pipeline_mode<synchronous>, transform_indices = @transform_1, window_bounds = array<i64: 128, 64>}, {pipeline_mode = #tpu.pipeline_mode<synchronous>, transform_indices = @transform_2, window_bounds = array<i64: 3, 8, 16>}, {pipeline_mode = #tpu.pipeline_mode<synchronous>, transform_indices = @transform_3, window_bounds = array<i64: 3, 8, 8>}, {pipeline_mode = #tpu.pipeline_mode<synchronous>, transform_indices = @transform_4, window_bounds = array<i64: 2, 3, 64, 128>}, {pipeline_mode = #tpu.pipeline_mode<synchronous>, transform_indices = @transform_5, window_bounds = array<i64: 2, 8, 128>}, {pipeline_mode = #tpu.pipeline_mode<synchronous>, transform_indices = @transform_6, window_bounds = array<i64: 2, 3, 128, 64>}, {pipeline_mode = #tpu.pipeline_mode<synchronous>, transform_indices = @transform_7, window_bounds = array<i64: 2, 1, 64>}, {pipeline_mode = #tpu.pipeline_mode<synchronous>, transform_indices = @transform_8, window_bounds = array<i64: 64, 32>}, {pipeline_mode = #tpu.pipeline_mode<synchronous>, transform_indices = @transform_9, window_bounds = array<i64: 64, 64>}, {pipeline_mode = #tpu.pipeline_mode<synchronous>, transform_indices = @transform_10, window_bounds = array<i64: 32, 64>}, {pipeline_mode = #tpu.pipeline_mode<synchronous>, transform_indices = @transform_11, window_bounds = array<i64: 64, 64>}, {transform_indices = @transform_12, window_bounds = array<i64: 1, 8, 64>}, {transform_indices = @transform_13, window_bounds = array<i64: 1, 1, 128>}]} {
    %c0 = arith.constant 0 : index
    %c0_0 = arith.constant 0 : index
    %c0_1 = arith.constant 0 : index
    %0 = vector.load %arg1[%c0, %c0_0, %c0_1] : memref<1x16x128xf32, #tpu.memory_space<vmem>>, vector<1x16x128xf32>
    %1 = vector.shape_cast %0 : vector<1x16x128xf32> to vector<16x128xf32>
    %c0_2 = arith.constant 0 : index
    %c0_3 = arith.constant 0 : index
    %2 = vector.load %arg2[%c0_2, %c0_3] : memref<128x64xf32, #tpu.memory_space<vmem>>, vector<128x64xf32>
    %cst = arith.constant dense<0.000000e+00> : vector<16x64xf32>
    %3 = tpu.matmul %1, %2, %cst {dimension_numbers = #tpu.dot_dimension_numbers<[1], [0], [0], [1], [0, 0, 1, 1], [], []>} : vector<16x128xf32>, vector<128x64xf32>, vector<16x64xf32> -> vector<16x64xf32>
    %c0_4 = arith.constant 0 : index
    %c0_5 = arith.constant 0 : index
    %c0_6 = arith.constant 0 : index
    %4 = vector.load %arg3[%c0_4, %c0_5, %c0_6] : memref<3x8x16xf32, #tpu.memory_space<vmem>>, vector<1x8x16xf32>
    %5 = vector.shape_cast %4 : vector<1x8x16xf32> to vector<8x16xf32>
    %cst_7 = arith.constant dense<0.000000e+00> : vector<8x64xf32>
    %6 = tpu.matmul %5, %3, %cst_7 {dimension_numbers = #tpu.dot_dimension_numbers<[1], [0], [0], [1], [0, 0, 1, 1], [], []>} : vector<8x16xf32>, vector<16x64xf32>, vector<8x64xf32> -> vector<8x64xf32>
    %c1 = arith.constant 1 : index
    %c0_8 = arith.constant 0 : index
    %c0_9 = arith.constant 0 : index
    %7 = vector.load %arg3[%c1, %c0_8, %c0_9] : memref<3x8x16xf32, #tpu.memory_space<vmem>>, vector<1x8x16xf32>
    %8 = vector.shape_cast %7 : vector<1x8x16xf32> to vector<8x16xf32>
    %cst_10 = arith.constant dense<0.000000e+00> : vector<8x64xf32>
    %9 = tpu.matmul %8, %3, %cst_10 {dimension_numbers = #tpu.dot_dimension_numbers<[1], [0], [0], [1], [0, 0, 1, 1], [], []>} : vector<8x16xf32>, vector<16x64xf32>, vector<8x64xf32> -> vector<8x64xf32>
    %10 = arith.addf %6, %9 : vector<8x64xf32>
    %c2 = arith.constant 2 : index
    %c0_11 = arith.constant 0 : index
    %c0_12 = arith.constant 0 : index
    %11 = vector.load %arg3[%c2, %c0_11, %c0_12] : memref<3x8x16xf32, #tpu.memory_space<vmem>>, vector<1x8x16xf32>
    %12 = vector.shape_cast %11 : vector<1x8x16xf32> to vector<8x16xf32>
    %cst_13 = arith.constant dense<0.000000e+00> : vector<8x64xf32>
    %13 = tpu.matmul %12, %3, %cst_13 {dimension_numbers = #tpu.dot_dimension_numbers<[1], [0], [0], [1], [0, 0, 1, 1], [], []>} : vector<8x16xf32>, vector<16x64xf32>, vector<8x64xf32> -> vector<8x64xf32>
    %14 = arith.addf %10, %13 : vector<8x64xf32>
    %cst_14 = arith.constant 0.000000e+00 : f32
    %15 = vector.broadcast %cst_14 : f32 to vector<1x1xf32>
    %c0_15 = arith.constant 0 : index
    %c0_16 = arith.constant 0 : index
    %c0_17 = arith.constant 0 : index
    %c0_18 = arith.constant 0 : index
    %16 = vector.load %arg5[%c0_15, %c0_16, %c0_17, %c0_18] : memref<2x3x64x128xf32, #tpu.memory_space<vmem>>, vector<1x1x64x128xf32>
    %17 = vector.shape_cast %16 : vector<1x1x64x128xf32> to vector<64x128xf32>
    %cst_19 = arith.constant dense<0.000000e+00> : vector<8x128xf32>
    %18 = tpu.matmul %14, %17, %cst_19 {dimension_numbers = #tpu.dot_dimension_numbers<[1], [0], [0], [1], [0, 0, 1, 1], [], []>} : vector<8x64xf32>, vector<64x128xf32>, vector<8x128xf32> -> vector<8x128xf32>
    %c0_20 = arith.constant 0 : index
    %c0_21 = arith.constant 0 : index
    %c0_22 = arith.constant 0 : index
    %19 = vector.load %arg4[%c0_20, %c0_21, %c0_22] : memref<3x8x8xf32, #tpu.memory_space<vmem>>, vector<1x8x8xf32>
    %20 = vector.shape_cast %19 : vector<1x8x8xf32> to vector<8x8xf32>
    %cst_23 = arith.constant dense<0.000000e+00> : vector<8x128xf32>
    %21 = tpu.matmul %20, %18, %cst_23 {dimension_numbers = #tpu.dot_dimension_numbers<[1], [0], [0], [1], [0, 0, 1, 1], [], []>} : vector<8x8xf32>, vector<8x128xf32>, vector<8x128xf32> -> vector<8x128xf32>
    %c0_24 = arith.constant 0 : index
    %c1_25 = arith.constant 1 : index
    %c0_26 = arith.constant 0 : index
    %c0_27 = arith.constant 0 : index
    %22 = vector.load %arg5[%c0_24, %c1_25, %c0_26, %c0_27] : memref<2x3x64x128xf32, #tpu.memory_space<vmem>>, vector<1x1x64x128xf32>
    %23 = vector.shape_cast %22 : vector<1x1x64x128xf32> to vector<64x128xf32>
    %cst_28 = arith.constant dense<0.000000e+00> : vector<8x128xf32>
    %24 = tpu.matmul %14, %23, %cst_28 {dimension_numbers = #tpu.dot_dimension_numbers<[1], [0], [0], [1], [0, 0, 1, 1], [], []>} : vector<8x64xf32>, vector<64x128xf32>, vector<8x128xf32> -> vector<8x128xf32>
    %c1_29 = arith.constant 1 : index
    %c0_30 = arith.constant 0 : index
    %c0_31 = arith.constant 0 : index
    %25 = vector.load %arg4[%c1_29, %c0_30, %c0_31] : memref<3x8x8xf32, #tpu.memory_space<vmem>>, vector<1x8x8xf32>
    %26 = vector.shape_cast %25 : vector<1x8x8xf32> to vector<8x8xf32>
    %cst_32 = arith.constant dense<0.000000e+00> : vector<8x128xf32>
    %27 = tpu.matmul %26, %24, %cst_32 {dimension_numbers = #tpu.dot_dimension_numbers<[1], [0], [0], [1], [0, 0, 1, 1], [], []>} : vector<8x8xf32>, vector<8x128xf32>, vector<8x128xf32> -> vector<8x128xf32>
    %28 = arith.addf %21, %27 : vector<8x128xf32>
    %c0_33 = arith.constant 0 : index
    %c2_34 = arith.constant 2 : index
    %c0_35 = arith.constant 0 : index
    %c0_36 = arith.constant 0 : index
    %29 = vector.load %arg5[%c0_33, %c2_34, %c0_35, %c0_36] : memref<2x3x64x128xf32, #tpu.memory_space<vmem>>, vector<1x1x64x128xf32>
    %30 = vector.shape_cast %29 : vector<1x1x64x128xf32> to vector<64x128xf32>
    %cst_37 = arith.constant dense<0.000000e+00> : vector<8x128xf32>
    %31 = tpu.matmul %14, %30, %cst_37 {dimension_numbers = #tpu.dot_dimension_numbers<[1], [0], [0], [1], [0, 0, 1, 1], [], []>} : vector<8x64xf32>, vector<64x128xf32>, vector<8x128xf32> -> vector<8x128xf32>
    %c2_38 = arith.constant 2 : index
    %c0_39 = arith.constant 0 : index
    %c0_40 = arith.constant 0 : index
    %32 = vector.load %arg4[%c2_38, %c0_39, %c0_40] : memref<3x8x8xf32, #tpu.memory_space<vmem>>, vector<1x8x8xf32>
    %33 = vector.shape_cast %32 : vector<1x8x8xf32> to vector<8x8xf32>
    %cst_41 = arith.constant dense<0.000000e+00> : vector<8x128xf32>
    %34 = tpu.matmul %33, %31, %cst_41 {dimension_numbers = #tpu.dot_dimension_numbers<[1], [0], [0], [1], [0, 0, 1, 1], [], []>} : vector<8x8xf32>, vector<8x128xf32>, vector<8x128xf32> -> vector<8x128xf32>
    %35 = arith.addf %28, %34 : vector<8x128xf32>
    %c0_42 = arith.constant 0 : index
    %c0_43 = arith.constant 0 : index
    %c0_44 = arith.constant 0 : index
    %36 = vector.load %arg6[%c0_42, %c0_43, %c0_44] : memref<2x8x128xf32, #tpu.memory_space<vmem>>, vector<1x8x128xf32>
    %37 = vector.shape_cast %36 : vector<1x8x128xf32> to vector<8x128xf32>
    %38 = arith.addf %35, %37 : vector<8x128xf32>
    %cst_45 = arith.constant 0.000000e+00 : f32
    %39 = vector.broadcast %cst_45 : f32 to vector<8x128xf32>
    %40 = arith.maximumf %38, %39 : vector<8x128xf32>
    %c0_46 = arith.constant 0 : index
    %c0_47 = arith.constant 0 : index
    %c0_48 = arith.constant 0 : index
    %c0_49 = arith.constant 0 : index
    %41 = vector.load %arg7[%c0_46, %c0_47, %c0_48, %c0_49] : memref<2x3x128x64xf32, #tpu.memory_space<vmem>>, vector<1x1x128x64xf32>
    %42 = vector.shape_cast %41 : vector<1x1x128x64xf32> to vector<128x64xf32>
    %cst_50 = arith.constant dense<0.000000e+00> : vector<8x64xf32>
    %43 = tpu.matmul %40, %42, %cst_50 {dimension_numbers = #tpu.dot_dimension_numbers<[1], [0], [0], [1], [0, 0, 1, 1], [], []>} : vector<8x128xf32>, vector<128x64xf32>, vector<8x64xf32> -> vector<8x64xf32>
    %c0_51 = arith.constant 0 : index
    %c0_52 = arith.constant 0 : index
    %c0_53 = arith.constant 0 : index
    %44 = vector.load %arg4[%c0_51, %c0_52, %c0_53] : memref<3x8x8xf32, #tpu.memory_space<vmem>>, vector<1x8x8xf32>
    %45 = vector.shape_cast %44 : vector<1x8x8xf32> to vector<8x8xf32>
    %cst_54 = arith.constant dense<0.000000e+00> : vector<8x64xf32>
    %46 = tpu.matmul %45, %43, %cst_54 {dimension_numbers = #tpu.dot_dimension_numbers<[1], [0], [0], [1], [0, 0, 1, 1], [], []>} : vector<8x8xf32>, vector<8x64xf32>, vector<8x64xf32> -> vector<8x64xf32>
    %c0_55 = arith.constant 0 : index
    %c1_56 = arith.constant 1 : index
    %c0_57 = arith.constant 0 : index
    %c0_58 = arith.constant 0 : index
    %47 = vector.load %arg7[%c0_55, %c1_56, %c0_57, %c0_58] : memref<2x3x128x64xf32, #tpu.memory_space<vmem>>, vector<1x1x128x64xf32>
    %48 = vector.shape_cast %47 : vector<1x1x128x64xf32> to vector<128x64xf32>
    %cst_59 = arith.constant dense<0.000000e+00> : vector<8x64xf32>
    %49 = tpu.matmul %40, %48, %cst_59 {dimension_numbers = #tpu.dot_dimension_numbers<[1], [0], [0], [1], [0, 0, 1, 1], [], []>} : vector<8x128xf32>, vector<128x64xf32>, vector<8x64xf32> -> vector<8x64xf32>
    %c1_60 = arith.constant 1 : index
    %c0_61 = arith.constant 0 : index
    %c0_62 = arith.constant 0 : index
    %50 = vector.load %arg4[%c1_60, %c0_61, %c0_62] : memref<3x8x8xf32, #tpu.memory_space<vmem>>, vector<1x8x8xf32>
    %51 = vector.shape_cast %50 : vector<1x8x8xf32> to vector<8x8xf32>
    %cst_63 = arith.constant dense<0.000000e+00> : vector<8x64xf32>
    %52 = tpu.matmul %51, %49, %cst_63 {dimension_numbers = #tpu.dot_dimension_numbers<[1], [0], [0], [1], [0, 0, 1, 1], [], []>} : vector<8x8xf32>, vector<8x64xf32>, vector<8x64xf32> -> vector<8x64xf32>
    %53 = arith.addf %46, %52 : vector<8x64xf32>
    %c0_64 = arith.constant 0 : index
    %c2_65 = arith.constant 2 : index
    %c0_66 = arith.constant 0 : index
    %c0_67 = arith.constant 0 : index
    %54 = vector.load %arg7[%c0_64, %c2_65, %c0_66, %c0_67] : memref<2x3x128x64xf32, #tpu.memory_space<vmem>>, vector<1x1x128x64xf32>
    %55 = vector.shape_cast %54 : vector<1x1x128x64xf32> to vector<128x64xf32>
    %cst_68 = arith.constant dense<0.000000e+00> : vector<8x64xf32>
    %56 = tpu.matmul %40, %55, %cst_68 {dimension_numbers = #tpu.dot_dimension_numbers<[1], [0], [0], [1], [0, 0, 1, 1], [], []>} : vector<8x128xf32>, vector<128x64xf32>, vector<8x64xf32> -> vector<8x64xf32>
    %c2_69 = arith.constant 2 : index
    %c0_70 = arith.constant 0 : index
    %c0_71 = arith.constant 0 : index
    %57 = vector.load %arg4[%c2_69, %c0_70, %c0_71] : memref<3x8x8xf32, #tpu.memory_space<vmem>>, vector<1x8x8xf32>
    %58 = vector.shape_cast %57 : vector<1x8x8xf32> to vector<8x8xf32>
    %cst_72 = arith.constant dense<0.000000e+00> : vector<8x64xf32>
    %59 = tpu.matmul %58, %56, %cst_72 {dimension_numbers = #tpu.dot_dimension_numbers<[1], [0], [0], [1], [0, 0, 1, 1], [], []>} : vector<8x8xf32>, vector<8x64xf32>, vector<8x64xf32> -> vector<8x64xf32>
    %60 = arith.addf %53, %59 : vector<8x64xf32>
    %c0_73 = arith.constant 0 : index
    %c0_74 = arith.constant 0 : index
    %c0_75 = arith.constant 0 : index
    %61 = vector.load %arg8[%c0_73, %c0_74, %c0_75] : memref<2x1x64xf32, #tpu.memory_space<vmem>>, vector<1x1x64xf32>
    %62 = vector.shape_cast %61 : vector<1x1x64xf32> to vector<1x64xf32>
    %63 = vector.broadcast %62 : vector<1x64xf32> to vector<8x64xf32>
    %64 = arith.addf %60, %63 : vector<8x64xf32>
    %65 = vector.extract_strided_slice %64 {offsets = [0, 0], sizes = [8, 32], strides = [1, 1]} : vector<8x64xf32> to vector<8x32xf32>
    %66 = math.tanh %65 : vector<8x32xf32>
    %cst_76 = arith.constant 1.900000e+00 : f32
    %67 = vector.broadcast %cst_76 : f32 to vector<8x32xf32>
    %68 = arith.mulf %67, %66 : vector<8x32xf32>
    %69 = vector.extract_strided_slice %64 {offsets = [0, 32], sizes = [8, 32], strides = [1, 1]} : vector<8x64xf32> to vector<8x32xf32>
    %c0_77 = arith.constant 0 : index
    %c0_78 = arith.constant 0 : index
    %70 = vector.load %arg9[%c0_77, %c0_78] : memref<64x32xf32, #tpu.memory_space<vmem>>, vector<64x32xf32>
    %cst_79 = arith.constant dense<0.000000e+00> : vector<8x32xf32>
    %71 = tpu.matmul %14, %70, %cst_79 {dimension_numbers = #tpu.dot_dimension_numbers<[1], [0], [0], [1], [0, 0, 1, 1], [], []>} : vector<8x64xf32>, vector<64x32xf32>, vector<8x32xf32> -> vector<8x32xf32>
    %72 = math.exp %68 : vector<8x32xf32>
    %73 = arith.mulf %71, %72 : vector<8x32xf32>
    %74 = arith.addf %73, %69 : vector<8x32xf32>
    %cst_80 = arith.constant dense<0.000000e+00> : vector<8xf32>
    %75 = vector.multi_reduction <add>, %68, %cst_80 [1] : vector<8x32xf32> to vector<8xf32>
    %76 = vector.shape_cast %75 : vector<8xf32> to vector<8x1xf32>
    %cst_81 = arith.constant dense<0.000000e+00> : vector<1xf32>
    %77 = vector.multi_reduction <add>, %76, %cst_81 [0] : vector<8x1xf32> to vector<1xf32>
    %78 = vector.shape_cast %77 : vector<1xf32> to vector<1x1xf32>
    %79 = arith.addf %15, %78 : vector<1x1xf32>
    %c0_82 = arith.constant 0 : index
    %c0_83 = arith.constant 0 : index
    %80 = vector.load %arg10[%c0_82, %c0_83] : memref<64x64xf32, #tpu.memory_space<vmem>>, vector<64x64xf32>
    %cst_84 = arith.constant dense<0.000000e+00> : vector<8x64xf32>
    %81 = tpu.matmul %14, %80, %cst_84 {dimension_numbers = #tpu.dot_dimension_numbers<[1], [0], [0], [1], [0, 0, 1, 1], [], []>} : vector<8x64xf32>, vector<64x64xf32>, vector<8x64xf32> -> vector<8x64xf32>
    %c0_85 = arith.constant 0 : index
    %c0_86 = arith.constant 0 : index
    %82 = vector.load %arg11[%c0_85, %c0_86] : memref<32x64xf32, #tpu.memory_space<vmem>>, vector<32x64xf32>
    %cst_87 = arith.constant dense<0.000000e+00> : vector<8x64xf32>
    %83 = tpu.matmul %74, %82, %cst_87 {dimension_numbers = #tpu.dot_dimension_numbers<[1], [0], [0], [1], [0, 0, 1, 1], [], []>} : vector<8x32xf32>, vector<32x64xf32>, vector<8x64xf32> -> vector<8x64xf32>
    %84 = arith.addf %81, %83 : vector<8x64xf32>
    %c1_88 = arith.constant 1 : index
    %c0_89 = arith.constant 0 : index
    %c0_90 = arith.constant 0 : index
    %c0_91 = arith.constant 0 : index
    %85 = vector.load %arg5[%c1_88, %c0_89, %c0_90, %c0_91] : memref<2x3x64x128xf32, #tpu.memory_space<vmem>>, vector<1x1x64x128xf32>
    %86 = vector.shape_cast %85 : vector<1x1x64x128xf32> to vector<64x128xf32>
    %cst_92 = arith.constant dense<0.000000e+00> : vector<8x128xf32>
    %87 = tpu.matmul %84, %86, %cst_92 {dimension_numbers = #tpu.dot_dimension_numbers<[1], [0], [0], [1], [0, 0, 1, 1], [], []>} : vector<8x64xf32>, vector<64x128xf32>, vector<8x128xf32> -> vector<8x128xf32>
    %c0_93 = arith.constant 0 : index
    %c0_94 = arith.constant 0 : index
    %c0_95 = arith.constant 0 : index
    %88 = vector.load %arg4[%c0_93, %c0_94, %c0_95] : memref<3x8x8xf32, #tpu.memory_space<vmem>>, vector<1x8x8xf32>
    %89 = vector.shape_cast %88 : vector<1x8x8xf32> to vector<8x8xf32>
    %cst_96 = arith.constant dense<0.000000e+00> : vector<8x128xf32>
    %90 = tpu.matmul %89, %87, %cst_96 {dimension_numbers = #tpu.dot_dimension_numbers<[1], [0], [0], [1], [0, 0, 1, 1], [], []>} : vector<8x8xf32>, vector<8x128xf32>, vector<8x128xf32> -> vector<8x128xf32>
    %c1_97 = arith.constant 1 : index
    %c1_98 = arith.constant 1 : index
    %c0_99 = arith.constant 0 : index
    %c0_100 = arith.constant 0 : index
    %91 = vector.load %arg5[%c1_97, %c1_98, %c0_99, %c0_100] : memref<2x3x64x128xf32, #tpu.memory_space<vmem>>, vector<1x1x64x128xf32>
    %92 = vector.shape_cast %91 : vector<1x1x64x128xf32> to vector<64x128xf32>
    %cst_101 = arith.constant dense<0.000000e+00> : vector<8x128xf32>
    %93 = tpu.matmul %84, %92, %cst_101 {dimension_numbers = #tpu.dot_dimension_numbers<[1], [0], [0], [1], [0, 0, 1, 1], [], []>} : vector<8x64xf32>, vector<64x128xf32>, vector<8x128xf32> -> vector<8x128xf32>
    %c1_102 = arith.constant 1 : index
    %c0_103 = arith.constant 0 : index
    %c0_104 = arith.constant 0 : index
    %94 = vector.load %arg4[%c1_102, %c0_103, %c0_104] : memref<3x8x8xf32, #tpu.memory_space<vmem>>, vector<1x8x8xf32>
    %95 = vector.shape_cast %94 : vector<1x8x8xf32> to vector<8x8xf32>
    %cst_105 = arith.constant dense<0.000000e+00> : vector<8x128xf32>
    %96 = tpu.matmul %95, %93, %cst_105 {dimension_numbers = #tpu.dot_dimension_numbers<[1], [0], [0], [1], [0, 0, 1, 1], [], []>} : vector<8x8xf32>, vector<8x128xf32>, vector<8x128xf32> -> vector<8x128xf32>
    %97 = arith.addf %90, %96 : vector<8x128xf32>
    %c1_106 = arith.constant 1 : index
    %c2_107 = arith.constant 2 : index
    %c0_108 = arith.constant 0 : index
    %c0_109 = arith.constant 0 : index
    %98 = vector.load %arg5[%c1_106, %c2_107, %c0_108, %c0_109] : memref<2x3x64x128xf32, #tpu.memory_space<vmem>>, vector<1x1x64x128xf32>
    %99 = vector.shape_cast %98 : vector<1x1x64x128xf32> to vector<64x128xf32>
    %cst_110 = arith.constant dense<0.000000e+00> : vector<8x128xf32>
    %100 = tpu.matmul %84, %99, %cst_110 {dimension_numbers = #tpu.dot_dimension_numbers<[1], [0], [0], [1], [0, 0, 1, 1], [], []>} : vector<8x64xf32>, vector<64x128xf32>, vector<8x128xf32> -> vector<8x128xf32>
    %c2_111 = arith.constant 2 : index
    %c0_112 = arith.constant 0 : index
    %c0_113 = arith.constant 0 : index
    %101 = vector.load %arg4[%c2_111, %c0_112, %c0_113] : memref<3x8x8xf32, #tpu.memory_space<vmem>>, vector<1x8x8xf32>
    %102 = vector.shape_cast %101 : vector<1x8x8xf32> to vector<8x8xf32>
    %cst_114 = arith.constant dense<0.000000e+00> : vector<8x128xf32>
    %103 = tpu.matmul %102, %100, %cst_114 {dimension_numbers = #tpu.dot_dimension_numbers<[1], [0], [0], [1], [0, 0, 1, 1], [], []>} : vector<8x8xf32>, vector<8x128xf32>, vector<8x128xf32> -> vector<8x128xf32>
    %104 = arith.addf %97, %103 : vector<8x128xf32>
    %c1_115 = arith.constant 1 : index
    %c0_116 = arith.constant 0 : index
    %c0_117 = arith.constant 0 : index
    %105 = vector.load %arg6[%c1_115, %c0_116, %c0_117] : memref<2x8x128xf32, #tpu.memory_space<vmem>>, vector<1x8x128xf32>
    %106 = vector.shape_cast %105 : vector<1x8x128xf32> to vector<8x128xf32>
    %107 = arith.addf %104, %106 : vector<8x128xf32>
    %cst_118 = arith.constant 0.000000e+00 : f32
    %108 = vector.broadcast %cst_118 : f32 to vector<8x128xf32>
    %109 = arith.maximumf %107, %108 : vector<8x128xf32>
    %c1_119 = arith.constant 1 : index
    %c0_120 = arith.constant 0 : index
    %c0_121 = arith.constant 0 : index
    %c0_122 = arith.constant 0 : index
    %110 = vector.load %arg7[%c1_119, %c0_120, %c0_121, %c0_122] : memref<2x3x128x64xf32, #tpu.memory_space<vmem>>, vector<1x1x128x64xf32>
    %111 = vector.shape_cast %110 : vector<1x1x128x64xf32> to vector<128x64xf32>
    %cst_123 = arith.constant dense<0.000000e+00> : vector<8x64xf32>
    %112 = tpu.matmul %109, %111, %cst_123 {dimension_numbers = #tpu.dot_dimension_numbers<[1], [0], [0], [1], [0, 0, 1, 1], [], []>} : vector<8x128xf32>, vector<128x64xf32>, vector<8x64xf32> -> vector<8x64xf32>
    %c0_124 = arith.constant 0 : index
    %c0_125 = arith.constant 0 : index
    %c0_126 = arith.constant 0 : index
    %113 = vector.load %arg4[%c0_124, %c0_125, %c0_126] : memref<3x8x8xf32, #tpu.memory_space<vmem>>, vector<1x8x8xf32>
    %114 = vector.shape_cast %113 : vector<1x8x8xf32> to vector<8x8xf32>
    %cst_127 = arith.constant dense<0.000000e+00> : vector<8x64xf32>
    %115 = tpu.matmul %114, %112, %cst_127 {dimension_numbers = #tpu.dot_dimension_numbers<[1], [0], [0], [1], [0, 0, 1, 1], [], []>} : vector<8x8xf32>, vector<8x64xf32>, vector<8x64xf32> -> vector<8x64xf32>
    %c1_128 = arith.constant 1 : index
    %c1_129 = arith.constant 1 : index
    %c0_130 = arith.constant 0 : index
    %c0_131 = arith.constant 0 : index
    %116 = vector.load %arg7[%c1_128, %c1_129, %c0_130, %c0_131] : memref<2x3x128x64xf32, #tpu.memory_space<vmem>>, vector<1x1x128x64xf32>
    %117 = vector.shape_cast %116 : vector<1x1x128x64xf32> to vector<128x64xf32>
    %cst_132 = arith.constant dense<0.000000e+00> : vector<8x64xf32>
    %118 = tpu.matmul %109, %117, %cst_132 {dimension_numbers = #tpu.dot_dimension_numbers<[1], [0], [0], [1], [0, 0, 1, 1], [], []>} : vector<8x128xf32>, vector<128x64xf32>, vector<8x64xf32> -> vector<8x64xf32>
    %c1_133 = arith.constant 1 : index
    %c0_134 = arith.constant 0 : index
    %c0_135 = arith.constant 0 : index
    %119 = vector.load %arg4[%c1_133, %c0_134, %c0_135] : memref<3x8x8xf32, #tpu.memory_space<vmem>>, vector<1x8x8xf32>
    %120 = vector.shape_cast %119 : vector<1x8x8xf32> to vector<8x8xf32>
    %cst_136 = arith.constant dense<0.000000e+00> : vector<8x64xf32>
    %121 = tpu.matmul %120, %118, %cst_136 {dimension_numbers = #tpu.dot_dimension_numbers<[1], [0], [0], [1], [0, 0, 1, 1], [], []>} : vector<8x8xf32>, vector<8x64xf32>, vector<8x64xf32> -> vector<8x64xf32>
    %122 = arith.addf %115, %121 : vector<8x64xf32>
    %c1_137 = arith.constant 1 : index
    %c2_138 = arith.constant 2 : index
    %c0_139 = arith.constant 0 : index
    %c0_140 = arith.constant 0 : index
    %123 = vector.load %arg7[%c1_137, %c2_138, %c0_139, %c0_140] : memref<2x3x128x64xf32, #tpu.memory_space<vmem>>, vector<1x1x128x64xf32>
    %124 = vector.shape_cast %123 : vector<1x1x128x64xf32> to vector<128x64xf32>
    %cst_141 = arith.constant dense<0.000000e+00> : vector<8x64xf32>
    %125 = tpu.matmul %109, %124, %cst_141 {dimension_numbers = #tpu.dot_dimension_numbers<[1], [0], [0], [1], [0, 0, 1, 1], [], []>} : vector<8x128xf32>, vector<128x64xf32>, vector<8x64xf32> -> vector<8x64xf32>
    %c2_142 = arith.constant 2 : index
    %c0_143 = arith.constant 0 : index
    %c0_144 = arith.constant 0 : index
    %126 = vector.load %arg4[%c2_142, %c0_143, %c0_144] : memref<3x8x8xf32, #tpu.memory_space<vmem>>, vector<1x8x8xf32>
    %127 = vector.shape_cast %126 : vector<1x8x8xf32> to vector<8x8xf32>
    %cst_145 = arith.constant dense<0.000000e+00> : vector<8x64xf32>
    %128 = tpu.matmul %127, %125, %cst_145 {dimension_numbers = #tpu.dot_dimension_numbers<[1], [0], [0], [1], [0, 0, 1, 1], [], []>} : vector<8x8xf32>, vector<8x64xf32>, vector<8x64xf32> -> vector<8x64xf32>
    %129 = arith.addf %122, %128 : vector<8x64xf32>
    %c1_146 = arith.constant 1 : index
    %c0_147 = arith.constant 0 : index
    %c0_148 = arith.constant 0 : index
    %130 = vector.load %arg8[%c1_146, %c0_147, %c0_148] : memref<2x1x64xf32, #tpu.memory_space<vmem>>, vector<1x1x64xf32>
    %131 = vector.shape_cast %130 : vector<1x1x64xf32> to vector<1x64xf32>
    %132 = vector.broadcast %131 : vector<1x64xf32> to vector<8x64xf32>
    %133 = arith.addf %129, %132 : vector<8x64xf32>
    %134 = vector.extract_strided_slice %133 {offsets = [0, 0], sizes = [8, 32], strides = [1, 1]} : vector<8x64xf32> to vector<8x32xf32>
    %135 = math.tanh %134 : vector<8x32xf32>
    %cst_149 = arith.constant 1.900000e+00 : f32
    %136 = vector.broadcast %cst_149 : f32 to vector<8x32xf32>
    %137 = arith.mulf %136, %135 : vector<8x32xf32>
    %138 = vector.extract_strided_slice %133 {offsets = [0, 32], sizes = [8, 32], strides = [1, 1]} : vector<8x64xf32> to vector<8x32xf32>
    %c0_150 = arith.constant 0 : index
    %c0_151 = arith.constant 0 : index
    %139 = vector.load %arg9[%c0_150, %c0_151] : memref<64x32xf32, #tpu.memory_space<vmem>>, vector<64x32xf32>
    %cst_152 = arith.constant dense<0.000000e+00> : vector<8x32xf32>
    %140 = tpu.matmul %84, %139, %cst_152 {dimension_numbers = #tpu.dot_dimension_numbers<[1], [0], [0], [1], [0, 0, 1, 1], [], []>} : vector<8x64xf32>, vector<64x32xf32>, vector<8x32xf32> -> vector<8x32xf32>
    %141 = math.exp %137 : vector<8x32xf32>
    %142 = arith.mulf %140, %141 : vector<8x32xf32>
    %143 = arith.addf %142, %138 : vector<8x32xf32>
    %cst_153 = arith.constant dense<0.000000e+00> : vector<8xf32>
    %144 = vector.multi_reduction <add>, %137, %cst_153 [1] : vector<8x32xf32> to vector<8xf32>
    %145 = vector.shape_cast %144 : vector<8xf32> to vector<8x1xf32>
    %cst_154 = arith.constant dense<0.000000e+00> : vector<1xf32>
    %146 = vector.multi_reduction <add>, %145, %cst_154 [0] : vector<8x1xf32> to vector<1xf32>
    %147 = vector.shape_cast %146 : vector<1xf32> to vector<1x1xf32>
    %148 = arith.addf %79, %147 : vector<1x1xf32>
    %c0_155 = arith.constant 0 : index
    %c0_156 = arith.constant 0 : index
    %149 = vector.load %arg10[%c0_155, %c0_156] : memref<64x64xf32, #tpu.memory_space<vmem>>, vector<64x64xf32>
    %cst_157 = arith.constant dense<0.000000e+00> : vector<8x64xf32>
    %150 = tpu.matmul %84, %149, %cst_157 {dimension_numbers = #tpu.dot_dimension_numbers<[1], [0], [0], [1], [0, 0, 1, 1], [], []>} : vector<8x64xf32>, vector<64x64xf32>, vector<8x64xf32> -> vector<8x64xf32>
    %c0_158 = arith.constant 0 : index
    %c0_159 = arith.constant 0 : index
    %151 = vector.load %arg11[%c0_158, %c0_159] : memref<32x64xf32, #tpu.memory_space<vmem>>, vector<32x64xf32>
    %cst_160 = arith.constant dense<0.000000e+00> : vector<8x64xf32>
    %152 = tpu.matmul %143, %151, %cst_160 {dimension_numbers = #tpu.dot_dimension_numbers<[1], [0], [0], [1], [0, 0, 1, 1], [], []>} : vector<8x32xf32>, vector<32x64xf32>, vector<8x64xf32> -> vector<8x64xf32>
    %153 = arith.addf %150, %152 : vector<8x64xf32>
    %c0_161 = arith.constant 0 : index
    %c0_162 = arith.constant 0 : index
    %154 = vector.load %arg12[%c0_161, %c0_162] : memref<64x64xf32, #tpu.memory_space<vmem>>, vector<64x64xf32>
    %cst_163 = arith.constant dense<0.000000e+00> : vector<8x64xf32>
    %155 = tpu.matmul %153, %154, %cst_163 {dimension_numbers = #tpu.dot_dimension_numbers<[1], [0], [0], [1], [0, 0, 1, 1], [], []>} : vector<8x64xf32>, vector<64x64xf32>, vector<8x64xf32> -> vector<8x64xf32>
    %c0_164 = arith.constant 0 : index
    %c0_165 = arith.constant 0 : index
    %c0_166 = arith.constant 0 : index
    %156 = vector.load %arg13[%c0_164, %c0_165, %c0_166] : memref<1x8x64xf32, #tpu.memory_space<vmem>>, vector<1x8x64xf32>
    %157 = vector.shape_cast %156 : vector<1x8x64xf32> to vector<8x64xf32>
    %158 = vector.shape_cast %155 : vector<8x64xf32> to vector<1x8x64xf32>
    tpu.vector_store %arg13[%c0_164, %c0_165, %c0_166], %158 {strides = array<i32>} : memref<1x8x64xf32, #tpu.memory_space<vmem>>, vector<1x8x64xf32>,
    %159 = vector.shape_cast %148 : vector<1x1xf32> to vector<1x1xf32>
    %160 = vector.broadcast %159 : vector<1x1xf32> to vector<1x128xf32>
    %c0_167 = arith.constant 0 : index
    %c0_168 = arith.constant 0 : index
    %c0_169 = arith.constant 0 : index
    %161 = vector.load %arg14[%c0_167, %c0_168, %c0_169] : memref<1x1x128xf32, #tpu.memory_space<vmem>>, vector<1x1x128xf32>
    %162 = vector.shape_cast %161 : vector<1x1x128xf32> to vector<1x128xf32>
    %163 = vector.shape_cast %160 : vector<1x128xf32> to vector<1x1x128xf32>
    tpu.vector_store %arg14[%c0_167, %c0_168, %c0_169], %163 {strides = array<i32>} : memref<1x1x128xf32, #tpu.memory_space<vmem>>, vector<1x1x128xf32>,
    return
  }
  func.func @transform_0(%arg0: i32) -> (i32, i32, i32) {
    %c0_i32 = arith.constant 0 : i32
    %c0_i32_0 = arith.constant 0 : i32
    %c0_i32_1 = arith.constant 0 : i32
    return %arg0, %c0_i32, %c0_i32_0 : i32, i32, i32
  }
  func.func @transform_1(%arg0: i32) -> (i32, i32) {
    %c0_i32 = arith.constant 0 : i32
    %c0_i32_0 = arith.constant 0 : i32
    %c0_i32_1 = arith.constant 0 : i32
    return %c0_i32, %c0_i32_0 : i32, i32
  }
  func.func @transform_2(%arg0: i32) -> (i32, i32, i32) {
    %c0_i32 = arith.constant 0 : i32
    %c0_i32_0 = arith.constant 0 : i32
    %c0_i32_1 = arith.constant 0 : i32
    %c0_i32_2 = arith.constant 0 : i32
    return %c0_i32, %c0_i32_0, %c0_i32_1 : i32, i32, i32
  }
  func.func @transform_3(%arg0: i32) -> (i32, i32, i32) {
    %c0_i32 = arith.constant 0 : i32
    %c0_i32_0 = arith.constant 0 : i32
    %c0_i32_1 = arith.constant 0 : i32
    %c0_i32_2 = arith.constant 0 : i32
    return %c0_i32, %c0_i32_0, %c0_i32_1 : i32, i32, i32
  }
  func.func @transform_4(%arg0: i32) -> (i32, i32, i32, i32) {
    %c0_i32 = arith.constant 0 : i32
    %c0_i32_0 = arith.constant 0 : i32
    %c0_i32_1 = arith.constant 0 : i32
    %c0_i32_2 = arith.constant 0 : i32
    %c0_i32_3 = arith.constant 0 : i32
    return %c0_i32, %c0_i32_0, %c0_i32_1, %c0_i32_2 : i32, i32, i32, i32
  }
  func.func @transform_5(%arg0: i32) -> (i32, i32, i32) {
    %c0_i32 = arith.constant 0 : i32
    %c0_i32_0 = arith.constant 0 : i32
    %c0_i32_1 = arith.constant 0 : i32
    %c0_i32_2 = arith.constant 0 : i32
    return %c0_i32, %c0_i32_0, %c0_i32_1 : i32, i32, i32
  }
  func.func @transform_6(%arg0: i32) -> (i32, i32, i32, i32) {
    %c0_i32 = arith.constant 0 : i32
    %c0_i32_0 = arith.constant 0 : i32
    %c0_i32_1 = arith.constant 0 : i32
    %c0_i32_2 = arith.constant 0 : i32
    %c0_i32_3 = arith.constant 0 : i32
    return %c0_i32, %c0_i32_0, %c0_i32_1, %c0_i32_2 : i32, i32, i32, i32
  }
  func.func @transform_7(%arg0: i32) -> (i32, i32, i32) {
    %c0_i32 = arith.constant 0 : i32
    %c0_i32_0 = arith.constant 0 : i32
    %c0_i32_1 = arith.constant 0 : i32
    %c0_i32_2 = arith.constant 0 : i32
    return %c0_i32, %c0_i32_0, %c0_i32_1 : i32, i32, i32
  }
  func.func @transform_8(%arg0: i32) -> (i32, i32) {
    %c0_i32 = arith.constant 0 : i32
    %c0_i32_0 = arith.constant 0 : i32
    %c0_i32_1 = arith.constant 0 : i32
    return %c0_i32, %c0_i32_0 : i32, i32
  }
  func.func @transform_9(%arg0: i32) -> (i32, i32) {
    %c0_i32 = arith.constant 0 : i32
    %c0_i32_0 = arith.constant 0 : i32
    %c0_i32_1 = arith.constant 0 : i32
    return %c0_i32, %c0_i32_0 : i32, i32
  }
  func.func @transform_10(%arg0: i32) -> (i32, i32) {
    %c0_i32 = arith.constant 0 : i32
    %c0_i32_0 = arith.constant 0 : i32
    %c0_i32_1 = arith.constant 0 : i32
    return %c0_i32, %c0_i32_0 : i32, i32
  }
  func.func @transform_11(%arg0: i32) -> (i32, i32) {
    %c0_i32 = arith.constant 0 : i32
    %c0_i32_0 = arith.constant 0 : i32
    %c0_i32_1 = arith.constant 0 : i32
    return %c0_i32, %c0_i32_0 : i32, i32
  }
  func.func @transform_12(%arg0: i32) -> (i32, i32, i32) {
    %c0_i32 = arith.constant 0 : i32
    %c0_i32_0 = arith.constant 0 : i32
    %c0_i32_1 = arith.constant 0 : i32
    return %arg0, %c0_i32, %c0_i32_0 : i32, i32, i32
  }
  func.func @transform_13(%arg0: i32) -> (i32, i32, i32) {
    %c0_i32 = arith.constant 0 : i32
    %c0_i32_0 = arith.constant 0 : i32
    %c0_i32_1 = arith.constant 0 : i32
    return %arg0, %c0_i32, %c0_i32_0 : i32, i32, i32
  }
}

module attributes {stable_mosaic.version = 11 : i64} {
  func.func @_level_flow_kernel(%arg0: i32, %arg1: memref<1x8x128xf32, #tpu.memory_space<vmem>>, %arg2: memref<128x64xf32, #tpu.memory_space<vmem>>, %arg3: memref<3x4x8xf32, #tpu.memory_space<vmem>>, %arg4: memref<3x4x4xf32, #tpu.memory_space<vmem>>, %arg5: memref<2x3x64x64xf32, #tpu.memory_space<vmem>>, %arg6: memref<2x4x64xf32, #tpu.memory_space<vmem>>, %arg7: memref<2x3x64x64xf32, #tpu.memory_space<vmem>>, %arg8: memref<2x1x64xf32, #tpu.memory_space<vmem>>, %arg9: memref<64x32xf32, #tpu.memory_space<vmem>>, %arg10: memref<64x64xf32, #tpu.memory_space<vmem>>, %arg11: memref<32x64xf32, #tpu.memory_space<vmem>>, %arg12: memref<64x64xf32, #tpu.memory_space<vmem>>, %arg13: memref<1x4x64xf32, #tpu.memory_space<vmem>>, %arg14: memref<1x1x128xf32, #tpu.memory_space<vmem>>) attributes {dimension_semantics = [#tpu.dimension_semantics<parallel>], iteration_bounds = array<i64: 2>, scalar_prefetch = 0 : i64, scratch_operands = 0 : i64, tpu.core_type = #tpu.core_type<tc>, window_params = [{transform_indices = @transform_0, window_bounds = array<i64: 1, 8, 128>}, {pipeline_mode = #tpu.pipeline_mode<synchronous>, transform_indices = @transform_1, window_bounds = array<i64: 128, 64>}, {pipeline_mode = #tpu.pipeline_mode<synchronous>, transform_indices = @transform_2, window_bounds = array<i64: 3, 4, 8>}, {pipeline_mode = #tpu.pipeline_mode<synchronous>, transform_indices = @transform_3, window_bounds = array<i64: 3, 4, 4>}, {pipeline_mode = #tpu.pipeline_mode<synchronous>, transform_indices = @transform_4, window_bounds = array<i64: 2, 3, 64, 64>}, {pipeline_mode = #tpu.pipeline_mode<synchronous>, transform_indices = @transform_5, window_bounds = array<i64: 2, 4, 64>}, {pipeline_mode = #tpu.pipeline_mode<synchronous>, transform_indices = @transform_6, window_bounds = array<i64: 2, 3, 64, 64>}, {pipeline_mode = #tpu.pipeline_mode<synchronous>, transform_indices = @transform_7, window_bounds = array<i64: 2, 1, 64>}, {pipeline_mode = #tpu.pipeline_mode<synchronous>, transform_indices = @transform_8, window_bounds = array<i64: 64, 32>}, {pipeline_mode = #tpu.pipeline_mode<synchronous>, transform_indices = @transform_9, window_bounds = array<i64: 64, 64>}, {pipeline_mode = #tpu.pipeline_mode<synchronous>, transform_indices = @transform_10, window_bounds = array<i64: 32, 64>}, {pipeline_mode = #tpu.pipeline_mode<synchronous>, transform_indices = @transform_11, window_bounds = array<i64: 64, 64>}, {transform_indices = @transform_12, window_bounds = array<i64: 1, 4, 64>}, {transform_indices = @transform_13, window_bounds = array<i64: 1, 1, 128>}]} {
    %c0 = arith.constant 0 : index
    %c0_0 = arith.constant 0 : index
    %c0_1 = arith.constant 0 : index
    %0 = vector.load %arg1[%c0, %c0_0, %c0_1] : memref<1x8x128xf32, #tpu.memory_space<vmem>>, vector<1x8x128xf32>
    %1 = vector.shape_cast %0 : vector<1x8x128xf32> to vector<8x128xf32>
    %c0_2 = arith.constant 0 : index
    %c0_3 = arith.constant 0 : index
    %2 = vector.load %arg2[%c0_2, %c0_3] : memref<128x64xf32, #tpu.memory_space<vmem>>, vector<128x64xf32>
    %cst = arith.constant dense<0.000000e+00> : vector<8x64xf32>
    %3 = tpu.matmul %1, %2, %cst {dimension_numbers = #tpu.dot_dimension_numbers<[1], [0], [0], [1], [0, 0, 1, 1], [], []>} : vector<8x128xf32>, vector<128x64xf32>, vector<8x64xf32> -> vector<8x64xf32>
    %c0_4 = arith.constant 0 : index
    %c0_5 = arith.constant 0 : index
    %c0_6 = arith.constant 0 : index
    %4 = vector.load %arg3[%c0_4, %c0_5, %c0_6] : memref<3x4x8xf32, #tpu.memory_space<vmem>>, vector<1x4x8xf32>
    %5 = vector.shape_cast %4 : vector<1x4x8xf32> to vector<4x8xf32>
    %cst_7 = arith.constant dense<0.000000e+00> : vector<4x64xf32>
    %6 = tpu.matmul %5, %3, %cst_7 {dimension_numbers = #tpu.dot_dimension_numbers<[1], [0], [0], [1], [0, 0, 1, 1], [], []>} : vector<4x8xf32>, vector<8x64xf32>, vector<4x64xf32> -> vector<4x64xf32>
    %c1 = arith.constant 1 : index
    %c0_8 = arith.constant 0 : index
    %c0_9 = arith.constant 0 : index
    %7 = vector.load %arg3[%c1, %c0_8, %c0_9] : memref<3x4x8xf32, #tpu.memory_space<vmem>>, vector<1x4x8xf32>
    %8 = vector.shape_cast %7 : vector<1x4x8xf32> to vector<4x8xf32>
    %cst_10 = arith.constant dense<0.000000e+00> : vector<4x64xf32>
    %9 = tpu.matmul %8, %3, %cst_10 {dimension_numbers = #tpu.dot_dimension_numbers<[1], [0], [0], [1], [0, 0, 1, 1], [], []>} : vector<4x8xf32>, vector<8x64xf32>, vector<4x64xf32> -> vector<4x64xf32>
    %10 = arith.addf %6, %9 : vector<4x64xf32>
    %c2 = arith.constant 2 : index
    %c0_11 = arith.constant 0 : index
    %c0_12 = arith.constant 0 : index
    %11 = vector.load %arg3[%c2, %c0_11, %c0_12] : memref<3x4x8xf32, #tpu.memory_space<vmem>>, vector<1x4x8xf32>
    %12 = vector.shape_cast %11 : vector<1x4x8xf32> to vector<4x8xf32>
    %cst_13 = arith.constant dense<0.000000e+00> : vector<4x64xf32>
    %13 = tpu.matmul %12, %3, %cst_13 {dimension_numbers = #tpu.dot_dimension_numbers<[1], [0], [0], [1], [0, 0, 1, 1], [], []>} : vector<4x8xf32>, vector<8x64xf32>, vector<4x64xf32> -> vector<4x64xf32>
    %14 = arith.addf %10, %13 : vector<4x64xf32>
    %cst_14 = arith.constant 0.000000e+00 : f32
    %15 = vector.broadcast %cst_14 : f32 to vector<1x1xf32>
    %c0_15 = arith.constant 0 : index
    %c0_16 = arith.constant 0 : index
    %c0_17 = arith.constant 0 : index
    %c0_18 = arith.constant 0 : index
    %16 = vector.load %arg5[%c0_15, %c0_16, %c0_17, %c0_18] : memref<2x3x64x64xf32, #tpu.memory_space<vmem>>, vector<1x1x64x64xf32>
    %17 = vector.shape_cast %16 : vector<1x1x64x64xf32> to vector<64x64xf32>
    %cst_19 = arith.constant dense<0.000000e+00> : vector<4x64xf32>
    %18 = tpu.matmul %14, %17, %cst_19 {dimension_numbers = #tpu.dot_dimension_numbers<[1], [0], [0], [1], [0, 0, 1, 1], [], []>} : vector<4x64xf32>, vector<64x64xf32>, vector<4x64xf32> -> vector<4x64xf32>
    %c0_20 = arith.constant 0 : index
    %c0_21 = arith.constant 0 : index
    %c0_22 = arith.constant 0 : index
    %19 = vector.load %arg4[%c0_20, %c0_21, %c0_22] : memref<3x4x4xf32, #tpu.memory_space<vmem>>, vector<1x4x4xf32>
    %20 = vector.shape_cast %19 : vector<1x4x4xf32> to vector<4x4xf32>
    %cst_23 = arith.constant dense<0.000000e+00> : vector<4x64xf32>
    %21 = tpu.matmul %20, %18, %cst_23 {dimension_numbers = #tpu.dot_dimension_numbers<[1], [0], [0], [1], [0, 0, 1, 1], [], []>} : vector<4x4xf32>, vector<4x64xf32>, vector<4x64xf32> -> vector<4x64xf32>
    %c0_24 = arith.constant 0 : index
    %c1_25 = arith.constant 1 : index
    %c0_26 = arith.constant 0 : index
    %c0_27 = arith.constant 0 : index
    %22 = vector.load %arg5[%c0_24, %c1_25, %c0_26, %c0_27] : memref<2x3x64x64xf32, #tpu.memory_space<vmem>>, vector<1x1x64x64xf32>
    %23 = vector.shape_cast %22 : vector<1x1x64x64xf32> to vector<64x64xf32>
    %cst_28 = arith.constant dense<0.000000e+00> : vector<4x64xf32>
    %24 = tpu.matmul %14, %23, %cst_28 {dimension_numbers = #tpu.dot_dimension_numbers<[1], [0], [0], [1], [0, 0, 1, 1], [], []>} : vector<4x64xf32>, vector<64x64xf32>, vector<4x64xf32> -> vector<4x64xf32>
    %c1_29 = arith.constant 1 : index
    %c0_30 = arith.constant 0 : index
    %c0_31 = arith.constant 0 : index
    %25 = vector.load %arg4[%c1_29, %c0_30, %c0_31] : memref<3x4x4xf32, #tpu.memory_space<vmem>>, vector<1x4x4xf32>
    %26 = vector.shape_cast %25 : vector<1x4x4xf32> to vector<4x4xf32>
    %cst_32 = arith.constant dense<0.000000e+00> : vector<4x64xf32>
    %27 = tpu.matmul %26, %24, %cst_32 {dimension_numbers = #tpu.dot_dimension_numbers<[1], [0], [0], [1], [0, 0, 1, 1], [], []>} : vector<4x4xf32>, vector<4x64xf32>, vector<4x64xf32> -> vector<4x64xf32>
    %28 = arith.addf %21, %27 : vector<4x64xf32>
    %c0_33 = arith.constant 0 : index
    %c2_34 = arith.constant 2 : index
    %c0_35 = arith.constant 0 : index
    %c0_36 = arith.constant 0 : index
    %29 = vector.load %arg5[%c0_33, %c2_34, %c0_35, %c0_36] : memref<2x3x64x64xf32, #tpu.memory_space<vmem>>, vector<1x1x64x64xf32>
    %30 = vector.shape_cast %29 : vector<1x1x64x64xf32> to vector<64x64xf32>
    %cst_37 = arith.constant dense<0.000000e+00> : vector<4x64xf32>
    %31 = tpu.matmul %14, %30, %cst_37 {dimension_numbers = #tpu.dot_dimension_numbers<[1], [0], [0], [1], [0, 0, 1, 1], [], []>} : vector<4x64xf32>, vector<64x64xf32>, vector<4x64xf32> -> vector<4x64xf32>
    %c2_38 = arith.constant 2 : index
    %c0_39 = arith.constant 0 : index
    %c0_40 = arith.constant 0 : index
    %32 = vector.load %arg4[%c2_38, %c0_39, %c0_40] : memref<3x4x4xf32, #tpu.memory_space<vmem>>, vector<1x4x4xf32>
    %33 = vector.shape_cast %32 : vector<1x4x4xf32> to vector<4x4xf32>
    %cst_41 = arith.constant dense<0.000000e+00> : vector<4x64xf32>
    %34 = tpu.matmul %33, %31, %cst_41 {dimension_numbers = #tpu.dot_dimension_numbers<[1], [0], [0], [1], [0, 0, 1, 1], [], []>} : vector<4x4xf32>, vector<4x64xf32>, vector<4x64xf32> -> vector<4x64xf32>
    %35 = arith.addf %28, %34 : vector<4x64xf32>
    %c0_42 = arith.constant 0 : index
    %c0_43 = arith.constant 0 : index
    %c0_44 = arith.constant 0 : index
    %36 = vector.load %arg6[%c0_42, %c0_43, %c0_44] : memref<2x4x64xf32, #tpu.memory_space<vmem>>, vector<1x4x64xf32>
    %37 = vector.shape_cast %36 : vector<1x4x64xf32> to vector<4x64xf32>
    %38 = arith.addf %35, %37 : vector<4x64xf32>
    %cst_45 = arith.constant 0.000000e+00 : f32
    %39 = vector.broadcast %cst_45 : f32 to vector<4x64xf32>
    %40 = arith.maximumf %38, %39 : vector<4x64xf32>
    %c0_46 = arith.constant 0 : index
    %c0_47 = arith.constant 0 : index
    %c0_48 = arith.constant 0 : index
    %c0_49 = arith.constant 0 : index
    %41 = vector.load %arg7[%c0_46, %c0_47, %c0_48, %c0_49] : memref<2x3x64x64xf32, #tpu.memory_space<vmem>>, vector<1x1x64x64xf32>
    %42 = vector.shape_cast %41 : vector<1x1x64x64xf32> to vector<64x64xf32>
    %cst_50 = arith.constant dense<0.000000e+00> : vector<4x64xf32>
    %43 = tpu.matmul %40, %42, %cst_50 {dimension_numbers = #tpu.dot_dimension_numbers<[1], [0], [0], [1], [0, 0, 1, 1], [], []>} : vector<4x64xf32>, vector<64x64xf32>, vector<4x64xf32> -> vector<4x64xf32>
    %c0_51 = arith.constant 0 : index
    %c0_52 = arith.constant 0 : index
    %c0_53 = arith.constant 0 : index
    %44 = vector.load %arg4[%c0_51, %c0_52, %c0_53] : memref<3x4x4xf32, #tpu.memory_space<vmem>>, vector<1x4x4xf32>
    %45 = vector.shape_cast %44 : vector<1x4x4xf32> to vector<4x4xf32>
    %cst_54 = arith.constant dense<0.000000e+00> : vector<4x64xf32>
    %46 = tpu.matmul %45, %43, %cst_54 {dimension_numbers = #tpu.dot_dimension_numbers<[1], [0], [0], [1], [0, 0, 1, 1], [], []>} : vector<4x4xf32>, vector<4x64xf32>, vector<4x64xf32> -> vector<4x64xf32>
    %c0_55 = arith.constant 0 : index
    %c1_56 = arith.constant 1 : index
    %c0_57 = arith.constant 0 : index
    %c0_58 = arith.constant 0 : index
    %47 = vector.load %arg7[%c0_55, %c1_56, %c0_57, %c0_58] : memref<2x3x64x64xf32, #tpu.memory_space<vmem>>, vector<1x1x64x64xf32>
    %48 = vector.shape_cast %47 : vector<1x1x64x64xf32> to vector<64x64xf32>
    %cst_59 = arith.constant dense<0.000000e+00> : vector<4x64xf32>
    %49 = tpu.matmul %40, %48, %cst_59 {dimension_numbers = #tpu.dot_dimension_numbers<[1], [0], [0], [1], [0, 0, 1, 1], [], []>} : vector<4x64xf32>, vector<64x64xf32>, vector<4x64xf32> -> vector<4x64xf32>
    %c1_60 = arith.constant 1 : index
    %c0_61 = arith.constant 0 : index
    %c0_62 = arith.constant 0 : index
    %50 = vector.load %arg4[%c1_60, %c0_61, %c0_62] : memref<3x4x4xf32, #tpu.memory_space<vmem>>, vector<1x4x4xf32>
    %51 = vector.shape_cast %50 : vector<1x4x4xf32> to vector<4x4xf32>
    %cst_63 = arith.constant dense<0.000000e+00> : vector<4x64xf32>
    %52 = tpu.matmul %51, %49, %cst_63 {dimension_numbers = #tpu.dot_dimension_numbers<[1], [0], [0], [1], [0, 0, 1, 1], [], []>} : vector<4x4xf32>, vector<4x64xf32>, vector<4x64xf32> -> vector<4x64xf32>
    %53 = arith.addf %46, %52 : vector<4x64xf32>
    %c0_64 = arith.constant 0 : index
    %c2_65 = arith.constant 2 : index
    %c0_66 = arith.constant 0 : index
    %c0_67 = arith.constant 0 : index
    %54 = vector.load %arg7[%c0_64, %c2_65, %c0_66, %c0_67] : memref<2x3x64x64xf32, #tpu.memory_space<vmem>>, vector<1x1x64x64xf32>
    %55 = vector.shape_cast %54 : vector<1x1x64x64xf32> to vector<64x64xf32>
    %cst_68 = arith.constant dense<0.000000e+00> : vector<4x64xf32>
    %56 = tpu.matmul %40, %55, %cst_68 {dimension_numbers = #tpu.dot_dimension_numbers<[1], [0], [0], [1], [0, 0, 1, 1], [], []>} : vector<4x64xf32>, vector<64x64xf32>, vector<4x64xf32> -> vector<4x64xf32>
    %c2_69 = arith.constant 2 : index
    %c0_70 = arith.constant 0 : index
    %c0_71 = arith.constant 0 : index
    %57 = vector.load %arg4[%c2_69, %c0_70, %c0_71] : memref<3x4x4xf32, #tpu.memory_space<vmem>>, vector<1x4x4xf32>
    %58 = vector.shape_cast %57 : vector<1x4x4xf32> to vector<4x4xf32>
    %cst_72 = arith.constant dense<0.000000e+00> : vector<4x64xf32>
    %59 = tpu.matmul %58, %56, %cst_72 {dimension_numbers = #tpu.dot_dimension_numbers<[1], [0], [0], [1], [0, 0, 1, 1], [], []>} : vector<4x4xf32>, vector<4x64xf32>, vector<4x64xf32> -> vector<4x64xf32>
    %60 = arith.addf %53, %59 : vector<4x64xf32>
    %c0_73 = arith.constant 0 : index
    %c0_74 = arith.constant 0 : index
    %c0_75 = arith.constant 0 : index
    %61 = vector.load %arg8[%c0_73, %c0_74, %c0_75] : memref<2x1x64xf32, #tpu.memory_space<vmem>>, vector<1x1x64xf32>
    %62 = vector.shape_cast %61 : vector<1x1x64xf32> to vector<1x64xf32>
    %63 = vector.broadcast %62 : vector<1x64xf32> to vector<4x64xf32>
    %64 = arith.addf %60, %63 : vector<4x64xf32>
    %65 = vector.extract_strided_slice %64 {offsets = [0, 0], sizes = [4, 32], strides = [1, 1]} : vector<4x64xf32> to vector<4x32xf32>
    %66 = math.tanh %65 : vector<4x32xf32>
    %cst_76 = arith.constant 1.900000e+00 : f32
    %67 = vector.broadcast %cst_76 : f32 to vector<4x32xf32>
    %68 = arith.mulf %67, %66 : vector<4x32xf32>
    %69 = vector.extract_strided_slice %64 {offsets = [0, 32], sizes = [4, 32], strides = [1, 1]} : vector<4x64xf32> to vector<4x32xf32>
    %c0_77 = arith.constant 0 : index
    %c0_78 = arith.constant 0 : index
    %70 = vector.load %arg9[%c0_77, %c0_78] : memref<64x32xf32, #tpu.memory_space<vmem>>, vector<64x32xf32>
    %cst_79 = arith.constant dense<0.000000e+00> : vector<4x32xf32>
    %71 = tpu.matmul %14, %70, %cst_79 {dimension_numbers = #tpu.dot_dimension_numbers<[1], [0], [0], [1], [0, 0, 1, 1], [], []>} : vector<4x64xf32>, vector<64x32xf32>, vector<4x32xf32> -> vector<4x32xf32>
    %72 = math.exp %68 : vector<4x32xf32>
    %73 = arith.mulf %71, %72 : vector<4x32xf32>
    %74 = arith.addf %73, %69 : vector<4x32xf32>
    %cst_80 = arith.constant dense<0.000000e+00> : vector<4xf32>
    %75 = vector.multi_reduction <add>, %68, %cst_80 [1] : vector<4x32xf32> to vector<4xf32>
    %76 = vector.shape_cast %75 : vector<4xf32> to vector<4x1xf32>
    %cst_81 = arith.constant dense<0.000000e+00> : vector<1xf32>
    %77 = vector.multi_reduction <add>, %76, %cst_81 [0] : vector<4x1xf32> to vector<1xf32>
    %78 = vector.shape_cast %77 : vector<1xf32> to vector<1x1xf32>
    %79 = arith.addf %15, %78 : vector<1x1xf32>
    %c0_82 = arith.constant 0 : index
    %c0_83 = arith.constant 0 : index
    %80 = vector.load %arg10[%c0_82, %c0_83] : memref<64x64xf32, #tpu.memory_space<vmem>>, vector<64x64xf32>
    %cst_84 = arith.constant dense<0.000000e+00> : vector<4x64xf32>
    %81 = tpu.matmul %14, %80, %cst_84 {dimension_numbers = #tpu.dot_dimension_numbers<[1], [0], [0], [1], [0, 0, 1, 1], [], []>} : vector<4x64xf32>, vector<64x64xf32>, vector<4x64xf32> -> vector<4x64xf32>
    %c0_85 = arith.constant 0 : index
    %c0_86 = arith.constant 0 : index
    %82 = vector.load %arg11[%c0_85, %c0_86] : memref<32x64xf32, #tpu.memory_space<vmem>>, vector<32x64xf32>
    %cst_87 = arith.constant dense<0.000000e+00> : vector<4x64xf32>
    %83 = tpu.matmul %74, %82, %cst_87 {dimension_numbers = #tpu.dot_dimension_numbers<[1], [0], [0], [1], [0, 0, 1, 1], [], []>} : vector<4x32xf32>, vector<32x64xf32>, vector<4x64xf32> -> vector<4x64xf32>
    %84 = arith.addf %81, %83 : vector<4x64xf32>
    %c1_88 = arith.constant 1 : index
    %c0_89 = arith.constant 0 : index
    %c0_90 = arith.constant 0 : index
    %c0_91 = arith.constant 0 : index
    %85 = vector.load %arg5[%c1_88, %c0_89, %c0_90, %c0_91] : memref<2x3x64x64xf32, #tpu.memory_space<vmem>>, vector<1x1x64x64xf32>
    %86 = vector.shape_cast %85 : vector<1x1x64x64xf32> to vector<64x64xf32>
    %cst_92 = arith.constant dense<0.000000e+00> : vector<4x64xf32>
    %87 = tpu.matmul %84, %86, %cst_92 {dimension_numbers = #tpu.dot_dimension_numbers<[1], [0], [0], [1], [0, 0, 1, 1], [], []>} : vector<4x64xf32>, vector<64x64xf32>, vector<4x64xf32> -> vector<4x64xf32>
    %c0_93 = arith.constant 0 : index
    %c0_94 = arith.constant 0 : index
    %c0_95 = arith.constant 0 : index
    %88 = vector.load %arg4[%c0_93, %c0_94, %c0_95] : memref<3x4x4xf32, #tpu.memory_space<vmem>>, vector<1x4x4xf32>
    %89 = vector.shape_cast %88 : vector<1x4x4xf32> to vector<4x4xf32>
    %cst_96 = arith.constant dense<0.000000e+00> : vector<4x64xf32>
    %90 = tpu.matmul %89, %87, %cst_96 {dimension_numbers = #tpu.dot_dimension_numbers<[1], [0], [0], [1], [0, 0, 1, 1], [], []>} : vector<4x4xf32>, vector<4x64xf32>, vector<4x64xf32> -> vector<4x64xf32>
    %c1_97 = arith.constant 1 : index
    %c1_98 = arith.constant 1 : index
    %c0_99 = arith.constant 0 : index
    %c0_100 = arith.constant 0 : index
    %91 = vector.load %arg5[%c1_97, %c1_98, %c0_99, %c0_100] : memref<2x3x64x64xf32, #tpu.memory_space<vmem>>, vector<1x1x64x64xf32>
    %92 = vector.shape_cast %91 : vector<1x1x64x64xf32> to vector<64x64xf32>
    %cst_101 = arith.constant dense<0.000000e+00> : vector<4x64xf32>
    %93 = tpu.matmul %84, %92, %cst_101 {dimension_numbers = #tpu.dot_dimension_numbers<[1], [0], [0], [1], [0, 0, 1, 1], [], []>} : vector<4x64xf32>, vector<64x64xf32>, vector<4x64xf32> -> vector<4x64xf32>
    %c1_102 = arith.constant 1 : index
    %c0_103 = arith.constant 0 : index
    %c0_104 = arith.constant 0 : index
    %94 = vector.load %arg4[%c1_102, %c0_103, %c0_104] : memref<3x4x4xf32, #tpu.memory_space<vmem>>, vector<1x4x4xf32>
    %95 = vector.shape_cast %94 : vector<1x4x4xf32> to vector<4x4xf32>
    %cst_105 = arith.constant dense<0.000000e+00> : vector<4x64xf32>
    %96 = tpu.matmul %95, %93, %cst_105 {dimension_numbers = #tpu.dot_dimension_numbers<[1], [0], [0], [1], [0, 0, 1, 1], [], []>} : vector<4x4xf32>, vector<4x64xf32>, vector<4x64xf32> -> vector<4x64xf32>
    %97 = arith.addf %90, %96 : vector<4x64xf32>
    %c1_106 = arith.constant 1 : index
    %c2_107 = arith.constant 2 : index
    %c0_108 = arith.constant 0 : index
    %c0_109 = arith.constant 0 : index
    %98 = vector.load %arg5[%c1_106, %c2_107, %c0_108, %c0_109] : memref<2x3x64x64xf32, #tpu.memory_space<vmem>>, vector<1x1x64x64xf32>
    %99 = vector.shape_cast %98 : vector<1x1x64x64xf32> to vector<64x64xf32>
    %cst_110 = arith.constant dense<0.000000e+00> : vector<4x64xf32>
    %100 = tpu.matmul %84, %99, %cst_110 {dimension_numbers = #tpu.dot_dimension_numbers<[1], [0], [0], [1], [0, 0, 1, 1], [], []>} : vector<4x64xf32>, vector<64x64xf32>, vector<4x64xf32> -> vector<4x64xf32>
    %c2_111 = arith.constant 2 : index
    %c0_112 = arith.constant 0 : index
    %c0_113 = arith.constant 0 : index
    %101 = vector.load %arg4[%c2_111, %c0_112, %c0_113] : memref<3x4x4xf32, #tpu.memory_space<vmem>>, vector<1x4x4xf32>
    %102 = vector.shape_cast %101 : vector<1x4x4xf32> to vector<4x4xf32>
    %cst_114 = arith.constant dense<0.000000e+00> : vector<4x64xf32>
    %103 = tpu.matmul %102, %100, %cst_114 {dimension_numbers = #tpu.dot_dimension_numbers<[1], [0], [0], [1], [0, 0, 1, 1], [], []>} : vector<4x4xf32>, vector<4x64xf32>, vector<4x64xf32> -> vector<4x64xf32>
    %104 = arith.addf %97, %103 : vector<4x64xf32>
    %c1_115 = arith.constant 1 : index
    %c0_116 = arith.constant 0 : index
    %c0_117 = arith.constant 0 : index
    %105 = vector.load %arg6[%c1_115, %c0_116, %c0_117] : memref<2x4x64xf32, #tpu.memory_space<vmem>>, vector<1x4x64xf32>
    %106 = vector.shape_cast %105 : vector<1x4x64xf32> to vector<4x64xf32>
    %107 = arith.addf %104, %106 : vector<4x64xf32>
    %cst_118 = arith.constant 0.000000e+00 : f32
    %108 = vector.broadcast %cst_118 : f32 to vector<4x64xf32>
    %109 = arith.maximumf %107, %108 : vector<4x64xf32>
    %c1_119 = arith.constant 1 : index
    %c0_120 = arith.constant 0 : index
    %c0_121 = arith.constant 0 : index
    %c0_122 = arith.constant 0 : index
    %110 = vector.load %arg7[%c1_119, %c0_120, %c0_121, %c0_122] : memref<2x3x64x64xf32, #tpu.memory_space<vmem>>, vector<1x1x64x64xf32>
    %111 = vector.shape_cast %110 : vector<1x1x64x64xf32> to vector<64x64xf32>
    %cst_123 = arith.constant dense<0.000000e+00> : vector<4x64xf32>
    %112 = tpu.matmul %109, %111, %cst_123 {dimension_numbers = #tpu.dot_dimension_numbers<[1], [0], [0], [1], [0, 0, 1, 1], [], []>} : vector<4x64xf32>, vector<64x64xf32>, vector<4x64xf32> -> vector<4x64xf32>
    %c0_124 = arith.constant 0 : index
    %c0_125 = arith.constant 0 : index
    %c0_126 = arith.constant 0 : index
    %113 = vector.load %arg4[%c0_124, %c0_125, %c0_126] : memref<3x4x4xf32, #tpu.memory_space<vmem>>, vector<1x4x4xf32>
    %114 = vector.shape_cast %113 : vector<1x4x4xf32> to vector<4x4xf32>
    %cst_127 = arith.constant dense<0.000000e+00> : vector<4x64xf32>
    %115 = tpu.matmul %114, %112, %cst_127 {dimension_numbers = #tpu.dot_dimension_numbers<[1], [0], [0], [1], [0, 0, 1, 1], [], []>} : vector<4x4xf32>, vector<4x64xf32>, vector<4x64xf32> -> vector<4x64xf32>
    %c1_128 = arith.constant 1 : index
    %c1_129 = arith.constant 1 : index
    %c0_130 = arith.constant 0 : index
    %c0_131 = arith.constant 0 : index
    %116 = vector.load %arg7[%c1_128, %c1_129, %c0_130, %c0_131] : memref<2x3x64x64xf32, #tpu.memory_space<vmem>>, vector<1x1x64x64xf32>
    %117 = vector.shape_cast %116 : vector<1x1x64x64xf32> to vector<64x64xf32>
    %cst_132 = arith.constant dense<0.000000e+00> : vector<4x64xf32>
    %118 = tpu.matmul %109, %117, %cst_132 {dimension_numbers = #tpu.dot_dimension_numbers<[1], [0], [0], [1], [0, 0, 1, 1], [], []>} : vector<4x64xf32>, vector<64x64xf32>, vector<4x64xf32> -> vector<4x64xf32>
    %c1_133 = arith.constant 1 : index
    %c0_134 = arith.constant 0 : index
    %c0_135 = arith.constant 0 : index
    %119 = vector.load %arg4[%c1_133, %c0_134, %c0_135] : memref<3x4x4xf32, #tpu.memory_space<vmem>>, vector<1x4x4xf32>
    %120 = vector.shape_cast %119 : vector<1x4x4xf32> to vector<4x4xf32>
    %cst_136 = arith.constant dense<0.000000e+00> : vector<4x64xf32>
    %121 = tpu.matmul %120, %118, %cst_136 {dimension_numbers = #tpu.dot_dimension_numbers<[1], [0], [0], [1], [0, 0, 1, 1], [], []>} : vector<4x4xf32>, vector<4x64xf32>, vector<4x64xf32> -> vector<4x64xf32>
    %122 = arith.addf %115, %121 : vector<4x64xf32>
    %c1_137 = arith.constant 1 : index
    %c2_138 = arith.constant 2 : index
    %c0_139 = arith.constant 0 : index
    %c0_140 = arith.constant 0 : index
    %123 = vector.load %arg7[%c1_137, %c2_138, %c0_139, %c0_140] : memref<2x3x64x64xf32, #tpu.memory_space<vmem>>, vector<1x1x64x64xf32>
    %124 = vector.shape_cast %123 : vector<1x1x64x64xf32> to vector<64x64xf32>
    %cst_141 = arith.constant dense<0.000000e+00> : vector<4x64xf32>
    %125 = tpu.matmul %109, %124, %cst_141 {dimension_numbers = #tpu.dot_dimension_numbers<[1], [0], [0], [1], [0, 0, 1, 1], [], []>} : vector<4x64xf32>, vector<64x64xf32>, vector<4x64xf32> -> vector<4x64xf32>
    %c2_142 = arith.constant 2 : index
    %c0_143 = arith.constant 0 : index
    %c0_144 = arith.constant 0 : index
    %126 = vector.load %arg4[%c2_142, %c0_143, %c0_144] : memref<3x4x4xf32, #tpu.memory_space<vmem>>, vector<1x4x4xf32>
    %127 = vector.shape_cast %126 : vector<1x4x4xf32> to vector<4x4xf32>
    %cst_145 = arith.constant dense<0.000000e+00> : vector<4x64xf32>
    %128 = tpu.matmul %127, %125, %cst_145 {dimension_numbers = #tpu.dot_dimension_numbers<[1], [0], [0], [1], [0, 0, 1, 1], [], []>} : vector<4x4xf32>, vector<4x64xf32>, vector<4x64xf32> -> vector<4x64xf32>
    %129 = arith.addf %122, %128 : vector<4x64xf32>
    %c1_146 = arith.constant 1 : index
    %c0_147 = arith.constant 0 : index
    %c0_148 = arith.constant 0 : index
    %130 = vector.load %arg8[%c1_146, %c0_147, %c0_148] : memref<2x1x64xf32, #tpu.memory_space<vmem>>, vector<1x1x64xf32>
    %131 = vector.shape_cast %130 : vector<1x1x64xf32> to vector<1x64xf32>
    %132 = vector.broadcast %131 : vector<1x64xf32> to vector<4x64xf32>
    %133 = arith.addf %129, %132 : vector<4x64xf32>
    %134 = vector.extract_strided_slice %133 {offsets = [0, 0], sizes = [4, 32], strides = [1, 1]} : vector<4x64xf32> to vector<4x32xf32>
    %135 = math.tanh %134 : vector<4x32xf32>
    %cst_149 = arith.constant 1.900000e+00 : f32
    %136 = vector.broadcast %cst_149 : f32 to vector<4x32xf32>
    %137 = arith.mulf %136, %135 : vector<4x32xf32>
    %138 = vector.extract_strided_slice %133 {offsets = [0, 32], sizes = [4, 32], strides = [1, 1]} : vector<4x64xf32> to vector<4x32xf32>
    %c0_150 = arith.constant 0 : index
    %c0_151 = arith.constant 0 : index
    %139 = vector.load %arg9[%c0_150, %c0_151] : memref<64x32xf32, #tpu.memory_space<vmem>>, vector<64x32xf32>
    %cst_152 = arith.constant dense<0.000000e+00> : vector<4x32xf32>
    %140 = tpu.matmul %84, %139, %cst_152 {dimension_numbers = #tpu.dot_dimension_numbers<[1], [0], [0], [1], [0, 0, 1, 1], [], []>} : vector<4x64xf32>, vector<64x32xf32>, vector<4x32xf32> -> vector<4x32xf32>
    %141 = math.exp %137 : vector<4x32xf32>
    %142 = arith.mulf %140, %141 : vector<4x32xf32>
    %143 = arith.addf %142, %138 : vector<4x32xf32>
    %cst_153 = arith.constant dense<0.000000e+00> : vector<4xf32>
    %144 = vector.multi_reduction <add>, %137, %cst_153 [1] : vector<4x32xf32> to vector<4xf32>
    %145 = vector.shape_cast %144 : vector<4xf32> to vector<4x1xf32>
    %cst_154 = arith.constant dense<0.000000e+00> : vector<1xf32>
    %146 = vector.multi_reduction <add>, %145, %cst_154 [0] : vector<4x1xf32> to vector<1xf32>
    %147 = vector.shape_cast %146 : vector<1xf32> to vector<1x1xf32>
    %148 = arith.addf %79, %147 : vector<1x1xf32>
    %c0_155 = arith.constant 0 : index
    %c0_156 = arith.constant 0 : index
    %149 = vector.load %arg10[%c0_155, %c0_156] : memref<64x64xf32, #tpu.memory_space<vmem>>, vector<64x64xf32>
    %cst_157 = arith.constant dense<0.000000e+00> : vector<4x64xf32>
    %150 = tpu.matmul %84, %149, %cst_157 {dimension_numbers = #tpu.dot_dimension_numbers<[1], [0], [0], [1], [0, 0, 1, 1], [], []>} : vector<4x64xf32>, vector<64x64xf32>, vector<4x64xf32> -> vector<4x64xf32>
    %c0_158 = arith.constant 0 : index
    %c0_159 = arith.constant 0 : index
    %151 = vector.load %arg11[%c0_158, %c0_159] : memref<32x64xf32, #tpu.memory_space<vmem>>, vector<32x64xf32>
    %cst_160 = arith.constant dense<0.000000e+00> : vector<4x64xf32>
    %152 = tpu.matmul %143, %151, %cst_160 {dimension_numbers = #tpu.dot_dimension_numbers<[1], [0], [0], [1], [0, 0, 1, 1], [], []>} : vector<4x32xf32>, vector<32x64xf32>, vector<4x64xf32> -> vector<4x64xf32>
    %153 = arith.addf %150, %152 : vector<4x64xf32>
    %c0_161 = arith.constant 0 : index
    %c0_162 = arith.constant 0 : index
    %154 = vector.load %arg12[%c0_161, %c0_162] : memref<64x64xf32, #tpu.memory_space<vmem>>, vector<64x64xf32>
    %cst_163 = arith.constant dense<0.000000e+00> : vector<4x64xf32>
    %155 = tpu.matmul %153, %154, %cst_163 {dimension_numbers = #tpu.dot_dimension_numbers<[1], [0], [0], [1], [0, 0, 1, 1], [], []>} : vector<4x64xf32>, vector<64x64xf32>, vector<4x64xf32> -> vector<4x64xf32>
    %c0_164 = arith.constant 0 : index
    %c0_165 = arith.constant 0 : index
    %c0_166 = arith.constant 0 : index
    %156 = vector.load %arg13[%c0_164, %c0_165, %c0_166] : memref<1x4x64xf32, #tpu.memory_space<vmem>>, vector<1x4x64xf32>
    %157 = vector.shape_cast %156 : vector<1x4x64xf32> to vector<4x64xf32>
    %158 = vector.shape_cast %155 : vector<4x64xf32> to vector<1x4x64xf32>
    tpu.vector_store %arg13[%c0_164, %c0_165, %c0_166], %158 {strides = array<i32>} : memref<1x4x64xf32, #tpu.memory_space<vmem>>, vector<1x4x64xf32>,
    %159 = vector.shape_cast %148 : vector<1x1xf32> to vector<1x1xf32>
    %160 = vector.broadcast %159 : vector<1x1xf32> to vector<1x128xf32>
    %c0_167 = arith.constant 0 : index
    %c0_168 = arith.constant 0 : index
    %c0_169 = arith.constant 0 : index
    %161 = vector.load %arg14[%c0_167, %c0_168, %c0_169] : memref<1x1x128xf32, #tpu.memory_space<vmem>>, vector<1x1x128xf32>
    %162 = vector.shape_cast %161 : vector<1x1x128xf32> to vector<1x128xf32>
    %163 = vector.shape_cast %160 : vector<1x128xf32> to vector<1x1x128xf32>
    tpu.vector_store %arg14[%c0_167, %c0_168, %c0_169], %163 {strides = array<i32>} : memref<1x1x128xf32, #tpu.memory_space<vmem>>, vector<1x1x128xf32>,
    return
  }
  func.func @transform_0(%arg0: i32) -> (i32, i32, i32) {
    %c0_i32 = arith.constant 0 : i32
    %c0_i32_0 = arith.constant 0 : i32
    %c0_i32_1 = arith.constant 0 : i32
    return %arg0, %c0_i32, %c0_i32_0 : i32, i32, i32
  }
  func.func @transform_1(%arg0: i32) -> (i32, i32) {
    %c0_i32 = arith.constant 0 : i32
    %c0_i32_0 = arith.constant 0 : i32
    %c0_i32_1 = arith.constant 0 : i32
    return %c0_i32, %c0_i32_0 : i32, i32
  }
  func.func @transform_2(%arg0: i32) -> (i32, i32, i32) {
    %c0_i32 = arith.constant 0 : i32
    %c0_i32_0 = arith.constant 0 : i32
    %c0_i32_1 = arith.constant 0 : i32
    %c0_i32_2 = arith.constant 0 : i32
    return %c0_i32, %c0_i32_0, %c0_i32_1 : i32, i32, i32
  }
  func.func @transform_3(%arg0: i32) -> (i32, i32, i32) {
    %c0_i32 = arith.constant 0 : i32
    %c0_i32_0 = arith.constant 0 : i32
    %c0_i32_1 = arith.constant 0 : i32
    %c0_i32_2 = arith.constant 0 : i32
    return %c0_i32, %c0_i32_0, %c0_i32_1 : i32, i32, i32
  }
  func.func @transform_4(%arg0: i32) -> (i32, i32, i32, i32) {
    %c0_i32 = arith.constant 0 : i32
    %c0_i32_0 = arith.constant 0 : i32
    %c0_i32_1 = arith.constant 0 : i32
    %c0_i32_2 = arith.constant 0 : i32
    %c0_i32_3 = arith.constant 0 : i32
    return %c0_i32, %c0_i32_0, %c0_i32_1, %c0_i32_2 : i32, i32, i32, i32
  }
  func.func @transform_5(%arg0: i32) -> (i32, i32, i32) {
    %c0_i32 = arith.constant 0 : i32
    %c0_i32_0 = arith.constant 0 : i32
    %c0_i32_1 = arith.constant 0 : i32
    %c0_i32_2 = arith.constant 0 : i32
    return %c0_i32, %c0_i32_0, %c0_i32_1 : i32, i32, i32
  }
  func.func @transform_6(%arg0: i32) -> (i32, i32, i32, i32) {
    %c0_i32 = arith.constant 0 : i32
    %c0_i32_0 = arith.constant 0 : i32
    %c0_i32_1 = arith.constant 0 : i32
    %c0_i32_2 = arith.constant 0 : i32
    %c0_i32_3 = arith.constant 0 : i32
    return %c0_i32, %c0_i32_0, %c0_i32_1, %c0_i32_2 : i32, i32, i32, i32
  }
  func.func @transform_7(%arg0: i32) -> (i32, i32, i32) {
    %c0_i32 = arith.constant 0 : i32
    %c0_i32_0 = arith.constant 0 : i32
    %c0_i32_1 = arith.constant 0 : i32
    %c0_i32_2 = arith.constant 0 : i32
    return %c0_i32, %c0_i32_0, %c0_i32_1 : i32, i32, i32
  }
  func.func @transform_8(%arg0: i32) -> (i32, i32) {
    %c0_i32 = arith.constant 0 : i32
    %c0_i32_0 = arith.constant 0 : i32
    %c0_i32_1 = arith.constant 0 : i32
    return %c0_i32, %c0_i32_0 : i32, i32
  }
  func.func @transform_9(%arg0: i32) -> (i32, i32) {
    %c0_i32 = arith.constant 0 : i32
    %c0_i32_0 = arith.constant 0 : i32
    %c0_i32_1 = arith.constant 0 : i32
    return %c0_i32, %c0_i32_0 : i32, i32
  }
  func.func @transform_10(%arg0: i32) -> (i32, i32) {
    %c0_i32 = arith.constant 0 : i32
    %c0_i32_0 = arith.constant 0 : i32
    %c0_i32_1 = arith.constant 0 : i32
    return %c0_i32, %c0_i32_0 : i32, i32
  }
  func.func @transform_11(%arg0: i32) -> (i32, i32) {
    %c0_i32 = arith.constant 0 : i32
    %c0_i32_0 = arith.constant 0 : i32
    %c0_i32_1 = arith.constant 0 : i32
    return %c0_i32, %c0_i32_0 : i32, i32
  }
  func.func @transform_12(%arg0: i32) -> (i32, i32, i32) {
    %c0_i32 = arith.constant 0 : i32
    %c0_i32_0 = arith.constant 0 : i32
    %c0_i32_1 = arith.constant 0 : i32
    return %arg0, %c0_i32, %c0_i32_0 : i32, i32, i32
  }
  func.func @transform_13(%arg0: i32) -> (i32, i32, i32) {
    %c0_i32 = arith.constant 0 : i32
    %c0_i32_0 = arith.constant 0 : i32
    %c0_i32_1 = arith.constant 0 : i32
    return %arg0, %c0_i32, %c0_i32_0 : i32, i32, i32
  }
}

</mosaic_0001>

<bundles_post_ra>
// kernel: msflow_forward.7
= control target key start
LH: loop header
LB: loop body
LE: loop exit
PB: predicated region body
PF: predicated region fallthrough
CT: control target
= control target key end

     0   :  { %s2643_s0 = inlined_call_operand.vmem [shape: f32[2,4,128], index: 0, kind: input, shape index: {}]   ;;  %s2644_s1 = inlined_call_operand.hbm [shape: f32[128,64], index: 1, kind: input, shape index: {}]   ;;  %s2645_s2 = inlined_call_operand.hbm [shape: f32[3,2,4], index: 2, kind: input, shape index: {}]   ;;  %s2646_s3 = inlined_call_operand.hbm [shape: f32[3,2,2], index: 3, kind: input, shape index: {}]   ;;  %s2647_s4 = inlined_call_operand.hbm [shape: f32[2,3,64,32], index: 4, kind: input, shape index: {}]   ;;  %s2648_s5 = inlined_call_operand.vmem [shape: f32[2,2,32], index: 5, kind: input, shape index: {}]   ;;  %s2649_s6 = inlined_call_operand.vmem [shape: f32[2,3,32,64], index: 6, kind: input, shape index: {}]   ;;  %s2650_s7 = inlined_call_operand.vmem [shape: f32[2,1,64], index: 7, kind: input, shape index: {}]   ;;  %s2651_s8 = inlined_call_operand.hbm [shape: f32[64,32], index: 8, kind: input, shape index: {}]   ;;  %s2652_s9 = inlined_call_operand.hbm [shape: f32[64,64], index: 9, kind: input, shape index: {}]   ;;  %s2653_s10 = inlined_call_operand.hbm [shape: f32[32,64], index: 10, kind: input, shape index: {}]   ;;  %s2654_s11 = inlined_call_operand.hbm [shape: f32[64,64], index: 11, kind: input, shape index: {}]   ;;  %s2655_s12 = inlined_call_operand.vmem [shape: f32[2,2,64], index: 12, kind: output, shape index: {0}]   ;;  %s2656_s13 = inlined_call_operand.vmem [shape: f32[2,1,128], index: 13, kind: output, shape index: {1}]  }
   0x1   :  { %2657 = sst [smem:[#allocation20_spill]] %s2644_s1 }
   0x2   :  { %2658 = sst [smem:[#allocation21_spill]] %s2645_s2 }
   0x3   :  { %2659 = sst [smem:[#allocation22_spill]] %s2646_s3 }
   0x4   :  { %2660 = sst [smem:[#allocation23_spill]] %s2647_s4 }
   0x5   :  { %19 = vsyncpa [#allocation3], 0 }
   0x6   :  { %20 = vsyncpa [#allocation5], 0 }
   0x7   :  { %21 = vsyncpa [#allocation8], 0 }
   0x8   :  { %22 = vsyncpa [#allocation11], 0 }
   0x9   :  { %23 = vsyncpa [#allocation14], 0  ;;  %s2276_s25 = smov 0  }
   0xa LB: > { %s2661_s2 = sld [smem:[#allocation21_spill]]  ;;  %s2285_s29 = sadd.s32 4294967295, %s2191_s25   ;;  %s2191_s25 = sphi %s2276_s25, %s29_s25  }
   0xb   : > { %p1727_p0 = scmp.ge.s32.totalorder %s2191_s25, 1  ;;  %p343_p1 = scmp.lt.s32.totalorder %s2191_s25, 3 }
   0xc   : > { %p1878_p2 = scmp.eq.s32.totalorder %s2285_s29, 0  ;;  %s2193_s14 = smov [#allocation4]  }
   0xd   : > { %p2290_p3 = pnand %p1727_p0, %p343_p1  ;;  %s370_s15 = sshll.u32 %s2193_s14, 4  ;;  %s371_s15 = int_to_ptr.vmem [resolvable:$true] %s370_s15 }
   0xe   : > { %s2664_s4 = sld [smem:[#allocation23_spill]]  ;;  %s2194_s20 = smov [#allocation7]  }
   0xf   : > { %p1853_p4 = pneg %p2290_p3  ;;  %s398_s21 = sshll.u32 %s2194_s20, 4  ;;  %s399_s21 = int_to_ptr.vmem [resolvable:$true] %s398_s21 }
  0x10   : > { %s368_s28 = sshll.u32 %s2661_s2, 4  ;;  %s2195_s22 = smov 32   ;;  %s369_s28 = int_to_ptr.hbm [resolvable:$true] %s368_s28 }
  0x11   : > { %p2298_p5 = pnand %p1878_p2, %p1853_p4  ;;  %s2196_s23 = smov 2  }
  0x12   : > { %s433_s27 = sshll.u32 %s2652_s9, 4  ;;  %s2197_s14 = smov 128   ;;  %s434_s27 = int_to_ptr.hbm [resolvable:$true] %s433_s27 }
  0x13   : > { %1859 = dma.hbm_to_vmem [thread:$0]  (!%p2298_p5), %s369_s28, 96, %s371_s15, [#allocation5], %s2195_s22, %s2195_s22, %s2196_s23  }
  0x14   : > { %s396_s19 = sshll.u32 %s2664_s4, 4  ;;  %s2198_s2 = smov 8   ;;  %s397_s19 = int_to_ptr.hbm [resolvable:$true] %s396_s19 }
  0x15   : > { %1865 = dma.hbm_to_vmem [thread:$0]  (!%p2298_p5), %s397_s19, 6144, %s399_s21, [#allocation8], %s2197_s14, %s2197_s14, %s2198_s2  }
  0x16   : > { %s2199_s17 = smov [#allocation10]   ;;  %s2665_s1 = sld [smem:[#allocation20_spill]] }
  0x17   : > { %s435_s18 = sshll.u32 %s2199_s17, 4  ;;  %s2666_s3 = sld [smem:[#allocation22_spill]]  ;;  %s436_s18 = int_to_ptr.vmem [resolvable:$true] %s435_s18 }
  0x18   : > { %1871 = dma.hbm_to_vmem [thread:$0]  (!%p2298_p5), %s434_s27, 1024, %s436_s18, [#allocation11], %s2197_s14, %s2197_s14, %s2198_s2  }
  0x19   : > { %s2200_s19 = smov [#allocation2]   ;;  %s2201_s4 = smov [#allocation6]  }
  0x1a   : > { %s356_s21 = sshll.u32 %s2200_s19, 4  ;;  %s384_s17 = sshll.u32 %s2201_s4, 4  ;;  %s357_s21 = int_to_ptr.vmem [resolvable:$true] %s356_s21  ;;  %s385_s17 = int_to_ptr.vmem [resolvable:$true] %s384_s17 }
  0x1b   : > { %s419_s27 = sshll.u32 %s2651_s8, 4  ;;  %s447_s24 = sshll.u32 %s2653_s10, 4  ;;  %s420_s27 = int_to_ptr.hbm [resolvable:$true] %s419_s27  ;;  %s448_s24 = int_to_ptr.hbm [resolvable:$true] %s447_s24 }
  0x1c   : > { %s354_s28 = sshll.u32 %s2665_s1, 4  ;;  %s2202_s19 = smov [#allocation9]   ;;  %s355_s28 = int_to_ptr.hbm [resolvable:$true] %s354_s28 }
  0x1d   : > { %s382_s26 = sshll.u32 %s2666_s3, 4  ;;  %s421_s3 = sshll.u32 %s2202_s19, 4  ;;  %s383_s26 = int_to_ptr.hbm [resolvable:$true] %s382_s26  ;;  %s422_s3 = int_to_ptr.vmem [resolvable:$true] %s421_s3 }
  0x1e   : > { %1856 = dma.hbm_to_vmem [thread:$0]  (!%p2298_p5), %s355_s28, 2048, %s357_s21, [#allocation3], %s2197_s14, %s2197_s14, %s2198_s2  }
  0x1f   : > { %1862 = dma.hbm_to_vmem [thread:$0]  (!%p2298_p5), %s383_s26, 96, %s385_s17, [#allocation5], %s2195_s22, %s2195_s22, %s2196_s23  }
  0x20   : > { %1868 = dma.hbm_to_vmem [thread:$0]  (!%p2298_p5), %s420_s27, 1024, %s422_s3, [#allocation8], %s2197_s14, %s2197_s14, %s2198_s2  }
  0x21   : > { %s2203_s1 = smov [#allocation12]   ;;  %s461_s22 = sshll.u32 %s2654_s11, 4  ;;  %s462_s22 = int_to_ptr.hbm [resolvable:$true] %s461_s22 }
  0x22   : > { %s449_s28 = sshll.u32 %s2203_s1, 4  ;;  %s2204_s23 = smov [#allocation13]   ;;  %s450_s28 = int_to_ptr.vmem [resolvable:$true] %s449_s28 }
  0x23   : > { %1874 = dma.hbm_to_vmem [thread:$0]  (!%p2298_p5), %s448_s24, 512, %s450_s28, [#allocation11], %s2197_s14, %s2197_s14, %s2198_s2  }
  0x24   : > { %s463_s26 = sshll.u32 %s2204_s23, 4  ;;  %486 = sbr.rel (%p2290_p3) target bundleno = 2070 (0x816), region = 68  ;;  %s464_s26 = int_to_ptr.vmem [resolvable:$true] %s463_s26 }
  0x25   : > { %1877 = dma.hbm_to_vmem [thread:$0]  (!%p2298_p5), %s462_s22, 1024, %s464_s26, [#allocation14], %s2197_s14, %s2197_s14, %s2198_s2  }
  0x29   : > { %2170 = dma.done.wait (%p1878_p2), [#allocation3], 2048  }
  0x2a   : > { %2172 = vsyncadd (%p1878_p2), [#allocation3], 4294965248 }
  0x2b   : > { %2174 = dma.done.wait (%p1878_p2), [#allocation5], 192  }
  0x2c   : > { %2176 = vsyncadd (%p1878_p2), [#allocation5], 4294967104 }
  0x2d   : > { %2178 = dma.done.wait (%p1878_p2), [#allocation8], 7168  }
  0x2e   : > { %2180 = vsyncadd (%p1878_p2), [#allocation8], 4294960128 }
  0x2f   : > { %2182 = dma.done.wait (%p1878_p2), [#allocation11], 1536  }
  0x30   : > { %2184 = vsyncadd (%p1878_p2), [#allocation11], 4294965760 }
  0x31   : > { %2186 = dma.done.wait (%p1878_p2), [#allocation14], 1024  }
  0x32   : > { %2188 = vsyncadd (%p1878_p2), [#allocation14], 4294966272  ;;  %v594_v0 = vld [vmem:[#allocation2 + $0x78] sm:$0xff]  ;;  %v593_v1 = vld [vmem:[#allocation2 + $0x70] sm:$0xff]  ;;  %p567_p6 = scmp.lt.s32.totalorder %s2285_s29, 1  ;;  %vm622_vm0 = vcmask 1043456  }
  0x33   : > { %595 = vmatpush.msra.mxu0 %v594_v0  ;;  %v592_v2 = vld [vmem:[#allocation2 + $0x68] sm:$0xff]  ;;  %v591_v3 = vld [vmem:[#allocation2 + $0x60] sm:$0xff]  ;;  %v590_v4 = vld [vmem:[#allocation2 + $0x58] sm:$0xff]  ;;  %vm618_vm1 = vcmask 31744   ;;  %vm703_vm2 = vcmask 523264   ;;  %vm763_vm3 = vcmask 1041408  }
  0x34   : > { %v589_v5 = vld [vmem:[#allocation2 + $0x50] sm:$0xff]  ;;  %v588_v6 = vld [vmem:[#allocation2 + $0x48] sm:$0xff]  ;;  %v587_v7 = vld [vmem:[#allocation2 + $0x40] sm:$0xff]  ;;  %s2668_s29 = smov (!%p567_p6, %s2285_s29), 1  ;;  %vm759_vm4 = vcmask 15360   ;;  %vm878_vm5 = vcmask 261120  }
  0x35   : > { %596 = vmatpush.msra.mxu0 %v593_v1  ;;  %v586_v8 = vld [vmem:[#allocation2 + $0x38] sm:$0xff]  ;;  %v585_v9 = vld [vmem:[#allocation2 + $0x30] sm:$0xff]  ;;  %v584_v10 = vld [vmem:[#allocation2 + $0x28] sm:$0xff]  ;;  %s1746_s2 = sshll.u32 %s2668_s29, 2  ;;  %s2205_s28 = smov 96   ;;  %vm1065_vm6 = vcmask 254976  }
  0x36   : > { %v583_v11 = vld [vmem:[#allocation2 + $0x20] sm:$0xff]  ;;  %v582_v12 = vld [vmem:[#allocation2 + $0x18] sm:$0xff]  ;;  %v581_v13 = vld [vmem:[#allocation2 + $0x10] sm:$0xff]  ;;  %s570_s16 = scalar_lea.vmem %s2643_s0, %s1746_s2  ;;  %s577_s20 = scalar_lea.vmem %s2656_s13, %s2668_s29  ;;  %vm1565_vm7 = vcmask 517120  }
  0x37   : > { %597 = vmatpush.msra.mxu0 %v592_v2  ;;  %v580_v14 = vld [vmem:[#allocation2 + $0x8] sm:$0xff]  ;;  %v579_v15 = vld [vmem:[#allocation2] sm:$0xff]  ;;  %v700_v19 = vld [vmem:[#allocation7 + $0x28] sm:$0xff]  ;;  %s1747_s27 = sshll.u32 %s2668_s29, 1 }
  0x38   : > { %v578_v16 = vld [vmem:[%s570_s16] sm:$0xf]  ;;  %v702_v17 = vld [vmem:[#allocation7 + $0x38] sm:$0xff]  ;;  %v699_v20 = vld [vmem:[#allocation7 + $0x20] sm:$0xff]  ;;  %s574_s24 = scalar_lea.vmem %s2655_s12, %s1747_s27 }
  0x39   : > { %598 = vmatpush.msra.mxu0 %v591_v3  ;;  %v701_v18 = vld [vmem:[#allocation7 + $0x30] sm:$0xff]  ;;  %715 = vmatpush.msra.mxu1 %v702_v17  ;;  %v698_v21 = vld [vmem:[#allocation7 + $0x18] sm:$0xff]  ;;  %v696_v23 = vld [vmem:[#allocation7 + $0x8] sm:$0xff] }
  0x3a   : > { %v697_v22 = vld [vmem:[#allocation7 + $0x10] sm:$0xff]  ;;  %v695_v24 = vld [vmem:[#allocation7] sm:$0xff]  ;;  %v821_v25 = vld [vmem:[#allocation7 + $0xb8] sm:$0xff] }
  0x3b   : > { %599 = vmatpush.msra.mxu0 %v590_v4  ;;  %716 = vmatpush.msra.mxu1 %v701_v18  ;;  %v615_v26 = vld [vmem:[#allocation4] sm:$0x3]  ;;  %v670_v28 = vld [vmem:[#allocation4 + $0x4] sm:$0x3]  ;;  %v617_v29 = vld [vmem:[#allocation4 + $0x2] sm:$0x3] }
  0x3c   : > { %v736_v30 = vld [vmem:[#allocation7 + $0x78] sm:$0xff]  ;;  %v735_v31 = vld [vmem:[#allocation7 + $0x70] sm:$0xff]  ;;  %v734_v32 = vld [vmem:[#allocation7 + $0x68] sm:$0xff] }
  0x3d   : > { %600 = vmatpush.msra.mxu0 %v589_v5  ;;  %717 = vmatpush.msra.mxu1 %v700_v19  ;;  %v733_v33 = vld [vmem:[#allocation7 + $0x60] sm:$0xff]  ;;  %v732_v34 = vld [vmem:[#allocation7 + $0x58] sm:$0xff]  ;;  %v731_v35 = vld [vmem:[#allocation7 + $0x50] sm:$0xff] }
  0x3e   : > { %v820_v36 = vld [vmem:[#allocation7 + $0xb0] sm:$0xff]  ;;  %v730_v37 = vld [vmem:[#allocation7 + $0x48] sm:$0xff]  ;;  %v729_v39 = vld [vmem:[#allocation7 + $0x40] sm:$0xff] }
  0x3f   : > { %601 = vmatpush.msra.mxu0 %v588_v6  ;;  %718 = vmatpush.msra.mxu1 %v699_v20  ;;  %v819_v38 = vld [vmem:[#allocation7 + $0xa8] sm:$0xff]  ;;  %v818_v40 = vld [vmem:[#allocation7 + $0xa0] sm:$0xff]  ;;  %v817_v41 = vld [vmem:[#allocation7 + $0x98] sm:$0xff] }
  0x40   : > { %v816_v42 = vld [vmem:[#allocation7 + $0x90] sm:$0xff]  ;;  %v815_v43 = vld [vmem:[#allocation7 + $0x88] sm:$0xff]  ;;  %v814_v44 = vld [vmem:[#allocation7 + $0x80] sm:$0xff] }
  0x41   : > { %602 = vmatpush.msra.mxu0 %v587_v7  ;;  %719 = vmatpush.msra.mxu1 %v698_v21  ;;  %v2395_v51 = vld [vmem:[#allocation6 + $0x2] sm:$0x3]  ;;  %v2398_v53 = vld [vmem:[#allocation6 + $0x4] sm:$0x3]  ;;  %v2406_v55 = vld [vmem:[#allocation6] sm:$0x3] }
  0x42   : > { %v1776_v56 = vld [vmem:[%s2649_s6 + $0x58] sm:$0xff]  ;;  %v1775_v57 = vld [vmem:[%s2649_s6 + $0x50] sm:$0xff]  ;;  %v1774_v58 = vld [vmem:[%s2649_s6 + $0x48] sm:$0xff] }
  0x43   : > { %603 = vmatpush.msra.mxu0 %v586_v8  ;;  %720 = vmatpush.msra.mxu1 %v697_v22  ;;  %v1773_v59 = vld [vmem:[%s2649_s6 + $0x40] sm:$0xff]  ;;  %v877_v60 = vld [vmem:[%s2649_s6 + $0x18] sm:$0xff]  ;;  %v876_v63 = vld [vmem:[%s2649_s6 + $0x10] sm:$0xff] }
  0x44   : > { %v1767_v61 = vld [vmem:[%s2649_s6 + $0x38] sm:$0xff]  ;;  %v2428_v62 = vld [vmem:[#allocation10 + $0x38] sm:$0xff]  ;;  %v1766_v0 = vld [vmem:[%s2649_s6 + $0x30] sm:$0xff] }
  0x45   : > { %604 = vmatpush.msra.mxu0 %v585_v9  ;;  %721 = vmatpush.msra.mxu1 %v696_v23  ;;  %v2437_v1 = vld [vmem:[#allocation10 + $0x30] sm:$0xff]  ;;  %v875_v2 = vld [vmem:[%s2649_s6 + $0x8] sm:$0xff]  ;;  %v2446_v4 = vld [vmem:[#allocation10 + $0x28] sm:$0xff] }
  0x46   : > { %v1765_v3 = vld [vmem:[%s2649_s6 + $0x28] sm:$0xff]  ;;  %v874_v5 = vld [vmem:[%s2649_s6] sm:$0xff] }
  0x47   : > { %605 = vmatpush.msra.mxu0 %v584_v10  ;;  %722 = vmatpush.msra.mxu1 %v695_v24  ;;  %v1764_v6 = vld [vmem:[%s2649_s6 + $0x20] sm:$0xff]  ;;  %v2454_v7 = vld [vmem:[#allocation10 + $0x20] sm:$0xff]  ;;  %v2463_v10 = vld [vmem:[#allocation10 + $0x8] sm:$0xff] }
  0x48   : > { %v2458_v8 = vld [vmem:[#allocation10 + $0x18] sm:$0xff]  ;;  %v2460_v9 = vld [vmem:[#allocation10 + $0x10] sm:$0xff] }
  0x49   : > { %606 = vmatpush.msra.mxu0 %v583_v11  ;;  %830 = vmatpush.msrb.mxu1 %v821_v25  ;;  %v2466_v11 = vld [vmem:[#allocation10] sm:$0xff]  ;;  %v2481_v23 = vld [vmem:[#allocation9 + $0x38] sm:$0xff]  ;;  %v2487_v24 = vld [vmem:[#allocation9 + $0x30] sm:$0xff] }
  0x4a   : > { %v2492_v25 = vld [vmem:[#allocation9 + $0x28] sm:$0xff] }
  0x4b   : > { %607 = vmatpush.msra.mxu0 %v582_v12  ;;  %831 = vmatpush.msrb.mxu1 %v820_v36 }
  0x4d   : > { %608 = vmatpush.msra.mxu0 %v581_v13  ;;  %832 = vmatpush.msrb.mxu1 %v819_v38  ;;  %v1915_v38 = vld [vmem:[%s2650_s7] ss:$0 sm:$0xff] }
  0x4f   : > { %609 = vmatpush.msra.mxu0 %v580_v14  ;;  %833 = vmatpush.msrb.mxu1 %v818_v40 }
  0x51   : > { %610 = vmatpush.msra.mxu0 %v579_v15  ;;  %834 = vmatpush.msrb.mxu1 %v817_v41 }
  0x52   : > { %611 = vmatmul.f32.vlgmr.msra.gmra.mxu0 %v578_v16  ;;  %v871_v16 = vld [vmem:[%s2648_s5] sm:$0x3] }
  0x53   : > { %835 = vmatpush.msrb.mxu1 %v816_v42 }
  0x55   : > { %836 = vmatpush.msrb.mxu1 %v815_v43 }
  0x57   : > { %837 = vmatpush.msrb.mxu1 %v814_v44  ;;  %v2527_v44 = vld [vmem:[#allocation12] sm:$0xff] }
  0xcf   : > { %v612_v27 = vpop.f32.mrf.mxu0 }
  0xd0   : > { %1748 = vmatpush.msk.msrb.mxu0 %vm622_vm0, %v612_v27  ;;  %1750 = vmatpush.msk.msra.mxu2 %vm622_vm0, %v612_v27 }
  0xd1   : > { %1752 = vmatpush.msk.msra.mxu3 %vm622_vm0, %v612_v27  ;;  %1751 = vmatmul.msk.f32.vlgmr.msra.gmra.mxu2 %vm618_vm1, %v615_v26  ;;  %v2495_v26 = vld [vmem:[#allocation9 + $0x20] sm:$0xff]  ;;  %v2498_v27 = vld [vmem:[#allocation9 + $0x18] sm:$0xff] }
  0xd2   : > { %1753 = vmatmul.msk.f32.vlgmr.msra.gmra.mxu3 %vm618_vm1, %v670_v28  ;;  %1749 = vmatmul.msk.f32.vlgmr.msrb.gmra.mxu0 %vm618_vm1, %v617_v29  ;;  %v2501_v28 = vld [vmem:[#allocation9 + $0x10] sm:$0xff]  ;;  %v2504_v29 = vld [vmem:[#allocation9 + $0x8] sm:$0xff] }
  0xd3   : > { %745 = vmatpush.msrb.mxu2 %v736_v30  ;;  %v2507_v30 = vld [vmem:[#allocation9] sm:$0xff] }
  0xd5   : > { %746 = vmatpush.msrb.mxu2 %v735_v31  ;;  %v2513_v31 = vld [vmem:[#allocation12 + $0x18] sm:$0xff] }
  0xd7   : > { %747 = vmatpush.msrb.mxu2 %v734_v32  ;;  %v2515_v32 = vld [vmem:[#allocation12 + $0x10] sm:$0xff] }
  0xd9   : > { %748 = vmatpush.msrb.mxu2 %v733_v33  ;;  %v2518_v33 = vld [vmem:[#allocation12 + $0x8] sm:$0xff] }
  0xdb   : > { %749 = vmatpush.msrb.mxu2 %v732_v34 }
  0xdd   : > { %750 = vmatpush.msrb.mxu2 %v731_v35 }
  0xdf   : > { %751 = vmatpush.msrb.mxu2 %v730_v37 }
  0xe1   : > { %752 = vmatpush.msrb.mxu2 %v729_v39 }
 0x14f   : > { %v643_v45 = vpop.f32.mrf.mxu0 }
 0x154   : > { %v666_v46 = vpop.f32.mrf.mxu2 }
 0x155   : > { %v667_v47 = vadd.f32 %v666_v46, %v643_v45  ;;  %v691_v48 = vpop.f32.mrf.mxu3  ;;  %v1140_v46 = vld [vmem:[#allocation7 + $0xf8] sm:$0xff] }
 0x157   : > { %v2387_v49 = vadd.f32 %v691_v48, %v667_v47  ;;  %v1139_v47 = vld [vmem:[#allocation7 + $0xf0] sm:$0xff]  ;;  %v1172_v48 = vld [vmem:[#allocation7 + $0x138] sm:$0xff] }
 0x159   : > { %1754 = vmatmul.msk.f32.vlgmr.msra.gmra.mxu1 %vm703_vm2, %v2387_v49  ;;  %1755 = vmatmul.msk.f32.vlgmr.msrb.gmra.mxu2 %vm703_vm2, %v2387_v49 }
 0x15a   : > { %990 = vmatpush.msra.mxu1 %v1776_v56 }
 0x15c   : > { %991 = vmatpush.msra.mxu1 %v1775_v57  ;;  %v1169_v57 = vld [vmem:[#allocation7 + $0x120] sm:$0xff] }
 0x15e   : > { %992 = vmatpush.msra.mxu1 %v1774_v58  ;;  %v1136_v58 = vld [vmem:[#allocation7 + $0xd8] sm:$0xff] }
 0x160   : > { %993 = vmatpush.msra.mxu1 %v1773_v59 }
 0x161   : > { %1760 = vmatmul.msk.f32.vlgmr.msrb.gmra.mxu1 %vm703_vm2, %v2387_v49 }
 0x162   : > { %1120 = vmatpush.msrb.mxu1 %v2428_v62 }
 0x164   : > { %1121 = vmatpush.msrb.mxu1 %v2437_v1 }
 0x166   : > { %1122 = vmatpush.msrb.mxu1 %v2446_v4 }
 0x168   : > { %1123 = vmatpush.msrb.mxu1 %v2454_v7 }
 0x16a   : > { %1124 = vmatpush.msrb.mxu1 %v2458_v8 }
 0x16c   : > { %1125 = vmatpush.msrb.mxu1 %v2460_v9 }
 0x16e   : > { %1126 = vmatpush.msrb.mxu1 %v2463_v10 }
 0x170   : > { %1127 = vmatpush.msrb.mxu1 %v2466_v11 }
 0x1d6   : > { %v724_v50 = vpop.f32.mrf.mxu1 }
 0x1dc   : > { %v754_v52 = vpop.f32.mrf.mxu2 }
 0x1dd   : > { %1756 = vmatpush.msk.msrb.mxu3 %vm763_vm3, %v754_v52  ;;  %v1170_v52 = vld [vmem:[#allocation7 + $0x128] sm:$0xff] }
 0x1de   : > { %1757 = vmatmul.msk.f32.vlgmr.msrb.gmra.mxu3 %vm759_vm4, %v2395_v51  ;;  %v839_v54 = vpop.f32.mrf.mxu1 }
 0x1df   : > { %1758 = vmatpush.msk.msra.mxu3 %vm763_vm3, %v724_v50  ;;  %1761 = vmatpush.msk.msra.mxu2 %vm763_vm3, %v839_v54  ;;  %v1171_v50 = vld [vmem:[#allocation7 + $0x130] sm:$0xff]  ;;  %v1137_v54 = vld [vmem:[#allocation7 + $0xe0] sm:$0xff] }
 0x1e0   : > { %1762 = vmatmul.msk.f32.vlgmr.msra.gmra.mxu2 %vm759_vm4, %v2398_v53 }
 0x1e1   : > { %894 = vmatpush.msrb.mxu3 %v877_v60  ;;  %919 = vmatpush.msrb.mxu2 %v1767_v61  ;;  %v1168_v60 = vld [vmem:[#allocation7 + $0x118] sm:$0xff] }
 0x1e3   : > { %895 = vmatpush.msrb.mxu3 %v876_v63  ;;  %920 = vmatpush.msrb.mxu2 %v1766_v0  ;;  %v1135_v63 = vld [vmem:[#allocation7 + $0xd0] sm:$0xff] }
 0x1e5   : > { %896 = vmatpush.msrb.mxu3 %v875_v2  ;;  %921 = vmatpush.msrb.mxu2 %v1765_v3  ;;  %v1134_v3 = vld [vmem:[#allocation7 + $0xc8] sm:$0xff] }
 0x1e6   : > { %1759 = vmatmul.msk.f32.vlgmr.msra.gmra.mxu3 %vm759_vm4, %v2406_v55 }
 0x1e7   : > { %897 = vmatpush.msrb.mxu3 %v874_v5  ;;  %922 = vmatpush.msrb.mxu2 %v1764_v6  ;;  %v1167_v5 = vld [vmem:[#allocation7 + $0x110] sm:$0xff]  ;;  %v1133_v6 = vld [vmem:[#allocation7 + $0xc0] sm:$0xff] }
 0x261   : > { %v784_v12 = vpop.f32.mrf.mxu3 }
 0x263   : > { %v867_v14 = vpop.f32.mrf.mxu2 }
 0x269   : > { %v810_v13 = vpop.f32.mrf.mxu3 }
 0x26a   : > { %v811_v15 = vadd.f32 %v810_v13, %v784_v12  ;;  %v1247_v12 = vld [vmem:[#allocation7 + $0x178] sm:$0xff]  ;;  %v1246_v13 = vld [vmem:[#allocation7 + $0x170] sm:$0xff] }
 0x26c   : > { %v870_v17 = vadd.f32 %v867_v14, %v811_v15  ;;  %v1166_v14 = vld [vmem:[#allocation7 + $0x108] sm:$0xff] }
 0x26d   : > { %v1245_v15 = vld [vmem:[#allocation7 + $0x168] sm:$0xff] }
 0x26e   : > { %v872_v18 = vadd.f32 %v871_v16, %v870_v17  ;;  %v1165_v16 = vld [vmem:[#allocation7 + $0x100] sm:$0xff] }
 0x26f   : > { %v1244_v17 = vld [vmem:[#allocation7 + $0x160] sm:$0xff] }
 0x270   : > { %v873_v19 = vmax.f32 %v872_v18, 0.0  ;;  %v1243_v18 = vld [vmem:[#allocation7 + $0x158] sm:$0xff] }
 0x272   : > { %1763 = vmatmul.msk.f32.vlgmr.msrb.gmra.mxu3 %vm878_vm5, %v873_v19  ;;  %1768 = vmatmul.msk.f32.vlgmr.msrb.gmra.mxu2 %vm878_vm5, %v873_v19 }
 0x273   : > { %1777 = vmatmul.msk.f32.vlgmr.msra.gmra.mxu1 %vm878_vm5, %v873_v19  ;;  %v1242_v19 = vld [vmem:[#allocation7 + $0x150] sm:$0xff] }
 0x27b   : > { %1782 = vmatmul.msk.f32.vlgmr.msrb.gmra.mxu1 %vm703_vm2, %v2387_v49 }
 0x2f0   : > { %v995_v20 = vpop.f32.mrf.mxu1 }
 0x2f1   : > { %1778 = vmatpush.msk.msra.mxu2 %vm763_vm3, %v995_v20  ;;  %v1241_v20 = vld [vmem:[#allocation7 + $0x148] sm:$0xff] }
 0x2f2   : > { %1779 = vmatmul.msk.f32.vlgmr.msra.gmra.mxu2 %vm759_vm4, %v2398_v53 }
 0x2f3   : > { %1152 = vmatpush.msrb.mxu2 %v1140_v46  ;;  %v1795_v46 = vld [vmem:[%s2649_s6 + $0x70] sm:$0xff] }
 0x2f5   : > { %v899_v21 = vpop.f32.mrf.mxu3  ;;  %v924_v22 = vpop.f32.mrf.mxu2  ;;  %1153 = vmatpush.msrb.mxu2 %v1139_v47  ;;  %v1809_v47 = vld [vmem:[%s2649_s6 + $0xb0] sm:$0xff] }
 0x2f6   : > { %1769 = vmatpush.msk.msra.mxu3 %vm763_vm3, %v924_v22  ;;  %1771 = vmatpush.msk.msra.mxu0 %vm763_vm3, %v899_v21  ;;  %v1240_v21 = vld [vmem:[#allocation7 + $0x140] sm:$0xff] }
 0x2f7   : > { %1770 = vmatmul.msk.f32.vlgmr.msra.gmra.mxu3 %vm759_vm4, %v2395_v51  ;;  %1772 = vmatmul.msk.f32.vlgmr.msra.gmra.mxu0 %vm759_vm4, %v2406_v55 }
 0x2f8   : > { %1045 = vmatpush.msrb.mxu3 %v2481_v23  ;;  %1104 = vmatpush.msrb.mxu0 %v2513_v31  ;;  %v1129_v22 = vpop.f32.mrf.mxu1 }
 0x2fa   : > { %1046 = vmatpush.msrb.mxu3 %v2487_v24  ;;  %1105 = vmatpush.msrb.mxu0 %v2515_v32 }
 0x2fc   : > { %1047 = vmatpush.msrb.mxu3 %v2492_v25  ;;  %1106 = vmatpush.msrb.mxu0 %v2518_v33 }
 0x2fe   : > { %1048 = vmatpush.msrb.mxu3 %v2495_v26  ;;  %1107 = vmatpush.msrb.mxu0 %v2527_v44 }
 0x300   : > { %1049 = vmatpush.msrb.mxu3 %v2498_v27  ;;  %1181 = vmatpush.msra.mxu0 %v1172_v48  ;;  %v1794_v48 = vld [vmem:[%s2649_s6 + $0x68] sm:$0xff] }
 0x302   : > { %1050 = vmatpush.msrb.mxu3 %v2501_v28  ;;  %1182 = vmatpush.msra.mxu0 %v1171_v50  ;;  %v1793_v50 = vld [vmem:[%s2649_s6 + $0x60] sm:$0xff] }
 0x304   : > { %1051 = vmatpush.msrb.mxu3 %v2504_v29  ;;  %1183 = vmatpush.msra.mxu0 %v1170_v52  ;;  %v1807_v52 = vld [vmem:[%s2649_s6 + $0xa0] sm:$0xff] }
 0x306   : > { %1052 = vmatpush.msrb.mxu3 %v2507_v30  ;;  %1184 = vmatpush.msra.mxu0 %v1169_v57 }
 0x307   : > { %1780 = vmatmul.msk.f32.vlgmr.msrb.gmra.mxu3 %vm703_vm2, %v2387_v49  ;;  %v1138_v49 = vld [vmem:[#allocation7 + $0xe8] sm:$0xff] }
 0x308   : > { %1154 = vmatpush.msrb.mxu2 %v1138_v49  ;;  %1185 = vmatpush.msra.mxu0 %v1168_v60  ;;  %v1808_v49 = vld [vmem:[%s2649_s6 + $0xa8] sm:$0xff] }
 0x30a   : > { %1155 = vmatpush.msrb.mxu2 %v1137_v54  ;;  %1186 = vmatpush.msra.mxu0 %v1167_v5 }
 0x30c   : > { %1156 = vmatpush.msrb.mxu2 %v1136_v58  ;;  %1187 = vmatpush.msra.mxu0 %v1166_v14 }
 0x30e   : > { %1157 = vmatpush.msrb.mxu2 %v1135_v63  ;;  %1188 = vmatpush.msra.mxu0 %v1165_v16 }
 0x310   : > { %1158 = vmatpush.msrb.mxu2 %v1134_v3  ;;  %v1537_v3 = vld [vmem:[#allocation13 + $0x18] sm:$0xff] }
 0x312   : > { %1159 = vmatpush.msrb.mxu2 %v1133_v6  ;;  %v1536_v6 = vld [vmem:[#allocation13 + $0x10] sm:$0xff] }
 0x314   : > { %1256 = vmatpush.msra.mxu2 %v1247_v12 }
 0x316   : > { %1257 = vmatpush.msra.mxu2 %v1246_v13 }
 0x318   : > { %1258 = vmatpush.msra.mxu2 %v1245_v15 }
 0x31a   : > { %1259 = vmatpush.msra.mxu2 %v1244_v17 }
 0x31c   : > { %1260 = vmatpush.msra.mxu2 %v1243_v18 }
 0x31e   : > { %1261 = vmatpush.msra.mxu2 %v1242_v19 }
 0x320   : > { %1262 = vmatpush.msra.mxu2 %v1241_v20 }
 0x322   : > { %1263 = vmatpush.msra.mxu2 %v1240_v21 }
 0x374   : > { %v970_v34 = vpop.f32.mrf.mxu0 }
 0x375   : > { %v1018_v36 = vpop.f32.mrf.mxu2 }
 0x37a   : > { %v947_v35 = vpop.f32.mrf.mxu3 }
 0x37b   : > { %v971_v37 = vadd.f32 %v970_v34, %v947_v35 }
 0x37d   : > { %v1021_v39 = vadd.f32 %v1018_v36, %v971_v37 }
 0x37f   : > { %v1026_v40 = vadd.f32 %v1915_v38, %v1021_v39  ;;  %v1801_v39 = vld [vmem:[%s2649_s6 + $0x98] sm:$0xff] }
 0x381   : > { %1061 = vrot.lane.b32.xlu0 %v1026_v40, %s2205_s28  ;;  %1917 = vtanh.f32 %v1026_v40  ;;  %v1800_v40 = vld [vmem:[%s2649_s6 + $0x90] sm:$0xff] }
 0x387   : > { %v1918_v41 = vpop.eup %1917 }
 0x388   : > { %v1028_v42 = vmul.f32 1.9, %v1918_v41  ;;  %v1799_v41 = vld [vmem:[%s2649_s6 + $0x88] sm:$0xff] }
 0x38a   : > { %v1066_v43 = vsel %vm1065_vm6, %v1028_v42, 0.0  ;;  %v1057_v45 = vmul.f32 1.442695, %v1028_v42  ;;  %v1054_v59 = vpop.f32.mrf.mxu3  ;;  %v1796_v42 = vld [vmem:[%s2649_s6 + $0x78] sm:$0xff] }
 0x38b   : > { %1067 = vadd.xlane.f32.xlu1 %v1066_v43  ;;  %v1798_v43 = vld [vmem:[%s2649_s6 + $0x80] sm:$0xff] }
 0x38c   : > { %1919 = vpow2.f32 %v1057_v45  ;;  %v1810_v45 = vld [vmem:[%s2649_s6 + $0xb8] sm:$0xff] }
 0x392   : > { %v1920_v56 = vpop.eup %1919 }
 0x393   : > { %v1059_v61 = vmul.f32 %v1920_v56, %v1054_v59  ;;  %v1792_v59 = vld [vmem:[%s2648_s5 + $0x2] sm:$0x3] }
 0x3f3   : > { %v1062_v0 = vpop.permute.xlu0 %1061 }
 0x3f4   : > { %v1064_v2 = vadd.f32 %v1062_v0, %v1059_v61 }
 0x3f6   : > { %1781 = vmatmul.msk.f32.vlgmr.msrb.gmra.mxu0 %vm878_vm5, %v1064_v2 }
 0x3f7   : > { %1316 = vmatpush.msrb.mxu0 %v1796_v42 }
 0x3f9   : > { %1317 = vmatpush.msrb.mxu0 %v1795_v46 }
 0x3fb   : > { %1318 = vmatpush.msrb.mxu0 %v1794_v48 }
 0x3fd   : > { %1319 = vmatpush.msrb.mxu0 %v1793_v50 }
 0x473   : > { %v1109_v34 = vpop.f32.mrf.mxu0 }
 0x474   : > { %v2531_v35 = vadd.f32 %v1129_v22, %v1109_v34 }
 0x476   : > { %1783 = vmatmul.msk.f32.vlgmr.msrb.gmra.mxu2 %vm703_vm2, %v2531_v35  ;;  %1784 = vmatmul.msk.f32.vlgmr.msra.gmra.mxu0 %vm703_vm2, %v2531_v35 }
 0x47e   : > { %1789 = vmatmul.msk.f32.vlgmr.msra.gmra.mxu2 %vm703_vm2, %v2531_v35 }
 0x4f3   : > { %v1190_v36 = vpop.f32.mrf.mxu0 }
 0x4f4   : > { %1785 = vmatpush.msk.msra.mxu3 %vm763_vm3, %v1190_v36 }
 0x4f5   : > { %1786 = vmatmul.msk.f32.vlgmr.msra.gmra.mxu3 %vm759_vm4, %v2395_v51 }
 0x4f9   : > { %v1161_v37 = vpop.f32.mrf.mxu2 }
 0x4fa   : > { %1787 = vmatpush.msk.msra.mxu1 %vm763_vm3, %v1161_v37  ;;  %v1535_v37 = vld [vmem:[#allocation13 + $0x8] sm:$0xff] }
 0x4fb   : > { %1788 = vmatmul.msk.f32.vlgmr.msra.gmra.mxu1 %vm759_vm4, %v2406_v55 }
 0x4fc   : > { %1341 = vmatpush.msrb.mxu1 %v1801_v39 }
 0x4fe   : > { %1342 = vmatpush.msrb.mxu1 %v1800_v40 }
 0x500   : > { %1343 = vmatpush.msrb.mxu1 %v1799_v41 }
 0x501   : > { %v1265_v38 = vpop.f32.mrf.mxu2 }
 0x502   : > { %1790 = vmatpush.msk.msrb.mxu3 %vm763_vm3, %v1265_v38  ;;  %1344 = vmatpush.msrb.mxu1 %v1798_v43  ;;  %v1534_v38 = vld [vmem:[#allocation13] sm:$0xff] }
 0x503   : > { %1791 = vmatmul.msk.f32.vlgmr.msrb.gmra.mxu3 %vm759_vm4, %v2398_v53 }
 0x504   : > { %1412 = vmatpush.msra.mxu1 %v1810_v45 }
 0x506   : > { %1413 = vmatpush.msra.mxu1 %v1809_v47 }
 0x508   : > { %1414 = vmatpush.msra.mxu1 %v1808_v49 }
 0x50a   : > { %1415 = vmatpush.msra.mxu1 %v1807_v52 }
 0x578   : > { %v1213_v54 = vpop.f32.mrf.mxu3  ;;  %v1236_v56 = vpop.f32.mrf.mxu1 }
 0x579   : > { %v1237_v57 = vadd.f32 %v1236_v56, %v1213_v54 }
 0x586   : > { %v1288_v58 = vpop.f32.mrf.mxu3 }
 0x587   : > { %v1291_v60 = vadd.f32 %v1288_v58, %v1237_v57 }
 0x589   : > { %v1294_v61 = vadd.f32 %v1792_v59, %v1291_v60 }
 0x58b   : > { %v1295_v63 = vmax.f32 %v1294_v61, 0.0 }
 0x58d   : > { %1797 = vmatmul.msk.f32.vlgmr.msrb.gmra.mxu0 %vm878_vm5, %v1295_v63  ;;  %1802 = vmatmul.msk.f32.vlgmr.msrb.gmra.mxu1 %vm878_vm5, %v1295_v63 }
 0x58e   : > { %1522 = vmatpush.msrb.mxu1 %v2428_v62 }
 0x590   : > { %1523 = vmatpush.msrb.mxu1 %v2437_v1 }
 0x592   : > { %1524 = vmatpush.msrb.mxu1 %v2446_v4 }
 0x594   : > { %1525 = vmatpush.msrb.mxu1 %v2454_v7  ;;  %v1916_v7 = vld [vmem:[%s2650_s7 + $0x1] ss:$0 sm:$0xff] }
 0x595   : > { %1811 = vmatmul.msk.f32.vlgmr.msra.gmra.mxu1 %vm878_vm5, %v1295_v63 }
 0x596   : > { %1526 = vmatpush.msrb.mxu1 %v2458_v8 }
 0x598   : > { %1527 = vmatpush.msrb.mxu1 %v2460_v9 }
 0x59a   : > { %1528 = vmatpush.msrb.mxu1 %v2463_v10 }
 0x59c   : > { %1529 = vmatpush.msrb.mxu1 %v2466_v11 }
 0x59d   : > { %1817 = vmatmul.msk.f32.vlgmr.msrb.gmra.mxu1 %vm703_vm2, %v2531_v35 }
 0x60a   : > { %v1321_v62 = vpop.f32.mrf.mxu0  ;;  %v1346_v0 = vpop.f32.mrf.mxu1 }
 0x60b   : > { %1803 = vmatpush.msk.msra.mxu3 %vm763_vm3, %v1346_v0  ;;  %1805 = vmatpush.msk.msra.mxu0 %vm763_vm3, %v1321_v62 }
 0x60c   : > { %1806 = vmatmul.msk.f32.vlgmr.msra.gmra.mxu0 %vm759_vm4, %v2406_v55  ;;  %1804 = vmatmul.msk.f32.vlgmr.msra.gmra.mxu3 %vm759_vm4, %v2395_v51 }
 0x60d   : > { %1460 = vmatpush.msrb.mxu3 %v2481_v23  ;;  %1506 = vmatpush.msrb.mxu0 %v2513_v31 }
 0x60f   : > { %1461 = vmatpush.msrb.mxu3 %v2487_v24  ;;  %1507 = vmatpush.msrb.mxu0 %v2515_v32  ;;  %v1538_v32 = vld [vmem:[#allocation13 + $0x20] sm:$0xff] }
 0x611   : > { %1462 = vmatpush.msrb.mxu3 %v2492_v25  ;;  %1508 = vmatpush.msrb.mxu0 %v2518_v33  ;;  %v1541_v25 = vld [vmem:[#allocation13 + $0x38] sm:$0xff] }
 0x612   : > { %v1417_v1 = vpop.f32.mrf.mxu1 }
 0x613   : > { %1463 = vmatpush.msrb.mxu3 %v2495_v26  ;;  %1812 = vmatpush.msk.msrb.mxu2 %vm763_vm3, %v1417_v1  ;;  %v1540_v26 = vld [vmem:[#allocation13 + $0x30] sm:$0xff] }
 0x614   : > { %1509 = vmatpush.msrb.mxu0 %v2527_v44  ;;  %1813 = vmatmul.msk.f32.vlgmr.msrb.gmra.mxu2 %vm759_vm4, %v2398_v53 }
 0x615   : > { %1464 = vmatpush.msrb.mxu3 %v2498_v27  ;;  %1553 = vmatpush.msra.mxu2 %v1541_v25 }
 0x617   : > { %1465 = vmatpush.msrb.mxu3 %v2501_v28  ;;  %v1068_v28 = vpop.xlane.xlu1 %1067  ;;  %1554 = vmatpush.msra.mxu2 %v1540_v26 }
 0x618   : > { %v1069_v33 = vsel %vm763_vm3, %v1068_v28, 0.0 }
 0x619   : > { %1466 = vmatpush.msrb.mxu3 %v2504_v29  ;;  %v1539_v29 = vld [vmem:[#allocation13 + $0x28] sm:$0xff]  ;;  %v1070_v5 = vrot.slane %v1069_v33, 4 }
 0x61a   : > { %1555 = vmatpush.msra.mxu2 %v1539_v29  ;;  %v1531_v39 = vpop.f32.mrf.mxu1 }
 0x61b   : > { %1467 = vmatpush.msrb.mxu3 %v2507_v30  ;;  %v1071_v12 = vadd.f32 %v1070_v5, %v1069_v33 }
 0x61c   : > { %1815 = vmatmul.msk.f32.vlgmr.msrb.gmra.mxu3 %vm703_vm2, %v2531_v35  ;;  %1556 = vmatpush.msra.mxu2 %v1538_v32 }
 0x61d   : > { %v1072_v13 = vrot.slane %v1071_v12, 2 }
 0x61e   : > { %1557 = vmatpush.msra.mxu2 %v1537_v3 }
 0x61f   : > { %v1073_v17 = vadd.f32 %v1072_v13, %v1071_v12 }
 0x620   : > { %1558 = vmatpush.msra.mxu2 %v1536_v6 }
 0x621   : > { %v1074_v20 = vrot.slane %v1073_v17, 1 }
 0x622   : > { %1559 = vmatpush.msra.mxu2 %v1535_v37 }
 0x623   : > { %v1075_v34 = vadd.f32 %v1074_v20, %v1073_v17 }
 0x624   : > { %1560 = vmatpush.msra.mxu2 %v1534_v38 }
 0x689   : > { %v1392_v55 = vpop.f32.mrf.mxu0 }
 0x68f   : > { %v1369_v51 = vpop.f32.mrf.mxu3 }
 0x690   : > { %v1393_v4 = vadd.f32 %v1392_v55, %v1369_v51 }
 0x697   : > { %v1440_v8 = vpop.f32.mrf.mxu2 }
 0x698   : > { %v1443_v53 = vadd.f32 %v1440_v8, %v1393_v4 }
 0x69a   : > { %v1449_v9 = vadd.f32 %v1916_v7, %v1443_v53 }
 0x69c   : > { %1921 = vtanh.f32 %v1449_v9  ;;  %1476 = vrot.lane.b32.xlu0 %v1449_v9, %s2205_s28 }
 0x69f   : > { %v1469_v30 = vpop.f32.mrf.mxu3 }
 0x6a2   : > { %v1922_v10 = vpop.eup %1921 }
 0x6a3   : > { %v1451_v11 = vmul.f32 1.9, %v1922_v10 }
 0x6a5   : > { %v1480_v23 = vsel %vm1065_vm6, %v1451_v11, 0.0  ;;  %v1472_v24 = vmul.f32 1.442695, %v1451_v11 }
 0x6a6   : > { %1481 = vadd.xlane.f32.xlu1 %v1480_v23 }
 0x6a7   : > { %1923 = vpow2.f32 %v1472_v24 }
 0x6ad   : > { %v1924_v27 = vpop.eup %1923 }
 0x6ae   : > { %v1474_v31 = vmul.f32 %v1924_v27, %v1469_v30 }
 0x70e   : > { %v1477_v44 = vpop.permute.xlu0 %1476 }
 0x70f   : > { %v1479_v2 = vadd.f32 %v1477_v44, %v1474_v31 }
 0x711   : > { %1816 = vmatmul.msk.f32.vlgmr.msrb.gmra.mxu0 %vm878_vm5, %v1479_v2 }
 0x719   : > { %v1482_v14 = vpop.xlane.xlu1 %1481 }
 0x71a   : > { %v1483_v15 = vsel %vm763_vm3, %v1482_v14, 0.0 }
 0x71b   : > { %v1484_v16 = vrot.slane %v1483_v15, 4 }
 0x71d   : > { %v1485_v18 = vadd.f32 %v1484_v16, %v1483_v15 }
 0x71f   : > { %v1486_v19 = vrot.slane %v1485_v18, 2 }
 0x721   : > { %v1487_v21 = vadd.f32 %v1486_v19, %v1485_v18 }
 0x723   : > { %v1488_v22 = vrot.slane %v1487_v21, 1 }
 0x725   : > { %v1489_v35 = vadd.f32 %v1488_v22, %v1487_v21 }
 0x727   : > { %v1490_v36 = vadd.f32 %v1489_v35, %v1075_v34 }
 0x729   : > { %1567 = vst [vmem:[%s577_s20] sm:$0x1] %v1490_v36 }
 0x78e   : > { %v1511_v40 = vpop.f32.mrf.mxu0 }
 0x78f   : > { %v1532_v41 = vadd.f32 %v1531_v39, %v1511_v40 }
 0x791   : > { %1818 = vmatmul.msk.f32.vlgmr.msra.gmra.mxu2 %vm703_vm2, %v1532_v41 }
 0x814   : > { %v1562_v42 = vpop.f32.mrf.mxu2 }
 0x815   : > { %1566 = vst.msk [vmem:[%s574_s24] sm:$0x3] %vm1565_vm7, %v1562_v42 }
 0x816 PF: > { %s29_s25 = sadd.s32 1, %s2191_s25  }
 0x817   : > { %p26_p7 = scmp.ge.s32.totalorder %s29_s25, 4  }
 0x819   :  { %28 = sbr.rel (!%p26_p7) target bundleno = 10 (0xa), region = 159 }
 0x81e   :  { %1599 = vsyncpa [#allocation3], 1 }
 0x81f   :  { %1601 = vsyncpa [#allocation3 + $0x1], 1 }
 0x820   :  { %1602 = vsyncpa [#allocation5], 1 }
 0x821   :  { %1603 = vsyncpa [#allocation8], 1 }
 0x822   :  { %1604 = vsyncpa [#allocation11], 1 }
 0x823   :  { %1605 = vsyncpa [#allocation14], 1 }

// kernel: msflow_forward.6
= control target key start
LH: loop header
LB: loop body
LE: loop exit
PB: predicated region body
PF: predicated region fallthrough
CT: control target
= control target key end

     0   :  { %s2648_s0 = inlined_call_operand.vmem [shape: f32[2,8,128], index: 0, kind: input, shape index: {}]   ;;  %s2649_s1 = inlined_call_operand.hbm [shape: f32[128,64], index: 1, kind: input, shape index: {}]   ;;  %s2650_s2 = inlined_call_operand.vmem [shape: f32[3,4,8], index: 2, kind: input, shape index: {}]   ;;  %s2651_s3 = inlined_call_operand.hbm [shape: f32[3,4,4], index: 3, kind: input, shape index: {}]   ;;  %s2652_s4 = inlined_call_operand.hbm [shape: f32[2,3,64,64], index: 4, kind: input, shape index: {}]   ;;  %s2653_s5 = inlined_call_operand.hbm [shape: f32[2,4,64], index: 5, kind: input, shape index: {}]   ;;  %s2654_s6 = inlined_call_operand.hbm [shape: f32[2,3,64,64], index: 6, kind: input, shape index: {}]   ;;  %s2655_s7 = inlined_call_operand.vmem [shape: f32[2,1,64], index: 7, kind: input, shape index: {}]   ;;  %s2656_s8 = inlined_call_operand.hbm [shape: f32[64,32], index: 8, kind: input, shape index: {}]   ;;  %s2657_s9 = inlined_call_operand.hbm [shape: f32[64,64], index: 9, kind: input, shape index: {}]   ;;  %s2658_s10 = inlined_call_operand.hbm [shape: f32[32,64], index: 10, kind: input, shape index: {}]   ;;  %s2659_s11 = inlined_call_operand.hbm [shape: f32[64,64], index: 11, kind: input, shape index: {}]   ;;  %s2660_s12 = inlined_call_operand.vmem [shape: f32[2,4,64], index: 12, kind: output, shape index: {0}]   ;;  %s2661_s13 = inlined_call_operand.vmem [shape: f32[2,1,128], index: 13, kind: output, shape index: {1}]  }
   0x1   :  { %2663 = sst [smem:[#allocation22_spill]] %s2651_s3 }
   0x2   :  { %2664 = sst [smem:[#allocation23_spill]] %s2653_s5 }
   0x3   :  { %19 = vsyncpa [#allocation3], 0 }
   0x4   :  { %20 = vsyncpa [#allocation5], 0 }
   0x5   :  { %21 = vsyncpa [#allocation8], 0 }
   0x6   :  { %22 = vsyncpa [#allocation11], 0 }
   0x7   :  { %23 = vsyncpa [#allocation14], 0  ;;  %s2342_s25 = smov 0  }
   0x8 LB: > { %2665 = sst [smem:[#allocation21_spill]] %s2256_s25  ;;  %s2351_s29 = sadd.s32 4294967295, %s2256_s25   ;;  %s2256_s25 = sphi %s2342_s25, %s29_s25  }
   0x9   : > { %s2666_s3 = sld [smem:[#allocation22_spill]]  ;;  %p1772_p0 = scmp.ge.s32.totalorder %s2256_s25, 1 }
   0xa   : > { %p343_p1 = scmp.lt.s32.totalorder %s2256_s25, 3  ;;  %p1910_p2 = scmp.eq.s32.totalorder %s2351_s29, 0 }
   0xb   : > { %s2258_s14 = smov [#allocation4]   ;;  %s2668_s5 = sld [smem:[#allocation23_spill]] }
   0xc   : > { %p2356_p3 = pnand %p1772_p0, %p343_p1  ;;  %s373_s15 = sshll.u32 %s2258_s14, 4  ;;  %s374_s15 = int_to_ptr.vmem [resolvable:$true] %s373_s15 }
   0xd   : > { %s2259_s20 = smov [#allocation7]   ;;  %s2260_s22 = smov 64  }
   0xe   : > { %p1882_p4 = pneg %p2356_p3  ;;  %s401_s21 = sshll.u32 %s2259_s20, 4  ;;  %s402_s21 = int_to_ptr.vmem [resolvable:$true] %s401_s21 }
   0xf   : > { %s371_s28 = sshll.u32 %s2666_s3, 4  ;;  %s2261_s23 = smov 4   ;;  %s372_s28 = int_to_ptr.hbm [resolvable:$true] %s371_s28 }
  0x10   : > { %p2367_p5 = pnand %p1910_p2, %p1882_p4  ;;  %s430_s27 = sshll.u32 %s2656_s8, 4  ;;  %s431_s27 = int_to_ptr.hbm [resolvable:$true] %s430_s27 }
  0x11   : > { %s399_s18 = sshll.u32 %s2668_s5, 4  ;;  %s2262_s14 = smov [#allocation10]   ;;  %s400_s18 = int_to_ptr.hbm [resolvable:$true] %s399_s18 }
  0x12   : > { %1888 = dma.hbm_to_vmem [thread:$0]  (!%p2367_p5), %s372_s28, 192, %s374_s15, [#allocation5], %s2260_s22, %s2260_s22, %s2261_s23  }
  0x13   : > { %1894 = dma.hbm_to_vmem [thread:$0]  (!%p2367_p5), %s400_s18, 128, %s402_s21, [#allocation8], %s2260_s22, %s2260_s22, %s2261_s23  }
  0x14   : > { %s432_s16 = sshll.u32 %s2262_s14, 4  ;;  %s458_s5 = sshll.u32 %s2658_s10, 4  ;;  %s433_s16 = int_to_ptr.vmem [resolvable:$true] %s432_s16  ;;  %s459_s5 = int_to_ptr.hbm [resolvable:$true] %s458_s5 }
  0x15   : > { %s2263_s20 = smov 128   ;;  %s2264_s25 = smov 8  }
  0x16   : > { %1900 = dma.hbm_to_vmem [thread:$0]  (!%p2367_p5), %s431_s27, 1024, %s433_s16, [#allocation11], %s2263_s20, %s2263_s20, %s2264_s25  }
  0x17   : > { %s354_s18 = sshll.u32 %s2649_s1, 4  ;;  %s2265_s21 = smov [#allocation13]   ;;  %s355_s18 = int_to_ptr.hbm [resolvable:$true] %s354_s18 }
  0x18   : > { %s460_s22 = sshll.u32 %s2265_s21, 4  ;;  %s2266_s3 = smov [#allocation2]   ;;  %s461_s22 = int_to_ptr.vmem [resolvable:$true] %s460_s22 }
  0x19   : > { %1906 = dma.hbm_to_vmem [thread:$0]  (!%p2367_p5), %s459_s5, 512, %s461_s22, [#allocation14], %s2263_s20, %s2263_s20, %s2264_s25  }
  0x1a   : > { %s356_s23 = sshll.u32 %s2266_s3, 4  ;;  %s385_s27 = sshll.u32 %s2652_s4, 4  ;;  %s357_s23 = int_to_ptr.vmem [resolvable:$true] %s356_s23  ;;  %s386_s27 = int_to_ptr.hbm [resolvable:$true] %s385_s27 }
  0x1b   : > { %1885 = dma.hbm_to_vmem [thread:$0]  (!%p2367_p5), %s355_s18, 2048, %s357_s23, [#allocation3], %s2263_s20, %s2263_s20, %s2264_s25  }
  0x1c   : > { %s413_s17 = sshll.u32 %s2654_s6, 4  ;;  %s2267_s28 = smov [#allocation6]   ;;  %s414_s17 = int_to_ptr.hbm [resolvable:$true] %s413_s17 }
  0x1d   : > { %s387_s5 = sshll.u32 %s2267_s28, 4  ;;  %s2268_s15 = smov [#allocation9]   ;;  %s388_s5 = int_to_ptr.vmem [resolvable:$true] %s387_s5 }
  0x1e   : > { %1891 = dma.hbm_to_vmem [thread:$0]  (!%p2367_p5), %s386_s27, 6144, %s388_s5, [#allocation5], %s2263_s20, %s2263_s20, %s2264_s25  }
  0x1f   : > { %s415_s21 = sshll.u32 %s2268_s15, 4  ;;  %s444_s18 = sshll.u32 %s2657_s9, 4  ;;  %s416_s21 = int_to_ptr.vmem [resolvable:$true] %s415_s21  ;;  %s445_s18 = int_to_ptr.hbm [resolvable:$true] %s444_s18 }
  0x20   : > { %1897 = dma.hbm_to_vmem [thread:$0]  (!%p2367_p5), %s414_s17, 6144, %s416_s21, [#allocation8], %s2263_s20, %s2263_s20, %s2264_s25  }
  0x21   : > { %s472_s26 = sshll.u32 %s2659_s11, 4  ;;  %s2269_s14 = smov [#allocation12]   ;;  %s473_s26 = int_to_ptr.hbm [resolvable:$true] %s472_s26 }
  0x22   : > { %s446_s27 = sshll.u32 %s2269_s14, 4  ;;  %s2270_s16 = smov [#allocation15]   ;;  %s447_s27 = int_to_ptr.vmem [resolvable:$true] %s446_s27 }
  0x23   : > { %1903 = dma.hbm_to_vmem [thread:$0]  (!%p2367_p5), %s445_s18, 1024, %s447_s27, [#allocation11], %s2263_s20, %s2263_s20, %s2264_s25  }
  0x24   : > { %s474_s28 = sshll.u32 %s2270_s16, 4  ;;  %497 = sbr.rel (%p2356_p3) target bundleno = 2346 (0x92a), region = 68  ;;  %s475_s28 = int_to_ptr.vmem [resolvable:$true] %s474_s28 }
  0x25   : > { %1909 = dma.hbm_to_vmem [thread:$0]  (!%p2367_p5), %s473_s26, 1024, %s475_s28, [#allocation14], %s2263_s20, %s2263_s20, %s2264_s25  }
  0x29   : > { %2235 = dma.done.wait (%p1910_p2), [#allocation3], 2048  }
  0x2a   : > { %2237 = vsyncadd (%p1910_p2), [#allocation3], 4294965248 }
  0x2b   : > { %2239 = dma.done.wait (%p1910_p2), [#allocation5], 6336  }
  0x2c   : > { %2241 = vsyncadd (%p1910_p2), [#allocation5], 4294960960 }
  0x2d   : > { %2243 = dma.done.wait (%p1910_p2), [#allocation8], 6272  }
  0x2e   : > { %2245 = vsyncadd (%p1910_p2), [#allocation8], 4294961024 }
  0x2f   : > { %2247 = dma.done.wait (%p1910_p2), [#allocation11], 2048  }
  0x30   : > { %2249 = vsyncadd (%p1910_p2), [#allocation11], 4294965248 }
  0x31   : > { %2251 = dma.done.wait (%p1910_p2), [#allocation14], 1536  }
  0x32   : > { %2253 = vsyncadd (%p1910_p2), [#allocation14], 4294965760  ;;  %v610_v0 = vld [vmem:[#allocation2 + $0x78] sm:$0xff]  ;;  %v609_v1 = vld [vmem:[#allocation2 + $0x70] sm:$0xff]  ;;  %p583_p6 = scmp.lt.s32.totalorder %s2351_s29, 1  ;;  %vm634_vm0 = vcmask 64512  }
  0x33   : > { %611 = vmatpush.msra.mxu0 %v610_v0  ;;  %v608_v2 = vld [vmem:[#allocation2 + $0x68] sm:$0xff]  ;;  %v607_v3 = vld [vmem:[#allocation2 + $0x60] sm:$0xff]  ;;  %v606_v4 = vld [vmem:[#allocation2 + $0x58] sm:$0xff]  ;;  %vm715_vm1 = vcmask 523264   ;;  %vm775_vm2 = vcmask 1043456   ;;  %vm771_vm3 = vcmask 31744  }
  0x34   : > { %v605_v5 = vld [vmem:[#allocation2 + $0x50] sm:$0xff]  ;;  %v604_v6 = vld [vmem:[#allocation2 + $0x48] sm:$0xff]  ;;  %v603_v7 = vld [vmem:[#allocation2 + $0x40] sm:$0xff]  ;;  %s2672_s29 = smov (!%p583_p6, %s2351_s29), 1  ;;  %s2271_s24 = smov 96   ;;  %vm1088_vm4 = vcmask 257024  }
  0x35   : > { %612 = vmatpush.msra.mxu0 %v609_v1  ;;  %v602_v8 = vld [vmem:[#allocation2 + $0x38] sm:$0xff]  ;;  %v601_v9 = vld [vmem:[#allocation2 + $0x30] sm:$0xff]  ;;  %v600_v10 = vld [vmem:[#allocation2 + $0x28] sm:$0xff]  ;;  %s1793_s25 = sshll.u32 %s2672_s29, 3  ;;  %vm1112_vm5 = vcmask 261120   ;;  %s593_s28 = scalar_lea.vmem %s2661_s13, %s2672_s29  ;;  %vm1601_vm6 = vcmask 519168  }
  0x36   : > { %v599_v11 = vld [vmem:[#allocation2 + $0x20] sm:$0xff]  ;;  %v598_v12 = vld [vmem:[#allocation2 + $0x18] sm:$0xff]  ;;  %v597_v13 = vld [vmem:[#allocation2 + $0x10] sm:$0xff]  ;;  %s586_s20 = scalar_lea.vmem %s2648_s0, %s1793_s25  ;;  %s1794_s25 = sshll.u32 %s2672_s29, 2 }
  0x37   : > { %613 = vmatpush.msra.mxu0 %v608_v2  ;;  %v596_v14 = vld [vmem:[#allocation2 + $0x8] sm:$0xff]  ;;  %v595_v15 = vld [vmem:[#allocation2] sm:$0xff]  ;;  %v712_v25 = vld [vmem:[#allocation6 + $0x28] sm:$0xff] }
  0x38   : > { %v594_v16 = vld [vmem:[%s586_s20] sm:$0xff]  ;;  %v1798_v19 = vld [vmem:[%s2650_s2 + $0x8] sm:$0xf]  ;;  %v746_v26 = vld [vmem:[#allocation6 + $0x68] sm:$0xff]  ;;  %s590_s20 = scalar_lea.vmem %s2660_s12, %s1794_s25 }
  0x39   : > { %614 = vmatpush.msra.mxu0 %v607_v3  ;;  %v631_v17 = vld [vmem:[%s2650_s2] sm:$0xf]  ;;  %v1795_v20 = vld [vmem:[%s2650_s2 + $0x4] sm:$0xf]  ;;  %v711_v27 = vld [vmem:[#allocation6 + $0x20] sm:$0xff] }
  0x3a   : > { %v714_v21 = vld [vmem:[#allocation6 + $0x38] sm:$0xff]  ;;  %v713_v23 = vld [vmem:[#allocation6 + $0x30] sm:$0xff]  ;;  %v745_v28 = vld [vmem:[#allocation6 + $0x60] sm:$0xff] }
  0x3b   : > { %615 = vmatpush.msra.mxu0 %v606_v4  ;;  %v748_v22 = vld [vmem:[#allocation6 + $0x78] sm:$0xff]  ;;  %v747_v24 = vld [vmem:[#allocation6 + $0x70] sm:$0xff]  ;;  %v708_v32 = vld [vmem:[#allocation6 + $0x8] sm:$0xff] }
  0x3c   : > { %v710_v29 = vld [vmem:[#allocation6 + $0x18] sm:$0xff]  ;;  %v709_v31 = vld [vmem:[#allocation6 + $0x10] sm:$0xff]  ;;  %v707_v33 = vld [vmem:[#allocation6] sm:$0xff] }
  0x3d   : > { %616 = vmatpush.msra.mxu0 %v605_v5  ;;  %v744_v30 = vld [vmem:[#allocation6 + $0x58] sm:$0xff]  ;;  %v832_v35 = vld [vmem:[#allocation6 + $0xb0] sm:$0xff]  ;;  %v831_v36 = vld [vmem:[#allocation6 + $0xa8] sm:$0xff] }
  0x3e   : > { %v833_v34 = vld [vmem:[#allocation6 + $0xb8] sm:$0xff]  ;;  %v830_v37 = vld [vmem:[#allocation6 + $0xa0] sm:$0xff]  ;;  %v743_v39 = vld [vmem:[#allocation6 + $0x50] sm:$0xff] }
  0x3f   : > { %617 = vmatpush.msra.mxu0 %v604_v6  ;;  %v829_v38 = vld [vmem:[#allocation6 + $0x98] sm:$0xff]  ;;  %v828_v40 = vld [vmem:[#allocation6 + $0x90] sm:$0xff]  ;;  %v742_v41 = vld [vmem:[#allocation6 + $0x48] sm:$0xff] }
  0x40   : > { %v827_v42 = vld [vmem:[#allocation6 + $0x88] sm:$0xff]  ;;  %v741_v43 = vld [vmem:[#allocation6 + $0x40] sm:$0xff]  ;;  %v2478_v51 = vld [vmem:[#allocation10 + $0x30] sm:$0xff] }
  0x41   : > { %618 = vmatpush.msra.mxu0 %v603_v7  ;;  %v826_v44 = vld [vmem:[#allocation6 + $0x80] sm:$0xff]  ;;  %v2481_v52 = vld [vmem:[#allocation10 + $0x28] sm:$0xff]  ;;  %v2484_v53 = vld [vmem:[#allocation10 + $0x20] sm:$0xff] }
  0x42   : > { %v2472_v50 = vld [vmem:[#allocation10 + $0x38] sm:$0xff]  ;;  %v2492_v55 = vld [vmem:[#allocation10 + $0x10] sm:$0xff]  ;;  %v2495_v56 = vld [vmem:[#allocation10 + $0x8] sm:$0xff] }
  0x43   : > { %619 = vmatpush.msra.mxu0 %v602_v8  ;;  %v2487_v54 = vld [vmem:[#allocation10 + $0x18] sm:$0xff]  ;;  %v2498_v57 = vld [vmem:[#allocation10] sm:$0xff]  ;;  %v2504_v59 = vld [vmem:[#allocation4 + $0x4] sm:$0xf] }
  0x44   : > { %v2507_v61 = vld [vmem:[#allocation4 + $0x8] sm:$0xf]  ;;  %v893_v62 = vld [vmem:[#allocation9 + $0x38] sm:$0xff]  ;;  %v891_v1 = vld [vmem:[#allocation9 + $0x28] sm:$0xff] }
  0x45   : > { %620 = vmatpush.msra.mxu0 %v601_v9  ;;  %v892_v0 = vld [vmem:[#allocation9 + $0x30] sm:$0xff]  ;;  %v2515_v2 = vld [vmem:[#allocation4] sm:$0xf]  ;;  %v890_v3 = vld [vmem:[#allocation9 + $0x20] sm:$0xff] }
  0x46   : > { %v925_v4 = vld [vmem:[#allocation9 + $0x78] sm:$0xff]  ;;  %v924_v6 = vld [vmem:[#allocation9 + $0x70] sm:$0xff]  ;;  %v923_v8 = vld [vmem:[#allocation9 + $0x68] sm:$0xff] }
  0x47   : > { %621 = vmatpush.msra.mxu0 %v600_v10  ;;  %v889_v5 = vld [vmem:[#allocation9 + $0x18] sm:$0xff]  ;;  %v888_v7 = vld [vmem:[#allocation9 + $0x10] sm:$0xff]  ;;  %v887_v9 = vld [vmem:[#allocation9 + $0x8] sm:$0xff] }
  0x48   : > { %v922_v10 = vld [vmem:[#allocation9 + $0x60] sm:$0xff] }
  0x49   : > { %622 = vmatpush.msra.mxu0 %v599_v11  ;;  %v886_v11 = vld [vmem:[#allocation9] sm:$0xff] }
  0x4b   : > { %623 = vmatpush.msra.mxu0 %v598_v12  ;;  %v921_v12 = vld [vmem:[#allocation9 + $0x58] sm:$0xff] }
  0x4d   : > { %624 = vmatpush.msra.mxu0 %v597_v13  ;;  %v1000_v13 = vld [vmem:[#allocation9 + $0xb8] sm:$0xff] }
  0x4f   : > { %625 = vmatpush.msra.mxu0 %v596_v14  ;;  %v920_v14 = vld [vmem:[#allocation9 + $0x50] sm:$0xff] }
  0x51   : > { %626 = vmatpush.msra.mxu0 %v595_v15  ;;  %v999_v15 = vld [vmem:[#allocation9 + $0xb0] sm:$0xff] }
  0x52   : > { %627 = vmatmul.f32.vlgmr.msra.gmra.mxu0 %v594_v16  ;;  %v919_v16 = vld [vmem:[#allocation9 + $0x48] sm:$0xff] }
  0xcf   : > { %v628_v18 = vpop.f32.mrf.mxu0 }
  0xd0   : > { %653 = vmatpush.msra.mxu1 %v628_v18  ;;  %676 = vmatpush.msra.mxu2 %v628_v18 }
  0xd1   : > { %701 = vmatpush.msra.mxu3 %v628_v18  ;;  %1797 = vmatmul.msk.f32.vlgmr.msra.gmra.mxu2 %vm634_vm0, %v631_v17  ;;  %v998_v17 = vld [vmem:[#allocation9 + $0xa8] sm:$0xff]  ;;  %v918_v18 = vld [vmem:[#allocation9 + $0x40] sm:$0xff] }
  0xd2   : > { %1799 = vmatmul.msk.f32.vlgmr.msra.gmra.mxu3 %vm634_vm0, %v1798_v19  ;;  %1796 = vmatmul.msk.f32.vlgmr.msra.gmra.mxu1 %vm634_vm0, %v1795_v20  ;;  %v997_v19 = vld [vmem:[#allocation9 + $0xa0] sm:$0xff]  ;;  %v996_v20 = vld [vmem:[#allocation9 + $0x98] sm:$0xff] }
  0xd3   : > { %727 = vmatpush.msrb.mxu1 %v714_v21  ;;  %757 = vmatpush.msrb.mxu2 %v748_v22  ;;  %v995_v21 = vld [vmem:[#allocation9 + $0x90] sm:$0xff]  ;;  %v994_v22 = vld [vmem:[#allocation9 + $0x88] sm:$0xff] }
  0xd5   : > { %728 = vmatpush.msrb.mxu1 %v713_v23  ;;  %758 = vmatpush.msrb.mxu2 %v747_v24  ;;  %v993_v23 = vld [vmem:[#allocation9 + $0x80] sm:$0xff] }
  0xd7   : > { %729 = vmatpush.msrb.mxu1 %v712_v25  ;;  %759 = vmatpush.msrb.mxu2 %v746_v26 }
  0xd9   : > { %730 = vmatpush.msrb.mxu1 %v711_v27  ;;  %760 = vmatpush.msrb.mxu2 %v745_v28  ;;  %v883_v28 = vld [vmem:[#allocation7] sm:$0xf] }
  0xdb   : > { %731 = vmatpush.msrb.mxu1 %v710_v29  ;;  %761 = vmatpush.msrb.mxu2 %v744_v30 }
  0xdd   : > { %732 = vmatpush.msrb.mxu1 %v709_v31  ;;  %762 = vmatpush.msrb.mxu2 %v743_v39  ;;  %v2542_v39 = vld [vmem:[#allocation12 + $0x18] sm:$0xff] }
  0xdf   : > { %733 = vmatpush.msrb.mxu1 %v708_v32  ;;  %763 = vmatpush.msrb.mxu2 %v742_v41  ;;  %v2548_v41 = vld [vmem:[#allocation12 + $0x8] sm:$0xff] }
  0xe1   : > { %734 = vmatpush.msrb.mxu1 %v707_v33  ;;  %764 = vmatpush.msrb.mxu2 %v741_v43  ;;  %v2557_v43 = vld [vmem:[#allocation13 + $0x18] sm:$0xff] }
  0xe3   : > { %842 = vmatpush.msra.mxu1 %v833_v34 }
  0xe5   : > { %843 = vmatpush.msra.mxu1 %v832_v35  ;;  %v2528_v35 = vld [vmem:[#allocation12 + $0x38] sm:$0xff] }
  0xe7   : > { %844 = vmatpush.msra.mxu1 %v831_v36  ;;  %v2533_v36 = vld [vmem:[#allocation12 + $0x30] sm:$0xff] }
  0xe9   : > { %845 = vmatpush.msra.mxu1 %v830_v37  ;;  %v2536_v37 = vld [vmem:[#allocation12 + $0x28] sm:$0xff] }
  0xeb   : > { %846 = vmatpush.msra.mxu1 %v829_v38  ;;  %v2539_v38 = vld [vmem:[#allocation12 + $0x20] sm:$0xff] }
  0xed   : > { %847 = vmatpush.msra.mxu1 %v828_v40  ;;  %v2545_v40 = vld [vmem:[#allocation12 + $0x10] sm:$0xff] }
  0xef   : > { %848 = vmatpush.msra.mxu1 %v827_v42  ;;  %v2551_v42 = vld [vmem:[#allocation12] sm:$0xff] }
  0xf1   : > { %849 = vmatpush.msra.mxu1 %v826_v44  ;;  %v2559_v44 = vld [vmem:[#allocation13 + $0x10] sm:$0xff] }
 0x14f   : > { %v655_v45 = vpop.f32.mrf.mxu1 }
 0x154   : > { %v678_v46 = vpop.f32.mrf.mxu2 }
 0x155   : > { %v679_v47 = vadd.f32 %v678_v46, %v655_v45  ;;  %v703_v48 = vpop.f32.mrf.mxu3  ;;  %v2562_v45 = vld [vmem:[#allocation13 + $0x8] sm:$0xff] }
 0x157   : > { %v2470_v49 = vadd.f32 %v703_v48, %v679_v47 }
 0x159   : > { %1800 = vmatmul.msk.f32.vlgmr.msrb.gmra.mxu1 %vm715_vm1, %v2470_v49  ;;  %1801 = vmatmul.msk.f32.vlgmr.msrb.gmra.mxu2 %vm715_vm1, %v2470_v49 }
 0x15a   : > { %1068 = vmatpush.msrb.mxu1 %v2472_v50 }
 0x15c   : > { %1069 = vmatpush.msrb.mxu1 %v2478_v51 }
 0x15e   : > { %1070 = vmatpush.msrb.mxu1 %v2481_v52 }
 0x160   : > { %1071 = vmatpush.msrb.mxu1 %v2484_v53 }
 0x161   : > { %1806 = vmatmul.msk.f32.vlgmr.msra.gmra.mxu1 %vm715_vm1, %v2470_v49 }
 0x162   : > { %1072 = vmatpush.msrb.mxu1 %v2487_v54 }
 0x164   : > { %1073 = vmatpush.msrb.mxu1 %v2492_v55 }
 0x166   : > { %1074 = vmatpush.msrb.mxu1 %v2495_v56 }
 0x168   : > { %1075 = vmatpush.msrb.mxu1 %v2498_v57 }
 0x169   : > { %1818 = vmatmul.msk.f32.vlgmr.msrb.gmra.mxu1 %vm715_vm1, %v2470_v49 }
 0x1d6   : > { %v736_v58 = vpop.f32.mrf.mxu1 }
 0x1dc   : > { %v766_v60 = vpop.f32.mrf.mxu2 }
 0x1dd   : > { %1802 = vmatpush.msk.msrb.mxu3 %vm775_vm2, %v766_v60 }
 0x1de   : > { %1803 = vmatmul.msk.f32.vlgmr.msrb.gmra.mxu3 %vm771_vm3, %v2504_v59  ;;  %v851_v63 = vpop.f32.mrf.mxu1 }
 0x1df   : > { %1804 = vmatpush.msk.msra.mxu3 %vm775_vm2, %v736_v58  ;;  %1807 = vmatpush.msk.msra.mxu2 %vm775_vm2, %v851_v63  ;;  %v1950_v58 = vld [vmem:[%s2655_s7] ss:$0 sm:$0xff] }
 0x1e0   : > { %1808 = vmatmul.msk.f32.vlgmr.msra.gmra.mxu2 %vm771_vm3, %v2507_v61 }
 0x1e1   : > { %905 = vmatpush.msrb.mxu3 %v893_v62  ;;  %934 = vmatpush.msrb.mxu2 %v925_v4 }
 0x1e3   : > { %906 = vmatpush.msrb.mxu3 %v892_v0  ;;  %935 = vmatpush.msrb.mxu2 %v924_v6  ;;  %v1196_v6 = vld [vmem:[#allocation6 + $0x138] sm:$0xff] }
 0x1e5   : > { %907 = vmatpush.msrb.mxu3 %v891_v1  ;;  %936 = vmatpush.msrb.mxu2 %v923_v8  ;;  %v1195_v8 = vld [vmem:[#allocation6 + $0x130] sm:$0xff] }
 0x1e6   : > { %1805 = vmatmul.msk.f32.vlgmr.msra.gmra.mxu3 %vm771_vm3, %v2515_v2 }
 0x1e7   : > { %908 = vmatpush.msrb.mxu3 %v890_v3  ;;  %937 = vmatpush.msrb.mxu2 %v922_v10  ;;  %v2571_v3 = vld [vmem:[#allocation13] sm:$0xff] }
 0x1e8   : > { %v1194_v10 = vld [vmem:[#allocation6 + $0x128] sm:$0xff] }
 0x1e9   : > { %909 = vmatpush.msrb.mxu3 %v889_v5  ;;  %938 = vmatpush.msrb.mxu2 %v921_v12  ;;  %v1164_v5 = vld [vmem:[#allocation6 + $0xf8] sm:$0xff]  ;;  %v1193_v12 = vld [vmem:[#allocation6 + $0x120] sm:$0xff] }
 0x1eb   : > { %910 = vmatpush.msrb.mxu3 %v888_v7  ;;  %939 = vmatpush.msrb.mxu2 %v920_v14  ;;  %v1163_v7 = vld [vmem:[#allocation6 + $0xf0] sm:$0xff]  ;;  %v1160_v14 = vld [vmem:[#allocation6 + $0xd8] sm:$0xff] }
 0x1ed   : > { %911 = vmatpush.msrb.mxu3 %v887_v9  ;;  %940 = vmatpush.msrb.mxu2 %v919_v16  ;;  %v1162_v9 = vld [vmem:[#allocation6 + $0xe8] sm:$0xff]  ;;  %v1077_v16 = vpop.f32.mrf.mxu1 }
 0x1ef   : > { %912 = vmatpush.msrb.mxu3 %v886_v11  ;;  %941 = vmatpush.msrb.mxu2 %v918_v18  ;;  %v1161_v11 = vld [vmem:[#allocation6 + $0xe0] sm:$0xff]  ;;  %v1159_v18 = vld [vmem:[#allocation6 + $0xd0] sm:$0xff] }
 0x1f1   : > { %1009 = vmatpush.msra.mxu3 %v1000_v13 }
 0x1f3   : > { %1010 = vmatpush.msra.mxu3 %v999_v15  ;;  %v1192_v15 = vld [vmem:[#allocation6 + $0x118] sm:$0xff] }
 0x1f5   : > { %1011 = vmatpush.msra.mxu3 %v998_v17 }
 0x1f7   : > { %1012 = vmatpush.msra.mxu3 %v997_v19  ;;  %v1191_v19 = vld [vmem:[#allocation6 + $0x110] sm:$0xff] }
 0x1f9   : > { %1013 = vmatpush.msra.mxu3 %v996_v20 }
 0x1fb   : > { %1014 = vmatpush.msra.mxu3 %v995_v21 }
 0x1fd   : > { %1015 = vmatpush.msra.mxu3 %v994_v22  ;;  %v1158_v22 = vld [vmem:[#allocation6 + $0xc8] sm:$0xff] }
 0x1ff   : > { %1016 = vmatpush.msra.mxu3 %v993_v23  ;;  %v1190_v23 = vld [vmem:[#allocation6 + $0x108] sm:$0xff] }
 0x261   : > { %v796_v24 = vpop.f32.mrf.mxu3 }
 0x263   : > { %v879_v26 = vpop.f32.mrf.mxu2 }
 0x269   : > { %v822_v25 = vpop.f32.mrf.mxu3 }
 0x26a   : > { %v823_v27 = vadd.f32 %v822_v25, %v796_v24  ;;  %v1157_v24 = vld [vmem:[#allocation6 + $0xc0] sm:$0xff] }
 0x26b   : > { %v1189_v25 = vld [vmem:[#allocation6 + $0x100] sm:$0xff] }
 0x26c   : > { %v882_v29 = vadd.f32 %v879_v26, %v823_v27 }
 0x26e   : > { %v884_v30 = vadd.f32 %v883_v28, %v882_v29  ;;  %v1271_v29 = vld [vmem:[#allocation6 + $0x178] sm:$0xff] }
 0x270   : > { %v885_v31 = vmax.f32 %v884_v30, 0.0 }
 0x272   : > { %1809 = vmatmul.msk.f32.vlgmr.msrb.gmra.mxu3 %vm715_vm1, %v885_v31  ;;  %1810 = vmatmul.msk.f32.vlgmr.msrb.gmra.mxu2 %vm715_vm1, %v885_v31 }
 0x273   : > { %1205 = vmatpush.msrb.mxu3 %v1196_v6  ;;  %v1356_v6 = vld [vmem:[#allocation9 + $0x118] sm:$0xff] }
 0x275   : > { %1206 = vmatpush.msrb.mxu3 %v1195_v8  ;;  %v1354_v8 = vld [vmem:[#allocation9 + $0x108] sm:$0xff] }
 0x277   : > { %1207 = vmatpush.msrb.mxu3 %v1194_v10 }
 0x279   : > { %1208 = vmatpush.msrb.mxu3 %v1193_v12 }
 0x27a   : > { %1815 = vmatmul.msk.f32.vlgmr.msra.gmra.mxu3 %vm715_vm1, %v885_v31 }
 0x27b   : > { %1209 = vmatpush.msrb.mxu3 %v1192_v15  ;;  %v1435_v15 = vld [vmem:[#allocation9 + $0x178] sm:$0xff] }
 0x27d   : > { %1210 = vmatpush.msrb.mxu3 %v1191_v19  ;;  %v1432_v19 = vld [vmem:[#allocation9 + $0x160] sm:$0xff] }
 0x27f   : > { %1211 = vmatpush.msrb.mxu3 %v1190_v23  ;;  %v1429_v23 = vld [vmem:[#allocation9 + $0x148] sm:$0xff] }
 0x281   : > { %1212 = vmatpush.msrb.mxu3 %v1189_v25 }
 0x2f5   : > { %v914_v32 = vpop.f32.mrf.mxu3  ;;  %v943_v33 = vpop.f32.mrf.mxu2 }
 0x2f6   : > { %1811 = vmatpush.msk.msrb.mxu0 %vm775_vm2, %v943_v33  ;;  %1813 = vmatpush.msk.msra.mxu2 %vm775_vm2, %v914_v32  ;;  %v1270_v32 = vld [vmem:[#allocation6 + $0x170] sm:$0xff]  ;;  %v1269_v33 = vld [vmem:[#allocation6 + $0x168] sm:$0xff] }
 0x2f7   : > { %1812 = vmatmul.msk.f32.vlgmr.msrb.gmra.mxu0 %vm771_vm3, %v2504_v59  ;;  %1814 = vmatmul.msk.f32.vlgmr.msra.gmra.mxu2 %vm771_vm3, %v2515_v2 }
 0x2f8   : > { %1128 = vmatpush.msrb.mxu2 %v2557_v43 }
 0x2fa   : > { %1129 = vmatpush.msrb.mxu2 %v2559_v44 }
 0x2fc   : > { %1130 = vmatpush.msrb.mxu2 %v2562_v45 }
 0x2fd   : > { %v1018_v34 = vpop.f32.mrf.mxu3 }
 0x2fe   : > { %1816 = vmatpush.msk.msra.mxu0 %vm775_vm2, %v1018_v34  ;;  %1131 = vmatpush.msrb.mxu2 %v2571_v3  ;;  %v1268_v34 = vld [vmem:[#allocation6 + $0x160] sm:$0xff] }
 0x2ff   : > { %1817 = vmatmul.msk.f32.vlgmr.msra.gmra.mxu0 %vm771_vm3, %v2507_v61 }
 0x300   : > { %1144 = vmatpush.msrb.mxu0 %v2528_v35  ;;  %1176 = vmatpush.msra.mxu2 %v1164_v5  ;;  %v1325_v5 = vld [vmem:[#allocation9 + $0xe0] sm:$0xff] }
 0x302   : > { %1145 = vmatpush.msrb.mxu0 %v2533_v36  ;;  %1177 = vmatpush.msra.mxu2 %v1163_v7  ;;  %v1355_v7 = vld [vmem:[#allocation9 + $0x110] sm:$0xff] }
 0x304   : > { %1146 = vmatpush.msrb.mxu0 %v2536_v37  ;;  %1178 = vmatpush.msra.mxu2 %v1162_v9  ;;  %v1353_v9 = vld [vmem:[#allocation9 + $0x100] sm:$0xff] }
 0x306   : > { %1147 = vmatpush.msrb.mxu0 %v2539_v38  ;;  %1179 = vmatpush.msra.mxu2 %v1161_v11 }
 0x308   : > { %1148 = vmatpush.msrb.mxu0 %v2542_v39  ;;  %1180 = vmatpush.msra.mxu2 %v1160_v14 }
 0x30a   : > { %1149 = vmatpush.msrb.mxu0 %v2545_v40  ;;  %1181 = vmatpush.msra.mxu2 %v1159_v18  ;;  %v1433_v18 = vld [vmem:[#allocation9 + $0x168] sm:$0xff] }
 0x30c   : > { %1150 = vmatpush.msrb.mxu0 %v2548_v41  ;;  %1182 = vmatpush.msra.mxu2 %v1158_v22  ;;  %v1430_v22 = vld [vmem:[#allocation9 + $0x150] sm:$0xff] }
 0x30e   : > { %1151 = vmatpush.msrb.mxu0 %v2551_v42  ;;  %1183 = vmatpush.msra.mxu2 %v1157_v24 }
 0x30f   : > { %1820 = vmatmul.msk.f32.vlgmr.msrb.gmra.mxu0 %vm715_vm1, %v2470_v49 }
 0x374   : > { %v966_v46 = vpop.f32.mrf.mxu0 }
 0x37a   : > { %v989_v47 = vpop.f32.mrf.mxu2 }
 0x37b   : > { %v990_v48 = vadd.f32 %v989_v47, %v966_v46  ;;  %v1267_v46 = vld [vmem:[#allocation6 + $0x158] sm:$0xff]  ;;  %v1266_v47 = vld [vmem:[#allocation6 + $0x150] sm:$0xff] }
 0x37c   : > { %v1041_v49 = vpop.f32.mrf.mxu0 }
 0x37d   : > { %v1044_v60 = vadd.f32 %v1041_v49, %v990_v48  ;;  %v1265_v48 = vld [vmem:[#allocation6 + $0x148] sm:$0xff]  ;;  %v1360_v49 = vld [vmem:[#allocation9 + $0x138] sm:$0xff] }
 0x37f   : > { %v1049_v62 = vadd.f32 %v1950_v58, %v1044_v60  ;;  %v1264_v58 = vld [vmem:[#allocation6 + $0x140] sm:$0xff]  ;;  %v1359_v60 = vld [vmem:[#allocation9 + $0x130] sm:$0xff] }
 0x381   : > { %1084 = vrot.lane.b32.xlu0 %v1049_v62, %s2271_s24  ;;  %1952 = vtanh.f32 %v1049_v62  ;;  %v1328_v62 = vld [vmem:[#allocation9 + $0xf8] sm:$0xff] }
 0x382   : > { %1340 = vmatpush.msra.mxu3 %v1328_v62 }
 0x387   : > { %v1953_v63 = vpop.eup %1952 }
 0x388   : > { %v1051_v0 = vmul.f32 1.9, %v1953_v63  ;;  %v1358_v63 = vld [vmem:[#allocation9 + $0x128] sm:$0xff] }
 0x38a   : > { %v1089_v1 = vsel %vm1088_vm4, %v1051_v0, 0.0  ;;  %v1080_v4 = vmul.f32 1.442695, %v1051_v0  ;;  %v1327_v0 = vld [vmem:[#allocation9 + $0xf0] sm:$0xff] }
 0x38b   : > { %1090 = vadd.xlane.f32.xlu1 %v1089_v1  ;;  %v1326_v1 = vld [vmem:[#allocation9 + $0xe8] sm:$0xff]  ;;  %1341 = vmatpush.msra.mxu3 %v1327_v0 }
 0x38c   : > { %1954 = vpow2.f32 %v1080_v4  ;;  %v1153_v26 = vpop.f32.mrf.mxu0  ;;  %v1357_v4 = vld [vmem:[#allocation9 + $0x120] sm:$0xff] }
 0x38d   : > { %1342 = vmatpush.msra.mxu3 %v1326_v1 }
 0x38f   : > { %1343 = vmatpush.msra.mxu3 %v1325_v5 }
 0x392   : > { %v1955_v13 = vpop.eup %1954 }
 0x393   : > { %v1082_v17 = vmul.f32 %v1955_v13, %v1077_v16 }
 0x3f3   : > { %v1085_v20 = vpop.permute.xlu0 %1084 }
 0x3f4   : > { %v1087_v21 = vadd.f32 %v1085_v20, %v1082_v17  ;;  %v1434_v17 = vld [vmem:[#allocation9 + $0x170] sm:$0xff] }
 0x3f6   : > { %1819 = vmatmul.msk.f32.vlgmr.msrb.gmra.mxu2 %vm1112_vm5, %v1087_v21  ;;  %v1431_v21 = vld [vmem:[#allocation9 + $0x158] sm:$0xff] }
 0x479   : > { %v1133_v27 = vpop.f32.mrf.mxu2 }
 0x47a   : > { %v2575_v28 = vadd.f32 %v1153_v26, %v1133_v27  ;;  %v1575_v26 = vld [vmem:[#allocation15 + $0x28] sm:$0xff] }
 0x47c   : > { %1821 = vmatmul.msk.f32.vlgmr.msra.gmra.mxu2 %vm715_vm1, %v2575_v28  ;;  %1822 = vmatmul.msk.f32.vlgmr.msrb.gmra.mxu3 %vm715_vm1, %v2575_v28 }
 0x4ff   : > { %v1185_v30 = vpop.f32.mrf.mxu2  ;;  %v1214_v31 = vpop.f32.mrf.mxu3 }
 0x500   : > { %1823 = vmatpush.msk.msra.mxu1 %vm775_vm2, %v1214_v31  ;;  %1825 = vmatpush.msk.msra.mxu0 %vm775_vm2, %v1185_v30 }
 0x501   : > { %1826 = vmatmul.msk.f32.vlgmr.msra.gmra.mxu0 %vm771_vm3, %v2515_v2  ;;  %1824 = vmatmul.msk.f32.vlgmr.msra.gmra.mxu1 %vm771_vm3, %v2504_v59 }
 0x502   : > { %1280 = vmatpush.msrb.mxu1 %v1271_v29  ;;  %1369 = vmatpush.msrb.mxu0 %v1360_v49  ;;  %v1574_v29 = vld [vmem:[#allocation15 + $0x20] sm:$0xff] }
 0x504   : > { %1281 = vmatpush.msrb.mxu1 %v1270_v32  ;;  %1370 = vmatpush.msrb.mxu0 %v1359_v60 }
 0x506   : > { %1282 = vmatpush.msrb.mxu1 %v1269_v33  ;;  %1371 = vmatpush.msrb.mxu0 %v1358_v63  ;;  %v1573_v33 = vld [vmem:[#allocation15 + $0x18] sm:$0xff] }
 0x508   : > { %1283 = vmatpush.msrb.mxu1 %v1268_v34  ;;  %1372 = vmatpush.msrb.mxu0 %v1357_v4 }
 0x50a   : > { %1284 = vmatpush.msrb.mxu1 %v1267_v46  ;;  %1373 = vmatpush.msrb.mxu0 %v1356_v6  ;;  %v1572_v46 = vld [vmem:[#allocation15 + $0x10] sm:$0xff] }
 0x50c   : > { %1285 = vmatpush.msrb.mxu1 %v1266_v47  ;;  %1374 = vmatpush.msrb.mxu0 %v1355_v7 }
 0x50e   : > { %1286 = vmatpush.msrb.mxu1 %v1265_v48  ;;  %1375 = vmatpush.msrb.mxu0 %v1354_v8 }
 0x510   : > { %1287 = vmatpush.msrb.mxu1 %v1264_v58  ;;  %1376 = vmatpush.msrb.mxu0 %v1353_v9  ;;  %v1571_v9 = vld [vmem:[#allocation15 + $0x8] sm:$0xff] }
 0x511   : > { %1827 = vmatmul.msk.f32.vlgmr.msrb.gmra.mxu1 %vm715_vm1, %v2575_v28 }
 0x512   : > { %1496 = vmatpush.msra.mxu0 %v2472_v50  ;;  %v1324_v50 = vld [vmem:[#allocation9 + $0xd8] sm:$0xff] }
 0x513   : > { %1344 = vmatpush.msra.mxu3 %v1324_v50 }
 0x514   : > { %1497 = vmatpush.msra.mxu0 %v2478_v51  ;;  %v1323_v51 = vld [vmem:[#allocation9 + $0xd0] sm:$0xff] }
 0x515   : > { %1345 = vmatpush.msra.mxu3 %v1323_v51 }
 0x516   : > { %1498 = vmatpush.msra.mxu0 %v2481_v52  ;;  %v1322_v52 = vld [vmem:[#allocation9 + $0xc8] sm:$0xff] }
 0x517   : > { %1346 = vmatpush.msra.mxu3 %v1322_v52 }
 0x518   : > { %1499 = vmatpush.msra.mxu0 %v2484_v53  ;;  %v1321_v53 = vld [vmem:[#allocation9 + $0xc0] sm:$0xff] }
 0x519   : > { %1347 = vmatpush.msra.mxu3 %v1321_v53 }
 0x51a   : > { %1500 = vmatpush.msra.mxu0 %v2487_v54 }
 0x51c   : > { %1501 = vmatpush.msra.mxu0 %v2492_v55 }
 0x51e   : > { %1502 = vmatpush.msra.mxu0 %v2495_v56  ;;  %v1317_v56 = vld [vmem:[#allocation7 + $0x4] sm:$0xf] }
 0x520   : > { %1503 = vmatpush.msra.mxu0 %v2498_v57 }
 0x57e   : > { %v1237_v10 = vpop.f32.mrf.mxu1  ;;  %v1260_v54 = vpop.f32.mrf.mxu0 }
 0x57f   : > { %v1261_v55 = vadd.f32 %v1260_v54, %v1237_v10  ;;  %v1570_v10 = vld [vmem:[#allocation15] sm:$0xff] }
 0x58e   : > { %v1289_v11 = vpop.f32.mrf.mxu1 }
 0x58f   : > { %1828 = vmatpush.msk.msrb.mxu2 %vm775_vm2, %v1289_v11 }
 0x590   : > { %1829 = vmatmul.msk.f32.vlgmr.msrb.gmra.mxu2 %vm771_vm3, %v2507_v61 }
 0x613   : > { %v1312_v12 = vpop.f32.mrf.mxu2 }
 0x614   : > { %v1315_v13 = vadd.f32 %v1312_v12, %v1261_v55 }
 0x616   : > { %v1318_v14 = vadd.f32 %v1317_v56, %v1315_v13 }
 0x618   : > { %v1319_v57 = vmax.f32 %v1318_v14, 0.0 }
 0x61a   : > { %1830 = vmatmul.msk.f32.vlgmr.msra.gmra.mxu3 %vm715_vm1, %v1319_v57  ;;  %1831 = vmatmul.msk.f32.vlgmr.msrb.gmra.mxu0 %vm715_vm1, %v1319_v57 }
 0x622   : > { %1840 = vmatmul.msk.f32.vlgmr.msra.gmra.mxu0 %vm715_vm1, %v2575_v28 }
 0x697   : > { %v1378_v16 = vpop.f32.mrf.mxu0 }
 0x698   : > { %1832 = vmatpush.msk.msra.mxu2 %vm775_vm2, %v1378_v16 }
 0x699   : > { %1833 = vmatmul.msk.f32.vlgmr.msra.gmra.mxu2 %vm771_vm3, %v2504_v59  ;;  %v1428_v59 = vld [vmem:[#allocation9 + $0x140] sm:$0xff] }
 0x69a   : > { %1444 = vmatpush.msrb.mxu2 %v1435_v15 }
 0x69c   : > { %1445 = vmatpush.msrb.mxu2 %v1434_v17 }
 0x69d   : > { %v1349_v20 = vpop.f32.mrf.mxu3 }
 0x69e   : > { %1446 = vmatpush.msrb.mxu2 %v1433_v18  ;;  %1834 = vmatpush.msk.msra.mxu1 %vm775_vm2, %v1349_v20 }
 0x69f   : > { %1835 = vmatmul.msk.f32.vlgmr.msra.gmra.mxu1 %vm771_vm3, %v2515_v2  ;;  %v1505_v27 = vpop.f32.mrf.mxu0 }
 0x6a0   : > { %1447 = vmatpush.msrb.mxu2 %v1432_v19  ;;  %1542 = vmatpush.msrb.mxu1 %v2557_v43  ;;  %v1577_v43 = vld [vmem:[#allocation15 + $0x38] sm:$0xff] }
 0x6a2   : > { %1448 = vmatpush.msrb.mxu2 %v1431_v21  ;;  %1543 = vmatpush.msrb.mxu1 %v2559_v44  ;;  %v1576_v44 = vld [vmem:[#allocation15 + $0x30] sm:$0xff] }
 0x6a4   : > { %1449 = vmatpush.msrb.mxu2 %v1430_v22  ;;  %1544 = vmatpush.msrb.mxu1 %v2562_v45 }
 0x6a6   : > { %1450 = vmatpush.msrb.mxu2 %v1429_v23  ;;  %1545 = vmatpush.msrb.mxu1 %v2571_v3  ;;  %v1091_v3 = vpop.xlane.xlu1 %1090 }
 0x6a7   : > { %v1092_v30 = vsel %vm775_vm2, %v1091_v3, 0.0 }
 0x6a8   : > { %1451 = vmatpush.msrb.mxu2 %v1428_v59  ;;  %1589 = vmatpush.msra.mxu1 %v1577_v43  ;;  %v1093_v34 = vrot.slane %v1092_v30, 4 }
 0x6a9   : > { %1836 = vmatmul.msk.f32.vlgmr.msrb.gmra.mxu2 %vm715_vm1, %v1319_v57 }
 0x6aa   : > { %1590 = vmatpush.msra.mxu1 %v1576_v44  ;;  %v1094_v47 = vadd.f32 %v1093_v34, %v1092_v30 }
 0x6ac   : > { %1591 = vmatpush.msra.mxu1 %v1575_v26  ;;  %v1095_v48 = vrot.slane %v1094_v47, 2 }
 0x6ae   : > { %1592 = vmatpush.msra.mxu1 %v1574_v29  ;;  %v1096_v62 = vadd.f32 %v1095_v48, %v1094_v47 }
 0x6b0   : > { %1593 = vmatpush.msra.mxu1 %v1573_v33  ;;  %v1097_v1 = vrot.slane %v1096_v62, 1 }
 0x6b2   : > { %1594 = vmatpush.msra.mxu1 %v1572_v46  ;;  %v1098_v6 = vadd.f32 %v1097_v1, %v1096_v62 }
 0x6b4   : > { %1595 = vmatpush.msra.mxu1 %v1571_v9 }
 0x6b6   : > { %1596 = vmatpush.msra.mxu1 %v1570_v10 }
 0x71c   : > { %v1401_v24 = vpop.f32.mrf.mxu2 }
 0x72c   : > { %v1453_v25 = vpop.f32.mrf.mxu2 }
 0x72d   : > { %1837 = vmatpush.msk.msrb.mxu3 %vm775_vm2, %v1453_v25 }
 0x72e   : > { %1838 = vmatmul.msk.f32.vlgmr.msrb.gmra.mxu3 %vm771_vm3, %v2507_v61  ;;  %v1424_v61 = vpop.f32.mrf.mxu1 }
 0x72f   : > { %1558 = vmatpush.msra.mxu3 %v2528_v35  ;;  %v1425_v2 = vadd.f32 %v1424_v61, %v1401_v24  ;;  %v1951_v35 = vld [vmem:[%s2655_s7 + $0x1] ss:$0 sm:$0xff] }
 0x731   : > { %1559 = vmatpush.msra.mxu3 %v2533_v36 }
 0x733   : > { %1560 = vmatpush.msra.mxu3 %v2536_v37 }
 0x735   : > { %1561 = vmatpush.msra.mxu3 %v2539_v38 }
 0x737   : > { %1562 = vmatpush.msra.mxu3 %v2542_v39 }
 0x739   : > { %1563 = vmatpush.msra.mxu3 %v2545_v40 }
 0x73b   : > { %1564 = vmatpush.msra.mxu3 %v2548_v41 }
 0x73d   : > { %1565 = vmatpush.msra.mxu3 %v2551_v42 }
 0x73e   : > { %1842 = vmatmul.msk.f32.vlgmr.msra.gmra.mxu3 %vm715_vm1, %v2575_v28 }
 0x7b1   : > { %v1476_v36 = vpop.f32.mrf.mxu3 }
 0x7b2   : > { %v1479_v37 = vadd.f32 %v1476_v36, %v1425_v2 }
 0x7b4   : > { %v1485_v38 = vadd.f32 %v1951_v35, %v1479_v37 }
 0x7b6   : > { %1512 = vrot.lane.b32.xlu0 %v1485_v38, %s2271_s24  ;;  %1956 = vtanh.f32 %v1485_v38 }
 0x7bc   : > { %v1957_v39 = vpop.eup %1956 }
 0x7bd   : > { %v1487_v40 = vmul.f32 1.9, %v1957_v39 }
 0x7bf   : > { %v1516_v41 = vsel %vm1088_vm4, %v1487_v40, 0.0  ;;  %v1508_v42 = vmul.f32 1.442695, %v1487_v40 }
 0x7c0   : > { %1517 = vadd.xlane.f32.xlu1 %v1516_v41 }
 0x7c1   : > { %1958 = vpow2.f32 %v1508_v42  ;;  %v1567_v11 = vpop.f32.mrf.mxu3 }
 0x7c7   : > { %v1959_v45 = vpop.eup %1958 }
 0x7c8   : > { %v1510_v28 = vmul.f32 %v1959_v45, %v1505_v27 }
 0x828   : > { %v1513_v31 = vpop.permute.xlu0 %1512 }
 0x829   : > { %v1515_v32 = vadd.f32 %v1513_v31, %v1510_v28 }
 0x82b   : > { %1841 = vmatmul.msk.f32.vlgmr.msrb.gmra.mxu1 %vm1112_vm5, %v1515_v32 }
 0x833   : > { %v1518_v58 = vpop.xlane.xlu1 %1517 }
 0x834   : > { %v1519_v49 = vsel %vm775_vm2, %v1518_v58, 0.0 }
 0x835   : > { %v1520_v60 = vrot.slane %v1519_v49, 4 }
 0x837   : > { %v1521_v63 = vadd.f32 %v1520_v60, %v1519_v49 }
 0x839   : > { %v1522_v0 = vrot.slane %v1521_v63, 2 }
 0x83b   : > { %v1523_v4 = vadd.f32 %v1522_v0, %v1521_v63 }
 0x83d   : > { %v1524_v5 = vrot.slane %v1523_v4, 1 }
 0x83f   : > { %v1525_v7 = vadd.f32 %v1524_v5, %v1523_v4 }
 0x841   : > { %v1526_v8 = vadd.f32 %v1525_v7, %v1098_v6 }
 0x843   : > { %1603 = vst [vmem:[%s593_s28] sm:$0x1] %v1526_v8 }
 0x8a8   : > { %v1547_v50 = vpop.f32.mrf.mxu1 }
 0x8a9   : > { %v1568_v51 = vadd.f32 %v1567_v11, %v1547_v50 }
 0x8ab   : > { %1843 = vmatmul.msk.f32.vlgmr.msra.gmra.mxu1 %vm715_vm1, %v1568_v51 }
 0x928   : > { %v1598_v52 = vpop.f32.mrf.mxu1 }
 0x929   : > { %1602 = vst.msk [vmem:[%s590_s20] sm:$0xf] %vm1601_vm6, %v1598_v52 }
 0x92a PF: > { %s2670_s17 = sld [smem:[#allocation21_spill]] }
 0x930   : > { %s29_s25 = sadd.s32 1, %s2670_s17  }
 0x931   : > { %p26_p7 = scmp.ge.s32.totalorder %s29_s25, 4  }
 0x933   :  { %28 = sbr.rel (!%p26_p7) target bundleno = 8 (0x8), region = 163 }
 0x938   :  { %1635 = vsyncpa [#allocation3], 1 }
 0x939   :  { %1637 = vsyncpa [#allocation3 + $0x1], 1 }
 0x93a   :  { %1638 = vsyncpa [#allocation5], 1 }
 0x93b   :  { %1639 = vsyncpa [#allocation8], 1 }
 0x93c   :  { %1640 = vsyncpa [#allocation11], 1 }
 0x93d   :  { %1641 = vsyncpa [#allocation14], 1 }

// kernel: msflow_forward.5
= control target key start
LH: loop header
LB: loop body
LE: loop exit
PB: predicated region body
PF: predicated region fallthrough
CT: control target
= control target key end

     0   :  { %s2698_s0 = inlined_call_operand.vmem [shape: f32[2,16,128], index: 0, kind: input, shape index: {}]   ;;  %s2699_s1 = inlined_call_operand.hbm [shape: f32[128,64], index: 1, kind: input, shape index: {}]   ;;  %s2700_s2 = inlined_call_operand.hbm [shape: f32[3,8,16], index: 2, kind: input, shape index: {}]   ;;  %s2701_s3 = inlined_call_operand.hbm [shape: f32[3,8,8], index: 3, kind: input, shape index: {}]   ;;  %s2702_s4 = inlined_call_operand.hbm [shape: f32[2,3,64,128], index: 4, kind: input, shape index: {}]   ;;  %s2703_s5 = inlined_call_operand.hbm [shape: f32[2,8,128], index: 5, kind: input, shape index: {}]   ;;  %s2704_s6 = inlined_call_operand.hbm [shape: f32[2,3,128,64], index: 6, kind: input, shape index: {}]   ;;  %s2705_s7 = inlined_call_operand.vmem [shape: f32[2,1,64], index: 7, kind: input, shape index: {}]   ;;  %s2706_s8 = inlined_call_operand.hbm [shape: f32[64,32], index: 8, kind: input, shape index: {}]   ;;  %s2707_s9 = inlined_call_operand.hbm [shape: f32[64,64], index: 9, kind: input, shape index: {}]   ;;  %s2708_s10 = inlined_call_operand.hbm [shape: f32[32,64], index: 10, kind: input, shape index: {}]   ;;  %s2709_s11 = inlined_call_operand.hbm [shape: f32[64,64], index: 11, kind: input, shape index: {}]   ;;  %s2710_s12 = inlined_call_operand.vmem [shape: f32[2,8,64], index: 12, kind: output, shape index: {0}]   ;;  %s2711_s13 = inlined_call_operand.vmem [shape: f32[2,1,128], index: 13, kind: output, shape index: {1}]  }
   0x1   :  { %2712 = sst [smem:[#allocation24_spill]] %s2700_s2 }
   0x2   :  { %19 = vsyncpa [#allocation3], 0 }
   0x3   :  { %20 = vsyncpa [#allocation5], 0 }
   0x4   :  { %21 = vsyncpa [#allocation8], 0 }
   0x5   :  { %22 = vsyncpa [#allocation11], 0 }
   0x6   :  { %23 = vsyncpa [#allocation14], 0 }
   0x7   :  { %24 = vsyncpa [#allocation17], 0  ;;  %s2402_s25 = smov 0  }
   0x8 LB: > { %s2408_s26 = sadd.s32 4294967295, %s2317_s25   ;;  %p1807_p0 = scmp.ge.s32.totalorder %s2317_s25, 1  ;;  %s2317_s25 = sphi %s2402_s25, %s30_s25  }
   0x9   : > { %p344_p1 = scmp.lt.s32.totalorder %s2317_s25, 3  ;;  %p1936_p2 = scmp.eq.s32.totalorder %s2408_s26, 0 }
   0xa   : > { %s2713_s2 = sld [smem:[#allocation24_spill]]  ;;  %s397_s16 = sshll.u32 %s2702_s4, 4  ;;  %s398_s16 = int_to_ptr.hbm [resolvable:$true] %s397_s16 }
   0xb   : > { %p2416_p3 = pnand %p1807_p0, %p344_p1  ;;  %s2319_s17 = smov [#allocation4]  }
   0xc   : > { %s371_s18 = sshll.u32 %s2319_s17, 4  ;;  %s2320_s20 = smov [#allocation7]   ;;  %s372_s18 = int_to_ptr.vmem [resolvable:$true] %s371_s18 }
   0xd   : > { %p1905_p4 = pneg %p2416_p3  ;;  %s399_s21 = sshll.u32 %s2320_s20, 4  ;;  %s400_s21 = int_to_ptr.vmem [resolvable:$true] %s399_s21 }
   0xe   : > { %s425_s24 = sshll.u32 %s2704_s6, 4  ;;  %s2321_s27 = smov 128   ;;  %s426_s24 = int_to_ptr.hbm [resolvable:$true] %s425_s24 }
   0xf   : > { %p2427_p5 = pnand %p1936_p2, %p1905_p4  ;;  %s2322_s28 = smov 8  }
  0x10   : > { %s369_s29 = sshll.u32 %s2713_s2, 4  ;;  %s2323_s14 = smov [#allocation10]   ;;  %s370_s29 = int_to_ptr.hbm [resolvable:$true] %s369_s29 }
  0x11   : > { %1911 = dma.hbm_to_vmem [thread:$0]  (!%p2427_p5), %s370_s29, 384, %s372_s18, [#allocation5], %s2321_s27, %s2321_s27, %s2322_s28  }
  0x12   : > { %1917 = dma.hbm_to_vmem [thread:$0]  (!%p2427_p5), %s398_s16, 6144, %s400_s21, [#allocation8], %s2321_s27, %s2321_s27, %s2322_s28  }
  0x13   : > { %s427_s15 = sshll.u32 %s2323_s14, 4  ;;  %s456_s22 = sshll.u32 %s2707_s9, 4  ;;  %s428_s15 = int_to_ptr.vmem [resolvable:$true] %s427_s15  ;;  %s457_s22 = int_to_ptr.hbm [resolvable:$true] %s456_s22 }
  0x14   : > { %1923 = dma.hbm_to_vmem [thread:$0]  (!%p2427_p5), %s426_s24, 12288, %s428_s15, [#allocation11], %s2321_s27, %s2321_s27, %s2322_s28  }
  0x15   : > { %s355_s23 = sshll.u32 %s2699_s1, 4  ;;  %s2324_s16 = smov [#allocation13]   ;;  %s356_s23 = int_to_ptr.hbm [resolvable:$true] %s355_s23 }
  0x16   : > { %s458_s21 = sshll.u32 %s2324_s16, 4  ;;  %s2325_s14 = smov [#allocation2]   ;;  %s459_s21 = int_to_ptr.vmem [resolvable:$true] %s458_s21 }
  0x17   : > { %1929 = dma.hbm_to_vmem [thread:$0]  (!%p2427_p5), %s457_s22, 1024, %s459_s21, [#allocation14], %s2321_s27, %s2321_s27, %s2322_s28  }
  0x18   : > { %s357_s17 = sshll.u32 %s2325_s14, 4  ;;  %s383_s24 = sshll.u32 %s2701_s3, 4  ;;  %s358_s17 = int_to_ptr.vmem [resolvable:$true] %s357_s17  ;;  %s384_s24 = int_to_ptr.hbm [resolvable:$true] %s383_s24 }
  0x19   : > { %1908 = dma.hbm_to_vmem [thread:$0]  (!%p2427_p5), %s356_s23, 2048, %s358_s17, [#allocation3], %s2321_s27, %s2321_s27, %s2322_s28  }
  0x1a   : > { %s411_s18 = sshll.u32 %s2703_s5, 4  ;;  %s2326_s16 = smov [#allocation6]   ;;  %s412_s18 = int_to_ptr.hbm [resolvable:$true] %s411_s18 }
  0x1b   : > { %s385_s22 = sshll.u32 %s2326_s16, 4  ;;  %s2327_s2 = smov [#allocation9]   ;;  %s386_s22 = int_to_ptr.vmem [resolvable:$true] %s385_s22 }
  0x1c   : > { %1914 = dma.hbm_to_vmem [thread:$0]  (!%p2427_p5), %s384_s24, 384, %s386_s22, [#allocation5], %s2321_s27, %s2321_s27, %s2322_s28  }
  0x1d   : > { %s413_s21 = sshll.u32 %s2327_s2, 4  ;;  %s442_s23 = sshll.u32 %s2706_s8, 4  ;;  %s414_s21 = int_to_ptr.vmem [resolvable:$true] %s413_s21  ;;  %s443_s23 = int_to_ptr.hbm [resolvable:$true] %s442_s23 }
  0x1e   : > { %1920 = dma.hbm_to_vmem [thread:$0]  (!%p2427_p5), %s412_s18, 256, %s414_s21, [#allocation8], %s2321_s27, %s2321_s27, %s2322_s28  }
  0x1f   : > { %s470_s29 = sshll.u32 %s2708_s10, 4  ;;  %s2328_s24 = smov [#allocation12]   ;;  %s471_s29 = int_to_ptr.hbm [resolvable:$true] %s470_s29 }
  0x20   : > { %s444_s16 = sshll.u32 %s2328_s24, 4  ;;  %s2329_s22 = smov [#allocation15]   ;;  %s445_s16 = int_to_ptr.vmem [resolvable:$true] %s444_s16 }
  0x21   : > { %1926 = dma.hbm_to_vmem [thread:$0]  (!%p2427_p5), %s443_s23, 1024, %s445_s16, [#allocation11], %s2321_s27, %s2321_s27, %s2322_s28  }
  0x22   : > { %s472_s2 = sshll.u32 %s2329_s22, 4  ;;  %s484_s18 = sshll.u32 %s2709_s11, 4  ;;  %s473_s2 = int_to_ptr.vmem [resolvable:$true] %s472_s2  ;;  %s485_s18 = int_to_ptr.hbm [resolvable:$true] %s484_s18 }
  0x23   : > { %1932 = dma.hbm_to_vmem [thread:$0]  (!%p2427_p5), %s471_s29, 512, %s473_s2, [#allocation14], %s2321_s27, %s2321_s27, %s2322_s28  }
  0x24   : > { %s2330_s21 = smov [#allocation16]   ;;  %510 = sbr.rel (%p2416_p3) target bundleno = 2383 (0x94f), region = 68 }
  0x25   : > { %s486_s17 = sshll.u32 %s2330_s21, 4  ;;  %s487_s17 = int_to_ptr.vmem [resolvable:$true] %s486_s17 }
  0x26   : > { %1935 = dma.hbm_to_vmem [thread:$0]  (!%p2427_p5), %s485_s18, 1024, %s487_s17, [#allocation17], %s2321_s27, %s2321_s27, %s2322_s28  }
  0x29   : > { %2292 = dma.done.wait (%p1936_p2), [#allocation3], 2048  }
  0x2a   : > { %2294 = vsyncadd (%p1936_p2), [#allocation3], 4294965248 }
  0x2b   : > { %2296 = dma.done.wait (%p1936_p2), [#allocation5], 768  }
  0x2c   : > { %2298 = vsyncadd (%p1936_p2), [#allocation5], 4294966528 }
  0x2d   : > { %2300 = dma.done.wait (%p1936_p2), [#allocation8], 6400  }
  0x2e   : > { %2302 = vsyncadd (%p1936_p2), [#allocation8], 4294960896 }
  0x2f   : > { %2304 = dma.done.wait (%p1936_p2), [#allocation11], 13312  }
  0x30   : > { %2306 = vsyncadd (%p1936_p2), [#allocation11], 4294953984 }
  0x31   : > { %2308 = dma.done.wait (%p1936_p2), [#allocation14], 1536  }
  0x32   : > { %2310 = vsyncadd (%p1936_p2), [#allocation14], 4294965760 }
  0x33   : > { %2312 = dma.done.wait (%p1936_p2), [#allocation17], 1024  }
  0x34   : > { %2314 = vsyncadd (%p1936_p2), [#allocation17], 4294966272  ;;  %v631_v0 = vld [vmem:[#allocation2 + $0x78] sm:$0xff]  ;;  %v630_v1 = vld [vmem:[#allocation2 + $0x70] sm:$0xff]  ;;  %p602_p6 = scmp.lt.s32.totalorder %s2408_s26, 1  ;;  %vm658_vm0 = vcmask 130048  }
  0x35   : > { %632 = vmatpush.msra.mxu0 %v631_v0  ;;  %v629_v2 = vld [vmem:[#allocation2 + $0x68] sm:$0xff]  ;;  %v628_v3 = vld [vmem:[#allocation2 + $0x60] sm:$0xff]  ;;  %v627_v4 = vld [vmem:[#allocation2 + $0x58] sm:$0xff]  ;;  %vm739_vm1 = vcmask 523264   ;;  %vm795_vm2 = vcmask 64512   ;;  %s2331_s29 = smov 96  }
  0x36   : > { %v626_v5 = vld [vmem:[#allocation2 + $0x50] sm:$0xff]  ;;  %v625_v6 = vld [vmem:[#allocation2 + $0x48] sm:$0xff]  ;;  %v624_v7 = vld [vmem:[#allocation2 + $0x40] sm:$0xff]  ;;  %s2717_s26 = smov (!%p602_p6, %s2408_s26), 1  ;;  %vm1114_vm3 = vcmask 261120  }
  0x37   : > { %633 = vmatpush.msra.mxu0 %v630_v1  ;;  %v623_v8 = vld [vmem:[#allocation2 + $0x38] sm:$0xff]  ;;  %v622_v9 = vld [vmem:[#allocation2 + $0x30] sm:$0xff]  ;;  %v621_v10 = vld [vmem:[#allocation2 + $0x28] sm:$0xff]  ;;  %s1864_s30 = sshll.u32 %s2717_s26, 4  ;;  %s613_s14 = scalar_lea.vmem %s2711_s13, %s2717_s26 }
  0x38   : > { %v620_v11 = vld [vmem:[#allocation2 + $0x20] sm:$0xff]  ;;  %v619_v12 = vld [vmem:[#allocation2 + $0x18] sm:$0xff]  ;;  %v618_v13 = vld [vmem:[#allocation2 + $0x10] sm:$0xff]  ;;  %s606_s28 = scalar_lea.vmem %s2698_s0, %s1864_s30  ;;  %s1832_s20 = sshll.u32 %s2717_s26, 3 }
  0x39   : > { %634 = vmatpush.msra.mxu0 %v629_v2  ;;  %v617_v14 = vld [vmem:[#allocation2 + $0x8] sm:$0xff]  ;;  %v616_v15 = vld [vmem:[#allocation2] sm:$0xff]  ;;  %v770_v20 = vld [vmem:[#allocation7 + $0x68] sm:$0xff]  ;;  %s610_s17 = scalar_lea.vmem %s2710_s12, %s1832_s20 }
  0x3a   : > { %v614_v16 = vld [vmem:[%s606_s28] sm:$0xff]  ;;  %v615_v17 = vld [vmem:[%s606_s28 + $0x8] sm:$0xff]  ;;  %v769_v21 = vld [vmem:[#allocation7 + $0x60] sm:$0xff] }
  0x3b   : > { %635 = vmatpush.msra.mxu0 %v628_v3  ;;  %v772_v18 = vld [vmem:[#allocation7 + $0x78] sm:$0xff]  ;;  %v771_v19 = vld [vmem:[#allocation7 + $0x70] sm:$0xff]  ;;  %v706_v26 = vld [vmem:[#allocation4 + $0x10] sm:$0xff] }
  0x3c   : > { %781 = vmatpush.msra.mxu2 %v772_v18  ;;  %v768_v22 = vld [vmem:[#allocation7 + $0x58] sm:$0xff]  ;;  %v655_v27 = vld [vmem:[#allocation4] sm:$0xff]  ;;  %v736_v30 = vld [vmem:[#allocation7 + $0x28] sm:$0xff] }
  0x3d   : > { %636 = vmatpush.msra.mxu0 %v627_v4  ;;  %v657_v25 = vld [vmem:[#allocation4 + $0x8] sm:$0xff]  ;;  %v737_v29 = vld [vmem:[#allocation7 + $0x30] sm:$0xff]  ;;  %v735_v31 = vld [vmem:[#allocation7 + $0x20] sm:$0xff] }
  0x3e   : > { %782 = vmatpush.msra.mxu2 %v771_v19  ;;  %v738_v28 = vld [vmem:[#allocation7 + $0x38] sm:$0xff]  ;;  %v733_v33 = vld [vmem:[#allocation7 + $0x10] sm:$0xff]  ;;  %v732_v34 = vld [vmem:[#allocation7 + $0x8] sm:$0xff] }
  0x3f   : > { %637 = vmatpush.msra.mxu0 %v626_v5  ;;  %v734_v32 = vld [vmem:[#allocation7 + $0x18] sm:$0xff]  ;;  %v731_v35 = vld [vmem:[#allocation7] sm:$0xff]  ;;  %v767_v37 = vld [vmem:[#allocation7 + $0x50] sm:$0xff] }
  0x40   : > { %783 = vmatpush.msra.mxu2 %v770_v20  ;;  %v850_v36 = vld [vmem:[#allocation7 + $0xb8] sm:$0xff]  ;;  %v849_v38 = vld [vmem:[#allocation7 + $0xb0] sm:$0xff]  ;;  %v766_v39 = vld [vmem:[#allocation7 + $0x48] sm:$0xff] }
  0x41   : > { %638 = vmatpush.msra.mxu0 %v625_v6  ;;  %v848_v40 = vld [vmem:[#allocation7 + $0xa8] sm:$0xff]  ;;  %v765_v41 = vld [vmem:[#allocation7 + $0x40] sm:$0xff]  ;;  %v846_v43 = vld [vmem:[#allocation7 + $0x98] sm:$0xff] }
  0x42   : > { %784 = vmatpush.msra.mxu2 %v769_v21  ;;  %v847_v42 = vld [vmem:[#allocation7 + $0xa0] sm:$0xff]  ;;  %v845_v44 = vld [vmem:[#allocation7 + $0x90] sm:$0xff]  ;;  %v844_v45 = vld [vmem:[#allocation7 + $0x88] sm:$0xff] }
  0x43   : > { %639 = vmatpush.msra.mxu0 %v624_v7  ;;  %v843_v46 = vld [vmem:[#allocation7 + $0x80] sm:$0xff]  ;;  %v2547_v53 = vld [vmem:[#allocation6 + $0x8] sm:$0xff]  ;;  %v2549_v55 = vld [vmem:[#allocation6 + $0x10] sm:$0xff] }
  0x44   : > { %785 = vmatpush.msra.mxu2 %v768_v22  ;;  %v915_v56 = vld [vmem:[#allocation10 + $0x78] sm:$0xff]  ;;  %v914_v59 = vld [vmem:[#allocation10 + $0x70] sm:$0xff]  ;;  %v913_v61 = vld [vmem:[#allocation10 + $0x68] sm:$0xff] }
  0x45   : > { %640 = vmatpush.msra.mxu0 %v623_v8  ;;  %v952_v58 = vld [vmem:[#allocation10 + $0xf8] sm:$0xff]  ;;  %v951_v60 = vld [vmem:[#allocation10 + $0xf0] sm:$0xff]  ;;  %v950_v62 = vld [vmem:[#allocation10 + $0xe8] sm:$0xff] }
  0x46   : > { %786 = vmatpush.msra.mxu2 %v767_v37  ;;  %v2555_v63 = vld [vmem:[#allocation6] sm:$0xff]  ;;  %v912_v0 = vld [vmem:[#allocation10 + $0x60] sm:$0xff]  ;;  %v910_v4 = vld [vmem:[#allocation10 + $0x50] sm:$0xff] }
  0x47   : > { %641 = vmatpush.msra.mxu0 %v622_v9  ;;  %v949_v1 = vld [vmem:[#allocation10 + $0xe0] sm:$0xff]  ;;  %v911_v2 = vld [vmem:[#allocation10 + $0x58] sm:$0xff]  ;;  %v947_v5 = vld [vmem:[#allocation10 + $0xd0] sm:$0xff] }
  0x48   : > { %787 = vmatpush.msra.mxu2 %v766_v39  ;;  %v948_v3 = vld [vmem:[#allocation10 + $0xd8] sm:$0xff]  ;;  %v909_v6 = vld [vmem:[#allocation10 + $0x48] sm:$0xff]  ;;  %v908_v8 = vld [vmem:[#allocation10 + $0x40] sm:$0xff] }
  0x49   : > { %642 = vmatpush.msra.mxu0 %v621_v10  ;;  %v946_v7 = vld [vmem:[#allocation10 + $0xc8] sm:$0xff]  ;;  %v945_v9 = vld [vmem:[#allocation10 + $0xc0] sm:$0xff]  ;;  %v907_v10 = vld [vmem:[#allocation10 + $0x38] sm:$0xff] }
  0x4a   : > { %788 = vmatpush.msra.mxu2 %v765_v41  ;;  %v903_v18 = vld [vmem:[#allocation10 + $0x18] sm:$0xff]  ;;  %v902_v20 = vld [vmem:[#allocation10 + $0x10] sm:$0xff]  ;;  %v901_v22 = vld [vmem:[#allocation10 + $0x8] sm:$0xff] }
  0x4b   : > { %643 = vmatpush.msra.mxu0 %v620_v11  ;;  %v944_v11 = vld [vmem:[#allocation10 + $0xb8] sm:$0xff]  ;;  %v939_v21 = vld [vmem:[#allocation10 + $0x90] sm:$0xff]  ;;  %v2595_v39 = vld [vmem:[#allocation13 + $0x8] sm:$0xff] }
  0x4c   : > { %v940_v19 = vld [vmem:[#allocation10 + $0x98] sm:$0xff]  ;;  %v2589_v37 = vld [vmem:[#allocation13 + $0x10] sm:$0xff]  ;;  %v2601_v41 = vld [vmem:[#allocation13] sm:$0xff] }
  0x4d   : > { %644 = vmatpush.msra.mxu0 %v619_v12  ;;  %v906_v12 = vld [vmem:[#allocation10 + $0x30] sm:$0xff] }
  0x4f   : > { %645 = vmatpush.msra.mxu0 %v618_v13  ;;  %v943_v13 = vld [vmem:[#allocation10 + $0xb0] sm:$0xff] }
  0x51   : > { %646 = vmatpush.msra.mxu0 %v617_v14  ;;  %v905_v14 = vld [vmem:[#allocation10 + $0x28] sm:$0xff] }
  0x53   : > { %647 = vmatpush.msra.mxu0 %v616_v15  ;;  %v942_v15 = vld [vmem:[#allocation10 + $0xa8] sm:$0xff] }
  0x54   : > { %648 = vmatmul.f32.vlgmr.msra.gmra.mxu0 %v614_v16  ;;  %v904_v16 = vld [vmem:[#allocation10 + $0x20] sm:$0xff] }
  0x5c   : > { %651 = vmatmul.f32.gmra.mxu0 %v615_v17  ;;  %v941_v17 = vld [vmem:[#allocation10 + $0xa0] sm:$0xff] }
  0xd1   : > { %v649_v23 = vpop.f32.mrf.mxu0 }
  0xd9   : > { %v652_v24 = vpop.f32.mrf.mxu0 }
  0xda   : > { %676 = vmatpush.msra.mxu1 %v652_v24  ;;  %699 = vmatpush.msrb.mxu0 %v652_v24 }
  0xdb   : > { %724 = vmatpush.msra.mxu3 %v652_v24  ;;  %v900_v24 = vld [vmem:[#allocation10] sm:$0xff] }
  0xdc   : > { %677 = vmatpush.msra.mxu1 %v649_v23  ;;  %700 = vmatpush.msrb.mxu0 %v649_v23 }
  0xdd   : > { %725 = vmatpush.msra.mxu3 %v649_v23  ;;  %1833 = vmatmul.msk.f32.vlgmr.msra.gmra.mxu1 %vm658_vm0, %v657_v25  ;;  %v938_v23 = vld [vmem:[#allocation10 + $0x88] sm:$0xff]  ;;  %v937_v25 = vld [vmem:[#allocation10 + $0x80] sm:$0xff] }
  0xde   : > { %1835 = vmatmul.msk.f32.vlgmr.msra.gmra.mxu3 %vm658_vm0, %v706_v26  ;;  %1834 = vmatmul.msk.f32.vlgmr.msrb.gmra.mxu0 %vm658_vm0, %v655_v27  ;;  %v2559_v26 = vld [vmem:[#allocation12 + $0x38] sm:$0xff] }
  0xdf   : > { %751 = vmatpush.msrb.mxu1 %v738_v28  ;;  %v2561_v27 = vld [vmem:[#allocation13 + $0x38] sm:$0xff]  ;;  %v2565_v28 = vld [vmem:[#allocation12 + $0x30] sm:$0xff] }
  0xe1   : > { %752 = vmatpush.msrb.mxu1 %v737_v29  ;;  %v2567_v29 = vld [vmem:[#allocation13 + $0x30] sm:$0xff] }
  0xe3   : > { %753 = vmatpush.msrb.mxu1 %v736_v30  ;;  %v2571_v30 = vld [vmem:[#allocation12 + $0x28] sm:$0xff] }
  0xe5   : > { %754 = vmatpush.msrb.mxu1 %v735_v31  ;;  %v2573_v31 = vld [vmem:[#allocation13 + $0x28] sm:$0xff] }
  0xe7   : > { %755 = vmatpush.msrb.mxu1 %v734_v32  ;;  %v2577_v32 = vld [vmem:[#allocation12 + $0x20] sm:$0xff] }
  0xe9   : > { %756 = vmatpush.msrb.mxu1 %v733_v33  ;;  %v2579_v33 = vld [vmem:[#allocation13 + $0x20] sm:$0xff] }
  0xeb   : > { %757 = vmatpush.msrb.mxu1 %v732_v34  ;;  %v2583_v34 = vld [vmem:[#allocation12 + $0x18] sm:$0xff] }
  0xed   : > { %758 = vmatpush.msrb.mxu1 %v731_v35  ;;  %v2585_v35 = vld [vmem:[#allocation13 + $0x18] sm:$0xff] }
  0xef   : > { %859 = vmatpush.msra.mxu1 %v850_v36  ;;  %v2587_v36 = vld [vmem:[#allocation12 + $0x10] sm:$0xff] }
  0xf1   : > { %860 = vmatpush.msra.mxu1 %v849_v38  ;;  %v2593_v38 = vld [vmem:[#allocation12 + $0x8] sm:$0xff] }
  0xf3   : > { %861 = vmatpush.msra.mxu1 %v848_v40  ;;  %v2599_v40 = vld [vmem:[#allocation12] sm:$0xff] }
  0xf5   : > { %862 = vmatpush.msra.mxu1 %v847_v42 }
  0xf7   : > { %863 = vmatpush.msra.mxu1 %v846_v43 }
  0xf9   : > { %864 = vmatpush.msra.mxu1 %v845_v44 }
  0xfb   : > { %865 = vmatpush.msra.mxu1 %v844_v45 }
  0xfd   : > { %866 = vmatpush.msra.mxu1 %v843_v46  ;;  %v897_v46 = vld [vmem:[#allocation9] sm:$0xff] }
 0x15a   : > { %v679_v47 = vpop.f32.mrf.mxu1 }
 0x15b   : > { %v702_v48 = vpop.f32.mrf.mxu0 }
 0x15c   : > { %v703_v49 = vadd.f32 %v702_v48, %v679_v47 }
 0x161   : > { %v727_v50 = vpop.f32.mrf.mxu3 }
 0x162   : > { %v2539_v51 = vadd.f32 %v727_v50, %v703_v49  ;;  %v1029_v50 = vld [vmem:[#allocation10 + $0x178] sm:$0xff] }
 0x164   : > { %1836 = vmatmul.msk.f32.vlgmr.msrb.gmra.mxu1 %vm739_vm1, %v2539_v51  ;;  %1837 = vmatmul.msk.f32.vlgmr.msra.gmra.mxu2 %vm739_vm1, %v2539_v51 }
 0x16c   : > { %1840 = vmatmul.msk.f32.vlgmr.msra.gmra.mxu1 %vm739_vm1, %v2539_v51 }
 0x1e1   : > { %v760_v52 = vpop.f32.mrf.mxu1 }
 0x1e7   : > { %v790_v54 = vpop.f32.mrf.mxu2 }
 0x1e8   : > { %814 = vmatpush.msrb.mxu3 %v790_v54 }
 0x1e9   : > { %1838 = vmatmul.msk.f32.vlgmr.msrb.gmra.mxu3 %vm795_vm2, %v2547_v53  ;;  %v868_v57 = vpop.f32.mrf.mxu1 }
 0x1ea   : > { %837 = vmatpush.msra.mxu3 %v760_v52  ;;  %891 = vmatpush.msrb.mxu2 %v868_v57  ;;  %v1027_v57 = vld [vmem:[#allocation10 + $0x168] sm:$0xff] }
 0x1eb   : > { %1841 = vmatmul.msk.f32.vlgmr.msrb.gmra.mxu2 %vm795_vm2, %v2549_v55 }
 0x1ec   : > { %916 = vmatpush.msrb.mxu3 %v915_v56  ;;  %953 = vmatpush.msra.mxu2 %v952_v58  ;;  %v1028_v56 = vld [vmem:[#allocation10 + $0x170] sm:$0xff]  ;;  %v1026_v58 = vld [vmem:[#allocation10 + $0x160] sm:$0xff] }
 0x1ee   : > { %917 = vmatpush.msrb.mxu3 %v914_v59  ;;  %954 = vmatpush.msra.mxu2 %v951_v60  ;;  %v1025_v59 = vld [vmem:[#allocation10 + $0x158] sm:$0xff]  ;;  %v1023_v60 = vld [vmem:[#allocation10 + $0x148] sm:$0xff] }
 0x1f0   : > { %918 = vmatpush.msrb.mxu3 %v913_v61  ;;  %955 = vmatpush.msra.mxu2 %v950_v62  ;;  %v1022_v61 = vld [vmem:[#allocation10 + $0x140] sm:$0xff]  ;;  %v1021_v62 = vld [vmem:[#allocation10 + $0x138] sm:$0xff] }
 0x1f1   : > { %1839 = vmatmul.msk.f32.vlgmr.msra.gmra.mxu3 %vm795_vm2, %v2555_v63 }
 0x1f2   : > { %919 = vmatpush.msrb.mxu3 %v912_v0  ;;  %956 = vmatpush.msra.mxu2 %v949_v1  ;;  %v1020_v0 = vld [vmem:[#allocation10 + $0x130] sm:$0xff]  ;;  %v1019_v1 = vld [vmem:[#allocation10 + $0x128] sm:$0xff] }
 0x1f4   : > { %920 = vmatpush.msrb.mxu3 %v911_v2  ;;  %957 = vmatpush.msra.mxu2 %v948_v3  ;;  %v1018_v2 = vld [vmem:[#allocation10 + $0x120] sm:$0xff]  ;;  %v1017_v3 = vld [vmem:[#allocation10 + $0x118] sm:$0xff] }
 0x1f6   : > { %921 = vmatpush.msrb.mxu3 %v910_v4  ;;  %958 = vmatpush.msra.mxu2 %v947_v5  ;;  %v1016_v4 = vld [vmem:[#allocation10 + $0x110] sm:$0xff]  ;;  %v1015_v5 = vld [vmem:[#allocation10 + $0x108] sm:$0xff] }
 0x1f8   : > { %922 = vmatpush.msrb.mxu3 %v909_v6  ;;  %959 = vmatpush.msra.mxu2 %v946_v7  ;;  %v1014_v6 = vld [vmem:[#allocation10 + $0x100] sm:$0xff] }
 0x1fa   : > { %923 = vmatpush.msrb.mxu3 %v908_v8  ;;  %960 = vmatpush.msra.mxu2 %v945_v9  ;;  %v2617_v9 = vld [vmem:[#allocation15 + $0x18] sm:$0xff] }
 0x1fc   : > { %924 = vmatpush.msrb.mxu3 %v907_v10  ;;  %961 = vmatpush.msra.mxu2 %v944_v11  ;;  %v2619_v10 = vld [vmem:[#allocation15 + $0x10] sm:$0xff]  ;;  %v2622_v11 = vld [vmem:[#allocation15 + $0x8] sm:$0xff] }
 0x1fe   : > { %925 = vmatpush.msrb.mxu3 %v906_v12  ;;  %962 = vmatpush.msra.mxu2 %v943_v13 }
 0x200   : > { %926 = vmatpush.msrb.mxu3 %v905_v14  ;;  %963 = vmatpush.msra.mxu2 %v942_v15  ;;  %v1977_v14 = vld [vmem:[%s2705_s7] ss:$0 sm:$0xff] }
 0x202   : > { %927 = vmatpush.msrb.mxu3 %v904_v16  ;;  %964 = vmatpush.msra.mxu2 %v941_v17 }
 0x204   : > { %928 = vmatpush.msrb.mxu3 %v903_v18  ;;  %965 = vmatpush.msra.mxu2 %v940_v19 }
 0x206   : > { %929 = vmatpush.msrb.mxu3 %v902_v20  ;;  %966 = vmatpush.msra.mxu2 %v939_v21  ;;  %v2631_v21 = vld [vmem:[#allocation15] sm:$0xff] }
 0x208   : > { %930 = vmatpush.msrb.mxu3 %v901_v22  ;;  %967 = vmatpush.msra.mxu2 %v938_v23  ;;  %v1188_v23 = vld [vmem:[#allocation7 + $0xf8] sm:$0xff] }
 0x20a   : > { %931 = vmatpush.msrb.mxu3 %v900_v24  ;;  %968 = vmatpush.msra.mxu2 %v937_v25  ;;  %v1187_v24 = vld [vmem:[#allocation7 + $0xf0] sm:$0xff]  ;;  %v1220_v25 = vld [vmem:[#allocation7 + $0x138] sm:$0xff] }
 0x20c   : > { %1094 = vmatpush.msra.mxu3 %v2559_v26  ;;  %1168 = vmatpush.msrb.mxu2 %v2561_v27 }
 0x20e   : > { %1095 = vmatpush.msra.mxu3 %v2565_v28  ;;  %1169 = vmatpush.msrb.mxu2 %v2567_v29 }
 0x210   : > { %1096 = vmatpush.msra.mxu3 %v2571_v30  ;;  %1170 = vmatpush.msrb.mxu2 %v2573_v31 }
 0x212   : > { %1097 = vmatpush.msra.mxu3 %v2577_v32  ;;  %1171 = vmatpush.msrb.mxu2 %v2579_v33 }
 0x214   : > { %1098 = vmatpush.msra.mxu3 %v2583_v34  ;;  %1172 = vmatpush.msrb.mxu2 %v2585_v35 }
 0x216   : > { %1099 = vmatpush.msra.mxu3 %v2587_v36  ;;  %1173 = vmatpush.msrb.mxu2 %v2589_v37 }
 0x218   : > { %1100 = vmatpush.msra.mxu3 %v2593_v38  ;;  %1174 = vmatpush.msrb.mxu2 %v2595_v39 }
 0x21a   : > { %1101 = vmatpush.msra.mxu3 %v2599_v40  ;;  %1175 = vmatpush.msrb.mxu2 %v2601_v41 }
 0x26c   : > { %v816_v42 = vpop.f32.mrf.mxu3 }
 0x26e   : > { %v893_v44 = vpop.f32.mrf.mxu2 }
 0x274   : > { %v839_v43 = vpop.f32.mrf.mxu3 }
 0x275   : > { %v840_v45 = vadd.f32 %v839_v43, %v816_v42  ;;  %v1186_v42 = vld [vmem:[#allocation7 + $0xe8] sm:$0xff]  ;;  %v1219_v43 = vld [vmem:[#allocation7 + $0x130] sm:$0xff] }
 0x277   : > { %v896_v47 = vadd.f32 %v893_v44, %v840_v45  ;;  %v1218_v44 = vld [vmem:[#allocation7 + $0x128] sm:$0xff]  ;;  %v1185_v45 = vld [vmem:[#allocation7 + $0xe0] sm:$0xff] }
 0x279   : > { %v898_v48 = vadd.f32 %v897_v46, %v896_v47  ;;  %v1217_v46 = vld [vmem:[#allocation7 + $0x120] sm:$0xff] }
 0x27b   : > { %v899_v49 = vmax.f32 %v898_v48, 0.0  ;;  %v1184_v48 = vld [vmem:[#allocation7 + $0xd8] sm:$0xff] }
 0x27d   : > { %932 = vmatmul.f32.vlgmr.msrb.gmra.mxu3 %v899_v49  ;;  %969 = vmatmul.f32.vlgmr.msra.gmra.mxu2 %v899_v49 }
 0x27e   : > { %1229 = vmatpush.msrb.mxu3 %v1220_v25  ;;  %v1379_v25 = vld [vmem:[#allocation10 + $0x230] sm:$0xff] }
 0x280   : > { %1230 = vmatpush.msrb.mxu3 %v1219_v43  ;;  %v1378_v43 = vld [vmem:[#allocation10 + $0x228] sm:$0xff] }
 0x282   : > { %1231 = vmatpush.msrb.mxu3 %v1218_v44  ;;  %v1349_v44 = vld [vmem:[#allocation10 + $0x1e8] sm:$0xff] }
 0x284   : > { %1232 = vmatpush.msrb.mxu3 %v1217_v46 }
 0x285   : > { %1845 = vmatmul.msk.f32.vlgmr.msra.gmra.mxu3 %vm739_vm1, %v2539_v51  ;;  %1847 = vmatmul.msk.f32.vlgmr.msrb.gmra.mxu2 %vm739_vm1, %v2539_v51  ;;  %v1024_v51 = vld [vmem:[#allocation10 + $0x150] sm:$0xff] }
 0x300   : > { %v933_v52 = vpop.f32.mrf.mxu3  ;;  %v970_v54 = vpop.f32.mrf.mxu2 }
 0x301   : > { %988 = vmatpush.msrb.mxu1 %v970_v54  ;;  %1008 = vmatpush.msra.mxu0 %v933_v52  ;;  %v1183_v52 = vld [vmem:[#allocation7 + $0xd0] sm:$0xff] }
 0x302   : > { %1843 = vmatmul.msk.f32.vlgmr.msra.gmra.mxu0 %vm795_vm2, %v2555_v63  ;;  %1842 = vmatmul.msk.f32.vlgmr.msrb.gmra.mxu1 %vm795_vm2, %v2547_v53 }
 0x303   : > { %1030 = vmatpush.msra.mxu1 %v1029_v50 }
 0x305   : > { %1031 = vmatpush.msra.mxu1 %v1028_v56  ;;  %v1215_v56 = vld [vmem:[#allocation7 + $0x110] sm:$0xff] }
 0x307   : > { %1032 = vmatpush.msra.mxu1 %v1027_v57 }
 0x308   : > { %v1103_v50 = vpop.f32.mrf.mxu3 }
 0x309   : > { %1033 = vmatpush.msra.mxu1 %v1026_v58 }
 0x30b   : > { %1034 = vmatpush.msra.mxu1 %v1025_v59  ;;  %v1182_v59 = vld [vmem:[#allocation7 + $0xc8] sm:$0xff] }
 0x30d   : > { %1035 = vmatpush.msra.mxu1 %v1024_v51  ;;  %v1181_v51 = vld [vmem:[#allocation7 + $0xc0] sm:$0xff] }
 0x30f   : > { %1036 = vmatpush.msra.mxu1 %v1023_v60  ;;  %v1289_v60 = vld [vmem:[#allocation7 + $0x178] sm:$0xff] }
 0x311   : > { %1037 = vmatpush.msra.mxu1 %v1022_v61  ;;  %v1288_v61 = vld [vmem:[#allocation7 + $0x170] sm:$0xff] }
 0x313   : > { %1038 = vmatpush.msra.mxu1 %v1021_v62  ;;  %v1214_v62 = vld [vmem:[#allocation7 + $0x108] sm:$0xff] }
 0x315   : > { %1039 = vmatpush.msra.mxu1 %v1020_v0  ;;  %v1287_v0 = vld [vmem:[#allocation7 + $0x168] sm:$0xff] }
 0x317   : > { %1040 = vmatpush.msra.mxu1 %v1019_v1  ;;  %v1213_v1 = vld [vmem:[#allocation7 + $0x100] sm:$0xff] }
 0x319   : > { %1041 = vmatpush.msra.mxu1 %v1018_v2  ;;  %v1286_v2 = vld [vmem:[#allocation7 + $0x160] sm:$0xff] }
 0x31b   : > { %1042 = vmatpush.msra.mxu1 %v1017_v3  ;;  %v1285_v3 = vld [vmem:[#allocation7 + $0x158] sm:$0xff] }
 0x31d   : > { %1043 = vmatpush.msra.mxu1 %v1016_v4  ;;  %v1284_v4 = vld [vmem:[#allocation7 + $0x150] sm:$0xff] }
 0x31f   : > { %1044 = vmatpush.msra.mxu1 %v1015_v5  ;;  %v1283_v5 = vld [vmem:[#allocation7 + $0x148] sm:$0xff] }
 0x321   : > { %1045 = vmatpush.msra.mxu1 %v1014_v6  ;;  %v1282_v6 = vld [vmem:[#allocation7 + $0x140] sm:$0xff] }
 0x322   : > { %1046 = vmatmul.f32.vlgmr.msra.gmra.mxu1 %v899_v49  ;;  %v1216_v49 = vld [vmem:[#allocation7 + $0x118] sm:$0xff] }
 0x323   : > { %1233 = vmatpush.msrb.mxu3 %v1216_v49  ;;  %v1347_v49 = vld [vmem:[#allocation10 + $0x1d8] sm:$0xff] }
 0x325   : > { %1234 = vmatpush.msrb.mxu3 %v1215_v56  ;;  %v1343_v56 = vld [vmem:[#allocation10 + $0x1b8] sm:$0xff] }
 0x327   : > { %1235 = vmatpush.msrb.mxu3 %v1214_v62  ;;  %v1373_v62 = vld [vmem:[#allocation10 + $0x200] sm:$0xff] }
 0x329   : > { %1236 = vmatpush.msrb.mxu3 %v1213_v1  ;;  %v1338_v1 = vld [vmem:[#allocation10 + $0x190] sm:$0xff] }
 0x37f   : > { %v990_v7 = vpop.f32.mrf.mxu1  ;;  %v1010_v12 = vpop.f32.mrf.mxu0 }
 0x380   : > { %v1011_v13 = vadd.f32 %v1010_v12, %v990_v7  ;;  %v1177_v7 = vpop.f32.mrf.mxu2 }
 0x39f   : > { %v1047_v8 = vpop.f32.mrf.mxu1 }
 0x3a0   : > { %1065 = vmatpush.msrb.mxu0 %v1047_v8 }
 0x3a1   : > { %1844 = vmatmul.msk.f32.vlgmr.msrb.gmra.mxu0 %vm795_vm2, %v2549_v55 }
 0x3a2   : > { %1152 = vmatpush.msra.mxu0 %v2617_v9 }
 0x3a4   : > { %1153 = vmatpush.msra.mxu0 %v2619_v10 }
 0x3a6   : > { %1154 = vmatpush.msra.mxu0 %v2622_v11 }
 0x3a8   : > { %1155 = vmatpush.msra.mxu0 %v2631_v21 }
 0x3aa   : > { %1200 = vmatpush.msrb.mxu0 %v1188_v23 }
 0x3ac   : > { %1201 = vmatpush.msrb.mxu0 %v1187_v24  ;;  %v1351_v24 = vld [vmem:[#allocation10 + $0x1f8] sm:$0xff] }
 0x3ae   : > { %1202 = vmatpush.msrb.mxu0 %v1186_v42  ;;  %v1350_v42 = vld [vmem:[#allocation10 + $0x1f0] sm:$0xff] }
 0x3b0   : > { %1203 = vmatpush.msrb.mxu0 %v1185_v45  ;;  %v1377_v45 = vld [vmem:[#allocation10 + $0x220] sm:$0xff] }
 0x3b2   : > { %1204 = vmatpush.msrb.mxu0 %v1184_v48 }
 0x3b4   : > { %1205 = vmatpush.msrb.mxu0 %v1183_v52  ;;  %v1345_v52 = vld [vmem:[#allocation10 + $0x1c8] sm:$0xff] }
 0x3b6   : > { %1206 = vmatpush.msrb.mxu0 %v1182_v59  ;;  %v1375_v59 = vld [vmem:[#allocation10 + $0x210] sm:$0xff] }
 0x3b8   : > { %1207 = vmatpush.msrb.mxu0 %v1181_v51  ;;  %v1341_v51 = vld [vmem:[#allocation10 + $0x1a8] sm:$0xff] }
 0x41e   : > { %v1067_v15 = vpop.f32.mrf.mxu0 }
 0x41f   : > { %v1070_v16 = vadd.f32 %v1067_v15, %v1011_v13  ;;  %v1388_v13 = vld [vmem:[#allocation10 + $0x278] sm:$0xff]  ;;  %v1386_v15 = vld [vmem:[#allocation10 + $0x268] sm:$0xff] }
 0x420   : > { %1389 = vmatpush.msra.mxu3 %v1388_v13  ;;  %v1458_v13 = vld [vmem:[#allocation10 + $0x2c0] sm:$0xff] }
 0x421   : > { %v1075_v17 = vadd.f32 %v1977_v14, %v1070_v16  ;;  %v1387_v14 = vld [vmem:[#allocation10 + $0x270] sm:$0xff]  ;;  %v1385_v16 = vld [vmem:[#allocation10 + $0x260] sm:$0xff] }
 0x422   : > { %1390 = vmatpush.msra.mxu3 %v1387_v14  ;;  %v1457_v14 = vld [vmem:[#allocation10 + $0x2b8] sm:$0xff] }
 0x423   : > { %1110 = vrot.lane.b32.xlu0 %v1075_v17, %s2331_s29  ;;  %1979 = vtanh.f32 %v1075_v17  ;;  %v1384_v17 = vld [vmem:[#allocation10 + $0x258] sm:$0xff] }
 0x424   : > { %1391 = vmatpush.msra.mxu3 %v1386_v15  ;;  %v1456_v15 = vld [vmem:[#allocation10 + $0x2b0] sm:$0xff] }
 0x426   : > { %1392 = vmatpush.msra.mxu3 %v1385_v16  ;;  %v1454_v16 = vld [vmem:[#allocation10 + $0x2a0] sm:$0xff] }
 0x428   : > { %1393 = vmatpush.msra.mxu3 %v1384_v17  ;;  %v1452_v17 = vld [vmem:[#allocation10 + $0x290] sm:$0xff] }
 0x429   : > { %v1980_v18 = vpop.eup %1979 }
 0x42a   : > { %v1077_v19 = vmul.f32 1.9, %v1980_v18  ;;  %v1383_v18 = vld [vmem:[#allocation10 + $0x250] sm:$0xff] }
 0x42b   : > { %1394 = vmatpush.msra.mxu3 %v1383_v18  ;;  %v1451_v18 = vld [vmem:[#allocation10 + $0x288] sm:$0xff] }
 0x42c   : > { %v1115_v20 = vsel %vm1114_vm3, %v1077_v19, 0.0  ;;  %v1106_v22 = vmul.f32 1.442695, %v1077_v19  ;;  %v1382_v19 = vld [vmem:[#allocation10 + $0x248] sm:$0xff] }
 0x42d   : > { %1116 = vadd.xlane.f32.xlu1 %v1115_v20  ;;  %v1381_v20 = vld [vmem:[#allocation10 + $0x240] sm:$0xff]  ;;  %1395 = vmatpush.msra.mxu3 %v1382_v19 }
 0x42e   : > { %1981 = vpow2.f32 %v1106_v22  ;;  %v1380_v22 = vld [vmem:[#allocation10 + $0x238] sm:$0xff]  ;;  %v1450_v19 = vld [vmem:[#allocation10 + $0x280] sm:$0xff] }
 0x42f   : > { %1396 = vmatpush.msra.mxu3 %v1381_v20 }
 0x431   : > { %1397 = vmatpush.msra.mxu3 %v1380_v22 }
 0x433   : > { %1398 = vmatpush.msra.mxu3 %v1379_v25 }
 0x434   : > { %v1982_v47 = vpop.eup %1981 }
 0x435   : > { %v1108_v54 = vmul.f32 %v1982_v47, %v1103_v50  ;;  %1399 = vmatpush.msra.mxu3 %v1378_v43  ;;  %v1348_v47 = vld [vmem:[#allocation10 + $0x1e0] sm:$0xff]  ;;  %v1346_v50 = vld [vmem:[#allocation10 + $0x1d0] sm:$0xff] }
 0x437   : > { %1400 = vmatpush.msra.mxu3 %v1377_v45 }
 0x495   : > { %v1111_v57 = vpop.permute.xlu0 %1110 }
 0x496   : > { %v1113_v58 = vadd.f32 %v1111_v57, %v1108_v54  ;;  %v1344_v54 = vld [vmem:[#allocation10 + $0x1c0] sm:$0xff]  ;;  %v1376_v57 = vld [vmem:[#allocation10 + $0x218] sm:$0xff] }
 0x497   : > { %1401 = vmatpush.msra.mxu3 %v1376_v57 }
 0x498   : > { %1846 = vmatmul.msk.f32.vlgmr.msra.gmra.mxu0 %vm1114_vm3, %v1113_v58  ;;  %v1342_v58 = vld [vmem:[#allocation10 + $0x1b0] sm:$0xff] }
 0x499   : > { %1298 = vmatpush.msra.mxu0 %v1289_v60  ;;  %v1374_v60 = vld [vmem:[#allocation10 + $0x208] sm:$0xff]  ;;  %1402 = vmatpush.msra.mxu3 %v1375_v59 }
 0x49b   : > { %1299 = vmatpush.msra.mxu0 %v1288_v61  ;;  %v1340_v61 = vld [vmem:[#allocation10 + $0x1a0] sm:$0xff]  ;;  %1403 = vmatpush.msra.mxu3 %v1374_v60 }
 0x49d   : > { %1300 = vmatpush.msra.mxu0 %v1287_v0  ;;  %1404 = vmatpush.msra.mxu3 %v1373_v62  ;;  %v1339_v0 = vld [vmem:[#allocation10 + $0x198] sm:$0xff] }
 0x49f   : > { %1301 = vmatpush.msra.mxu0 %v1286_v2  ;;  %v1337_v2 = vld [vmem:[#allocation10 + $0x188] sm:$0xff] }
 0x4a0   : > { %v1117_v45 = vpop.xlane.xlu1 %1116 }
 0x4a1   : > { %1302 = vmatpush.msra.mxu0 %v1285_v3  ;;  %v1336_v3 = vld [vmem:[#allocation10 + $0x180] sm:$0xff] }
 0x4a3   : > { %1303 = vmatpush.msra.mxu0 %v1284_v4  ;;  %v1332_v4 = vld [vmem:[#allocation9 + $0x8] sm:$0xff] }
 0x4a5   : > { %1304 = vmatpush.msra.mxu0 %v1283_v5 }
 0x4a7   : > { %1305 = vmatpush.msra.mxu0 %v1282_v6  ;;  %v1461_v6 = vld [vmem:[#allocation10 + $0x2d8] sm:$0xff] }
 0x515   : > { %v1157_v8 = vpop.f32.mrf.mxu0 }
 0x516   : > { %v2635_v12 = vadd.f32 %v1177_v7, %v1157_v8  ;;  %v1460_v7 = vld [vmem:[#allocation10 + $0x2d0] sm:$0xff]  ;;  %v1459_v8 = vld [vmem:[#allocation10 + $0x2c8] sm:$0xff] }
 0x518   : > { %1848 = vmatmul.msk.f32.vlgmr.msrb.gmra.mxu0 %vm739_vm1, %v2635_v12  ;;  %1849 = vmatmul.msk.f32.vlgmr.msrb.gmra.mxu3 %vm739_vm1, %v2635_v12 }
 0x519   : > { %1584 = vmatpush.msrb.mxu3 %v2561_v27 }
 0x51b   : > { %1585 = vmatpush.msrb.mxu3 %v2567_v29 }
 0x51d   : > { %1586 = vmatpush.msrb.mxu3 %v2573_v31 }
 0x51f   : > { %1587 = vmatpush.msrb.mxu3 %v2579_v33 }
 0x520   : > { %1852 = vmatmul.msk.f32.vlgmr.msra.gmra.mxu0 %vm739_vm1, %v2635_v12 }
 0x521   : > { %1588 = vmatpush.msrb.mxu3 %v2585_v35 }
 0x523   : > { %1589 = vmatpush.msrb.mxu3 %v2589_v37  ;;  %v1465_v37 = vld [vmem:[#allocation10 + $0x2f8] sm:$0xff] }
 0x525   : > { %1590 = vmatpush.msrb.mxu3 %v2595_v39 }
 0x527   : > { %1591 = vmatpush.msrb.mxu3 %v2601_v41  ;;  %v1463_v41 = vld [vmem:[#allocation10 + $0x2e8] sm:$0xff] }
 0x595   : > { %v1209_v23 = vpop.f32.mrf.mxu0 }
 0x596   : > { %1276 = vmatpush.msra.mxu2 %v1209_v23 }
 0x597   : > { %1851 = vmatmul.msk.f32.vlgmr.msra.gmra.mxu2 %vm795_vm2, %v2555_v63 }
 0x598   : > { %1352 = vmatpush.msrb.mxu2 %v1351_v24  ;;  %v1602_v24 = vld [vmem:[#allocation16 + $0x30] sm:$0xff] }
 0x59a   : > { %1353 = vmatpush.msrb.mxu2 %v1350_v42  ;;  %v1601_v42 = vld [vmem:[#allocation16 + $0x28] sm:$0xff] }
 0x59b   : > { %v1238_v46 = vpop.f32.mrf.mxu3 }
 0x59c   : > { %1256 = vmatpush.msrb.mxu1 %v1238_v46  ;;  %1354 = vmatpush.msrb.mxu2 %v1349_v44  ;;  %v1600_v44 = vld [vmem:[#allocation16 + $0x20] sm:$0xff] }
 0x59d   : > { %1850 = vmatmul.msk.f32.vlgmr.msrb.gmra.mxu1 %vm795_vm2, %v2547_v53  ;;  %v1307_v48 = vpop.f32.mrf.mxu0 }
 0x59e   : > { %1325 = vmatpush.msra.mxu1 %v1307_v48  ;;  %1355 = vmatpush.msrb.mxu2 %v1348_v47 }
 0x5a0   : > { %1356 = vmatpush.msrb.mxu2 %v1347_v49  ;;  %v1599_v49 = vld [vmem:[#allocation16 + $0x18] sm:$0xff] }
 0x5a2   : > { %1357 = vmatpush.msrb.mxu2 %v1346_v50  ;;  %v1118_v50 = vrot.slane %v1117_v45, 4 }
 0x5a4   : > { %1358 = vmatpush.msrb.mxu2 %v1345_v52  ;;  %v1598_v52 = vld [vmem:[#allocation16 + $0x10] sm:$0xff] }
 0x5a5   : > { %1853 = vmatmul.msk.f32.vlgmr.msra.gmra.mxu1 %vm795_vm2, %v2549_v55 }
 0x5a6   : > { %1359 = vmatpush.msrb.mxu2 %v1344_v54  ;;  %v1119_v54 = vadd.f32 %v1118_v50, %v1117_v45 }
 0x5a8   : > { %1360 = vmatpush.msrb.mxu2 %v1343_v56  ;;  %v1120_v56 = vrot.slane %v1119_v54, 2 }
 0x5aa   : > { %1361 = vmatpush.msrb.mxu2 %v1342_v58  ;;  %v1121_v59 = vadd.f32 %v1120_v56, %v1119_v54 }
 0x5ac   : > { %1362 = vmatpush.msrb.mxu2 %v1341_v51 }
 0x5ae   : > { %1363 = vmatpush.msrb.mxu2 %v1340_v61  ;;  %v1122_v61 = vrot.slane %v1121_v59, 1 }
 0x5b0   : > { %1364 = vmatpush.msrb.mxu2 %v1339_v0 }
 0x5b2   : > { %1365 = vmatpush.msrb.mxu2 %v1338_v1  ;;  %v1123_v1 = vadd.f32 %v1122_v61, %v1121_v59 }
 0x5b4   : > { %1366 = vmatpush.msrb.mxu2 %v1337_v2 }
 0x5b6   : > { %1367 = vmatpush.msrb.mxu2 %v1336_v3 }
 0x5b8   : > { %1568 = vmatpush.msra.mxu2 %v2617_v9 }
 0x5ba   : > { %1569 = vmatpush.msra.mxu2 %v2619_v10 }
 0x5bc   : > { %1570 = vmatpush.msra.mxu2 %v2622_v11  ;;  %v1464_v11 = vld [vmem:[#allocation10 + $0x2f0] sm:$0xff] }
 0x5be   : > { %1571 = vmatpush.msra.mxu2 %v2631_v21  ;;  %v1462_v21 = vld [vmem:[#allocation10 + $0x2e0] sm:$0xff] }
 0x61a   : > { %v1258_v27 = vpop.f32.mrf.mxu1  ;;  %v1278_v29 = vpop.f32.mrf.mxu2 }
 0x61b   : > { %v1279_v31 = vadd.f32 %v1278_v29, %v1258_v27  ;;  %v1597_v27 = vld [vmem:[#allocation16 + $0x8] sm:$0xff]  ;;  %v1596_v29 = vld [vmem:[#allocation16] sm:$0xff] }
 0x622   : > { %v1327_v33 = vpop.f32.mrf.mxu1 }
 0x623   : > { %v1330_v9 = vadd.f32 %v1327_v33, %v1279_v31 }
 0x625   : > { %v1333_v5 = vadd.f32 %v1332_v4, %v1330_v9 }
 0x627   : > { %v1334_v35 = vmax.f32 %v1333_v5, 0.0 }
 0x629   : > { %1368 = vmatmul.f32.vlgmr.msrb.gmra.mxu2 %v1334_v35  ;;  %1405 = vmatmul.f32.vlgmr.msra.gmra.mxu3 %v1334_v35 }
 0x631   : > { %1860 = vmatmul.msk.f32.vlgmr.msrb.gmra.mxu3 %vm739_vm1, %v2635_v12 }
 0x6ac   : > { %v1369_v10 = vpop.f32.mrf.mxu2  ;;  %v1406_v39 = vpop.f32.mrf.mxu3 }
 0x6ad   : > { %1424 = vmatpush.msrb.mxu1 %v1406_v39  ;;  %1444 = vmatpush.msrb.mxu0 %v1369_v10 }
 0x6ae   : > { %1855 = vmatmul.msk.f32.vlgmr.msrb.gmra.mxu0 %vm795_vm2, %v2555_v63  ;;  %1854 = vmatmul.msk.f32.vlgmr.msrb.gmra.mxu1 %vm795_vm2, %v2547_v53  ;;  %v1455_v63 = vld [vmem:[#allocation10 + $0x2a8] sm:$0xff]  ;;  %v1453_v53 = vld [vmem:[#allocation10 + $0x298] sm:$0xff] }
 0x6af   : > { %1466 = vmatpush.msra.mxu1 %v1465_v37 }
 0x6b1   : > { %1467 = vmatpush.msra.mxu1 %v1464_v11 }
 0x6b3   : > { %1468 = vmatpush.msra.mxu1 %v1463_v41 }
 0x6b4   : > { %v1593_v31 = vpop.f32.mrf.mxu3 }
 0x6b5   : > { %1469 = vmatpush.msra.mxu1 %v1462_v21 }
 0x6b7   : > { %1470 = vmatpush.msra.mxu1 %v1461_v6 }
 0x6b9   : > { %1471 = vmatpush.msra.mxu1 %v1460_v7 }
 0x6bb   : > { %1472 = vmatpush.msra.mxu1 %v1459_v8 }
 0x6bd   : > { %1473 = vmatpush.msra.mxu1 %v1458_v13 }
 0x6bf   : > { %1474 = vmatpush.msra.mxu1 %v1457_v14 }
 0x6c1   : > { %1475 = vmatpush.msra.mxu1 %v1456_v15 }
 0x6c3   : > { %1476 = vmatpush.msra.mxu1 %v1455_v63 }
 0x6c5   : > { %1477 = vmatpush.msra.mxu1 %v1454_v16 }
 0x6c7   : > { %1478 = vmatpush.msra.mxu1 %v1453_v53 }
 0x6c9   : > { %1479 = vmatpush.msra.mxu1 %v1452_v17 }
 0x6cb   : > { %1480 = vmatpush.msra.mxu1 %v1451_v18 }
 0x6cd   : > { %1481 = vmatpush.msra.mxu1 %v1450_v19 }
 0x6ce   : > { %1482 = vmatmul.f32.vlgmr.msra.gmra.mxu1 %v1334_v35 }
 0x72b   : > { %v1426_v20 = vpop.f32.mrf.mxu1 }
 0x74b   : > { %v1483_v22 = vpop.f32.mrf.mxu1 }
 0x74c   : > { %1501 = vmatpush.msra.mxu0 %v1483_v22 }
 0x74d   : > { %1856 = vmatmul.msk.f32.vlgmr.msra.gmra.mxu0 %vm795_vm2, %v2549_v55  ;;  %v1446_v55 = vpop.f32.mrf.mxu0 }
 0x74e   : > { %1523 = vmatpush.msrb.mxu0 %v2559_v26  ;;  %v1447_v23 = vadd.f32 %v1446_v55, %v1426_v20  ;;  %v1978_v26 = vld [vmem:[%s2705_s7 + $0x1] ss:$0 sm:$0xff] }
 0x750   : > { %1524 = vmatpush.msrb.mxu0 %v2565_v28 }
 0x752   : > { %1525 = vmatpush.msrb.mxu0 %v2571_v30 }
 0x754   : > { %1526 = vmatpush.msrb.mxu0 %v2577_v32 }
 0x756   : > { %1527 = vmatpush.msrb.mxu0 %v2583_v34 }
 0x758   : > { %1528 = vmatpush.msrb.mxu0 %v2587_v36 }
 0x75a   : > { %1529 = vmatpush.msrb.mxu0 %v2593_v38 }
 0x75c   : > { %1530 = vmatpush.msrb.mxu0 %v2599_v40 }
 0x75d   : > { %1858 = vmatmul.msk.f32.vlgmr.msrb.gmra.mxu0 %vm739_vm1, %v2635_v12  ;;  %v1603_v12 = vld [vmem:[#allocation16 + $0x38] sm:$0xff] }
 0x75e   : > { %1615 = vmatpush.msrb.mxu2 %v1603_v12 }
 0x760   : > { %1616 = vmatpush.msrb.mxu2 %v1602_v24 }
 0x762   : > { %1617 = vmatpush.msrb.mxu2 %v1601_v42 }
 0x764   : > { %1618 = vmatpush.msrb.mxu2 %v1600_v44 }
 0x766   : > { %1619 = vmatpush.msrb.mxu2 %v1599_v49 }
 0x768   : > { %1620 = vmatpush.msrb.mxu2 %v1598_v52 }
 0x76a   : > { %1621 = vmatpush.msrb.mxu2 %v1597_v27 }
 0x76c   : > { %1622 = vmatpush.msrb.mxu2 %v1596_v29 }
 0x7ca   : > { %v1503_v28 = vpop.f32.mrf.mxu0 }
 0x7cb   : > { %v1506_v30 = vadd.f32 %v1503_v28, %v1447_v23 }
 0x7cd   : > { %v1512_v32 = vadd.f32 %v1978_v26, %v1506_v30 }
 0x7cf   : > { %1983 = vtanh.f32 %v1512_v32  ;;  %1539 = vrot.lane.b32.xlu0 %v1512_v32, %s2331_s29 }
 0x7d5   : > { %v1984_v34 = vpop.eup %1983 }
 0x7d6   : > { %v1514_v36 = vmul.f32 1.9, %v1984_v34 }
 0x7d8   : > { %v1543_v38 = vsel %vm1114_vm3, %v1514_v36, 0.0  ;;  %v1535_v40 = vmul.f32 1.442695, %v1514_v36 }
 0x7d9   : > { %1544 = vadd.xlane.f32.xlu1 %v1543_v38 }
 0x7da   : > { %1985 = vpow2.f32 %v1535_v40  ;;  %v1532_v43 = vpop.f32.mrf.mxu0 }
 0x7e0   : > { %v1986_v25 = vpop.eup %1985 }
 0x7e1   : > { %v1537_v46 = vmul.f32 %v1986_v25, %v1532_v43 }
 0x841   : > { %v1540_v47 = vpop.permute.xlu0 %1539 }
 0x842   : > { %v1542_v48 = vadd.f32 %v1540_v47, %v1537_v46 }
 0x844   : > { %1859 = vmatmul.msk.f32.vlgmr.msra.gmra.mxu2 %vm1114_vm3, %v1542_v48 }
 0x84c   : > { %v1545_v57 = vpop.xlane.xlu1 %1544 }
 0x84d   : > { %v1546_v58 = vrot.slane %v1545_v57, 4 }
 0x84f   : > { %v1547_v51 = vadd.f32 %v1546_v58, %v1545_v57 }
 0x851   : > { %v1548_v60 = vrot.slane %v1547_v51, 2 }
 0x853   : > { %v1549_v62 = vadd.f32 %v1548_v60, %v1547_v51 }
 0x855   : > { %v1550_v0 = vrot.slane %v1549_v62, 1 }
 0x857   : > { %v1551_v2 = vadd.f32 %v1550_v0, %v1549_v62 }
 0x859   : > { %v1552_v3 = vadd.f32 %v1551_v2, %v1123_v1 }
 0x85b   : > { %1628 = vst [vmem:[%s613_s14] sm:$0x1] %v1552_v3 }
 0x8c7   : > { %v1573_v33 = vpop.f32.mrf.mxu2 }
 0x8c8   : > { %v1594_v4 = vadd.f32 %v1593_v31, %v1573_v33 }
 0x8ca   : > { %1861 = vmatmul.msk.f32.vlgmr.msrb.gmra.mxu2 %vm739_vm1, %v1594_v4 }
 0x94d   : > { %v1624_v9 = vpop.f32.mrf.mxu2 }
 0x94e   : > { %1627 = vst.msk [vmem:[%s610_s17] sm:$0xff] %vm739_vm1, %v1624_v9 }
 0x94f PF: > { %s30_s25 = sadd.s32 1, %s2317_s25  }
 0x950   : > { %p27_p7 = scmp.ge.s32.totalorder %s30_s25, 4  }
 0x952   :  { %29 = sbr.rel (!%p27_p7) target bundleno = 8 (0x8), region = 167 }
 0x957   :  { %1660 = vsyncpa [#allocation3], 1 }
 0x958   :  { %1662 = vsyncpa [#allocation3 + $0x1], 1 }
 0x959   :  { %1663 = vsyncpa [#allocation5], 1 }
 0x95a   :  { %1664 = vsyncpa [#allocation8], 1 }
 0x95b   :  { %1665 = vsyncpa [#allocation11], 1 }
 0x95c   :  { %1666 = vsyncpa [#allocation14], 1 }
 0x95d   :  { %1667 = vsyncpa [#allocation17], 1 }

// kernel: msflow_forward.4
= control target key start
LH: loop header
LB: loop body
LE: loop exit
PB: predicated region body
PF: predicated region fallthrough
CT: control target
= control target key end

     0   :  { %s4032_s0 = inlined_call_operand.vmem [shape: f32[2,64,192], index: 0, kind: input, shape index: {}]   ;;  %s4033_s1 = inlined_call_operand.vmem [shape: f32[3,192,256], index: 1, kind: input, shape index: {}]   ;;  %s4034_s2 = inlined_call_operand.vmem [shape: f32[3,32,64], index: 2, kind: input, shape index: {}]   ;;  %s4035_s3 = inlined_call_operand.vmem [shape: f32[1,256], index: 3, kind: input, shape index: {}]   ;;  %s4036_s4 = inlined_call_operand.hbm [shape: f32[3,256,128], index: 4, kind: input, shape index: {}]   ;;  %s4037_s5 = inlined_call_operand.hbm [shape: f32[3,16,32], index: 5, kind: input, shape index: {}]   ;;  %s4038_s6 = inlined_call_operand.vmem [shape: f32[1,128], index: 6, kind: input, shape index: {}, may-alias: {6,9,12}]   ;;  %s4039_s7 = inlined_call_operand.hbm [shape: f32[3,128,128], index: 7, kind: input, shape index: {}]   ;;  %s4040_s8 = inlined_call_operand.hbm [shape: f32[3,8,16], index: 8, kind: input, shape index: {}]   ;;  %s4041_s9 = inlined_call_operand.vmem [shape: f32[1,128], index: 9, kind: input, shape index: {}, may-alias: {6,9,12}]   ;;  %s4042_s10 = inlined_call_operand.hbm [shape: f32[3,128,128], index: 10, kind: input, shape index: {}]   ;;  %s4043_s11 = inlined_call_operand.hbm [shape: f32[3,4,8], index: 11, kind: input, shape index: {}]   ;;  %s4044_s12 = inlined_call_operand.vmem [shape: f32[1,128], index: 12, kind: input, shape index: {}, may-alias: {6,9,12}]   ;;  %s4045_s13 = inlined_call_operand.vmem [shape: f32[2,16,128], index: 13, kind: output, shape index: {0}]   ;;  %s4046_s14 = inlined_call_operand.vmem [shape: f32[2,8,128], index: 14, kind: output, shape index: {1}]   ;;  %s4047_s15 = inlined_call_operand.vmem [shape: f32[2,4,128], index: 15, kind: output, shape index: {2}]  }
   0x1   :  { %4049 = sst [smem:[#allocation17_spill]] %s4036_s4 }
   0x2   :  { %4050 = sst [smem:[#allocation18_spill]] %s4037_s5 }
   0x3   :  { %4051 = sst [smem:[#allocation19_spill]] %s4040_s8 }
   0x4   :  { %4052 = sst [smem:[#allocation20_spill]] %s4047_s15 }
   0x5   :  { %21 = vsyncpa [#allocation3], 0 }
   0x6   :  { %22 = vsyncpa [#allocation5], 0 }
   0x7   :  { %23 = vsyncpa [#allocation8], 0 }
   0x8   :  { %24 = vsyncpa [#allocation11], 0  ;;  %s3086_s18 = smov 0  }
   0x9 LB: > { %4053 = sst [smem:[#allocation16_spill]] %s2994_s18  ;;  %s3092_s19 = sadd.s32 4294967295, %s2994_s18   ;;  %s2994_s18 = sphi %s3086_s18, %s30_s18  }
   0xa   : > { %p2503_p0 = scmp.ge.s32.totalorder %s2994_s18, 1  ;;  %p391_p1 = scmp.lt.s32.totalorder %s2994_s18, 3 }
   0xb   : > { %p2759_p2 = scmp.eq.s32.totalorder %s3092_s19, 0  ;;  %s4054_s5 = sld [smem:[#allocation18_spill]] }
   0xc   : > { %p3100_p3 = pnand %p2503_p0, %p391_p1  ;;  %s4056_s8 = sld [smem:[#allocation19_spill]] }
   0xd   : > { %s2996_s27 = smov [#allocation4]   ;;  %s2997_s30 = smov [#allocation7]  }
   0xe   : > { %p2740_p4 = pneg %p3100_p3  ;;  %s427_s28 = sshll.u32 %s2996_s27, 4  ;;  %s428_s28 = int_to_ptr.vmem [resolvable:$true] %s427_s28 }
   0xf   : > { %s458_s16 = sshll.u32 %s2997_s30, 4  ;;  %s4058_s4 = sld [smem:[#allocation17_spill]]  ;;  %s459_s16 = int_to_ptr.vmem [resolvable:$true] %s458_s16 }
  0x10   : > { %p3111_p5 = pnand %p2759_p2, %p2740_p4  ;;  %s2998_s24 = smov 128  }
  0x11   : > { %s425_s22 = sshll.u32 %s4054_s5, 4  ;;  %s2999_s25 = smov 8   ;;  %s426_s22 = int_to_ptr.hbm [resolvable:$true] %s425_s22 }
  0x12   : > { %s456_s26 = sshll.u32 %s4056_s8, 4  ;;  %s3000_s27 = smov [#allocation2]   ;;  %s457_s26 = int_to_ptr.hbm [resolvable:$true] %s456_s26 }
  0x13   : > { %2746 = dma.hbm_to_vmem [thread:$0]  (!%p3111_p5), %s426_s22, 768, %s428_s28, [#allocation5], %s2998_s24, %s2998_s24, %s2999_s25  }
  0x14   : > { %2752 = dma.hbm_to_vmem [thread:$0]  (!%p3111_p5), %s457_s26, 384, %s459_s16, [#allocation8], %s2998_s24, %s2998_s24, %s2999_s25  }
  0x15   : > { %s411_s21 = sshll.u32 %s4058_s4, 4  ;;  %s413_s5 = sshll.u32 %s3000_s27, 4  ;;  %s412_s21 = int_to_ptr.hbm [resolvable:$true] %s411_s21  ;;  %s414_s5 = int_to_ptr.vmem [resolvable:$true] %s413_s5 }
  0x16   : > { %s442_s30 = sshll.u32 %s4039_s7, 4  ;;  %s473_s4 = sshll.u32 %s4042_s10, 4  ;;  %s443_s30 = int_to_ptr.hbm [resolvable:$true] %s442_s30  ;;  %s474_s4 = int_to_ptr.hbm [resolvable:$true] %s473_s4 }
  0x17   : > { %2743 = dma.hbm_to_vmem [thread:$0]  (!%p3111_p5), %s412_s21, 12288, %s414_s5, [#allocation3], %s2998_s24, %s2998_s24, %s2999_s25  }
  0x18   : > { %s3001_s15 = smov [#allocation6]   ;;  %s3002_s26 = smov [#allocation9]  }
  0x19   : > { %s444_s22 = sshll.u32 %s3001_s15, 4  ;;  %s475_s28 = sshll.u32 %s3002_s26, 4  ;;  %s445_s22 = int_to_ptr.vmem [resolvable:$true] %s444_s22  ;;  %s476_s28 = int_to_ptr.vmem [resolvable:$true] %s475_s28 }
  0x1a   : > { %2749 = dma.hbm_to_vmem [thread:$0]  (!%p3111_p5), %s443_s30, 6144, %s445_s22, [#allocation5], %s2998_s24, %s2998_s24, %s2999_s25  }
  0x1b   : > { %s487_s16 = sshll.u32 %s4043_s11, 4  ;;  %s3003_s5 = smov [#allocation10]   ;;  %s488_s16 = int_to_ptr.hbm [resolvable:$true] %s487_s16 }
  0x1c   : > { %2755 = dma.hbm_to_vmem [thread:$0]  (!%p3111_p5), %s474_s4, 6144, %s476_s28, [#allocation8], %s2998_s24, %s2998_s24, %s2999_s25  }
  0x1d   : > { %s489_s21 = sshll.u32 %s3003_s5, 4  ;;  %s3004_s27 = smov 64   ;;  %s490_s21 = int_to_ptr.vmem [resolvable:$true] %s489_s21 }
  0x1e   : > { %s3005_s17 = smov 4   ;;  %516 = sbr.rel (%p3100_p3) target bundleno = 1750 (0x6d6), region = 72 }
  0x1f   : > { %2758 = dma.hbm_to_vmem [thread:$0]  (!%p3111_p5), %s488_s16, 192, %s490_s21, [#allocation11], %s3004_s27, %s3004_s27, %s3005_s17  }
  0x23   : > { %2977 = dma.done.wait (%p2759_p2), [#allocation3], 12288  }
  0x24   : > { %2979 = vsyncadd (%p2759_p2), [#allocation3], 4294955008 }
  0x25   : > { %2981 = dma.done.wait (%p2759_p2), [#allocation5], 6912  }
  0x26   : > { %2983 = vsyncadd (%p2759_p2), [#allocation5], 4294960384 }
  0x27   : > { %2985 = dma.done.wait (%p2759_p2), [#allocation8], 6528  }
  0x28   : > { %2987 = vsyncadd (%p2759_p2), [#allocation8], 4294960768 }
  0x29   : > { %2989 = dma.done.wait (%p2759_p2), [#allocation11], 192  }
  0x2a   : > { %2991 = vsyncadd (%p2759_p2), [#allocation11], 4294967104  ;;  %v662_v0 = vld [vmem:[%s4033_s1 + $0xf0] sm:$0xff]  ;;  %v663_v1 = vld [vmem:[%s4033_s1 + $0xf8] sm:$0xff]  ;;  %p598_p6 = scmp.lt.s32.totalorder %s3092_s19, 1  ;;  %vm680_vm0 = vcmask 523264  }
  0x2b   : > { %v679_v2 = vld [vmem:[%s4033_s1 + $0x178] sm:$0xff]  ;;  %705 = vmatpush.msra.mxu0 %v662_v0  ;;  %787 = vmatpush.msra.mxu2 %v663_v1  ;;  %v660_v3 = vld [vmem:[%s4033_s1 + $0xe0] sm:$0xff]  ;;  %v661_v4 = vld [vmem:[%s4033_s1 + $0xe8] sm:$0xff]  ;;  %vm1735_vm1 = vcmask 261120   ;;  %vm2009_vm2 = vcmask 130048   ;;  %vm2204_vm3 = vcmask 64512  }
  0x2c   : > { %v677_v5 = vld [vmem:[%s4033_s1 + $0x168] sm:$0xff]  ;;  %836 = vmatpush.msra.mxu3 %v679_v2  ;;  %v658_v6 = vld [vmem:[%s4033_s1 + $0xd0] sm:$0xff]  ;;  %v659_v7 = vld [vmem:[%s4033_s1 + $0xd8] sm:$0xff]  ;;  %s4062_s19 = smov (!%p598_p6, %s3092_s19), 1  ;;  %s4059_s4 = sld [smem:[#allocation20_spill]] }
  0x2d   : > { %706 = vmatpush.msra.mxu0 %v660_v3  ;;  %788 = vmatpush.msra.mxu2 %v661_v4  ;;  %v675_v8 = vld [vmem:[%s4033_s1 + $0x158] sm:$0xff]  ;;  %v678_v9 = vld [vmem:[%s4033_s1 + $0x170] sm:$0xff]  ;;  %v656_v10 = vld [vmem:[%s4033_s1 + $0xc0] sm:$0xff]  ;;  %s2714_s30 = sshll.u32 %s4062_s19, 7  ;;  %s2715_s24 = sshll.u32 %s4062_s19, 4 }
  0x2e   : > { %837 = vmatpush.msra.mxu3 %v677_v5  ;;  %754 = vmatpush.msra.mxu1 %v678_v9  ;;  %v657_v11 = vld [vmem:[%s4033_s1 + $0xc8] sm:$0xff]  ;;  %v676_v12 = vld [vmem:[%s4033_s1 + $0x160] sm:$0xff]  ;;  %v654_v14 = vld [vmem:[%s4033_s1 + $0xb0] sm:$0xff]  ;;  %s3245_s15 = scalar_lea.vmem %s4032_s0, %s2714_s30  ;;  %s607_s20 = scalar_lea.vmem %s4045_s13, %s2715_s24 }
  0x2f   : > { %707 = vmatpush.msra.mxu0 %v658_v6  ;;  %789 = vmatpush.msra.mxu2 %v659_v7  ;;  %v673_v13 = vld [vmem:[%s4033_s1 + $0x148] sm:$0xff]  ;;  %v655_v15 = vld [vmem:[%s4033_s1 + $0xb8] sm:$0xff]  ;;  %v674_v16 = vld [vmem:[%s4033_s1 + $0x150] sm:$0xff]  ;;  %s2522_s30 = sshll.u32 %s4062_s19, 3  ;;  %s2523_s21 = sshll.u32 %s4062_s19, 2 }
  0x30   : > { %838 = vmatpush.msra.mxu3 %v675_v8  ;;  %755 = vmatpush.msra.mxu1 %v676_v12  ;;  %v671_v17 = vld [vmem:[%s4033_s1 + $0x138] sm:$0xff]  ;;  %v672_v18 = vld [vmem:[%s4033_s1 + $0x140] sm:$0xff]  ;;  %v653_v20 = vld [vmem:[%s4033_s1 + $0xa8] sm:$0xff]  ;;  %s611_s18 = scalar_lea.vmem %s4046_s14, %s2522_s30 }
  0x31   : > { %708 = vmatpush.msra.mxu0 %v656_v10  ;;  %790 = vmatpush.msra.mxu2 %v657_v11  ;;  %v652_v19 = vld [vmem:[%s4033_s1 + $0xa0] sm:$0xff]  ;;  %v669_v21 = vld [vmem:[%s4033_s1 + $0x128] sm:$0xff]  ;;  %v670_v22 = vld [vmem:[%s4033_s1 + $0x130] sm:$0xff] }
  0x32   : > { %839 = vmatpush.msra.mxu3 %v673_v13  ;;  %756 = vmatpush.msra.mxu1 %v674_v16  ;;  %v650_v23 = vld [vmem:[%s4033_s1 + $0x90] sm:$0xff]  ;;  %v651_v24 = vld [vmem:[%s4033_s1 + $0x98] sm:$0xff]  ;;  %v668_v26 = vld [vmem:[%s4033_s1 + $0x120] sm:$0xff]  ;;  %s615_s23 = scalar_lea.vmem %s4059_s4, %s2523_s21 }
  0x33   : > { %709 = vmatpush.msra.mxu0 %v654_v14  ;;  %791 = vmatpush.msra.mxu2 %v655_v15  ;;  %v667_v25 = vld [vmem:[%s4033_s1 + $0x118] sm:$0xff]  ;;  %v648_v27 = vld [vmem:[%s4033_s1 + $0x80] sm:$0xff]  ;;  %v649_v28 = vld [vmem:[%s4033_s1 + $0x88] sm:$0xff] }
  0x34   : > { %840 = vmatpush.msra.mxu3 %v671_v17  ;;  %757 = vmatpush.msra.mxu1 %v672_v18  ;;  %v665_v29 = vld [vmem:[%s4033_s1 + $0x108] sm:$0xff]  ;;  %v666_v30 = vld [vmem:[%s4033_s1 + $0x110] sm:$0xff]  ;;  %v647_v33 = vld [vmem:[%s4033_s1 + $0x78] sm:$0xff] }
  0x35   : > { %710 = vmatpush.msra.mxu0 %v652_v19  ;;  %792 = vmatpush.msra.mxu2 %v653_v20  ;;  %v3263_v31 = vld [vmem:[%s3245_s15 + $0x8] sm:$0xff]  ;;  %v646_v32 = vld [vmem:[%s4033_s1 + $0x70] sm:$0xff]  ;;  %v664_v34 = vld [vmem:[%s4033_s1 + $0x100] sm:$0xff] }
  0x36   : > { %841 = vmatpush.msra.mxu3 %v669_v21  ;;  %758 = vmatpush.msra.mxu1 %v670_v22  ;;  %v644_v35 = vld [vmem:[%s4033_s1 + $0x60] sm:$0xff]  ;;  %v645_v36 = vld [vmem:[%s4033_s1 + $0x68] sm:$0xff]  ;;  %v642_v37 = vld [vmem:[%s4033_s1 + $0x50] sm:$0xff] }
  0x37   : > { %711 = vmatpush.msra.mxu0 %v650_v23  ;;  %793 = vmatpush.msra.mxu2 %v651_v24  ;;  %v643_v38 = vld [vmem:[%s4033_s1 + $0x58] sm:$0xff]  ;;  %v2570_v39 = vld [vmem:[%s4033_s1 + $0x270] sm:$0xff]  ;;  %v640_v40 = vld [vmem:[%s4033_s1 + $0x40] sm:$0xff] }
  0x38   : > { %842 = vmatpush.msra.mxu3 %v667_v25  ;;  %759 = vmatpush.msra.mxu1 %v668_v26  ;;  %v641_v41 = vld [vmem:[%s4033_s1 + $0x48] sm:$0xff]  ;;  %v3300_v42 = vld [vmem:[%s3245_s15 + $0x18] sm:$0xff]  ;;  %v638_v43 = vld [vmem:[%s4033_s1 + $0x30] sm:$0xff] }
  0x39   : > { %712 = vmatpush.msra.mxu0 %v648_v27  ;;  %794 = vmatpush.msra.mxu2 %v649_v28  ;;  %v639_v44 = vld [vmem:[%s4033_s1 + $0x38] sm:$0xff]  ;;  %v636_v45 = vld [vmem:[%s4033_s1 + $0x20] sm:$0xff]  ;;  %v637_v46 = vld [vmem:[%s4033_s1 + $0x28] sm:$0xff] }
  0x3a   : > { %843 = vmatpush.msra.mxu3 %v665_v29  ;;  %760 = vmatpush.msra.mxu1 %v666_v30  ;;  %v2568_v47 = vld [vmem:[%s4033_s1 + $0x260] sm:$0xff]  ;;  %v2566_v48 = vld [vmem:[%s4033_s1 + $0x250] sm:$0xff]  ;;  %v635_v50 = vld [vmem:[%s4033_s1 + $0x18] sm:$0xff] }
  0x3b   : > { %2532 = vmatmul.msk.f32.vlgmr.msra.gmra.mxu3 %vm680_vm0, %v3263_v31  ;;  %713 = vmatpush.msra.mxu0 %v646_v32  ;;  %v634_v49 = vld [vmem:[%s4033_s1 + $0x10] sm:$0xff]  ;;  %v2564_v51 = vld [vmem:[%s4033_s1 + $0x240] sm:$0xff]  ;;  %v633_v53 = vld [vmem:[%s4033_s1 + $0x8] sm:$0xff] }
  0x3c   : > { %795 = vmatpush.msra.mxu2 %v647_v33  ;;  %761 = vmatpush.msra.mxu1 %v664_v34  ;;  %v632_v52 = vld [vmem:[%s4033_s1] sm:$0xff]  ;;  %v3343_v55 = vld [vmem:[%s3245_s15 + $0x28] sm:$0xff]  ;;  %v2562_v56 = vld [vmem:[%s4033_s1 + $0x230] sm:$0xff] }
  0x3d   : > { %714 = vmatpush.msra.mxu0 %v644_v35  ;;  %2524 = vmatmul.msk.f32.vlgmr.msra.gmra.mxu1 %vm680_vm0, %v3263_v31  ;;  %v3340_v54 = vld [vmem:[%s3245_s15] sm:$0xff]  ;;  %v2586_v58 = vld [vmem:[%s4033_s1 + $0x2f0] sm:$0xff]  ;;  %v2571_v62 = vld [vmem:[%s4033_s1 + $0x278] sm:$0xff] }
  0x3e   : > { %796 = vmatpush.msra.mxu2 %v645_v36  ;;  %922 = vmatpush.msrb.mxu1 %v2570_v39  ;;  %v2560_v57 = vld [vmem:[%s4033_s1 + $0x220] sm:$0xff]  ;;  %v2558_v60 = vld [vmem:[%s4033_s1 + $0x210] sm:$0xff]  ;;  %v3379_v1 = vld [vmem:[%s3245_s15 + $0x38] sm:$0xff] }
  0x3f   : > { %715 = vmatpush.msra.mxu0 %v642_v37  ;;  %971 = vmatpush.msrb.mxu3 %v2586_v58  ;;  %v2584_v59 = vld [vmem:[%s4033_s1 + $0x2e0] sm:$0xff]  ;;  %v2582_v61 = vld [vmem:[%s4033_s1 + $0x2d0] sm:$0xff]  ;;  %v2569_v6 = vld [vmem:[%s4033_s1 + $0x268] sm:$0xff] }
  0x40   : > { %797 = vmatpush.msra.mxu2 %v643_v38  ;;  %923 = vmatpush.msrb.mxu1 %v2568_v47  ;;  %v3373_v63 = vld [vmem:[%s3245_s15 + $0x10] sm:$0xff]  ;;  %v2556_v0 = vld [vmem:[%s4033_s1 + $0x200] sm:$0xff]  ;;  %v2567_v7 = vld [vmem:[%s4033_s1 + $0x258] sm:$0xff] }
  0x41   : > { %716 = vmatpush.msra.mxu0 %v640_v40  ;;  %972 = vmatpush.msrb.mxu3 %v2584_v59  ;;  %v2554_v2 = vld [vmem:[%s4033_s1 + $0x1f0] sm:$0xff]  ;;  %v2580_v3 = vld [vmem:[%s4033_s1 + $0x2c0] sm:$0xff]  ;;  %v2565_v10 = vld [vmem:[%s4033_s1 + $0x248] sm:$0xff] }
  0x42   : > { %798 = vmatpush.msra.mxu2 %v641_v41  ;;  %924 = vmatpush.msrb.mxu1 %v2566_v48  ;;  %v2552_v4 = vld [vmem:[%s4033_s1 + $0x1e0] sm:$0xff]  ;;  %v2578_v5 = vld [vmem:[%s4033_s1 + $0x2b0] sm:$0xff]  ;;  %v3421_v13 = vld [vmem:[%s3245_s15 + $0x48] sm:$0xff] }
  0x43   : > { %2533 = vmatmul.msk.f32.gmra.mxu3 %vm680_vm0, %v3300_v42  ;;  %717 = vmatpush.msra.mxu0 %v638_v43  ;;  %v2550_v8 = vld [vmem:[%s4033_s1 + $0x1d0] sm:$0xff]  ;;  %v2576_v9 = vld [vmem:[%s4033_s1 + $0x2a0] sm:$0xff]  ;;  %v2563_v16 = vld [vmem:[%s4033_s1 + $0x238] sm:$0xff] }
  0x44   : > { %799 = vmatpush.msra.mxu2 %v639_v44  ;;  %925 = vmatpush.msrb.mxu1 %v2564_v51  ;;  %v3415_v11 = vld [vmem:[%s3245_s15 + $0x20] sm:$0xff]  ;;  %v2574_v14 = vld [vmem:[%s4033_s1 + $0x290] sm:$0xff]  ;;  %v2561_v19 = vld [vmem:[%s4033_s1 + $0x228] sm:$0xff] }
  0x45   : > { %718 = vmatpush.msra.mxu0 %v636_v45  ;;  %2525 = vmatmul.msk.f32.gmra.mxu1 %vm680_vm0, %v3300_v42  ;;  %v2548_v12 = vld [vmem:[%s4033_s1 + $0x1c0] sm:$0xff]  ;;  %v2546_v15 = vld [vmem:[%s4033_s1 + $0x1b0] sm:$0xff]  ;;  %v2587_v20 = vld [vmem:[%s4033_s1 + $0x2f8] sm:$0xff] }
  0x46   : > { %800 = vmatpush.msra.mxu2 %v637_v46  ;;  %926 = vmatpush.msrb.mxu1 %v2562_v56  ;;  %v2572_v17 = vld [vmem:[%s4033_s1 + $0x280] sm:$0xff]  ;;  %v2542_v21 = vld [vmem:[%s4033_s1 + $0x190] sm:$0xff]  ;;  %v2559_v22 = vld [vmem:[%s4033_s1 + $0x218] sm:$0xff] }
  0x47   : > { %719 = vmatpush.msra.mxu0 %v634_v49  ;;  %973 = vmatpush.msrb.mxu3 %v2582_v61  ;;  %v2544_v18 = vld [vmem:[%s4033_s1 + $0x1a0] sm:$0xff]  ;;  %v2585_v23 = vld [vmem:[%s4033_s1 + $0x2e8] sm:$0xff]  ;;  %v3460_v24 = vld [vmem:[%s3245_s15 + $0x30] sm:$0xff] }
  0x48   : > { %801 = vmatpush.msra.mxu2 %v635_v50  ;;  %927 = vmatpush.msrb.mxu1 %v2560_v57  ;;  %v2540_v25 = vld [vmem:[%s4033_s1 + $0x180] sm:$0xff]  ;;  %v3466_v26 = vld [vmem:[%s3245_s15 + $0x58] sm:$0xff]  ;;  %v2557_v27 = vld [vmem:[%s4033_s1 + $0x208] sm:$0xff] }
  0x49   : > { %720 = vmatpush.msra.mxu0 %v632_v52  ;;  %974 = vmatpush.msrb.mxu3 %v2580_v3  ;;  %v2583_v28 = vld [vmem:[%s4033_s1 + $0x2d8] sm:$0xff]  ;;  %v2581_v30 = vld [vmem:[%s4033_s1 + $0x2c8] sm:$0xff]  ;;  %v3493_v34 = vld [vmem:[%s3245_s15 + $0x40] sm:$0xff] }
  0x4a   : > { %802 = vmatpush.msra.mxu2 %v633_v53  ;;  %721 = vmatmul.f32.vlgmr.msra.gmra.mxu0 %v3340_v54  ;;  %v2555_v29 = vld [vmem:[%s4033_s1 + $0x1f8] sm:$0xff]  ;;  %v2553_v32 = vld [vmem:[%s4033_s1 + $0x1e8] sm:$0xff]  ;;  %v3523_v43 = vld [vmem:[%s3245_s15 + $0x50] sm:$0xff] }
  0x4b   : > { %803 = vmatmul.f32.vlgmr.msra.gmra.mxu2 %v3340_v54  ;;  %2534 = vmatmul.msk.f32.gmra.mxu3 %vm680_vm0, %v3343_v55  ;;  %v2579_v33 = vld [vmem:[%s4033_s1 + $0x2b8] sm:$0xff]  ;;  %v2577_v35 = vld [vmem:[%s4033_s1 + $0x2a8] sm:$0xff]  ;;  %v3544_v48 = vld [vmem:[%s3245_s15 + $0x60] sm:$0xff] }
  0x4c   : > { %1004 = vmatpush.msrb.mxu0 %v2571_v62  ;;  %928 = vmatpush.msrb.mxu1 %v2558_v60  ;;  %v3499_v36 = vld [vmem:[%s3245_s15 + $0x68] sm:$0xff]  ;;  %v2551_v37 = vld [vmem:[%s4033_s1 + $0x1d8] sm:$0xff]  ;;  %v3552_v49 = vld [vmem:[%s3245_s15 + $0x70] sm:$0xff] }
  0x4d   : > { %2526 = vmatmul.msk.f32.gmra.mxu1 %vm680_vm0, %v3343_v55  ;;  %975 = vmatpush.msrb.mxu3 %v2578_v5  ;;  %v2575_v38 = vld [vmem:[%s4033_s1 + $0x298] sm:$0xff]  ;;  %v2549_v39 = vld [vmem:[%s4033_s1 + $0x1c8] sm:$0xff] }
  0x4e   : > { %929 = vmatpush.msrb.mxu1 %v2556_v0  ;;  %1005 = vmatpush.msrb.mxu0 %v2569_v6  ;;  %v2573_v40 = vld [vmem:[%s4033_s1 + $0x288] sm:$0xff]  ;;  %v2547_v41 = vld [vmem:[%s4033_s1 + $0x1b8] sm:$0xff] }
  0x4f   : > { %976 = vmatpush.msrb.mxu3 %v2576_v9  ;;  %1053 = vmatpush.msrb.mxu2 %v2587_v20  ;;  %v3526_v44 = vld [vmem:[%s3245_s15 + $0x78] sm:$0xff]  ;;  %v2545_v45 = vld [vmem:[%s4033_s1 + $0x1a8] sm:$0xff] }
  0x50   : > { %930 = vmatpush.msrb.mxu1 %v2554_v2  ;;  %1006 = vmatpush.msrb.mxu0 %v2567_v7  ;;  %v2543_v46 = vld [vmem:[%s4033_s1 + $0x198] sm:$0xff]  ;;  %v2541_v47 = vld [vmem:[%s4033_s1 + $0x188] sm:$0xff] }
  0x51   : > { %977 = vmatpush.msrb.mxu3 %v2574_v14  ;;  %1054 = vmatpush.msrb.mxu2 %v2585_v23 }
  0x52   : > { %724 = vmatmul.f32.gmra.mxu0 %v3373_v63  ;;  %931 = vmatpush.msrb.mxu1 %v2552_v4 }
  0x53   : > { %806 = vmatmul.f32.gmra.mxu2 %v3373_v63  ;;  %2535 = vmatmul.msk.f32.gmra.mxu3 %vm680_vm0, %v3379_v1 }
  0x54   : > { %932 = vmatpush.msrb.mxu1 %v2550_v8  ;;  %1007 = vmatpush.msrb.mxu0 %v2565_v10 }
  0x55   : > { %2527 = vmatmul.msk.f32.gmra.mxu1 %vm680_vm0, %v3379_v1  ;;  %978 = vmatpush.msrb.mxu3 %v2572_v17 }
  0x56   : > { %933 = vmatpush.msrb.mxu1 %v2548_v12  ;;  %1008 = vmatpush.msrb.mxu0 %v2563_v16 }
  0x57   : > { %1055 = vmatpush.msrb.mxu2 %v2583_v28 }
  0x58   : > { %934 = vmatpush.msrb.mxu1 %v2546_v15  ;;  %1009 = vmatpush.msrb.mxu0 %v2561_v19 }
  0x59   : > { %1056 = vmatpush.msrb.mxu2 %v2581_v30 }
  0x5a   : > { %727 = vmatmul.f32.gmra.mxu0 %v3415_v11  ;;  %935 = vmatpush.msrb.mxu1 %v2544_v18 }
  0x5b   : > { %809 = vmatmul.f32.gmra.mxu2 %v3415_v11  ;;  %2536 = vmatmul.msk.f32.gmra.mxu3 %vm680_vm0, %v3421_v13 }
  0x5c   : > { %936 = vmatpush.msrb.mxu1 %v2542_v21  ;;  %1010 = vmatpush.msrb.mxu0 %v2559_v22 }
  0x5d   : > { %2528 = vmatmul.msk.f32.gmra.mxu1 %vm680_vm0, %v3421_v13  ;;  %1057 = vmatpush.msrb.mxu2 %v2579_v33 }
  0x5e   : > { %937 = vmatpush.msrb.mxu1 %v2540_v25  ;;  %1011 = vmatpush.msrb.mxu0 %v2557_v27 }
  0x5f   : > { %1058 = vmatpush.msrb.mxu2 %v2577_v35 }
  0x60   : > { %1012 = vmatpush.msrb.mxu0 %v2555_v29 }
  0x61   : > { %1059 = vmatpush.msrb.mxu2 %v2575_v38 }
  0x62   : > { %730 = vmatmul.f32.gmra.mxu0 %v3460_v24 }
  0x63   : > { %812 = vmatmul.f32.gmra.mxu2 %v3460_v24  ;;  %2537 = vmatmul.msk.f32.gmra.mxu3 %vm680_vm0, %v3466_v26 }
  0x64   : > { %1013 = vmatpush.msrb.mxu0 %v2553_v32  ;;  %1060 = vmatpush.msrb.mxu2 %v2573_v40 }
  0x65   : > { %2529 = vmatmul.msk.f32.gmra.mxu1 %vm680_vm0, %v3466_v26 }
  0x66   : > { %1014 = vmatpush.msrb.mxu0 %v2551_v37 }
  0x68   : > { %1015 = vmatpush.msrb.mxu0 %v2549_v39 }
  0x6a   : > { %733 = vmatmul.f32.gmra.mxu0 %v3493_v34 }
  0x6b   : > { %815 = vmatmul.f32.gmra.mxu2 %v3493_v34  ;;  %2538 = vmatmul.msk.f32.gmra.mxu3 %vm680_vm0, %v3499_v36 }
  0x6c   : > { %1016 = vmatpush.msrb.mxu0 %v2547_v41 }
  0x6d   : > { %2530 = vmatmul.msk.f32.gmra.mxu1 %vm680_vm0, %v3499_v36 }
  0x6e   : > { %1017 = vmatpush.msrb.mxu0 %v2545_v45 }
  0x70   : > { %1018 = vmatpush.msrb.mxu0 %v2543_v46 }
  0x72   : > { %736 = vmatmul.f32.gmra.mxu0 %v3523_v43 }
  0x73   : > { %818 = vmatmul.f32.gmra.mxu2 %v3523_v43  ;;  %2539 = vmatmul.msk.f32.gmra.mxu3 %vm680_vm0, %v3526_v44 }
  0x74   : > { %1019 = vmatpush.msrb.mxu0 %v2541_v47 }
  0x75   : > { %2531 = vmatmul.msk.f32.gmra.mxu1 %vm680_vm0, %v3526_v44 }
  0x7a   : > { %739 = vmatmul.f32.gmra.mxu0 %v3544_v48 }
  0x7b   : > { %821 = vmatmul.f32.gmra.mxu2 %v3544_v48  ;;  %2588 = vmatmul.msk.f32.vlgmr.msrb.gmra.mxu3 %vm680_vm0, %v3263_v31 }
  0x7d   : > { %938 = vmatmul.f32.vlgmr.msrb.gmra.mxu1 %v3340_v54 }
  0x82   : > { %742 = vmatmul.f32.gmra.mxu0 %v3552_v49 }
  0x83   : > { %824 = vmatmul.f32.gmra.mxu2 %v3552_v49  ;;  %2589 = vmatmul.msk.f32.gmra.mxu3 %vm680_vm0, %v3300_v42 }
  0x85   : > { %941 = vmatmul.f32.gmra.mxu1 %v3373_v63 }
  0x8a   : > { %1020 = vmatmul.f32.vlgmr.msrb.gmra.mxu0 %v3340_v54 }
  0x8b   : > { %2590 = vmatmul.msk.f32.gmra.mxu3 %vm680_vm0, %v3343_v55  ;;  %2596 = vmatmul.msk.f32.vlgmr.msrb.gmra.mxu2 %vm680_vm0, %v3263_v31 }
  0x8d   : > { %944 = vmatmul.f32.gmra.mxu1 %v3415_v11 }
  0x92   : > { %1023 = vmatmul.f32.gmra.mxu0 %v3373_v63 }
  0x93   : > { %2591 = vmatmul.msk.f32.gmra.mxu3 %vm680_vm0, %v3379_v1  ;;  %2597 = vmatmul.msk.f32.gmra.mxu2 %vm680_vm0, %v3300_v42 }
  0x95   : > { %947 = vmatmul.f32.gmra.mxu1 %v3460_v24 }
  0x9a   : > { %1026 = vmatmul.f32.gmra.mxu0 %v3415_v11 }
  0x9b   : > { %2592 = vmatmul.msk.f32.gmra.mxu3 %vm680_vm0, %v3421_v13  ;;  %2598 = vmatmul.msk.f32.gmra.mxu2 %vm680_vm0, %v3343_v55 }
  0x9d   : > { %950 = vmatmul.f32.gmra.mxu1 %v3493_v34 }
  0xa2   : > { %1029 = vmatmul.f32.gmra.mxu0 %v3460_v24 }
  0xa3   : > { %2593 = vmatmul.msk.f32.gmra.mxu3 %vm680_vm0, %v3466_v26  ;;  %2599 = vmatmul.msk.f32.gmra.mxu2 %vm680_vm0, %v3379_v1 }
  0xa5   : > { %953 = vmatmul.f32.gmra.mxu1 %v3523_v43 }
  0xaa   : > { %1032 = vmatmul.f32.gmra.mxu0 %v3493_v34 }
  0xab   : > { %2594 = vmatmul.msk.f32.gmra.mxu3 %vm680_vm0, %v3499_v36  ;;  %2600 = vmatmul.msk.f32.gmra.mxu2 %vm680_vm0, %v3421_v13 }
  0xad   : > { %956 = vmatmul.f32.gmra.mxu1 %v3544_v48 }
  0xb2   : > { %1035 = vmatmul.f32.gmra.mxu0 %v3523_v43 }
  0xb3   : > { %2595 = vmatmul.msk.f32.gmra.mxu3 %vm680_vm0, %v3526_v44  ;;  %2601 = vmatmul.msk.f32.gmra.mxu2 %vm680_vm0, %v3466_v26 }
  0xb5   : > { %959 = vmatmul.f32.gmra.mxu1 %v3552_v49 }
  0xba   : > { %v763_v50 = vpop.f32.mrf.mxu1  ;;  %1038 = vmatmul.f32.gmra.mxu0 %v3544_v48 }
  0xbb   : > { %2602 = vmatmul.msk.f32.gmra.mxu2 %vm680_vm0, %v3499_v36 }
  0xbe   : > { %v3598_v51 = vpop.f32.mrf.mxu3 }
  0xc2   : > { %v766_v52 = vpop.f32.mrf.mxu1  ;;  %1041 = vmatmul.f32.gmra.mxu0 %v3552_v49 }
  0xc3   : > { %2603 = vmatmul.msk.f32.gmra.mxu2 %vm680_vm0, %v3526_v44 }
  0xc6   : > { %v3603_v53 = vpop.f32.mrf.mxu3 }
  0xc7   : > { %v722_v56 = vpop.f32.mrf.mxu0 }
  0xca   : > { %v769_v57 = vpop.f32.mrf.mxu1 }
  0xce   : > { %v3605_v58 = vpop.f32.mrf.mxu2  ;;  %v851_v59 = vpop.f32.mrf.mxu3 }
  0xcf   : > { %v725_v60 = vpop.f32.mrf.mxu0 }
  0xd0   : > { %v767_v47 = vadd.f32 %v766_v52, %v725_v60  ;;  %v869_v52 = vld [vmem:[%s4034_s2] sm:$0xff] }
  0xd2   : > { %v772_v61 = vpop.f32.mrf.mxu1 }
  0xd6   : > { %v3607_v62 = vpop.f32.mrf.mxu2  ;;  %v854_v0 = vpop.f32.mrf.mxu3 }
  0xd7   : > { %v728_v2 = vpop.f32.mrf.mxu0 }
  0xd8   : > { %v770_v41 = vadd.f32 %v769_v57, %v728_v2  ;;  %v2655_v57 = vld [vmem:[%s4033_s1 + $0x3f8] sm:$0xff] }
  0xd9   : > { %v2651_v2 = vld [vmem:[%s4033_s1 + $0x3d8] sm:$0xff] }
  0xda   : > { %v775_v3 = vpop.f32.mrf.mxu1 }
  0xde   : > { %v810_v4 = vpop.f32.mrf.mxu2  ;;  %v857_v5 = vpop.f32.mrf.mxu3 }
  0xdf   : > { %v731_v6 = vpop.f32.mrf.mxu0  ;;  %v852_v60 = vadd.f32 %v851_v59, %v810_v4  ;;  %v846_v59 = vadd.f32 %v3598_v51, %v3605_v58  ;;  %v2649_v4 = vld [vmem:[%s4033_s1 + $0x3c8] sm:$0xff]  ;;  %v2647_v51 = vld [vmem:[%s4033_s1 + $0x3b8] sm:$0xff] }
  0xe0   : > { %v773_v39 = vadd.f32 %v772_v61, %v731_v6  ;;  %v870_v58 = vld [vmem:[%s4034_s2 + $0x8] sm:$0xff] }
  0xe2   : > { %v778_v7 = vpop.f32.mrf.mxu1 }
  0xe6   : > { %v813_v8 = vpop.f32.mrf.mxu2  ;;  %v860_v9 = vpop.f32.mrf.mxu3 }
  0xe7   : > { %v734_v10 = vpop.f32.mrf.mxu0  ;;  %v855_v61 = vadd.f32 %v854_v0, %v813_v8  ;;  %v849_v0 = vadd.f32 %v3603_v53, %v3607_v62  ;;  %v2671_v53 = vld [vmem:[%s4033_s1 + $0x478] sm:$0xff] }
  0xe8   : > { %v776_v32 = vadd.f32 %v775_v3, %v734_v10 }
  0xea   : > { %v781_v12 = vpop.f32.mrf.mxu1 }
  0xee   : > { %v816_v14 = vpop.f32.mrf.mxu2  ;;  %v863_v15 = vpop.f32.mrf.mxu3 }
  0xef   : > { %v737_v16 = vpop.f32.mrf.mxu0  ;;  %v858_v3 = vadd.f32 %v857_v5, %v816_v14  ;;  %v2645_v14 = vld [vmem:[%s4033_s1 + $0x3a8] sm:$0xff] }
  0xf0   : > { %v779_v30 = vadd.f32 %v778_v7, %v737_v16  ;;  %v764_v7 = vadd.f32 %v763_v50, %v722_v56  ;;  %v2653_v50 = vld [vmem:[%s4033_s1 + $0x3e8] sm:$0xff]  ;;  %v2667_v16 = vld [vmem:[%s4033_s1 + $0x458] sm:$0xff] }
  0xf2   : > { %v784_v17 = vpop.f32.mrf.mxu1 }
  0xf6   : > { %v819_v18 = vpop.f32.mrf.mxu2  ;;  %v866_v19 = vpop.f32.mrf.mxu3 }
  0xf7   : > { %v740_v20 = vpop.f32.mrf.mxu0  ;;  %v861_v46 = vadd.f32 %v860_v9, %v819_v18  ;;  %v2669_v9 = vld [vmem:[%s4033_s1 + $0x468] sm:$0xff] }
  0xf8   : > { %v782_v28 = vadd.f32 %v781_v12, %v740_v20  ;;  %v2665_v18 = vld [vmem:[%s4033_s1 + $0x448] sm:$0xff] }
  0xfa   : > { %v3609_v21 = vpop.f32.mrf.mxu1 }
  0xfe   : > { %v822_v22 = vpop.f32.mrf.mxu2  ;;  %v3611_v23 = vpop.f32.mrf.mxu3 }
  0xff   : > { %v743_v25 = vpop.f32.mrf.mxu0  ;;  %v864_v40 = vadd.f32 %v863_v15, %v822_v22 }
 0x100   : > { %v785_v27 = vadd.f32 %v784_v17, %v743_v25  ;;  %v2643_v17 = vld [vmem:[%s4033_s1 + $0x398] sm:$0xff] }
 0x101   : > { %v2663_v25 = vld [vmem:[%s4033_s1 + $0x438] sm:$0xff] }
 0x102   : > { %1181 = vmatpush.msra.mxu0 %v785_v27  ;;  %v3613_v29 = vpop.f32.mrf.mxu1 }
 0x104   : > { %1182 = vmatpush.msra.mxu0 %v782_v28  ;;  %v2639_v28 = vld [vmem:[%s4033_s1 + $0x378] sm:$0xff] }
 0x106   : > { %v825_v33 = vpop.f32.mrf.mxu2  ;;  %v3615_v35 = vpop.f32.mrf.mxu3  ;;  %1183 = vmatpush.msra.mxu0 %v779_v30  ;;  %v871_v30 = vld [vmem:[%s4034_s2 + $0x10] sm:$0xff] }
 0x107   : > { %v867_v37 = vadd.f32 %v866_v19, %v825_v33  ;;  %v3617_v38 = vpop.f32.mrf.mxu0  ;;  %v2641_v19 = vld [vmem:[%s4033_s1 + $0x388] sm:$0xff] }
 0x108   : > { %1184 = vmatpush.msra.mxu0 %v776_v32  ;;  %v2661_v32 = vld [vmem:[%s4033_s1 + $0x428] sm:$0xff] }
 0x109   : > { %1210 = vmatpush.msra.mxu2 %v867_v37  ;;  %v2637_v33 = vld [vmem:[%s4033_s1 + $0x368] sm:$0xff] }
 0x10a   : > { %1185 = vmatpush.msra.mxu0 %v773_v39  ;;  %v3619_v45 = vpop.f32.mrf.mxu1  ;;  %v2659_v39 = vld [vmem:[%s4033_s1 + $0x418] sm:$0xff] }
 0x10b   : > { %1211 = vmatpush.msra.mxu2 %v864_v40  ;;  %v2635_v40 = vld [vmem:[%s4033_s1 + $0x358] sm:$0xff] }
 0x10c   : > { %1186 = vmatpush.msra.mxu0 %v770_v41  ;;  %v2657_v41 = vld [vmem:[%s4033_s1 + $0x408] sm:$0xff] }
 0x10d   : > { %1212 = vmatpush.msra.mxu2 %v861_v46  ;;  %v2633_v46 = vld [vmem:[%s4033_s1 + $0x348] sm:$0xff] }
 0x10e   : > { %v3621_v10 = vpop.f32.mrf.mxu3  ;;  %v3623_v12 = vpop.f32.mrf.mxu2  ;;  %1187 = vmatpush.msra.mxu0 %v767_v47 }
 0x10f   : > { %1213 = vmatpush.msra.mxu2 %v858_v3  ;;  %v3625_v6 = vpop.f32.mrf.mxu0 }
 0x110   : > { %1188 = vmatpush.msra.mxu0 %v764_v7 }
 0x111   : > { %1214 = vmatpush.msra.mxu2 %v855_v61  ;;  %2616 = vmatmul.msk.f32.vlgmr.msra.gmra.mxu0 %vm680_vm0, %v869_v52  ;;  %v2631_v61 = vld [vmem:[%s4033_s1 + $0x338] sm:$0xff] }
 0x112   : > { %v3637_v56 = vpop.f32.mrf.mxu1  ;;  %1362 = vmatpush.msrb.mxu0 %v2655_v57  ;;  %v872_v57 = vld [vmem:[%s4034_s2 + $0x18] sm:$0xff] }
 0x113   : > { %1215 = vmatpush.msra.mxu2 %v852_v60 }
 0x114   : > { %1363 = vmatpush.msrb.mxu0 %v2653_v50  ;;  %v2627_v50 = vld [vmem:[%s4033_s1 + $0x318] sm:$0xff] }
 0x115   : > { %1216 = vmatpush.msra.mxu2 %v849_v0  ;;  %v2625_v0 = vld [vmem:[%s4033_s1 + $0x308] sm:$0xff] }
 0x116   : > { %v3649_v5 = vpop.f32.mrf.mxu3  ;;  %v3651_v8 = vpop.f32.mrf.mxu2  ;;  %1364 = vmatpush.msrb.mxu0 %v2651_v2 }
 0x117   : > { %1217 = vmatpush.msra.mxu2 %v846_v59  ;;  %v3656_v62 = vpop.f32.mrf.mxu0 }
 0x118   : > { %2620 = vmatmul.msk.f32.vlgmr.msra.gmra.mxu2 %vm680_vm0, %v869_v52  ;;  %1365 = vmatpush.msrb.mxu0 %v2649_v4  ;;  %v2629_v52 = vld [vmem:[%s4033_s1 + $0x328] sm:$0xff] }
 0x119   : > { %2617 = vmatmul.msk.f32.gmra.mxu0 %vm680_vm0, %v870_v58  ;;  %1411 = vmatpush.msrb.mxu2 %v2671_v53 }
 0x11a   : > { %v3672_v15 = vpop.f32.mrf.mxu1  ;;  %1366 = vmatpush.msrb.mxu0 %v2647_v51 }
 0x11b   : > { %1412 = vmatpush.msrb.mxu2 %v2669_v9 }
 0x11c   : > { %1367 = vmatpush.msrb.mxu0 %v2645_v14 }
 0x11d   : > { %1413 = vmatpush.msrb.mxu2 %v2667_v16 }
 0x11e   : > { %v992_v20 = vpop.f32.mrf.mxu3  ;;  %v3686_v22 = vpop.f32.mrf.mxu2  ;;  %1368 = vmatpush.msrb.mxu0 %v2643_v17 }
 0x11f   : > { %v3691_v27 = vpop.f32.mrf.mxu0  ;;  %1414 = vmatpush.msrb.mxu2 %v2665_v18  ;;  %v993_v18 = vadd.f32 %v992_v20, %v3672_v15  ;;  %v981_v20 = vadd.f32 %v3611_v23, %v3609_v21  ;;  %v2652_v21 = vld [vmem:[%s4033_s1 + $0x3e0] sm:$0xff] }
 0x120   : > { %2621 = vmatmul.msk.f32.gmra.mxu2 %vm680_vm0, %v870_v58  ;;  %1369 = vmatpush.msrb.mxu0 %v2641_v19 }
 0x121   : > { %2618 = vmatmul.msk.f32.gmra.mxu0 %vm680_vm0, %v871_v30  ;;  %1415 = vmatpush.msrb.mxu2 %v2663_v25  ;;  %v990_v25 = vadd.f32 %v3649_v5, %v3637_v56  ;;  %v2604_v56 = vld [vmem:[%s4034_s2 + $0x20] sm:$0xff] }
 0x122   : > { %v954_v37 = vpop.f32.mrf.mxu1  ;;  %1370 = vmatpush.msrb.mxu0 %v2639_v28  ;;  %v987_v28 = vadd.f32 %v3621_v10, %v3619_v45  ;;  %v2654_v45 = vld [vmem:[%s4033_s1 + $0x3f0] sm:$0xff] }
 0x123   : > { %1416 = vmatpush.msrb.mxu2 %v2661_v32 }
 0x124   : > { %1371 = vmatpush.msrb.mxu0 %v2637_v33  ;;  %v2605_v33 = vld [vmem:[%s4034_s2 + $0x28] sm:$0xff] }
 0x125   : > { %1417 = vmatpush.msrb.mxu2 %v2659_v39  ;;  %v2648_v39 = vld [vmem:[%s4033_s1 + $0x3c0] sm:$0xff] }
 0x126   : > { %v995_v47 = vpop.f32.mrf.mxu3  ;;  %v3719_v3 = vpop.f32.mrf.mxu2  ;;  %1372 = vmatpush.msrb.mxu0 %v2635_v40  ;;  %v1069_v40 = vadd.f32 %v3686_v22, %v3656_v62  ;;  %v1063_v62 = vadd.f32 %v3623_v12, %v3617_v38  ;;  %v2606_v22 = vld [vmem:[%s4034_s2 + $0x30] sm:$0xff]  ;;  %v2668_v38 = vld [vmem:[%s4033_s1 + $0x460] sm:$0xff] }
 0x127   : > { %v1033_v7 = vpop.f32.mrf.mxu0  ;;  %1418 = vmatpush.msrb.mxu2 %v2657_v41  ;;  %v996_v16 = vadd.f32 %v995_v47, %v954_v37  ;;  %v1072_v37 = vadd.f32 %v3719_v3, %v3691_v27  ;;  %v2646_v27 = vld [vmem:[%s4033_s1 + $0x3b0] sm:$0xff]  ;;  %v1066_v41 = vadd.f32 %v3651_v8, %v3625_v6  ;;  %v2640_v12 = vld [vmem:[%s4033_s1 + $0x380] sm:$0xff] }
 0x128   : > { %2622 = vmatmul.msk.f32.gmra.mxu2 %vm680_vm0, %v871_v30  ;;  %1373 = vmatpush.msrb.mxu0 %v2633_v46  ;;  %v984_v30 = vadd.f32 %v3615_v35, %v3613_v29  ;;  %v2650_v35 = vld [vmem:[%s4033_s1 + $0x3d0] sm:$0xff]  ;;  %v2644_v46 = vld [vmem:[%s4033_s1 + $0x3a0] sm:$0xff] }
 0x129   : > { %2619 = vmatmul.msk.f32.gmra.mxu0 %vm680_vm0, %v872_v57  ;;  %v2670_v6 = vld [vmem:[%s4033_s1 + $0x470] sm:$0xff] }
 0x12a   : > { %v957_v60 = vpop.f32.mrf.mxu1  ;;  %1374 = vmatpush.msrb.mxu0 %v2631_v61  ;;  %v2642_v8 = vld [vmem:[%s4033_s1 + $0x390] sm:$0xff]  ;;  %v2664_v61 = vld [vmem:[%s4033_s1 + $0x440] sm:$0xff] }
 0x12b   : > { %v2666_v47 = vld [vmem:[%s4033_s1 + $0x450] sm:$0xff] }
 0x12c   : > { %1375 = vmatpush.msrb.mxu0 %v2629_v52  ;;  %v2638_v3 = vld [vmem:[%s4033_s1 + $0x370] sm:$0xff] }
 0x12d   : > { %v2662_v52 = vld [vmem:[%s4033_s1 + $0x430] sm:$0xff] }
 0x12e   : > { %v998_v2 = vpop.f32.mrf.mxu3  ;;  %v1074_v59 = vpop.f32.mrf.mxu2  ;;  %1376 = vmatpush.msrb.mxu0 %v2627_v50  ;;  %v2660_v50 = vld [vmem:[%s4033_s1 + $0x420] sm:$0xff] }
 0x12f   : > { %v1036_v4 = vpop.f32.mrf.mxu0  ;;  %v999_v9 = vadd.f32 %v998_v2, %v957_v60  ;;  %v1075_v10 = vadd.f32 %v1074_v59, %v1033_v7  ;;  %v2607_v7 = vld [vmem:[%s4034_s2 + $0x38] sm:$0xff]  ;;  %v2634_v60 = vld [vmem:[%s4033_s1 + $0x350] sm:$0xff] }
 0x130   : > { %2623 = vmatmul.msk.f32.gmra.mxu2 %vm680_vm0, %v872_v57  ;;  %1377 = vmatpush.msrb.mxu0 %v2625_v0  ;;  %v2636_v57 = vld [vmem:[%s4033_s1 + $0x360] sm:$0xff]  ;;  %v2658_v2 = vld [vmem:[%s4033_s1 + $0x410] sm:$0xff] }
 0x131   : > { %1378 = vmatmul.f32.vlgmr.msrb.gmra.mxu0 %v3340_v54  ;;  %v2632_v0 = vld [vmem:[%s4033_s1 + $0x340] sm:$0xff]  ;;  %v2630_v59 = vld [vmem:[%s4033_s1 + $0x330] sm:$0xff] }
 0x132   : > { %v960_v53 = vpop.f32.mrf.mxu1 }
 0x136   : > { %v1001_v51 = vpop.f32.mrf.mxu3  ;;  %v1077_v58 = vpop.f32.mrf.mxu2 }
 0x137   : > { %v1002_v14 = vadd.f32 %v1001_v51, %v960_v53  ;;  %v1039_v17 = vpop.f32.mrf.mxu0  ;;  %v1078_v23 = vadd.f32 %v1077_v58, %v1036_v4  ;;  %v2656_v4 = vld [vmem:[%s4033_s1 + $0x400] sm:$0xff]  ;;  %v2626_v51 = vld [vmem:[%s4033_s1 + $0x310] sm:$0xff] }
 0x138   : > { %2680 = vmatmul.msk.f32.vlgmr.msrb.gmra.mxu2 %vm680_vm0, %v3263_v31  ;;  %v2628_v53 = vld [vmem:[%s4033_s1 + $0x320] sm:$0xff] }
 0x139   : > { %1111 = vmatpush.msra.mxu1 %v1002_v14  ;;  %1381 = vmatmul.f32.gmra.mxu0 %v3373_v63  ;;  %v2624_v58 = vld [vmem:[%s4033_s1 + $0x300] sm:$0xff] }
 0x13b   : > { %1112 = vmatpush.msra.mxu1 %v999_v9 }
 0x13d   : > { %1113 = vmatpush.msra.mxu1 %v996_v16 }
 0x13e   : > { %v1080_v19 = vpop.f32.mrf.mxu2 }
 0x13f   : > { %1114 = vmatpush.msra.mxu1 %v993_v18  ;;  %v1042_v15 = vpop.f32.mrf.mxu0  ;;  %v1081_v29 = vadd.f32 %v1080_v19, %v1039_v17 }
 0x140   : > { %2681 = vmatmul.msk.f32.gmra.mxu2 %vm680_vm0, %v3300_v42 }
 0x141   : > { %1115 = vmatpush.msra.mxu1 %v990_v25  ;;  %1384 = vmatmul.f32.gmra.mxu0 %v3415_v11 }
 0x143   : > { %1116 = vmatpush.msra.mxu1 %v987_v28 }
 0x145   : > { %1117 = vmatpush.msra.mxu1 %v984_v30 }
 0x146   : > { %v1083_v5 = vpop.f32.mrf.mxu2 }
 0x147   : > { %v1084_v32 = vadd.f32 %v1083_v5, %v1042_v15  ;;  %1118 = vmatpush.msra.mxu1 %v981_v20 }
 0x148   : > { %2682 = vmatmul.msk.f32.gmra.mxu2 %vm680_vm0, %v3343_v55  ;;  %2608 = vmatmul.msk.f32.vlgmr.msra.gmra.mxu1 %vm680_vm0, %v2604_v56 }
 0x149   : > { %1140 = vmatpush.msra.mxu3 %v1084_v32  ;;  %1387 = vmatmul.f32.gmra.mxu0 %v3460_v24 }
 0x14a   : > { %1280 = vmatpush.msrb.mxu1 %v2654_v45 }
 0x14b   : > { %1141 = vmatpush.msra.mxu3 %v1081_v29 }
 0x14c   : > { %1281 = vmatpush.msrb.mxu1 %v2652_v21 }
 0x14d   : > { %1142 = vmatpush.msra.mxu3 %v1078_v23 }
 0x14e   : > { %1282 = vmatpush.msrb.mxu1 %v2650_v35 }
 0x14f   : > { %1143 = vmatpush.msra.mxu3 %v1075_v10 }
 0x150   : > { %2683 = vmatmul.msk.f32.gmra.mxu2 %vm680_vm0, %v3379_v1  ;;  %2609 = vmatmul.msk.f32.gmra.mxu1 %vm680_vm0, %v2605_v33 }
 0x151   : > { %1144 = vmatpush.msra.mxu3 %v1072_v37  ;;  %1390 = vmatmul.f32.gmra.mxu0 %v3493_v34 }
 0x152   : > { %1283 = vmatpush.msrb.mxu1 %v2648_v39 }
 0x153   : > { %1145 = vmatpush.msra.mxu3 %v1069_v40 }
 0x154   : > { %1284 = vmatpush.msrb.mxu1 %v2646_v27 }
 0x155   : > { %1146 = vmatpush.msra.mxu3 %v1066_v41 }
 0x156   : > { %1285 = vmatpush.msrb.mxu1 %v2644_v46 }
 0x157   : > { %1147 = vmatpush.msra.mxu3 %v1063_v62 }
 0x158   : > { %2612 = vmatmul.msk.f32.vlgmr.msra.gmra.mxu3 %vm680_vm0, %v2604_v56  ;;  %2684 = vmatmul.msk.f32.gmra.mxu2 %vm680_vm0, %v3421_v13 }
 0x159   : > { %2610 = vmatmul.msk.f32.gmra.mxu1 %vm680_vm0, %v2606_v22  ;;  %1393 = vmatmul.f32.gmra.mxu0 %v3523_v43 }
 0x15a   : > { %1329 = vmatpush.msrb.mxu3 %v2670_v6  ;;  %1286 = vmatpush.msrb.mxu1 %v2642_v8  ;;  %v2688_v6 = vld [vmem:[%s4034_s2 + $0x40] sm:$0xff] }
 0x15c   : > { %1330 = vmatpush.msrb.mxu3 %v2668_v38  ;;  %1287 = vmatpush.msrb.mxu1 %v2640_v12  ;;  %v3935_v12 = vld [vmem:[%s4034_s2 + $0x48] sm:$0xff] }
 0x15e   : > { %1331 = vmatpush.msrb.mxu3 %v2666_v47  ;;  %1288 = vmatpush.msrb.mxu1 %v2638_v3  ;;  %v3942_v3 = vld [vmem:[%s4034_s2 + $0x50] sm:$0xff] }
 0x160   : > { %2613 = vmatmul.msk.f32.gmra.mxu3 %vm680_vm0, %v2605_v33  ;;  %2685 = vmatmul.msk.f32.gmra.mxu2 %vm680_vm0, %v3466_v26 }
 0x161   : > { %2611 = vmatmul.msk.f32.gmra.mxu1 %vm680_vm0, %v2607_v7  ;;  %1396 = vmatmul.f32.gmra.mxu0 %v3544_v48 }
 0x162   : > { %1332 = vmatpush.msrb.mxu3 %v2664_v61  ;;  %1289 = vmatpush.msrb.mxu1 %v2636_v57  ;;  %v3949_v57 = vld [vmem:[%s4034_s2 + $0x58] sm:$0xff] }
 0x164   : > { %1333 = vmatpush.msrb.mxu3 %v2662_v52  ;;  %1290 = vmatpush.msrb.mxu1 %v2634_v60 }
 0x166   : > { %1334 = vmatpush.msrb.mxu3 %v2660_v50  ;;  %1291 = vmatpush.msrb.mxu1 %v2632_v0 }
 0x168   : > { %2614 = vmatmul.msk.f32.gmra.mxu3 %vm680_vm0, %v2606_v22  ;;  %2686 = vmatmul.msk.f32.gmra.mxu2 %vm680_vm0, %v3499_v36 }
 0x169   : > { %1335 = vmatpush.msrb.mxu3 %v2658_v2  ;;  %1399 = vmatmul.f32.gmra.mxu0 %v3552_v49 }
 0x16a   : > { %1292 = vmatpush.msrb.mxu1 %v2630_v59 }
 0x16b   : > { %1336 = vmatpush.msrb.mxu3 %v2656_v4 }
 0x16c   : > { %1293 = vmatpush.msrb.mxu1 %v2628_v53 }
 0x16e   : > { %1294 = vmatpush.msrb.mxu1 %v2626_v51 }
 0x170   : > { %2615 = vmatmul.msk.f32.gmra.mxu3 %vm680_vm0, %v2607_v7  ;;  %2687 = vmatmul.msk.f32.gmra.mxu2 %vm680_vm0, %v3526_v44 }
 0x171   : > { %1295 = vmatpush.msrb.mxu1 %v2624_v58 }
 0x172   : > { %1296 = vmatmul.f32.vlgmr.msrb.gmra.mxu1 %v3340_v54 }
 0x178   : > { %2672 = vmatmul.msk.f32.vlgmr.msrb.gmra.mxu3 %vm680_vm0, %v3263_v31 }
 0x17a   : > { %1299 = vmatmul.f32.gmra.mxu1 %v3373_v63 }
 0x180   : > { %2673 = vmatmul.msk.f32.gmra.mxu3 %vm680_vm0, %v3300_v42 }
 0x182   : > { %1302 = vmatmul.f32.gmra.mxu1 %v3415_v11 }
 0x188   : > { %2674 = vmatmul.msk.f32.gmra.mxu3 %vm680_vm0, %v3343_v55 }
 0x18a   : > { %1305 = vmatmul.f32.gmra.mxu1 %v3460_v24 }
 0x18e   : > { %v3882_v9 = vpop.f32.mrf.mxu0 }
 0x190   : > { %2675 = vmatmul.msk.f32.gmra.mxu3 %vm680_vm0, %v3379_v1 }
 0x192   : > { %1308 = vmatmul.f32.gmra.mxu1 %v3493_v34 }
 0x196   : > { %v3887_v31 = vpop.f32.mrf.mxu0 }
 0x198   : > { %2676 = vmatmul.msk.f32.gmra.mxu3 %vm680_vm0, %v3421_v13 }
 0x19a   : > { %1311 = vmatmul.f32.gmra.mxu1 %v3523_v43 }
 0x19b   : > { %v3892_v42 = vpop.f32.mrf.mxu2 }
 0x19e   : > { %v3894_v54 = vpop.f32.mrf.mxu0 }
 0x1a0   : > { %2677 = vmatmul.msk.f32.gmra.mxu3 %vm680_vm0, %v3466_v26 }
 0x1a2   : > { %1314 = vmatmul.f32.gmra.mxu1 %v3544_v48 }
 0x1a3   : > { %v3899_v55 = vpop.f32.mrf.mxu2 }
 0x1a6   : > { %v1199_v63 = vpop.f32.mrf.mxu0 }
 0x1a8   : > { %2678 = vmatmul.msk.f32.gmra.mxu3 %vm680_vm0, %v3499_v36 }
 0x1aa   : > { %1317 = vmatmul.f32.gmra.mxu1 %v3552_v49 }
 0x1ab   : > { %v3904_v1 = vpop.f32.mrf.mxu2 }
 0x1ae   : > { %v1379_v11 = vpop.f32.mrf.mxu0 }
 0x1b0   : > { %2679 = vmatmul.msk.f32.gmra.mxu3 %vm680_vm0, %v3526_v44 }
 0x1b3   : > { %v3908_v13 = vpop.f32.mrf.mxu2 }
 0x1b6   : > { %v1382_v24 = vpop.f32.mrf.mxu0 }
 0x1bb   : > { %v1420_v26 = vpop.f32.mrf.mxu2 }
 0x1bc   : > { %v1421_v34 = vadd.f32 %v1420_v26, %v1379_v11  ;;  %v1673_v26 = vld [vmem:[#allocation2 + $0x1f8] sm:$0xff] }
 0x1be   : > { %v1385_v43 = vpop.f32.mrf.mxu0 }
 0x1c3   : > { %v1423_v48 = vpop.f32.mrf.mxu2 }
 0x1c4   : > { %v1424_v22 = vadd.f32 %v1423_v48, %v1382_v24  ;;  %v1580_v24 = vld [vmem:[#allocation2 + $0xf8] sm:$0xff]  ;;  %v1672_v48 = vld [vmem:[#allocation2 + $0x1f0] sm:$0xff] }
 0x1c5   : > { %v3910_v14 = vpop.f32.mrf.mxu1  ;;  %1610 = vmatpush.msra.mxu2 %v1580_v24 }
 0x1c6   : > { %v1388_v16 = vpop.f32.mrf.mxu0 }
 0x1cb   : > { %v1426_v17 = vpop.f32.mrf.mxu2 }
 0x1cc   : > { %v1427_v46 = vadd.f32 %v1426_v17, %v1385_v43 }
 0x1cd   : > { %v3912_v36 = vpop.f32.mrf.mxu1 }
 0x1ce   : > { %v1391_v18 = vpop.f32.mrf.mxu0 }
 0x1d3   : > { %v1429_v49 = vpop.f32.mrf.mxu2 }
 0x1d4   : > { %v1430_v27 = vadd.f32 %v1429_v49, %v1388_v16  ;;  %v1578_v16 = vld [vmem:[#allocation2 + $0xe8] sm:$0xff] }
 0x1d5   : > { %v1671_v49 = vld [vmem:[#allocation2 + $0x1e8] sm:$0xff] }
 0x1d6   : > { %v3914_v19 = vpop.f32.mrf.mxu1  ;;  %v1394_v28 = vpop.f32.mrf.mxu0 }
 0x1db   : > { %v3916_v25 = vpop.f32.mrf.mxu3  ;;  %v1432_v44 = vpop.f32.mrf.mxu2 }
 0x1dc   : > { %v1433_v40 = vadd.f32 %v1432_v44, %v1391_v18  ;;  %v1577_v18 = vld [vmem:[#allocation2 + $0xe0] sm:$0xff] }
 0x1de   : > { %v1129_v30 = vpop.f32.mrf.mxu1  ;;  %v1397_v5 = vpop.f32.mrf.mxu0 }
 0x1df   : > { %v3918_v15 = vadd.f32 %v1199_v63, %v1129_v30  ;;  %v1576_v30 = vld [vmem:[#allocation2 + $0xd8] sm:$0xff] }
 0x1e3   : > { %v3920_v20 = vpop.f32.mrf.mxu3  ;;  %v1435_v56 = vpop.f32.mrf.mxu2 }
 0x1e4   : > { %v1436_v37 = vadd.f32 %v1435_v56, %v1394_v28  ;;  %v1670_v28 = vld [vmem:[#allocation2 + $0x1e0] sm:$0xff]  ;;  %v1669_v56 = vld [vmem:[#allocation2 + $0x1d8] sm:$0xff] }
 0x1e6   : > { %v1400_v21 = vpop.f32.mrf.mxu0 }
 0x1eb   : > { %v3922_v32 = vpop.f32.mrf.mxu3  ;;  %v1438_v45 = vpop.f32.mrf.mxu2 }
 0x1ec   : > { %v1439_v10 = vadd.f32 %v1438_v45, %v1397_v5  ;;  %v1575_v5 = vld [vmem:[#allocation2 + $0xd0] sm:$0xff] }
 0x1ed   : > { %v1668_v45 = vld [vmem:[#allocation2 + $0x1d0] sm:$0xff] }
 0x1ef   : > { %v3924_v29 = vpop.f32.mrf.mxu1 }
 0x1f3   : > { %v3926_v23 = vpop.f32.mrf.mxu3  ;;  %v1441_v35 = vpop.f32.mrf.mxu2 }
 0x1f4   : > { %v1442_v33 = vadd.f32 %v1441_v35, %v1400_v21  ;;  %v1574_v21 = vld [vmem:[#allocation2 + $0xc8] sm:$0xff] }
 0x1f5   : > { %v1667_v35 = vld [vmem:[#allocation2 + $0x1c8] sm:$0xff] }
 0x1f6   : > { %1498 = vmatpush.msra.mxu3 %v1442_v33  ;;  %v1572_v33 = vld [vmem:[#allocation2 + $0xb8] sm:$0xff] }
 0x1f7   : > { %v1300_v39 = vpop.f32.mrf.mxu1 }
 0x1f8   : > { %1499 = vmatpush.msra.mxu3 %v1439_v10  ;;  %v1666_v10 = vld [vmem:[#allocation2 + $0x1c0] sm:$0xff] }
 0x1fa   : > { %1500 = vmatpush.msra.mxu3 %v1436_v37  ;;  %v1665_v37 = vld [vmem:[#allocation2 + $0x1b8] sm:$0xff] }
 0x1fb   : > { %v1338_v41 = vpop.f32.mrf.mxu3 }
 0x1fc   : > { %1501 = vmatpush.msra.mxu3 %v1433_v40  ;;  %v1339_v44 = vadd.f32 %v1338_v41, %v3924_v29  ;;  %v1573_v29 = vld [vmem:[#allocation2 + $0xc0] sm:$0xff]  ;;  %v1664_v40 = vld [vmem:[#allocation2 + $0x1b0] sm:$0xff]  ;;  %v1663_v41 = vld [vmem:[#allocation2 + $0x1a8] sm:$0xff] }
 0x1fe   : > { %1502 = vmatpush.msra.mxu3 %v1430_v27  ;;  %v1570_v27 = vld [vmem:[#allocation2 + $0xa8] sm:$0xff] }
 0x1ff   : > { %v1303_v62 = vpop.f32.mrf.mxu1 }
 0x200   : > { %1503 = vmatpush.msra.mxu3 %v1427_v46  ;;  %v1569_v46 = vld [vmem:[#allocation2 + $0xa0] sm:$0xff] }
 0x202   : > { %1504 = vmatpush.msra.mxu3 %v1424_v22  ;;  %v1568_v22 = vld [vmem:[#allocation2 + $0x98] sm:$0xff] }
 0x203   : > { %v1341_v8 = vpop.f32.mrf.mxu3 }
 0x204   : > { %1505 = vmatpush.msra.mxu3 %v1421_v34  ;;  %v1579_v34 = vld [vmem:[#allocation2 + $0xf0] sm:$0xff]  ;;  %v1342_v17 = vadd.f32 %v1341_v8, %v1300_v39 }
 0x205   : > { %2696 = vmatmul.msk.f32.vlgmr.msra.gmra.mxu3 %vm680_vm0, %v2688_v6  ;;  %1611 = vmatpush.msra.mxu2 %v1579_v34  ;;  %v1571_v39 = vld [vmem:[#allocation2 + $0xb0] sm:$0xff]  ;;  %v1564_v34 = vld [vmem:[#allocation2 + $0x78] sm:$0xff] }
 0x206   : > { %1703 = vmatpush.msrb.mxu3 %v1673_v26  ;;  %v1567_v8 = vld [vmem:[#allocation2 + $0x90] sm:$0xff]  ;;  %v1814_v26 = vld [vmem:[#allocation2 + $0x298] sm:$0xff]  ;;  %1581 = vmatpush.msra.mxu0 %v1564_v34 }
 0x207   : > { %v1306_v38 = vpop.f32.mrf.mxu1  ;;  %1612 = vmatpush.msra.mxu2 %v1578_v16  ;;  %v1813_v16 = vld [vmem:[#allocation2 + $0x290] sm:$0xff] }
 0x208   : > { %1704 = vmatpush.msrb.mxu3 %v1672_v48  ;;  %v1809_v34 = vld [vmem:[#allocation2 + $0x270] sm:$0xff] }
 0x209   : > { %1613 = vmatpush.msra.mxu2 %v1577_v18 }
 0x20a   : > { %1705 = vmatpush.msrb.mxu3 %v1671_v49  ;;  %v1656_v49 = vld [vmem:[#allocation2 + $0x170] sm:$0xff] }
 0x20b   : > { %v1344_v47 = vpop.f32.mrf.mxu3  ;;  %1614 = vmatpush.msra.mxu2 %v1576_v30  ;;  %v1655_v30 = vld [vmem:[#allocation2 + $0x168] sm:$0xff] }
 0x20c   : > { %v1345_v43 = vadd.f32 %v1344_v47, %v1303_v62  ;;  %1706 = vmatpush.msrb.mxu3 %v1670_v28  ;;  %v1662_v62 = vld [vmem:[#allocation2 + $0x1a0] sm:$0xff]  ;;  %v1659_v47 = vld [vmem:[#allocation2 + $0x188] sm:$0xff] }
 0x20d   : > { %2697 = vmatmul.msk.f32.gmra.mxu3 %vm680_vm0, %v3935_v12  ;;  %1615 = vmatpush.msra.mxu2 %v1575_v5  ;;  %v1562_v28 = vld [vmem:[#allocation2 + $0x68] sm:$0xff]  ;;  %v1223_v5 = vadd.f32 %v3899_v55, %v3920_v20 }
 0x20e   : > { %1707 = vmatpush.msrb.mxu3 %v1669_v56  ;;  %v1651_v55 = vld [vmem:[#allocation2 + $0x148] sm:$0xff] }
 0x20f   : > { %v1309_v61 = vpop.f32.mrf.mxu1  ;;  %1616 = vmatpush.msra.mxu2 %v1574_v21  ;;  %v1654_v21 = vld [vmem:[#allocation2 + $0x160] sm:$0xff] }
 0x210   : > { %1708 = vmatpush.msrb.mxu3 %v1668_v45  ;;  %v1561_v45 = vld [vmem:[#allocation2 + $0x60] sm:$0xff] }
 0x211   : > { %1617 = vmatpush.msra.mxu2 %v1573_v29 }
 0x212   : > { %1709 = vmatpush.msrb.mxu3 %v1667_v35  ;;  %v1560_v35 = vld [vmem:[#allocation2 + $0x58] sm:$0xff] }
 0x213   : > { %v1347_v7 = vpop.f32.mrf.mxu3  ;;  %1618 = vmatpush.msra.mxu2 %v1572_v33 }
 0x214   : > { %v1348_v11 = vadd.f32 %v1347_v7, %v1306_v38  ;;  %1710 = vmatpush.msrb.mxu3 %v1666_v10  ;;  %v1660_v38 = vld [vmem:[#allocation2 + $0x190] sm:$0xff]  ;;  %v1565_v7 = vld [vmem:[#allocation2 + $0x80] sm:$0xff]  ;;  %v1653_v10 = vld [vmem:[#allocation2 + $0x158] sm:$0xff] }
 0x215   : > { %2698 = vmatmul.msk.f32.gmra.mxu3 %vm680_vm0, %v3942_v3  ;;  %1619 = vmatpush.msra.mxu2 %v1571_v39  ;;  %v1652_v39 = vld [vmem:[#allocation2 + $0x150] sm:$0xff] }
 0x216   : > { %1711 = vmatpush.msrb.mxu3 %v1665_v37  ;;  %v1559_v37 = vld [vmem:[#allocation2 + $0x50] sm:$0xff] }
 0x217   : > { %v1312_v60 = vpop.f32.mrf.mxu1  ;;  %1620 = vmatpush.msra.mxu2 %v1570_v27  ;;  %v1558_v27 = vld [vmem:[#allocation2 + $0x48] sm:$0xff] }
 0x218   : > { %1712 = vmatpush.msrb.mxu3 %v1664_v40 }
 0x219   : > { %1621 = vmatpush.msra.mxu2 %v1569_v46  ;;  %v1557_v46 = vld [vmem:[#allocation2 + $0x40] sm:$0xff] }
 0x21a   : > { %1713 = vmatpush.msrb.mxu3 %v1663_v41  ;;  %v1226_v41 = vadd.f32 %v3904_v1, %v3922_v32  ;;  %v1647_v1 = vld [vmem:[#allocation2 + $0x128] sm:$0xff] }
 0x21b   : > { %v1350_v52 = vpop.f32.mrf.mxu3  ;;  %1622 = vmatpush.msra.mxu2 %v1568_v22  ;;  %v1556_v22 = vld [vmem:[#allocation2 + $0x38] sm:$0xff] }
 0x21c   : > { %v1351_v63 = vadd.f32 %v1350_v52, %v1309_v61  ;;  %1714 = vmatpush.msrb.mxu3 %v1662_v62  ;;  %v1658_v61 = vld [vmem:[#allocation2 + $0x180] sm:$0xff]  ;;  %v1825_v52 = vld [vmem:[#allocation2 + $0x2f0] sm:$0xff] }
 0x21d   : > { %2699 = vmatmul.msk.f32.gmra.mxu3 %vm680_vm0, %v3949_v57  ;;  %1623 = vmatpush.msra.mxu2 %v1567_v8  ;;  %v1650_v62 = vld [vmem:[#allocation2 + $0x140] sm:$0xff]  ;;  %v1649_v8 = vld [vmem:[#allocation2 + $0x138] sm:$0xff] }
 0x21f   : > { %v1315_v0 = vpop.f32.mrf.mxu1 }
 0x223   : > { %v1353_v50 = vpop.f32.mrf.mxu3 }
 0x224   : > { %v1354_v58 = vadd.f32 %v1353_v50, %v1312_v60  ;;  %v1823_v60 = vld [vmem:[#allocation2 + $0x2e0] sm:$0xff]  ;;  %v1822_v50 = vld [vmem:[#allocation2 + $0x2d8] sm:$0xff] }
 0x227   : > { %v1318_v59 = vpop.f32.mrf.mxu1 }
 0x22b   : > { %v1356_v2 = vpop.f32.mrf.mxu3 }
 0x22c   : > { %v1357_v51 = vadd.f32 %v1356_v2, %v1315_v0  ;;  %v1821_v0 = vld [vmem:[#allocation2 + $0x2d0] sm:$0xff]  ;;  %v1820_v2 = vld [vmem:[#allocation2 + $0x2c8] sm:$0xff] }
 0x233   : > { %v1359_v4 = vpop.f32.mrf.mxu3 }
 0x234   : > { %v1360_v53 = vadd.f32 %v1359_v4, %v1318_v59  ;;  %v1819_v59 = vld [vmem:[#allocation2 + $0x2c0] sm:$0xff]  ;;  %v1818_v4 = vld [vmem:[#allocation2 + $0x2b8] sm:$0xff] }
 0x236   : > { %1469 = vmatpush.msra.mxu1 %v1360_v53  ;;  %v1817_v53 = vld [vmem:[#allocation2 + $0x2b0] sm:$0xff] }
 0x238   : > { %1470 = vmatpush.msra.mxu1 %v1357_v51  ;;  %v1816_v51 = vld [vmem:[#allocation2 + $0x2a8] sm:$0xff] }
 0x23a   : > { %1471 = vmatpush.msra.mxu1 %v1354_v58  ;;  %v3964_v58 = vld [vmem:[%s4035_s3] sm:$0x3] }
 0x23b   : > { %v3969_v24 = vperm.slane %v3964_v58, 1 }
 0x23c   : > { %1472 = vmatpush.msra.mxu1 %v1351_v63  ;;  %v1815_v63 = vld [vmem:[#allocation2 + $0x2a0] sm:$0xff] }
 0x23e   : > { %1473 = vmatpush.msra.mxu1 %v1348_v11  ;;  %v1220_v11 = vadd.f32 %v3892_v42, %v3916_v25  ;;  %v1811_v25 = vld [vmem:[#allocation2 + $0x280] sm:$0xff] }
 0x240   : > { %1474 = vmatpush.msra.mxu1 %v1345_v43  ;;  %v1657_v43 = vld [vmem:[#allocation2 + $0x178] sm:$0xff] }
 0x242   : > { %1475 = vmatpush.msra.mxu1 %v1342_v17  ;;  %v1563_v17 = vld [vmem:[#allocation2 + $0x70] sm:$0xff] }
 0x243   : > { %1582 = vmatpush.msra.mxu0 %v1563_v17  ;;  %v1804_v17 = vld [vmem:[#allocation2 + $0x248] sm:$0xff] }
 0x244   : > { %1476 = vmatpush.msra.mxu1 %v1339_v44  ;;  %v1812_v44 = vld [vmem:[#allocation2 + $0x288] sm:$0xff] }
 0x245   : > { %2692 = vmatmul.msk.f32.vlgmr.msra.gmra.mxu1 %vm680_vm0, %v2688_v6  ;;  %v1661_v6 = vld [vmem:[#allocation2 + $0x198] sm:$0xff]  ;;  %1583 = vmatpush.msra.mxu0 %v1562_v28  ;;  %v1800_v28 = vld [vmem:[#allocation2 + $0x228] sm:$0xff] }
 0x246   : > { %1715 = vmatpush.msrb.mxu3 %v1661_v6  ;;  %1674 = vmatpush.msrb.mxu1 %v1657_v43  ;;  %v1807_v43 = vld [vmem:[#allocation2 + $0x260] sm:$0xff] }
 0x247   : > { %1584 = vmatpush.msra.mxu0 %v1561_v45 }
 0x248   : > { %1716 = vmatpush.msrb.mxu3 %v1660_v38  ;;  %1675 = vmatpush.msrb.mxu1 %v1656_v49  ;;  %v1803_v49 = vld [vmem:[#allocation2 + $0x240] sm:$0xff] }
 0x249   : > { %1585 = vmatpush.msra.mxu0 %v1560_v35  ;;  %v1796_v35 = vld [vmem:[#allocation2 + $0x208] sm:$0xff] }
 0x24a   : > { %1717 = vmatpush.msrb.mxu3 %v1659_v47  ;;  %1676 = vmatpush.msrb.mxu1 %v1655_v30  ;;  %v1648_v47 = vld [vmem:[#allocation2 + $0x130] sm:$0xff]  ;;  %v1799_v30 = vld [vmem:[#allocation2 + $0x220] sm:$0xff] }
 0x24b   : > { %1586 = vmatpush.msra.mxu0 %v1559_v37  ;;  %v1194_v37 = vadd.f32 %v3887_v31, %v3912_v36 }
 0x24c   : > { %1718 = vmatpush.msrb.mxu3 %v1658_v61  ;;  %1677 = vmatpush.msrb.mxu1 %v1654_v21  ;;  %v1554_v61 = vld [vmem:[#allocation2 + $0x28] sm:$0xff] }
 0x24d   : > { %2693 = vmatmul.msk.f32.gmra.mxu1 %vm680_vm0, %v3935_v12  ;;  %v1566_v12 = vld [vmem:[#allocation2 + $0x88] sm:$0xff]  ;;  %1587 = vmatpush.msra.mxu0 %v1558_v27 }
 0x24e   : > { %1624 = vmatpush.msra.mxu2 %v1566_v12  ;;  %1678 = vmatpush.msrb.mxu1 %v1653_v10  ;;  %v1555_v12 = vld [vmem:[#allocation2 + $0x30] sm:$0xff]  ;;  %v1795_v10 = vld [vmem:[#allocation2 + $0x200] sm:$0xff] }
 0x24f   : > { %1588 = vmatpush.msra.mxu0 %v1557_v46 }
 0x250   : > { %1625 = vmatpush.msra.mxu2 %v1565_v7  ;;  %1679 = vmatpush.msrb.mxu1 %v1652_v39 }
 0x251   : > { %1589 = vmatpush.msra.mxu0 %v1556_v22 }
 0x252   : > { %1680 = vmatpush.msrb.mxu1 %v1651_v55 }
 0x253   : > { %1590 = vmatpush.msra.mxu0 %v1555_v12 }
 0x254   : > { %1681 = vmatpush.msrb.mxu1 %v1650_v62 }
 0x255   : > { %2694 = vmatmul.msk.f32.gmra.mxu1 %vm680_vm0, %v3942_v3  ;;  %v1826_v3 = vld [vmem:[#allocation2 + $0x2f8] sm:$0xff]  ;;  %1591 = vmatpush.msra.mxu0 %v1554_v61 }
 0x256   : > { %1856 = vmatpush.msra.mxu3 %v1826_v3  ;;  %1682 = vmatpush.msrb.mxu1 %v1649_v8  ;;  %v1229_v3 = vadd.f32 %v3908_v13, %v3926_v23  ;;  %v1550_v13 = vld [vmem:[#allocation2 + $0x8] sm:$0xff] }
 0x257   : > { %v1643_v23 = vld [vmem:[#allocation2 + $0x108] sm:$0xff] }
 0x258   : > { %1857 = vmatpush.msra.mxu3 %v1825_v52  ;;  %1683 = vmatpush.msrb.mxu1 %v1648_v47  ;;  %v1553_v52 = vld [vmem:[#allocation2 + $0x20] sm:$0xff] }
 0x259   : > { %1592 = vmatpush.msra.mxu0 %v1553_v52 }
 0x25a   : > { %1684 = vmatpush.msrb.mxu1 %v1647_v1 }
 0x25d   : > { %2695 = vmatmul.msk.f32.gmra.mxu1 %vm680_vm0, %v3949_v57  ;;  %v1824_v57 = vld [vmem:[#allocation2 + $0x2e8] sm:$0xff] }
 0x25e   : > { %1858 = vmatpush.msra.mxu3 %v1824_v57  ;;  %v1646_v57 = vld [vmem:[#allocation2 + $0x120] sm:$0xff] }
 0x25f   : > { %1685 = vmatpush.msrb.mxu1 %v1646_v57 }
 0x260   : > { %1859 = vmatpush.msra.mxu3 %v1823_v60 }
 0x262   : > { %1860 = vmatpush.msra.mxu3 %v1822_v50 }
 0x264   : > { %1861 = vmatpush.msra.mxu3 %v1821_v0  ;;  %v1552_v0 = vld [vmem:[#allocation2 + $0x18] sm:$0xff] }
 0x265   : > { %1593 = vmatpush.msra.mxu0 %v1552_v0 }
 0x266   : > { %1862 = vmatpush.msra.mxu3 %v1820_v2  ;;  %v1645_v2 = vld [vmem:[#allocation2 + $0x118] sm:$0xff] }
 0x267   : > { %1686 = vmatpush.msrb.mxu1 %v1645_v2 }
 0x268   : > { %1863 = vmatpush.msra.mxu3 %v1819_v59 }
 0x26a   : > { %1864 = vmatpush.msra.mxu3 %v1818_v4  ;;  %v1551_v4 = vld [vmem:[#allocation2 + $0x10] sm:$0xff] }
 0x26b   : > { %1594 = vmatpush.msra.mxu0 %v1551_v4 }
 0x26c   : > { %1865 = vmatpush.msra.mxu3 %v1817_v53  ;;  %v1644_v53 = vld [vmem:[#allocation2 + $0x110] sm:$0xff] }
 0x26d   : > { %1687 = vmatpush.msrb.mxu1 %v1644_v53  ;;  %1595 = vmatpush.msra.mxu0 %v1550_v13 }
 0x26e   : > { %1866 = vmatpush.msra.mxu3 %v1816_v51 }
 0x26f   : > { %1688 = vmatpush.msrb.mxu1 %v1643_v23  ;;  %v1733_v23 = vld [vmem:[#allocation4 + $0x10] sm:$0xff] }
 0x270   : > { %1867 = vmatpush.msra.mxu3 %v1815_v63  ;;  %v1549_v63 = vld [vmem:[#allocation2] sm:$0xff] }
 0x271   : > { %1596 = vmatpush.msra.mxu0 %v1549_v63  ;;  %v1639_v63 = vld [vmem:[#allocation4] sm:$0xff] }
 0x272   : > { %1868 = vmatpush.msra.mxu3 %v1814_v26  ;;  %v1810_v26 = vld [vmem:[#allocation2 + $0x278] sm:$0xff] }
 0x274   : > { %1869 = vmatpush.msra.mxu3 %v1813_v16  ;;  %v1805_v16 = vld [vmem:[#allocation2 + $0x250] sm:$0xff] }
 0x276   : > { %1870 = vmatpush.msra.mxu3 %v1812_v44  ;;  %v1801_v44 = vld [vmem:[#allocation2 + $0x230] sm:$0xff] }
 0x278   : > { %1871 = vmatpush.msra.mxu3 %v1811_v25  ;;  %v1529_v25 = vperm.slane %v3964_v58, 0 }
 0x288   : > { %v1507_v48 = vpop.f32.mrf.mxu3 }
 0x289   : > { %v1520_v18 = vadd.f32 %v1507_v48, %v1220_v11  ;;  %v1642_v11 = vld [vmem:[#allocation2 + $0x100] sm:$0xff]  ;;  %v1806_v48 = vld [vmem:[#allocation2 + $0x258] sm:$0xff] }
 0x28a   : > { %1689 = vmatpush.msrb.mxu1 %v1642_v11 }
 0x28b   : > { %v1534_v42 = vadd.f32 %v3969_v24, %v1520_v18  ;;  %v1802_v18 = vld [vmem:[#allocation2 + $0x238] sm:$0xff] }
 0x28c   : > { %1827 = vmatpush.msra.mxu1 %v1810_v26 }
 0x28d   : > { %v3972_v56 = vmax.f32 %v1534_v42, 0.0  ;;  %v1191_v42 = vadd.f32 %v3882_v9, %v3910_v14 }
 0x28e   : > { %1828 = vmatpush.msra.mxu1 %v1809_v34  ;;  %v1734_v34 = vld [vmem:[#allocation4 + $0x18] sm:$0xff] }
 0x28f   : > { %1626 = vmatmul.f32.vlgmr.msra.gmra.mxu2 %v3972_v56  ;;  %1719 = vmatmul.f32.vlgmr.msrb.gmra.mxu3 %v3972_v56 }
 0x290   : > { %v1510_v29 = vpop.f32.mrf.mxu3 }
 0x291   : > { %v1522_v33 = vadd.f32 %v1510_v29, %v1223_v5  ;;  %v1797_v5 = vld [vmem:[#allocation2 + $0x210] sm:$0xff] }
 0x293   : > { %v1536_v40 = vadd.f32 %v3969_v24, %v1522_v33 }
 0x295   : > { %v3979_v20 = vmax.f32 %v1536_v40, 0.0  ;;  %v1197_v40 = vadd.f32 %v3894_v54, %v3914_v19 }
 0x297   : > { %1629 = vmatmul.f32.gmra.mxu2 %v3979_v20  ;;  %1722 = vmatmul.f32.gmra.mxu3 %v3979_v20 }
 0x298   : > { %v1513_v6 = vpop.f32.mrf.mxu3 }
 0x299   : > { %v1524_v38 = vadd.f32 %v1513_v6, %v1226_v41 }
 0x29b   : > { %v1538_v7 = vadd.f32 %v3969_v24, %v1524_v38 }
 0x29d   : > { %v1546_v32 = vmax.f32 %v1538_v7, 0.0 }
 0x29f   : > { %1632 = vmatmul.f32.gmra.mxu2 %v1546_v32  ;;  %1725 = vmatmul.f32.gmra.mxu3 %v1546_v32 }
 0x2a0   : > { %v1516_v60 = vpop.f32.mrf.mxu3 }
 0x2a1   : > { %v1526_v50 = vadd.f32 %v1516_v60, %v1229_v3 }
 0x2a3   : > { %v1540_v59 = vadd.f32 %v3969_v24, %v1526_v50  ;;  %v1808_v24 = vld [vmem:[#allocation2 + $0x268] sm:$0xff] }
 0x2a4   : > { %1829 = vmatpush.msra.mxu1 %v1808_v24  ;;  %v1640_v24 = vld [vmem:[#allocation4 + $0x8] sm:$0xff] }
 0x2a5   : > { %v1548_v51 = vmax.f32 %v1540_v59, 0.0 }
 0x2a6   : > { %1830 = vmatpush.msra.mxu1 %v1807_v43 }
 0x2a7   : > { %1635 = vmatmul.f32.gmra.mxu2 %v1548_v51  ;;  %1728 = vmatmul.f32.gmra.mxu3 %v1548_v51 }
 0x2a8   : > { %1831 = vmatpush.msra.mxu1 %v1806_v48  ;;  %v1942_v48 = vld [vmem:[#allocation6 + $0x78] sm:$0xff] }
 0x2aa   : > { %1832 = vmatpush.msra.mxu1 %v1805_v16  ;;  %v2072_v16 = vld [vmem:[#allocation6 + $0x178] sm:$0xff] }
 0x2ab   : > { %2073 = vmatpush.msrb.mxu3 %v2072_v16 }
 0x2ac   : > { %1833 = vmatpush.msra.mxu1 %v1804_v17  ;;  %v1941_v17 = vld [vmem:[#allocation6 + $0x70] sm:$0xff] }
 0x2ae   : > { %1834 = vmatpush.msra.mxu1 %v1803_v49  ;;  %v2071_v49 = vld [vmem:[#allocation6 + $0x170] sm:$0xff] }
 0x2af   : > { %1872 = vmatmul.f32.vlgmr.msra.gmra.mxu3 %v3972_v56  ;;  %v1798_v56 = vld [vmem:[#allocation2 + $0x218] sm:$0xff] }
 0x2b0   : > { %1835 = vmatpush.msra.mxu1 %v1802_v18  ;;  %v1940_v18 = vld [vmem:[#allocation6 + $0x68] sm:$0xff]  ;;  %2074 = vmatpush.msrb.mxu3 %v2071_v49 }
 0x2b2   : > { %1836 = vmatpush.msra.mxu1 %v1801_v44  ;;  %v2070_v44 = vld [vmem:[#allocation6 + $0x168] sm:$0xff] }
 0x2b3   : > { %2075 = vmatpush.msrb.mxu3 %v2070_v44 }
 0x2b4   : > { %1837 = vmatpush.msra.mxu1 %v1800_v28 }
 0x2b6   : > { %1838 = vmatpush.msra.mxu1 %v1799_v30  ;;  %v1939_v30 = vld [vmem:[#allocation6 + $0x60] sm:$0xff] }
 0x2b7   : > { %1875 = vmatmul.f32.gmra.mxu3 %v3979_v20 }
 0x2b8   : > { %1839 = vmatpush.msra.mxu1 %v1798_v56 }
 0x2ba   : > { %1840 = vmatpush.msra.mxu1 %v1797_v5 }
 0x2bc   : > { %1841 = vmatpush.msra.mxu1 %v1796_v35 }
 0x2be   : > { %1842 = vmatpush.msra.mxu1 %v1795_v10  ;;  %v1886_v10 = vld [vmem:[#allocation4 + $0x20] sm:$0xff] }
 0x2bf   : > { %1878 = vmatmul.f32.gmra.mxu3 %v1546_v32 }
 0x2c2   : > { %v1478_v45 = vpop.f32.mrf.mxu1 }
 0x2c3   : > { %v1519_v21 = vadd.f32 %v1478_v45, %v1191_v42  ;;  %v2069_v42 = vld [vmem:[#allocation6 + $0x160] sm:$0xff] }
 0x2c4   : > { %2076 = vmatpush.msrb.mxu3 %v2069_v42 }
 0x2c5   : > { %v1533_v29 = vadd.f32 %v1529_v25, %v1519_v21 }
 0x2c7   : > { %v1541_v33 = vmax.f32 %v1533_v29, 0.0  ;;  %1881 = vmatmul.f32.gmra.mxu3 %v1548_v51 }
 0x2c9   : > { %1597 = vmatmul.f32.vlgmr.msra.gmra.mxu0 %v1541_v33  ;;  %1690 = vmatmul.f32.vlgmr.msrb.gmra.mxu1 %v1541_v33 }
 0x2ca   : > { %v1481_v9 = vpop.f32.mrf.mxu1 }
 0x2cb   : > { %v1521_v14 = vadd.f32 %v1481_v9, %v1194_v37  ;;  %v1982_v37 = vld [vmem:[#allocation6 + $0xf0] sm:$0xff]  ;;  %v1981_v9 = vld [vmem:[#allocation6 + $0xe8] sm:$0xff] }
 0x2cd   : > { %v1535_v58 = vadd.f32 %v1529_v25, %v1521_v14  ;;  %v1980_v14 = vld [vmem:[#allocation6 + $0xe0] sm:$0xff] }
 0x2cf   : > { %v1543_v39 = vmax.f32 %v1535_v58, 0.0  ;;  %v1887_v58 = vld [vmem:[#allocation4 + $0x28] sm:$0xff] }
 0x2d1   : > { %1600 = vmatmul.f32.gmra.mxu0 %v1543_v39  ;;  %1693 = vmatmul.f32.gmra.mxu1 %v1543_v39 }
 0x2d2   : > { %v1484_v27 = vpop.f32.mrf.mxu1 }
 0x2d3   : > { %v1523_v55 = vadd.f32 %v1484_v27, %v1197_v40  ;;  %v1979_v40 = vld [vmem:[#allocation6 + $0xd8] sm:$0xff] }
 0x2d4   : > { %v2068_v27 = vld [vmem:[#allocation6 + $0x158] sm:$0xff] }
 0x2d5   : > { %v1537_v20 = vadd.f32 %v1529_v25, %v1523_v55  ;;  %v1937_v55 = vld [vmem:[#allocation6 + $0x50] sm:$0xff]  ;;  %2077 = vmatpush.msrb.mxu3 %v2068_v27 }
 0x2d6   : > { %v2177_v27 = vld [vmem:[#allocation9 + $0xd8] sm:$0xff] }
 0x2d7   : > { %v1545_v41 = vmax.f32 %v1537_v20, 0.0  ;;  %v1978_v20 = vld [vmem:[#allocation6 + $0xd0] sm:$0xff] }
 0x2d9   : > { %1603 = vmatmul.f32.gmra.mxu0 %v1545_v41  ;;  %1696 = vmatmul.f32.gmra.mxu1 %v1545_v41 }
 0x2da   : > { %v1487_v46 = vpop.f32.mrf.mxu1 }
 0x2db   : > { %v1525_v31 = vadd.f32 %v1487_v46, %v3918_v15  ;;  %v1936_v46 = vld [vmem:[#allocation6 + $0x48] sm:$0xff] }
 0x2dd   : > { %v1539_v36 = vadd.f32 %v1529_v25, %v1525_v31  ;;  %v1977_v31 = vld [vmem:[#allocation6 + $0xc8] sm:$0xff] }
 0x2df   : > { %v1547_v62 = vmax.f32 %v1539_v36, 0.0  ;;  %v2066_v36 = vld [vmem:[#allocation6 + $0x148] sm:$0xff] }
 0x2e1   : > { %1606 = vmatmul.f32.gmra.mxu0 %v1547_v62  ;;  %1699 = vmatmul.f32.gmra.mxu1 %v1547_v62 }
 0x2e9   : > { %1843 = vmatmul.f32.vlgmr.msra.gmra.mxu1 %v1541_v33  ;;  %v1983_v33 = vld [vmem:[#allocation6 + $0xf8] sm:$0xff] }
 0x2f1   : > { %1846 = vmatmul.f32.gmra.mxu1 %v1543_v39  ;;  %v1938_v39 = vld [vmem:[#allocation6 + $0x58] sm:$0xff] }
 0x2f9   : > { %1849 = vmatmul.f32.gmra.mxu1 %v1545_v41  ;;  %v2067_v41 = vld [vmem:[#allocation6 + $0x150] sm:$0xff] }
 0x2fa   : > { %2078 = vmatpush.msrb.mxu3 %v2067_v41  ;;  %v2174_v41 = vld [vmem:[#allocation9 + $0xc0] sm:$0xff] }
 0x2fc   : > { %2079 = vmatpush.msrb.mxu3 %v2066_v36  ;;  %v2171_v36 = vld [vmem:[#allocation9 + $0xa8] sm:$0xff] }
 0x301   : > { %1852 = vmatmul.f32.gmra.mxu1 %v1547_v62  ;;  %v1935_v62 = vld [vmem:[#allocation6 + $0x40] sm:$0xff] }
 0x312   : > { %v1720_v54 = vpop.f32.mrf.mxu3  ;;  %v1627_v19 = vpop.f32.mrf.mxu2 }
 0x31a   : > { %v1723_v22 = vpop.f32.mrf.mxu3  ;;  %v1630_v38 = vpop.f32.mrf.mxu2 }
 0x322   : > { %v1726_v12 = vpop.f32.mrf.mxu3  ;;  %v1633_v61 = vpop.f32.mrf.mxu2 }
 0x32a   : > { %v1729_v1 = vpop.f32.mrf.mxu3  ;;  %v1636_v3 = vpop.f32.mrf.mxu2 }
 0x332   : > { %v1873_v0 = vpop.f32.mrf.mxu3 }
 0x33a   : > { %v1876_v26 = vpop.f32.mrf.mxu3 }
 0x342   : > { %v1879_v28 = vpop.f32.mrf.mxu3 }
 0x346   : > { %v1598_v6 = vpop.f32.mrf.mxu0  ;;  %v1691_v8 = vpop.f32.mrf.mxu1 }
 0x347   : > { %v1628_v51 = vadd.f32 %v1627_v19, %v1598_v6  ;;  %v1721_v13 = vadd.f32 %v1720_v54, %v1691_v8  ;;  %v1976_v54 = vld [vmem:[#allocation6 + $0xc0] sm:$0xff]  ;;  %v1975_v6 = vld [vmem:[#allocation6 + $0xb8] sm:$0xff] }
 0x348   : > { %v2065_v19 = vld [vmem:[#allocation6 + $0x140] sm:$0xff]  ;;  %v2064_v8 = vld [vmem:[#allocation6 + $0x138] sm:$0xff] }
 0x349   : > { %2080 = vmatpush.msrb.mxu3 %v2065_v19  ;;  %v2139_v19 = vld [vmem:[#allocation9 + $0x58] sm:$0xff] }
 0x34a   : > { %v1882_v56 = vpop.f32.mrf.mxu3 }
 0x34b   : > { %2081 = vmatpush.msrb.mxu3 %v2064_v8  ;;  %v2136_v8 = vld [vmem:[#allocation9 + $0x40] sm:$0xff] }
 0x34e   : > { %v1601_v47 = vpop.f32.mrf.mxu0  ;;  %v1694_v7 = vpop.f32.mrf.mxu1 }
 0x34f   : > { %v1631_v4 = vadd.f32 %v1630_v38, %v1601_v47  ;;  %v1724_v53 = vadd.f32 %v1723_v22, %v1694_v7  ;;  %v1934_v22 = vld [vmem:[#allocation6 + $0x38] sm:$0xff]  ;;  %v1933_v38 = vld [vmem:[#allocation6 + $0x30] sm:$0xff]  ;;  %v1932_v7 = vld [vmem:[#allocation6 + $0x28] sm:$0xff] }
 0x350   : > { %v2063_v47 = vld [vmem:[#allocation6 + $0x130] sm:$0xff] }
 0x351   : > { %2082 = vmatpush.msrb.mxu3 %v2063_v47  ;;  %v2133_v47 = vld [vmem:[#allocation9 + $0x28] sm:$0xff] }
 0x356   : > { %v1604_v15 = vpop.f32.mrf.mxu0  ;;  %v1697_v32 = vpop.f32.mrf.mxu1 }
 0x357   : > { %v1634_v2 = vadd.f32 %v1633_v61, %v1604_v15  ;;  %v1727_v59 = vadd.f32 %v1726_v12, %v1697_v32  ;;  %v1974_v12 = vld [vmem:[#allocation6 + $0xb0] sm:$0xff]  ;;  %v1973_v61 = vld [vmem:[#allocation6 + $0xa8] sm:$0xff]  ;;  %v1931_v15 = vld [vmem:[#allocation6 + $0x20] sm:$0xff] }
 0x358   : > { %v1972_v32 = vld [vmem:[#allocation6 + $0xa0] sm:$0xff] }
 0x35e   : > { %v1607_v52 = vpop.f32.mrf.mxu0  ;;  %v1700_v57 = vpop.f32.mrf.mxu1 }
 0x35f   : > { %v1637_v60 = vadd.f32 %v1636_v3, %v1607_v52  ;;  %v1730_v50 = vadd.f32 %v1729_v1, %v1700_v57  ;;  %v2062_v1 = vld [vmem:[#allocation6 + $0x128] sm:$0xff]  ;;  %v2061_v3 = vld [vmem:[#allocation6 + $0x120] sm:$0xff]  ;;  %v1930_v52 = vld [vmem:[#allocation6 + $0x18] sm:$0xff] }
 0x360   : > { %2083 = vmatpush.msrb.mxu3 %v2062_v1  ;;  %v1971_v57 = vld [vmem:[#allocation6 + $0x98] sm:$0xff]  ;;  %v2169_v1 = vld [vmem:[#allocation9 + $0x98] sm:$0xff] }
 0x361   : > { %1754 = vmatpush.msrb.mxu0 %v1730_v50  ;;  %1783 = vmatpush.msrb.mxu2 %v1637_v60  ;;  %v2060_v60 = vld [vmem:[#allocation6 + $0x118] sm:$0xff]  ;;  %v1929_v50 = vld [vmem:[#allocation6 + $0x10] sm:$0xff] }
 0x362   : > { %2084 = vmatpush.msrb.mxu3 %v2061_v3  ;;  %v2130_v3 = vld [vmem:[#allocation9 + $0x10] sm:$0xff] }
 0x363   : > { %1755 = vmatpush.msrb.mxu0 %v1727_v59  ;;  %1784 = vmatpush.msrb.mxu2 %v1634_v2  ;;  %v2059_v2 = vld [vmem:[#allocation6 + $0x110] sm:$0xff]  ;;  %v1928_v59 = vld [vmem:[#allocation6 + $0x8] sm:$0xff] }
 0x364   : > { %2085 = vmatpush.msrb.mxu3 %v2060_v60  ;;  %v2166_v60 = vld [vmem:[#allocation9 + $0x80] sm:$0xff] }
 0x365   : > { %1756 = vmatpush.msrb.mxu0 %v1724_v53  ;;  %1785 = vmatpush.msrb.mxu2 %v1631_v4  ;;  %v1969_v4 = vld [vmem:[#allocation6 + $0x88] sm:$0xff] }
 0x366   : > { %v1844_v11 = vpop.f32.mrf.mxu1  ;;  %2086 = vmatpush.msrb.mxu3 %v2059_v2  ;;  %v2058_v53 = vld [vmem:[#allocation6 + $0x108] sm:$0xff] }
 0x367   : > { %1757 = vmatpush.msrb.mxu0 %v1721_v13  ;;  %1786 = vmatpush.msrb.mxu2 %v1628_v51  ;;  %v1874_v29 = vadd.f32 %v1873_v0, %v1844_v11  ;;  %v1970_v0 = vld [vmem:[#allocation6 + $0x90] sm:$0xff]  ;;  %v1927_v51 = vld [vmem:[#allocation6] sm:$0xff] }
 0x368   : > { %2700 = vmatmul.msk.f32.vlgmr.msrb.gmra.mxu0 %vm1735_vm1, %v1733_v23  ;;  %2702 = vmatmul.msk.f32.vlgmr.msrb.gmra.mxu2 %vm1735_vm1, %v1639_v63  ;;  %v1968_v13 = vld [vmem:[#allocation6 + $0x80] sm:$0xff] }
 0x369   : > { %1943 = vmatpush.msra.mxu2 %v1942_v48  ;;  %2087 = vmatpush.msrb.mxu3 %v2058_v53  ;;  %v2057_v23 = vld [vmem:[#allocation6 + $0x100] sm:$0xff]  ;;  %v2790_v53 = vld [vmem:[%s4041_s9] ss:$0 sm:$0xff] }
 0x36b   : > { %1944 = vmatpush.msra.mxu2 %v1941_v17  ;;  %2088 = vmatpush.msrb.mxu3 %v2057_v23 }
 0x36d   : > { %1945 = vmatpush.msra.mxu2 %v1940_v18 }
 0x36e   : > { %v1847_v43 = vpop.f32.mrf.mxu1 }
 0x36f   : > { %1946 = vmatpush.msra.mxu2 %v1939_v30  ;;  %v1877_v35 = vadd.f32 %v1876_v26, %v1847_v43 }
 0x370   : > { %2701 = vmatmul.msk.f32.gmra.mxu0 %vm1735_vm1, %v1734_v34  ;;  %2703 = vmatmul.msk.f32.gmra.mxu2 %vm1735_vm1, %v1640_v24  ;;  %v2789_v24 = vld [vmem:[%s4038_s6] ss:$0 sm:$0xff] }
 0x371   : > { %1947 = vmatpush.msra.mxu2 %v1938_v39  ;;  %v2179_v39 = vld [vmem:[#allocation9 + $0xe8] sm:$0xff] }
 0x373   : > { %1948 = vmatpush.msra.mxu2 %v1937_v55  ;;  %v2176_v55 = vld [vmem:[#allocation9 + $0xd0] sm:$0xff] }
 0x375   : > { %1949 = vmatpush.msra.mxu2 %v1936_v46  ;;  %v2173_v46 = vld [vmem:[#allocation9 + $0xb8] sm:$0xff] }
 0x376   : > { %v1850_v25 = vpop.f32.mrf.mxu1 }
 0x377   : > { %v1880_v21 = vadd.f32 %v1879_v28, %v1850_v25  ;;  %1950 = vmatpush.msra.mxu2 %v1935_v62  ;;  %v2141_v62 = vld [vmem:[#allocation9 + $0x68] sm:$0xff] }
 0x379   : > { %1951 = vmatpush.msra.mxu2 %v1934_v22  ;;  %v2138_v22 = vld [vmem:[#allocation9 + $0x50] sm:$0xff] }
 0x37b   : > { %1952 = vmatpush.msra.mxu2 %v1933_v38  ;;  %v2135_v38 = vld [vmem:[#allocation9 + $0x38] sm:$0xff] }
 0x37d   : > { %1953 = vmatpush.msra.mxu2 %v1932_v7  ;;  %v2170_v7 = vld [vmem:[#allocation9 + $0xa0] sm:$0xff] }
 0x37e   : > { %v1853_v5 = vpop.f32.mrf.mxu1 }
 0x37f   : > { %v1883_v45 = vadd.f32 %v1882_v56, %v1853_v5  ;;  %1954 = vmatpush.msra.mxu2 %v1931_v15  ;;  %v2143_v56 = vld [vmem:[#allocation9 + $0x78] sm:$0xff] }
 0x380   : > { %v2131_v15 = vld [vmem:[#allocation9 + $0x18] sm:$0xff] }
 0x381   : > { %1906 = vmatpush.msra.mxu0 %v1883_v45  ;;  %1955 = vmatpush.msra.mxu2 %v1930_v52  ;;  %v2167_v52 = vld [vmem:[#allocation9 + $0x88] sm:$0xff] }
 0x383   : > { %1907 = vmatpush.msra.mxu0 %v1880_v21  ;;  %1956 = vmatpush.msra.mxu2 %v1929_v50  ;;  %v2142_v21 = vld [vmem:[#allocation9 + $0x70] sm:$0xff]  ;;  %v2128_v50 = vld [vmem:[#allocation9] sm:$0xff] }
 0x385   : > { %1908 = vmatpush.msra.mxu0 %v1877_v35  ;;  %1957 = vmatpush.msra.mxu2 %v1928_v59 }
 0x387   : > { %1909 = vmatpush.msra.mxu0 %v1874_v29  ;;  %1958 = vmatpush.msra.mxu2 %v1927_v51  ;;  %v2008_v29 = vld [vmem:[#allocation7 + $0x8] sm:$0xff] }
 0x388   : > { %2704 = vmatmul.msk.f32.vlgmr.msra.gmra.mxu0 %vm1735_vm1, %v1886_v10 }
 0x389   : > { %1984 = vmatpush.msrb.mxu0 %v1983_v33 }
 0x38b   : > { %1985 = vmatpush.msrb.mxu0 %v1982_v37  ;;  %v1966_v37 = vld [vmem:[#allocation7] sm:$0xff] }
 0x38d   : > { %1986 = vmatpush.msrb.mxu0 %v1981_v9  ;;  %v2097_v9 = vld [vmem:[#allocation7 + $0x10] sm:$0xff] }
 0x38f   : > { %1987 = vmatpush.msrb.mxu0 %v1980_v14  ;;  %v2181_v14 = vld [vmem:[#allocation9 + $0xf8] sm:$0xff] }
 0x390   : > { %2705 = vmatmul.msk.f32.gmra.mxu0 %vm1735_vm1, %v1887_v58  ;;  %v2180_v58 = vld [vmem:[#allocation9 + $0xf0] sm:$0xff] }
 0x391   : > { %1988 = vmatpush.msrb.mxu0 %v1979_v40  ;;  %v2178_v40 = vld [vmem:[#allocation9 + $0xe0] sm:$0xff] }
 0x393   : > { %1989 = vmatpush.msrb.mxu0 %v1978_v20  ;;  %v2175_v20 = vld [vmem:[#allocation9 + $0xc8] sm:$0xff] }
 0x395   : > { %1990 = vmatpush.msrb.mxu0 %v1977_v31  ;;  %v2172_v31 = vld [vmem:[#allocation9 + $0xb0] sm:$0xff] }
 0x397   : > { %1991 = vmatpush.msrb.mxu0 %v1976_v54  ;;  %v2140_v54 = vld [vmem:[#allocation9 + $0x60] sm:$0xff] }
 0x399   : > { %1992 = vmatpush.msrb.mxu0 %v1975_v6  ;;  %v2137_v6 = vld [vmem:[#allocation9 + $0x48] sm:$0xff] }
 0x39b   : > { %1993 = vmatpush.msrb.mxu0 %v1974_v12  ;;  %v2134_v12 = vld [vmem:[#allocation9 + $0x30] sm:$0xff] }
 0x39d   : > { %1994 = vmatpush.msrb.mxu0 %v1973_v61  ;;  %v2132_v61 = vld [vmem:[#allocation9 + $0x20] sm:$0xff] }
 0x39f   : > { %1995 = vmatpush.msrb.mxu0 %v1972_v32  ;;  %v2168_v32 = vld [vmem:[#allocation9 + $0x90] sm:$0xff] }
 0x3a1   : > { %1996 = vmatpush.msrb.mxu0 %v1971_v57  ;;  %v2129_v57 = vld [vmem:[#allocation9 + $0x8] sm:$0xff] }
 0x3a3   : > { %1997 = vmatpush.msrb.mxu0 %v1970_v0 }
 0x3a5   : > { %1998 = vmatpush.msrb.mxu0 %v1969_v4 }
 0x3a7   : > { %1999 = vmatpush.msrb.mxu0 %v1968_v13 }
 0x3a9   : > { %2144 = vmatpush.msra.mxu0 %v2143_v56  ;;  %v2255_v56 = vld [vmem:[#allocation9 + $0x118] sm:$0xff] }
 0x3ab   : > { %2145 = vmatpush.msra.mxu0 %v2142_v21  ;;  %v2252_v21 = vld [vmem:[#allocation9 + $0x100] sm:$0xff] }
 0x3ad   : > { %2146 = vmatpush.msra.mxu0 %v2141_v62 }
 0x3af   : > { %2147 = vmatpush.msra.mxu0 %v2140_v54 }
 0x3b1   : > { %2148 = vmatpush.msra.mxu0 %v2139_v19 }
 0x3b3   : > { %2149 = vmatpush.msra.mxu0 %v2138_v22 }
 0x3b5   : > { %2150 = vmatpush.msra.mxu0 %v2137_v6 }
 0x3b7   : > { %2151 = vmatpush.msra.mxu0 %v2136_v8 }
 0x3b9   : > { %2152 = vmatpush.msra.mxu0 %v2135_v38 }
 0x3bb   : > { %2153 = vmatpush.msra.mxu0 %v2134_v12 }
 0x3bd   : > { %2154 = vmatpush.msra.mxu0 %v2133_v47 }
 0x3bf   : > { %2155 = vmatpush.msra.mxu0 %v2132_v61 }
 0x3c1   : > { %2156 = vmatpush.msra.mxu0 %v2131_v15 }
 0x3c3   : > { %2157 = vmatpush.msra.mxu0 %v2130_v3 }
 0x3c5   : > { %2158 = vmatpush.msra.mxu0 %v2129_v57 }
 0x3c7   : > { %2159 = vmatpush.msra.mxu0 %v2128_v50 }
 0x3e5   : > { %v1759_v63 = vpop.f32.mrf.mxu0 }
 0x3eb   : > { %v1788_v26 = vpop.f32.mrf.mxu2 }
 0x3ec   : > { %v1789_v34 = vadd.f32 %v1788_v26, %v1759_v63  ;;  %v2164_v63 = vld [vmem:[#allocation10] sm:$0xf]  ;;  %v2267_v26 = vld [vmem:[#allocation9 + $0x178] sm:$0xff] }
 0x3ed   : > { %v1762_v11 = vpop.f32.mrf.mxu0 }
 0x3f3   : > { %v1791_v17 = vpop.f32.mrf.mxu2 }
 0x3f4   : > { %v1792_v18 = vadd.f32 %v1791_v17, %v1762_v11  ;;  %v2263_v17 = vld [vmem:[#allocation9 + $0x158] sm:$0xff] }
 0x405   : > { %v1911_v43 = vpop.f32.mrf.mxu0 }
 0x406   : > { %v1917_v48 = vadd.f32 %v1911_v43, %v1789_v34  ;;  %v2266_v43 = vld [vmem:[#allocation9 + $0x170] sm:$0xff] }
 0x408   : > { %v1923_v16 = vadd.f32 %v2789_v24, %v1917_v48  ;;  %v2265_v48 = vld [vmem:[#allocation9 + $0x168] sm:$0xff] }
 0x40a   : > { %v1925_v49 = vmax.f32 %v1923_v16, 0.0  ;;  %v2264_v16 = vld [vmem:[#allocation9 + $0x160] sm:$0xff] }
 0x40c   : > { %2320 = vst [vmem:[%s607_s20] sm:$0xff] %v1925_v49  ;;  %1959 = vmatmul.f32.vlgmr.msra.gmra.mxu2 %v1925_v49  ;;  %2000 = vmatmul.f32.vlgmr.msrb.gmra.mxu0 %v1925_v49 }
 0x40d   : > { %2089 = vmatmul.f32.vlgmr.msrb.gmra.mxu3 %v1925_v49  ;;  %v1914_v44 = vpop.f32.mrf.mxu0  ;;  %v2262_v49 = vld [vmem:[#allocation9 + $0x150] sm:$0xff] }
 0x40e   : > { %v1918_v28 = vadd.f32 %v1914_v44, %v1792_v18  ;;  %v2261_v18 = vld [vmem:[#allocation9 + $0x148] sm:$0xff]  ;;  %v2260_v44 = vld [vmem:[#allocation9 + $0x140] sm:$0xff] }
 0x410   : > { %v1924_v30 = vadd.f32 %v2789_v24, %v1918_v28  ;;  %v2203_v24 = vld [vmem:[#allocation10 + $0x4] sm:$0xf]  ;;  %v2259_v28 = vld [vmem:[#allocation9 + $0x138] sm:$0xff] }
 0x412   : > { %v1926_v42 = vmax.f32 %v1924_v30, 0.0  ;;  %v2258_v30 = vld [vmem:[#allocation9 + $0x130] sm:$0xff] }
 0x414   : > { %2321 = vst [vmem:[%s607_s20 + $0x8] sm:$0xff] %v1926_v42  ;;  %1962 = vmatmul.f32.gmra.mxu2 %v1926_v42  ;;  %2003 = vmatmul.f32.gmra.mxu0 %v1926_v42 }
 0x415   : > { %2092 = vmatmul.f32.gmra.mxu3 %v1926_v42  ;;  %v2257_v42 = vld [vmem:[#allocation9 + $0x128] sm:$0xff] }
 0x489   : > { %v2001_v25 = vpop.f32.mrf.mxu0 }
 0x48f   : > { %v1960_v5 = vpop.f32.mrf.mxu2 }
 0x490   : > { %v2090_v45 = vpop.f32.mrf.mxu3 }
 0x491   : > { %v2004_v35 = vpop.f32.mrf.mxu0 }
 0x492   : > { %2027 = vmatpush.msrb.mxu1 %v2004_v35 }
 0x494   : > { %2028 = vmatpush.msrb.mxu1 %v2001_v25  ;;  %v2256_v25 = vld [vmem:[#allocation9 + $0x120] sm:$0xff] }
 0x495   : > { %2706 = vmatmul.msk.f32.vlgmr.msrb.gmra.mxu1 %vm2009_vm2, %v2008_v29  ;;  %v2289_v29 = vld [vmem:[#allocation10 + $0x8] sm:$0xf] }
 0x497   : > { %v1963_v10 = vpop.f32.mrf.mxu2 }
 0x498   : > { %v2093_v33 = vpop.f32.mrf.mxu3  ;;  %2050 = vmatpush.msrb.mxu2 %v1963_v10 }
 0x499   : > { %2115 = vmatpush.msra.mxu3 %v2093_v33 }
 0x49a   : > { %2051 = vmatpush.msrb.mxu2 %v1960_v5  ;;  %v2254_v5 = vld [vmem:[#allocation9 + $0x110] sm:$0xff] }
 0x49b   : > { %2116 = vmatpush.msra.mxu3 %v2090_v45  ;;  %2707 = vmatmul.msk.f32.vlgmr.msrb.gmra.mxu2 %vm2009_vm2, %v1966_v37  ;;  %v2253_v45 = vld [vmem:[#allocation9 + $0x108] sm:$0xff] }
 0x49c   : > { %2708 = vmatmul.msk.f32.vlgmr.msra.gmra.mxu3 %vm2009_vm2, %v2097_v9  ;;  %2182 = vmatpush.msra.mxu2 %v2181_v14  ;;  %v2791_v9 = vld [vmem:[%s4044_s12] ss:$0 sm:$0xff] }
 0x49e   : > { %2183 = vmatpush.msra.mxu2 %v2180_v58 }
 0x4a0   : > { %2184 = vmatpush.msra.mxu2 %v2179_v39 }
 0x4a2   : > { %2185 = vmatpush.msra.mxu2 %v2178_v40 }
 0x4a4   : > { %2186 = vmatpush.msra.mxu2 %v2177_v27 }
 0x4a6   : > { %2187 = vmatpush.msra.mxu2 %v2176_v55 }
 0x4a8   : > { %2188 = vmatpush.msra.mxu2 %v2175_v20 }
 0x4aa   : > { %2189 = vmatpush.msra.mxu2 %v2174_v41 }
 0x4ac   : > { %2190 = vmatpush.msra.mxu2 %v2173_v46 }
 0x4ae   : > { %2191 = vmatpush.msra.mxu2 %v2172_v31 }
 0x4b0   : > { %2192 = vmatpush.msra.mxu2 %v2171_v36 }
 0x4b2   : > { %2193 = vmatpush.msra.mxu2 %v2170_v7 }
 0x4b4   : > { %2194 = vmatpush.msra.mxu2 %v2169_v1 }
 0x4b6   : > { %2195 = vmatpush.msra.mxu2 %v2168_v32 }
 0x4b8   : > { %2196 = vmatpush.msra.mxu2 %v2167_v52 }
 0x4ba   : > { %2197 = vmatpush.msra.mxu2 %v2166_v60 }
 0x512   : > { %v2030_v0 = vpop.f32.mrf.mxu1 }
 0x51e   : > { %v2053_v2 = vpop.f32.mrf.mxu2 }
 0x51f   : > { %v2054_v59 = vadd.f32 %v2053_v2, %v2030_v0  ;;  %v2118_v4 = vpop.f32.mrf.mxu3 }
 0x521   : > { %v2121_v51 = vadd.f32 %v2118_v4, %v2054_v59 }
 0x523   : > { %v2126_v13 = vadd.f32 %v2790_v53, %v2121_v51 }
 0x525   : > { %v2127_v23 = vmax.f32 %v2126_v13, 0.0 }
 0x527   : > { %2322 = vst [vmem:[%s611_s18] sm:$0xff] %v2127_v23  ;;  %2198 = vmatmul.f32.vlgmr.msra.gmra.mxu2 %v2127_v23  ;;  %2160 = vmatmul.f32.vlgmr.msra.gmra.mxu0 %v2127_v23 }
 0x5a4   : > { %v2161_v11 = vpop.f32.mrf.mxu0 }
 0x5a5   : > { %2246 = vmatpush.msrb.mxu3 %v2161_v11 }
 0x5a6   : > { %2710 = vmatmul.msk.f32.vlgmr.msrb.gmra.mxu3 %vm2204_vm3, %v2164_v63 }
 0x5aa   : > { %v2199_v34 = vpop.f32.mrf.mxu2 }
 0x5ab   : > { %2223 = vmatpush.msra.mxu1 %v2199_v34 }
 0x5ac   : > { %2709 = vmatmul.msk.f32.vlgmr.msra.gmra.mxu1 %vm2204_vm3, %v2203_v24 }
 0x5ad   : > { %2268 = vmatpush.msrb.mxu1 %v2267_v26 }
 0x5af   : > { %2269 = vmatpush.msrb.mxu1 %v2266_v43 }
 0x5b1   : > { %2270 = vmatpush.msrb.mxu1 %v2265_v48 }
 0x5b3   : > { %2271 = vmatpush.msrb.mxu1 %v2264_v16 }
 0x5b5   : > { %2272 = vmatpush.msrb.mxu1 %v2263_v17 }
 0x5b7   : > { %2273 = vmatpush.msrb.mxu1 %v2262_v49 }
 0x5b9   : > { %2274 = vmatpush.msrb.mxu1 %v2261_v18 }
 0x5bb   : > { %2275 = vmatpush.msrb.mxu1 %v2260_v44 }
 0x5bd   : > { %2276 = vmatpush.msrb.mxu1 %v2259_v28 }
 0x5bf   : > { %2277 = vmatpush.msrb.mxu1 %v2258_v30 }
 0x5c1   : > { %2278 = vmatpush.msrb.mxu1 %v2257_v42 }
 0x5c3   : > { %2279 = vmatpush.msrb.mxu1 %v2256_v25 }
 0x5c5   : > { %2280 = vmatpush.msrb.mxu1 %v2255_v56 }
 0x5c7   : > { %2281 = vmatpush.msrb.mxu1 %v2254_v5 }
 0x5c9   : > { %2282 = vmatpush.msrb.mxu1 %v2253_v45 }
 0x5cb   : > { %2283 = vmatpush.msrb.mxu1 %v2252_v21 }
 0x5cc   : > { %2284 = vmatmul.f32.vlgmr.msrb.gmra.mxu1 %v2127_v23 }
 0x629   : > { %v2225_v35 = vpop.f32.mrf.mxu1  ;;  %v2248_v33 = vpop.f32.mrf.mxu3 }
 0x62a   : > { %v2249_v37 = vadd.f32 %v2248_v33, %v2225_v35 }
 0x649   : > { %v2285_v10 = vpop.f32.mrf.mxu1 }
 0x64a   : > { %2308 = vmatpush.msra.mxu3 %v2285_v10 }
 0x64b   : > { %2711 = vmatmul.msk.f32.vlgmr.msra.gmra.mxu3 %vm2204_vm3, %v2289_v29 }
 0x6ce   : > { %v2310_v14 = vpop.f32.mrf.mxu3 }
 0x6cf   : > { %v2313_v58 = vadd.f32 %v2310_v14, %v2249_v37 }
 0x6d1   : > { %v2318_v39 = vadd.f32 %v2791_v9, %v2313_v58 }
 0x6d3   : > { %v2319_v40 = vmax.f32 %v2318_v39, 0.0 }
 0x6d5   : > { %2323 = vst [vmem:[%s615_s23] sm:$0xf] %v2319_v40 }
 0x6d6 PF: > { %s4060_s29 = sld [smem:[#allocation16_spill]] }
 0x6dc   : > { %s30_s18 = sadd.s32 1, %s4060_s29  }
 0x6dd   : > { %p27_p7 = scmp.ge.s32.totalorder %s30_s18, 4  }
 0x6df   :  { %29 = sbr.rel (!%p27_p7) target bundleno = 9 (0x9), region = 167 }
 0x6e4   :  { %2373 = vsyncpa [#allocation3], 1 }
 0x6e5   :  { %2375 = vsyncpa [#allocation3 + $0x1], 1 }
 0x6e6   :  { %2376 = vsyncpa [#allocation5], 1 }
 0x6e7   :  { %2377 = vsyncpa [#allocation8], 1 }
 0x6e8   :  { %2378 = vsyncpa [#allocation11], 1 }

</bundles_post_ra>
